<compile_context>
chip_gen: v7x
topology: tpu7x:2x2x1
jax: 0.10.0
libtpu: 0.0.40
codegen_flags: <defaults>
</compile_context>

<pallas_src>
import functools

import numpy as np
import jax
import jax.numpy as jnp
from jax import lax
from jax.experimental import pallas as pl
from jax.experimental.pallas import tpu as pltpu

# ---- scaled-down CLIP ViT-B/32 hyper-params (small shapes for the demo) ----
IMG_IN   = 16            # input spatial size
IMG_OUT  = 32            # preprocessor target size (stand-in for 224)
PATCH    = 8             # patch size (stand-in for 32)
HIDDEN   = 32
HEADS    = 4
HEAD_DIM = HIDDEN // HEADS
MLP_DIM  = 4 * HIDDEN
LAYERS   = 2
PROJ_DIM = 16
GRID_HW  = IMG_OUT // PATCH            # 4
N_PATCH  = GRID_HW * GRID_HW           # 16
SEQ      = N_PATCH + 1                 # 17 real tokens (CLS + patches)
S_PAD    = ((SEQ + 7) // 8) * 8        # 24: sublane-aligned sequence length
D_PATCH  = 3 * PATCH * PATCH           # 192
EPS      = 1e-5
NEG_INF  = -1e9

CLIP_MEAN = (0.48145466, 0.4578275, 0.40821073)
CLIP_STD  = (0.26862954, 0.26130258, 0.27577711)


# --------------------- host-side constants (built once) ---------------------
def _bilinear_matrix(out_size, in_size):
    # align_corners=False bilinear weights (torch F.interpolate convention).
    scale = in_size / out_size
    i = np.arange(out_size, dtype=np.float64)
    src = np.maximum((i + 0.5) * scale - 0.5, 0.0)
    i0 = np.clip(np.floor(src).astype(np.int64), 0, in_size - 1)
    i1 = np.minimum(i0 + 1, in_size - 1)
    w1 = src - i0
    w0 = 1.0 - w1
    m = np.zeros((out_size, in_size), dtype=np.float64)
    np.add.at(m, (np.arange(out_size), i0), w0)
    np.add.at(m, (np.arange(out_size), i1), w1)
    return m


_BIL_NP = _bilinear_matrix(IMG_OUT, IMG_IN)                         # (32, 16)
_WW     = jnp.asarray(_BIL_NP.T, jnp.float32)                       # (16, 32) width resize (right mult)
_WHS    = jnp.asarray(np.stack([_BIL_NP / s for s in CLIP_STD], 0),
                      jnp.float32)                                  # (3, 32, 16) height resize, 1/std folded
_OFFROW = jnp.asarray(
    np.repeat(np.asarray([m / s for m, s in zip(CLIP_MEAN, CLIP_STD)],
                         dtype=np.float64), IMG_OUT)[None, :], jnp.float32)   # (1, 96)

# attention constants: head segmentation and padded-key mask (lane-packed heads)
_SEG_NP = np.zeros((HEADS * S_PAD, HIDDEN), np.float32)
for _h in range(HEADS):
    _SEG_NP[_h * S_PAD:(_h + 1) * S_PAD, _h * HEAD_DIM:(_h + 1) * HEAD_DIM] = 1.0
_SEG = jnp.asarray(_SEG_NP)                                          # (96, 32)

_KMASK_NP = np.zeros((1, HEADS * S_PAD), np.float32)
for _h in range(HEADS):
    _KMASK_NP[0, _h * S_PAD + SEQ:(_h + 1) * S_PAD] = NEG_INF
_KMASK = jnp.asarray(_KMASK_NP)                                      # (1, 96)


# ----------------------------- kernel helpers -------------------------------
def _ln(x, w, b):
    mu = jnp.mean(x, axis=-1, keepdims=True)
    var = jnp.mean(jnp.square(x - mu), axis=-1, keepdims=True)
    return (x - mu) * lax.rsqrt(var + EPS) * w + b


def _const_spec(arr):
    nd = arr.ndim
    return pl.BlockSpec(arr.shape, lambda b: (0,) * nd)


def _pick_bt(batch):
    # bt images per grid step, bt*S_PAD <= 128 rows; keep >= 2 grid steps when
    # possible so both v7x TensorCores get work.
    max_bt = max(1, 128 // S_PAD)
    divs = [d for d in range(1, max_bt + 1) if batch % d == 0]
    multi_step = [d for d in divs if batch // d >= 2]
    return max(multi_step) if multi_step else max(divs)


# ------------------------ preprocessing kernel ------------------------------
def _preprocess_kernel(bt, x_ref, ww_ref, whs_ref, off_ref, o_ref):
    ww = ww_ref[...]                         # (16, 32) width bilinear, hoisted
    off = off_ref[...]                       # (1, 96) mean/std offsets per output lane
    whs = [whs_ref[c] for c in range(3)]     # 3 x (32, 16) height bilinear / std_c
    for p in range(bt):                      # static unroll over images in the block
        x = x_ref[p]                                                  # (48, 16) rows=(c, y_in)
        r1 = jnp.dot(x, ww, preferred_element_type=jnp.float32)       # (48, 32) width-resized
        cols = [jnp.dot(whs[c], r1[c * IMG_IN:(c + 1) * IMG_IN, :],
                        preferred_element_type=jnp.float32)           # (32, 32) per channel
                for c in range(3)]
        # channels packed along lanes: one lane-dense (32, 96) store per image
        o_ref[p, :, :] = jnp.concatenate(cols, axis=1) - off


def preprocess(images, bt):
    # TODO(synk): torchvision's antialias path for *down*scaling is not modeled
    # (irrelevant here since we upscale, where bilinear == antialiased bilinear).
    B = images.shape[0]
    x2 = images.reshape(B, 3 * IMG_IN, IMG_IN)      # free reshape: rows = (channel, y_in)
    flops = B * 2 * (3 * IMG_IN * IMG_IN * IMG_OUT + 3 * IMG_OUT * IMG_IN * IMG_OUT)
    bytes_accessed = 4 * (B * 3 * IMG_IN * IMG_IN + B * IMG_OUT * 3 * IMG_OUT
                          + int(_WW.size) + int(_WHS.size) + int(_OFFROW.size))
    return pl.pallas_call(
        functools.partial(_preprocess_kernel, bt),
        out_shape=jax.ShapeDtypeStruct((B, IMG_OUT, 3 * IMG_OUT), jnp.float32),
        grid=(B // bt,),
        in_specs=[
            pl.BlockSpec((bt, 3 * IMG_IN, IMG_IN), lambda b: (b, 0, 0)),
            pl.BlockSpec((IMG_IN, IMG_OUT), lambda b: (0, 0)),
            pl.BlockSpec((3, IMG_OUT, IMG_IN), lambda b: (0, 0, 0)),
            pl.BlockSpec((1, 3 * IMG_OUT), lambda b: (0, 0)),
        ],
        out_specs=pl.BlockSpec((bt, IMG_OUT, 3 * IMG_OUT), lambda b: (b, 0, 0)),
        compiler_params=pltpu.CompilerParams(
            dimension_semantics=("parallel",), vmem_limit_bytes=8 * 1024 * 1024),
        cost_estimate=pl.CostEstimate(flops=flops, transcendentals=0,
                                      bytes_accessed=bytes_accessed),
    )(x2, _WW, _WHS, _OFFROW)


# ------------------ fused embed + encoder + head kernel ----------------------
def _clip_fused_kernel(bt, patches_ref, pw_ref, clspos_ref, lnpre_w, lnpre_b,
                       seg_ref, kmask_ref,
                       ln1_w, ln1_b, q_w, q_b, k_w, k_b, v_w, v_b, o_w, o_b,
                       ln2_w, ln2_b, f1_w, f1_b, f2_w, f2_b,
                       lnpost_w, lnpost_b, proj_ref, out_ref):
    # ---- patch embedding + CLS / positional embedding + pre-LN, bt images at once ----
    x = jnp.dot(patches_ref[...], pw_ref[...],
                preferred_element_type=jnp.float32)                    # (bt*S_PAD, H)
    x = x + clspos_ref[...]                 # row i*S_PAD = cls + pos[0]; pad rows stay 0
    x = _ln(x, lnpre_w[...], lnpre_b[...])                             # pre_layrnorm

    seg = seg_ref[...]      # (HEADS*S_PAD, H): 1 where the lane belongs to that row's head
    kmask = kmask_ref[...]  # (1, HEADS*S_PAD): -1e9 additive mask on padded key slots
    scale = HEAD_DIM ** -0.5

    for l in range(LAYERS):                                            # static unroll
        # --- multi-head self-attention, heads packed along the lane axis ---
        h1 = _ln(x, ln1_w[l], ln1_b[l])
        q = (jnp.dot(h1, q_w[l], preferred_element_type=jnp.float32) + q_b[l]) * scale
        k = jnp.dot(h1, k_w[l], preferred_element_type=jnp.float32) + k_b[l]
        v = jnp.dot(h1, v_w[l], preferred_element_type=jnp.float32) + v_b[l]
        ctx_blocks = []
        for i in range(bt):                                            # per-image attention
            r0 = i * S_PAD
            qs = q[r0:r0 + S_PAD, :]
            ks = k[r0:r0 + S_PAD, :]
            vs = v[r0:r0 + S_PAD, :]
            k_stack = jnp.concatenate([ks] * HEADS, axis=0) * seg      # (HEADS*S_PAD, H)
            v_stack = jnp.concatenate([vs] * HEADS, axis=0) * seg
            # all heads' scores in ONE (S_PAD, HEADS*S_PAD) = (24, 96) matrix
            s = jnp.einsum('qd,kd->qk', qs, k_stack,
                           preferred_element_type=jnp.float32) + kmask
            # ONE max/exp for all heads: the shared per-row max cancels in the
            # per-head normalization below, so this equals per-head softmax;
            # padded keys (-1e9) underflow to exactly 0 in f32.
            pr = jnp.exp(s - jnp.max(s, axis=-1, keepdims=True))
            denom = jnp.dot(pr, seg, preferred_element_type=jnp.float32)       # per-head sums
            ctx_un = jnp.dot(pr, v_stack, preferred_element_type=jnp.float32)  # un-normalized PV
            ctx_blocks.append(ctx_un / denom)        # deferred softmax normalization
        ctx = jnp.concatenate(ctx_blocks, axis=0)                      # (bt*S_PAD, H)
        x = x + jnp.dot(ctx, o_w[l], preferred_element_type=jnp.float32) + o_b[l]

        # --- MLP (CLIP quick_gelu) ---
        h2 = _ln(x, ln2_w[l], ln2_b[l])
        m = jnp.dot(h2, f1_w[l], preferred_element_type=jnp.float32) + f1_b[l]
        m = m * jax.nn.sigmoid(1.702 * m)
        x = x + jnp.dot(m, f2_w[l], preferred_element_type=jnp.float32) + f2_b[l]

    # ---- CLS pooling -> post-LN -> visual projection ----
    cls = jnp.concatenate([x[i * S_PAD:i * S_PAD + 1, :] for i in range(bt)], axis=0)
    cls = _ln(cls, lnpost_w[...], lnpost_b[...])                       # (bt, H)
    out_ref[0, :, :] = jnp.dot(cls, proj_ref[...], preferred_element_type=jnp.float32)


def clip_transformer(patches_pad, clspos, p, bt):
    B = patches_pad.shape[0]
    patches_flat = patches_pad.reshape(B * S_PAD, D_PATCH)             # free reshape
    consts = [p["patch_w"], clspos, p["ln_pre_w"], p["ln_pre_b"], _SEG, _KMASK,
              p["ln1_w"], p["ln1_b"], p["q_w"], p["q_b"], p["k_w"], p["k_b"],
              p["v_w"], p["v_b"], p["o_w"], p["o_b"], p["ln2_w"], p["ln2_b"],
              p["fc1_w"], p["fc1_b"], p["fc2_w"], p["fc2_b"],
              p["ln_post_w"], p["ln_post_b"], p["proj"]]
    in_specs = [pl.BlockSpec((bt * S_PAD, D_PATCH), lambda b: (b, 0))]
    in_specs += [_const_spec(c) for c in consts]

    attn_core = 3 * 2 * S_PAD * (HEADS * S_PAD) * HIDDEN
    qkvo = 4 * 2 * S_PAD * HIDDEN * HIDDEN
    mlp = 2 * 2 * S_PAD * HIDDEN * MLP_DIM
    per_img = (2 * S_PAD * D_PATCH * HIDDEN + LAYERS * (qkvo + attn_core + mlp)
               + 2 * HIDDEN * PROJ_DIM)
    const_bytes = sum(int(c.size) * 4 for c in consts)
    cost = pl.CostEstimate(
        flops=B * per_img,
        transcendentals=B * LAYERS * (S_PAD * HEADS * S_PAD + S_PAD * MLP_DIM),
        bytes_accessed=4 * B * (S_PAD * D_PATCH + PROJ_DIM) + const_bytes)

    out = pl.pallas_call(
        functools.partial(_clip_fused_kernel, bt),
        out_shape=jax.ShapeDtypeStruct((B // bt, bt, PROJ_DIM), jnp.float32),
        grid=(B // bt,),
        in_specs=in_specs,
        out_specs=pl.BlockSpec((1, bt, PROJ_DIM), lambda b: (b, 0, 0)),
        compiler_params=pltpu.CompilerParams(
            dimension_semantics=("parallel",), vmem_limit_bytes=8 * 1024 * 1024),
        cost_estimate=cost,
    )(patches_flat, *consts)
    return out.reshape(B, PROJ_DIM)


# ------------------------------- glue ---------------------------------------
def _rearrange_for_patches(pre):
    # pre: (B, 32, 96); rows = gy*8+py, lanes = c*32 + gx*8 + px.
    # conv(k=patch, stride=patch, no bias) == per-patch matmul over flattened
    # (c, py, px) features; row 0 (CLS) and rows SEQ..S_PAD-1 (padding) are zeros.
    # TODO(synk): this pure layout permutation (patchify) stays a tiny host-side
    # XLA transpose between the two kernels; in-kernel patchify needs strided
    # sublane gathers Mosaic handles poorly at these sizes.
    B = pre.shape[0]
    y = pre.reshape(B, GRID_HW, PATCH, 3, GRID_HW, PATCH)       # (B, gy, py, c, gx, px)
    y = y.transpose(0, 1, 4, 3, 2, 5)                           # (B, gy, gx, c, py, px)
    y = y.reshape(B, N_PATCH, D_PATCH)
    lead = jnp.zeros((B, 1, D_PATCH), jnp.float32)
    tail = jnp.zeros((B, S_PAD - SEQ, D_PATCH), jnp.float32)
    return jnp.concatenate([lead, y, tail], axis=1)             # (B, S_PAD, D_PATCH)


def build_clspos(p, bt):
    # row 0 = cls + pos[0]; rows 1..SEQ-1 = pos[1:]; padded rows = 0; tiled per image.
    cp = jnp.zeros((S_PAD, HIDDEN), jnp.float32)
    cp = cp.at[:SEQ].set(p["pos"])
    cp = cp.at[0].add(p["cls"][0])
    return jnp.tile(cp, (bt, 1))                                # (bt*S_PAD, HIDDEN)


@jax.jit
def clip_feature_extractor(images, params):
    B = images.shape[0]
    bt = _pick_bt(B)
    pre = preprocess(images, bt)                       # (B, 32, 96) resized + normalized
    patches = _rearrange_for_patches(pre)              # (B, S_PAD, D_PATCH)
    clspos = build_clspos(params, bt)                  # (bt*S_PAD, HIDDEN)
    return clip_transformer(patches, clspos, params, bt)   # (B, PROJ_DIM)


# --------------------------- deterministic params ---------------------------
def init_params(key):
    ks = jax.random.split(key, 10)

    def nrm(k, shape, s=0.02):
        return (s * jax.random.normal(k, shape)).astype(jnp.float32)

    ones = lambda shape: jnp.ones(shape, jnp.float32)
    zeros = lambda shape: jnp.zeros(shape, jnp.float32)

    return {
        "cls": nrm(ks[0], (1, HIDDEN)),
        "pos": nrm(ks[1], (SEQ, HIDDEN)),
        "patch_w": nrm(ks[2], (D_PATCH, HIDDEN)),      # conv weight as (in_features, out)
        "ln_pre_w": ones((1, HIDDEN)), "ln_pre_b": zeros((1, HIDDEN)),
        "ln_post_w": ones((1, HIDDEN)), "ln_post_b": zeros((1, HIDDEN)),
        "proj": nrm(ks[3], (HIDDEN, PROJ_DIM)),        # visual_projection, no bias
        # per-layer weights stacked with a leading LAYERS axis (single fused kernel)
        "ln1_w": ones((LAYERS, 1, HIDDEN)), "ln1_b": zeros((LAYERS, 1, HIDDEN)),
        "ln2_w": ones((LAYERS, 1, HIDDEN)), "ln2_b": zeros((LAYERS, 1, HIDDEN)),
        "q_w": nrm(ks[4], (LAYERS, HIDDEN, HIDDEN)), "q_b": zeros((LAYERS, 1, HIDDEN)),
        "k_w": nrm(ks[5], (LAYERS, HIDDEN, HIDDEN)), "k_b": zeros((LAYERS, 1, HIDDEN)),
        "v_w": nrm(ks[6], (LAYERS, HIDDEN, HIDDEN)), "v_b": zeros((LAYERS, 1, HIDDEN)),
        "o_w": nrm(ks[7], (LAYERS, HIDDEN, HIDDEN)), "o_b": zeros((LAYERS, 1, HIDDEN)),
        "fc1_w": nrm(ks[8], (LAYERS, HIDDEN, MLP_DIM)), "fc1_b": zeros((LAYERS, 1, MLP_DIM)),
        "fc2_w": nrm(ks[9], (LAYERS, MLP_DIM, HIDDEN)), "fc2_b": zeros((LAYERS, 1, HIDDEN)),
    }


if __name__ == "__main__":
    key = jax.random.PRNGKey(0)
    k_img, k_par = jax.random.split(key)
    B = 8                                   # bt=4 images per grid step, 2 parallel steps
    images = jax.random.uniform(k_img, (B, 3, IMG_IN, IMG_IN), jnp.float32)  # NCHW in [0,1]
    params = init_params(k_par)

    feats = clip_feature_extractor(images, params)
    feats = jax.block_until_ready(feats)
    assert feats.shape == (B, PROJ_DIM) and feats.dtype == jnp.float32
    assert bool(jnp.all(jnp.isfinite(feats)))
    print("KERNEL_OK")
</pallas_src>

<mosaic_0001>
module attributes {stable_mosaic.version = 11 : i64} {
  func.func @_preprocess_kernel(%arg0: i32, %arg1: memref<4x48x16xf32, #tpu.memory_space<vmem>>, %arg2: memref<16x32xf32, #tpu.memory_space<vmem>>, %arg3: memref<3x32x16xf32, #tpu.memory_space<vmem>>, %arg4: memref<1x96xf32, #tpu.memory_space<vmem>>, %arg5: memref<4x32x96xf32, #tpu.memory_space<vmem>>) attributes {dimension_semantics = [#tpu.dimension_semantics<parallel>], iteration_bounds = array<i64: 2>, scalar_prefetch = 0 : i64, scratch_operands = 0 : i64, tpu.core_type = #tpu.core_type<tc>, window_params = [{transform_indices = @transform_0, window_bounds = array<i64: 4, 48, 16>}, {pipeline_mode = #tpu.pipeline_mode<synchronous>, transform_indices = @transform_1, window_bounds = array<i64: 16, 32>}, {pipeline_mode = #tpu.pipeline_mode<synchronous>, transform_indices = @transform_2, window_bounds = array<i64: 3, 32, 16>}, {pipeline_mode = #tpu.pipeline_mode<synchronous>, transform_indices = @transform_3, window_bounds = array<i64: 1, 96>}, {transform_indices = @transform_4, window_bounds = array<i64: 4, 32, 96>}]} {
    %c0 = arith.constant 0 : index
    %c0_0 = arith.constant 0 : index
    %0 = vector.load %arg2[%c0, %c0_0] : memref<16x32xf32, #tpu.memory_space<vmem>>, vector<16x32xf32>
    %c0_1 = arith.constant 0 : index
    %c0_2 = arith.constant 0 : index
    %1 = vector.load %arg4[%c0_1, %c0_2] : memref<1x96xf32, #tpu.memory_space<vmem>>, vector<1x96xf32>
    %c0_3 = arith.constant 0 : index
    %c0_4 = arith.constant 0 : index
    %c0_5 = arith.constant 0 : index
    %2 = vector.load %arg3[%c0_3, %c0_4, %c0_5] : memref<3x32x16xf32, #tpu.memory_space<vmem>>, vector<1x32x16xf32>
    %3 = vector.shape_cast %2 : vector<1x32x16xf32> to vector<32x16xf32>
    %c1 = arith.constant 1 : index
    %c0_6 = arith.constant 0 : index
    %c0_7 = arith.constant 0 : index
    %4 = vector.load %arg3[%c1, %c0_6, %c0_7] : memref<3x32x16xf32, #tpu.memory_space<vmem>>, vector<1x32x16xf32>
    %5 = vector.shape_cast %4 : vector<1x32x16xf32> to vector<32x16xf32>
    %c2 = arith.constant 2 : index
    %c0_8 = arith.constant 0 : index
    %c0_9 = arith.constant 0 : index
    %6 = vector.load %arg3[%c2, %c0_8, %c0_9] : memref<3x32x16xf32, #tpu.memory_space<vmem>>, vector<1x32x16xf32>
    %7 = vector.shape_cast %6 : vector<1x32x16xf32> to vector<32x16xf32>
    %c0_10 = arith.constant 0 : index
    %c0_11 = arith.constant 0 : index
    %c0_12 = arith.constant 0 : index
    %8 = vector.load %arg1[%c0_10, %c0_11, %c0_12] : memref<4x48x16xf32, #tpu.memory_space<vmem>>, vector<1x48x16xf32>
    %9 = vector.shape_cast %8 : vector<1x48x16xf32> to vector<48x16xf32>
    %cst = arith.constant dense<0.000000e+00> : vector<48x32xf32>
    %10 = tpu.matmul %9, %0, %cst {dimension_numbers = #tpu.dot_dimension_numbers<[1], [0], [0], [1], [0, 0, 1, 1], [], []>} : vector<48x16xf32>, vector<16x32xf32>, vector<48x32xf32> -> vector<48x32xf32>
    %11 = vector.extract_strided_slice %10 {offsets = [0, 0], sizes = [16, 32], strides = [1, 1]} : vector<48x32xf32> to vector<16x32xf32>
    %cst_13 = arith.constant dense<0.000000e+00> : vector<32x32xf32>
    %12 = tpu.matmul %3, %11, %cst_13 {dimension_numbers = #tpu.dot_dimension_numbers<[1], [0], [0], [1], [0, 0, 1, 1], [], []>} : vector<32x16xf32>, vector<16x32xf32>, vector<32x32xf32> -> vector<32x32xf32>
    %13 = vector.extract_strided_slice %10 {offsets = [16, 0], sizes = [16, 32], strides = [1, 1]} : vector<48x32xf32> to vector<16x32xf32>
    %cst_14 = arith.constant dense<0.000000e+00> : vector<32x32xf32>
    %14 = tpu.matmul %5, %13, %cst_14 {dimension_numbers = #tpu.dot_dimension_numbers<[1], [0], [0], [1], [0, 0, 1, 1], [], []>} : vector<32x16xf32>, vector<16x32xf32>, vector<32x32xf32> -> vector<32x32xf32>
    %15 = vector.extract_strided_slice %10 {offsets = [32, 0], sizes = [16, 32], strides = [1, 1]} : vector<48x32xf32> to vector<16x32xf32>
    %cst_15 = arith.constant dense<0.000000e+00> : vector<32x32xf32>
    %16 = tpu.matmul %7, %15, %cst_15 {dimension_numbers = #tpu.dot_dimension_numbers<[1], [0], [0], [1], [0, 0, 1, 1], [], []>} : vector<32x16xf32>, vector<16x32xf32>, vector<32x32xf32> -> vector<32x32xf32>
    %17 = tpu.concatenate %12, %14, %16 in 1 : vector<32x32xf32>, vector<32x32xf32>, vector<32x32xf32> -> vector<32x96xf32>
    %18 = vector.broadcast %1 : vector<1x96xf32> to vector<32x96xf32>
    %19 = arith.subf %17, %18 : vector<32x96xf32>
    %c0_16 = arith.constant 0 : index
    %c0_17 = arith.constant 0 : index
    %c0_18 = arith.constant 0 : index
    %20 = vector.load %arg5[%c0_16, %c0_17, %c0_18] : memref<4x32x96xf32, #tpu.memory_space<vmem>>, vector<1x32x96xf32>
    %21 = vector.shape_cast %20 : vector<1x32x96xf32> to vector<32x96xf32>
    %22 = vector.shape_cast %19 : vector<32x96xf32> to vector<1x32x96xf32>
    tpu.vector_store %arg5[%c0_16, %c0_17, %c0_18], %22 {strides = array<i32>} : memref<4x32x96xf32, #tpu.memory_space<vmem>>, vector<1x32x96xf32>,
    %c1_19 = arith.constant 1 : index
    %c0_20 = arith.constant 0 : index
    %c0_21 = arith.constant 0 : index
    %23 = vector.load %arg1[%c1_19, %c0_20, %c0_21] : memref<4x48x16xf32, #tpu.memory_space<vmem>>, vector<1x48x16xf32>
    %24 = vector.shape_cast %23 : vector<1x48x16xf32> to vector<48x16xf32>
    %cst_22 = arith.constant dense<0.000000e+00> : vector<48x32xf32>
    %25 = tpu.matmul %24, %0, %cst_22 {dimension_numbers = #tpu.dot_dimension_numbers<[1], [0], [0], [1], [0, 0, 1, 1], [], []>} : vector<48x16xf32>, vector<16x32xf32>, vector<48x32xf32> -> vector<48x32xf32>
    %26 = vector.extract_strided_slice %25 {offsets = [0, 0], sizes = [16, 32], strides = [1, 1]} : vector<48x32xf32> to vector<16x32xf32>
    %cst_23 = arith.constant dense<0.000000e+00> : vector<32x32xf32>
    %27 = tpu.matmul %3, %26, %cst_23 {dimension_numbers = #tpu.dot_dimension_numbers<[1], [0], [0], [1], [0, 0, 1, 1], [], []>} : vector<32x16xf32>, vector<16x32xf32>, vector<32x32xf32> -> vector<32x32xf32>
    %28 = vector.extract_strided_slice %25 {offsets = [16, 0], sizes = [16, 32], strides = [1, 1]} : vector<48x32xf32> to vector<16x32xf32>
    %cst_24 = arith.constant dense<0.000000e+00> : vector<32x32xf32>
    %29 = tpu.matmul %5, %28, %cst_24 {dimension_numbers = #tpu.dot_dimension_numbers<[1], [0], [0], [1], [0, 0, 1, 1], [], []>} : vector<32x16xf32>, vector<16x32xf32>, vector<32x32xf32> -> vector<32x32xf32>
    %30 = vector.extract_strided_slice %25 {offsets = [32, 0], sizes = [16, 32], strides = [1, 1]} : vector<48x32xf32> to vector<16x32xf32>
    %cst_25 = arith.constant dense<0.000000e+00> : vector<32x32xf32>
    %31 = tpu.matmul %7, %30, %cst_25 {dimension_numbers = #tpu.dot_dimension_numbers<[1], [0], [0], [1], [0, 0, 1, 1], [], []>} : vector<32x16xf32>, vector<16x32xf32>, vector<32x32xf32> -> vector<32x32xf32>
    %32 = tpu.concatenate %27, %29, %31 in 1 : vector<32x32xf32>, vector<32x32xf32>, vector<32x32xf32> -> vector<32x96xf32>
    %33 = vector.broadcast %1 : vector<1x96xf32> to vector<32x96xf32>
    %34 = arith.subf %32, %33 : vector<32x96xf32>
    %c1_26 = arith.constant 1 : index
    %c0_27 = arith.constant 0 : index
    %c0_28 = arith.constant 0 : index
    %35 = vector.load %arg5[%c1_26, %c0_27, %c0_28] : memref<4x32x96xf32, #tpu.memory_space<vmem>>, vector<1x32x96xf32>
    %36 = vector.shape_cast %35 : vector<1x32x96xf32> to vector<32x96xf32>
    %37 = vector.shape_cast %34 : vector<32x96xf32> to vector<1x32x96xf32>
    tpu.vector_store %arg5[%c1_26, %c0_27, %c0_28], %37 {strides = array<i32>} : memref<4x32x96xf32, #tpu.memory_space<vmem>>, vector<1x32x96xf32>,
    %c2_29 = arith.constant 2 : index
    %c0_30 = arith.constant 0 : index
    %c0_31 = arith.constant 0 : index
    %38 = vector.load %arg1[%c2_29, %c0_30, %c0_31] : memref<4x48x16xf32, #tpu.memory_space<vmem>>, vector<1x48x16xf32>
    %39 = vector.shape_cast %38 : vector<1x48x16xf32> to vector<48x16xf32>
    %cst_32 = arith.constant dense<0.000000e+00> : vector<48x32xf32>
    %40 = tpu.matmul %39, %0, %cst_32 {dimension_numbers = #tpu.dot_dimension_numbers<[1], [0], [0], [1], [0, 0, 1, 1], [], []>} : vector<48x16xf32>, vector<16x32xf32>, vector<48x32xf32> -> vector<48x32xf32>
    %41 = vector.extract_strided_slice %40 {offsets = [0, 0], sizes = [16, 32], strides = [1, 1]} : vector<48x32xf32> to vector<16x32xf32>
    %cst_33 = arith.constant dense<0.000000e+00> : vector<32x32xf32>
    %42 = tpu.matmul %3, %41, %cst_33 {dimension_numbers = #tpu.dot_dimension_numbers<[1], [0], [0], [1], [0, 0, 1, 1], [], []>} : vector<32x16xf32>, vector<16x32xf32>, vector<32x32xf32> -> vector<32x32xf32>
    %43 = vector.extract_strided_slice %40 {offsets = [16, 0], sizes = [16, 32], strides = [1, 1]} : vector<48x32xf32> to vector<16x32xf32>
    %cst_34 = arith.constant dense<0.000000e+00> : vector<32x32xf32>
    %44 = tpu.matmul %5, %43, %cst_34 {dimension_numbers = #tpu.dot_dimension_numbers<[1], [0], [0], [1], [0, 0, 1, 1], [], []>} : vector<32x16xf32>, vector<16x32xf32>, vector<32x32xf32> -> vector<32x32xf32>
    %45 = vector.extract_strided_slice %40 {offsets = [32, 0], sizes = [16, 32], strides = [1, 1]} : vector<48x32xf32> to vector<16x32xf32>
    %cst_35 = arith.constant dense<0.000000e+00> : vector<32x32xf32>
    %46 = tpu.matmul %7, %45, %cst_35 {dimension_numbers = #tpu.dot_dimension_numbers<[1], [0], [0], [1], [0, 0, 1, 1], [], []>} : vector<32x16xf32>, vector<16x32xf32>, vector<32x32xf32> -> vector<32x32xf32>
    %47 = tpu.concatenate %42, %44, %46 in 1 : vector<32x32xf32>, vector<32x32xf32>, vector<32x32xf32> -> vector<32x96xf32>
    %48 = vector.broadcast %1 : vector<1x96xf32> to vector<32x96xf32>
    %49 = arith.subf %47, %48 : vector<32x96xf32>
    %c2_36 = arith.constant 2 : index
    %c0_37 = arith.constant 0 : index
    %c0_38 = arith.constant 0 : index
    %50 = vector.load %arg5[%c2_36, %c0_37, %c0_38] : memref<4x32x96xf32, #tpu.memory_space<vmem>>, vector<1x32x96xf32>
    %51 = vector.shape_cast %50 : vector<1x32x96xf32> to vector<32x96xf32>
    %52 = vector.shape_cast %49 : vector<32x96xf32> to vector<1x32x96xf32>
    tpu.vector_store %arg5[%c2_36, %c0_37, %c0_38], %52 {strides = array<i32>} : memref<4x32x96xf32, #tpu.memory_space<vmem>>, vector<1x32x96xf32>,
    %c3 = arith.constant 3 : index
    %c0_39 = arith.constant 0 : index
    %c0_40 = arith.constant 0 : index
    %53 = vector.load %arg1[%c3, %c0_39, %c0_40] : memref<4x48x16xf32, #tpu.memory_space<vmem>>, vector<1x48x16xf32>
    %54 = vector.shape_cast %53 : vector<1x48x16xf32> to vector<48x16xf32>
    %cst_41 = arith.constant dense<0.000000e+00> : vector<48x32xf32>
    %55 = tpu.matmul %54, %0, %cst_41 {dimension_numbers = #tpu.dot_dimension_numbers<[1], [0], [0], [1], [0, 0, 1, 1], [], []>} : vector<48x16xf32>, vector<16x32xf32>, vector<48x32xf32> -> vector<48x32xf32>
    %56 = vector.extract_strided_slice %55 {offsets = [0, 0], sizes = [16, 32], strides = [1, 1]} : vector<48x32xf32> to vector<16x32xf32>
    %cst_42 = arith.constant dense<0.000000e+00> : vector<32x32xf32>
    %57 = tpu.matmul %3, %56, %cst_42 {dimension_numbers = #tpu.dot_dimension_numbers<[1], [0], [0], [1], [0, 0, 1, 1], [], []>} : vector<32x16xf32>, vector<16x32xf32>, vector<32x32xf32> -> vector<32x32xf32>
    %58 = vector.extract_strided_slice %55 {offsets = [16, 0], sizes = [16, 32], strides = [1, 1]} : vector<48x32xf32> to vector<16x32xf32>
    %cst_43 = arith.constant dense<0.000000e+00> : vector<32x32xf32>
    %59 = tpu.matmul %5, %58, %cst_43 {dimension_numbers = #tpu.dot_dimension_numbers<[1], [0], [0], [1], [0, 0, 1, 1], [], []>} : vector<32x16xf32>, vector<16x32xf32>, vector<32x32xf32> -> vector<32x32xf32>
    %60 = vector.extract_strided_slice %55 {offsets = [32, 0], sizes = [16, 32], strides = [1, 1]} : vector<48x32xf32> to vector<16x32xf32>
    %cst_44 = arith.constant dense<0.000000e+00> : vector<32x32xf32>
    %61 = tpu.matmul %7, %60, %cst_44 {dimension_numbers = #tpu.dot_dimension_numbers<[1], [0], [0], [1], [0, 0, 1, 1], [], []>} : vector<32x16xf32>, vector<16x32xf32>, vector<32x32xf32> -> vector<32x32xf32>
    %62 = tpu.concatenate %57, %59, %61 in 1 : vector<32x32xf32>, vector<32x32xf32>, vector<32x32xf32> -> vector<32x96xf32>
    %63 = vector.broadcast %1 : vector<1x96xf32> to vector<32x96xf32>
    %64 = arith.subf %62, %63 : vector<32x96xf32>
    %c3_45 = arith.constant 3 : index
    %c0_46 = arith.constant 0 : index
    %c0_47 = arith.constant 0 : index
    %65 = vector.load %arg5[%c3_45, %c0_46, %c0_47] : memref<4x32x96xf32, #tpu.memory_space<vmem>>, vector<1x32x96xf32>
    %66 = vector.shape_cast %65 : vector<1x32x96xf32> to vector<32x96xf32>
    %67 = vector.shape_cast %64 : vector<32x96xf32> to vector<1x32x96xf32>
    tpu.vector_store %arg5[%c3_45, %c0_46, %c0_47], %67 {strides = array<i32>} : memref<4x32x96xf32, #tpu.memory_space<vmem>>, vector<1x32x96xf32>,
    return
  }
  func.func @transform_0(%arg0: i32) -> (i32, i32, i32) {
    %c0_i32 = arith.constant 0 : i32
    %c0_i32_0 = arith.constant 0 : i32
    %c0_i32_1 = arith.constant 0 : i32
    return %arg0, %c0_i32, %c0_i32_0 : i32, i32, i32
  }
  func.func @transform_1(%arg0: i32) -> (i32, i32) {
    %c0_i32 = arith.constant 0 : i32
    %c0_i32_0 = arith.constant 0 : i32
    %c0_i32_1 = arith.constant 0 : i32
    return %c0_i32, %c0_i32_0 : i32, i32
  }
  func.func @transform_2(%arg0: i32) -> (i32, i32, i32) {
    %c0_i32 = arith.constant 0 : i32
    %c0_i32_0 = arith.constant 0 : i32
    %c0_i32_1 = arith.constant 0 : i32
    %c0_i32_2 = arith.constant 0 : i32
    return %c0_i32, %c0_i32_0, %c0_i32_1 : i32, i32, i32
  }
  func.func @transform_3(%arg0: i32) -> (i32, i32) {
    %c0_i32 = arith.constant 0 : i32
    %c0_i32_0 = arith.constant 0 : i32
    %c0_i32_1 = arith.constant 0 : i32
    return %c0_i32, %c0_i32_0 : i32, i32
  }
  func.func @transform_4(%arg0: i32) -> (i32, i32, i32) {
    %c0_i32 = arith.constant 0 : i32
    %c0_i32_0 = arith.constant 0 : i32
    %c0_i32_1 = arith.constant 0 : i32
    return %arg0, %c0_i32, %c0_i32_0 : i32, i32, i32
  }
}

module attributes {stable_mosaic.version = 11 : i64} {
  func.func @_clip_fused_kernel(%arg0: i32, %arg1: memref<96x192xf32, #tpu.memory_space<vmem>>, %arg2: memref<192x32xf32, #tpu.memory_space<vmem>>, %arg3: memref<96x32xf32, #tpu.memory_space<vmem>>, %arg4: memref<1x32xf32, #tpu.memory_space<vmem>>, %arg5: memref<1x32xf32, #tpu.memory_space<vmem>>, %arg6: memref<96x32xf32, #tpu.memory_space<vmem>>, %arg7: memref<1x96xf32, #tpu.memory_space<vmem>>, %arg8: memref<2x1x32xf32, #tpu.memory_space<vmem>>, %arg9: memref<2x1x32xf32, #tpu.memory_space<vmem>>, %arg10: memref<2x32x32xf32, #tpu.memory_space<vmem>>, %arg11: memref<2x1x32xf32, #tpu.memory_space<vmem>>, %arg12: memref<2x32x32xf32, #tpu.memory_space<vmem>>, %arg13: memref<2x1x32xf32, #tpu.memory_space<vmem>>, %arg14: memref<2x32x32xf32, #tpu.memory_space<vmem>>, %arg15: memref<2x1x32xf32, #tpu.memory_space<vmem>>, %arg16: memref<2x32x32xf32, #tpu.memory_space<vmem>>, %arg17: memref<2x1x32xf32, #tpu.memory_space<vmem>>, %arg18: memref<2x1x32xf32, #tpu.memory_space<vmem>>, %arg19: memref<2x1x32xf32, #tpu.memory_space<vmem>>, %arg20: memref<2x32x128xf32, #tpu.memory_space<vmem>>, %arg21: memref<2x1x128xf32, #tpu.memory_space<vmem>>, %arg22: memref<2x128x32xf32, #tpu.memory_space<vmem>>, %arg23: memref<2x1x32xf32, #tpu.memory_space<vmem>>, %arg24: memref<1x32xf32, #tpu.memory_space<vmem>>, %arg25: memref<1x32xf32, #tpu.memory_space<vmem>>, %arg26: memref<32x16xf32, #tpu.memory_space<vmem>>, %arg27: memref<1x4x16xf32, #tpu.memory_space<vmem>>) attributes {dimension_semantics = [#tpu.dimension_semantics<parallel>], iteration_bounds = array<i64: 2>, scalar_prefetch = 0 : i64, scratch_operands = 0 : i64, tpu.core_type = #tpu.core_type<tc>, window_params = [{transform_indices = @transform_0, window_bounds = array<i64: 96, 192>}, {pipeline_mode = #tpu.pipeline_mode<synchronous>, transform_indices = @transform_1, window_bounds = array<i64: 192, 32>}, {pipeline_mode = #tpu.pipeline_mode<synchronous>, transform_indices = @transform_2, window_bounds = array<i64: 96, 32>}, {pipeline_mode = #tpu.pipeline_mode<synchronous>, transform_indices = @transform_3, window_bounds = array<i64: 1, 32>}, {pipeline_mode = #tpu.pipeline_mode<synchronous>, transform_indices = @transform_4, window_bounds = array<i64: 1, 32>}, {pipeline_mode = #tpu.pipeline_mode<synchronous>, transform_indices = @transform_5, window_bounds = array<i64: 96, 32>}, {pipeline_mode = #tpu.pipeline_mode<synchronous>, transform_indices = @transform_6, window_bounds = array<i64: 1, 96>}, {pipeline_mode = #tpu.pipeline_mode<synchronous>, transform_indices = @transform_7, window_bounds = array<i64: 2, 1, 32>}, {pipeline_mode = #tpu.pipeline_mode<synchronous>, transform_indices = @transform_8, window_bounds = array<i64: 2, 1, 32>}, {pipeline_mode = #tpu.pipeline_mode<synchronous>, transform_indices = @transform_9, window_bounds = array<i64: 2, 32, 32>}, {pipeline_mode = #tpu.pipeline_mode<synchronous>, transform_indices = @transform_10, window_bounds = array<i64: 2, 1, 32>}, {pipeline_mode = #tpu.pipeline_mode<synchronous>, transform_indices = @transform_11, window_bounds = array<i64: 2, 32, 32>}, {pipeline_mode = #tpu.pipeline_mode<synchronous>, transform_indices = @transform_12, window_bounds = array<i64: 2, 1, 32>}, {pipeline_mode = #tpu.pipeline_mode<synchronous>, transform_indices = @transform_13, window_bounds = array<i64: 2, 32, 32>}, {pipeline_mode = #tpu.pipeline_mode<synchronous>, transform_indices = @transform_14, window_bounds = array<i64: 2, 1, 32>}, {pipeline_mode = #tpu.pipeline_mode<synchronous>, transform_indices = @transform_15, window_bounds = array<i64: 2, 32, 32>}, {pipeline_mode = #tpu.pipeline_mode<synchronous>, transform_indices = @transform_16, window_bounds = array<i64: 2, 1, 32>}, {pipeline_mode = #tpu.pipeline_mode<synchronous>, transform_indices = @transform_17, window_bounds = array<i64: 2, 1, 32>}, {pipeline_mode = #tpu.pipeline_mode<synchronous>, transform_indices = @transform_18, window_bounds = array<i64: 2, 1, 32>}, {pipeline_mode = #tpu.pipeline_mode<synchronous>, transform_indices = @transform_19, window_bounds = array<i64: 2, 32, 128>}, {pipeline_mode = #tpu.pipeline_mode<synchronous>, transform_indices = @transform_20, window_bounds = array<i64: 2, 1, 128>}, {pipeline_mode = #tpu.pipeline_mode<synchronous>, transform_indices = @transform_21, window_bounds = array<i64: 2, 128, 32>}, {pipeline_mode = #tpu.pipeline_mode<synchronous>, transform_indices = @transform_22, window_bounds = array<i64: 2, 1, 32>}, {pipeline_mode = #tpu.pipeline_mode<synchronous>, transform_indices = @transform_23, window_bounds = array<i64: 1, 32>}, {pipeline_mode = #tpu.pipeline_mode<synchronous>, transform_indices = @transform_24, window_bounds = array<i64: 1, 32>}, {pipeline_mode = #tpu.pipeline_mode<synchronous>, transform_indices = @transform_25, window_bounds = array<i64: 32, 16>}, {transform_indices = @transform_26, window_bounds = array<i64: 1, 4, 16>}]} {
    %c0 = arith.constant 0 : index
    %c0_0 = arith.constant 0 : index
    %0 = vector.load %arg1[%c0, %c0_0] : memref<96x192xf32, #tpu.memory_space<vmem>>, vector<96x192xf32>
    %c0_1 = arith.constant 0 : index
    %c0_2 = arith.constant 0 : index
    %1 = vector.load %arg2[%c0_1, %c0_2] : memref<192x32xf32, #tpu.memory_space<vmem>>, vector<192x32xf32>
    %cst = arith.constant dense<0.000000e+00> : vector<96x32xf32>
    %2 = tpu.matmul %0, %1, %cst {dimension_numbers = #tpu.dot_dimension_numbers<[1], [0], [0], [1], [0, 0, 1, 1], [], []>} : vector<96x192xf32>, vector<192x32xf32>, vector<96x32xf32> -> vector<96x32xf32>
    %c0_3 = arith.constant 0 : index
    %c0_4 = arith.constant 0 : index
    %3 = vector.load %arg3[%c0_3, %c0_4] : memref<96x32xf32, #tpu.memory_space<vmem>>, vector<96x32xf32>
    %4 = arith.addf %2, %3 : vector<96x32xf32>
    %c0_5 = arith.constant 0 : index
    %c0_6 = arith.constant 0 : index
    %5 = vector.load %arg4[%c0_5, %c0_6] : memref<1x32xf32, #tpu.memory_space<vmem>>, vector<1x32xf32>
    %c0_7 = arith.constant 0 : index
    %c0_8 = arith.constant 0 : index
    %6 = vector.load %arg5[%c0_7, %c0_8] : memref<1x32xf32, #tpu.memory_space<vmem>>, vector<1x32xf32>
    %cst_9 = arith.constant dense<0.000000e+00> : vector<96xf32>
    %7 = vector.multi_reduction <add>, %4, %cst_9 [1] : vector<96x32xf32> to vector<96xf32>
    %8 = vector.shape_cast %7 : vector<96xf32> to vector<96x1xf32>
    %cst_10 = arith.constant 3.200000e+01 : f32
    %9 = vector.broadcast %cst_10 : f32 to vector<96x1xf32>
    %10 = arith.divf %8, %9 : vector<96x1xf32>
    %11 = vector.broadcast %10 : vector<96x1xf32> to vector<96x32xf32>
    %12 = arith.subf %4, %11 : vector<96x32xf32>
    %13 = arith.mulf %12, %12 : vector<96x32xf32>
    %cst_11 = arith.constant dense<0.000000e+00> : vector<96xf32>
    %14 = vector.multi_reduction <add>, %13, %cst_11 [1] : vector<96x32xf32> to vector<96xf32>
    %15 = vector.shape_cast %14 : vector<96xf32> to vector<96x1xf32>
    %cst_12 = arith.constant 3.200000e+01 : f32
    %16 = vector.broadcast %cst_12 : f32 to vector<96x1xf32>
    %17 = arith.divf %15, %16 : vector<96x1xf32>
    %18 = vector.broadcast %10 : vector<96x1xf32> to vector<96x32xf32>
    %19 = arith.subf %4, %18 : vector<96x32xf32>
    %cst_13 = arith.constant 9.99999974E-6 : f32
    %20 = vector.broadcast %cst_13 : f32 to vector<96x1xf32>
    %21 = arith.addf %17, %20 : vector<96x1xf32>
    %22 = math.rsqrt %21 : vector<96x1xf32>
    %23 = vector.broadcast %22 : vector<96x1xf32> to vector<96x32xf32>
    %24 = arith.mulf %19, %23 : vector<96x32xf32>
    %25 = vector.broadcast %5 : vector<1x32xf32> to vector<96x32xf32>
    %26 = arith.mulf %24, %25 : vector<96x32xf32>
    %27 = vector.broadcast %6 : vector<1x32xf32> to vector<96x32xf32>
    %28 = arith.addf %26, %27 : vector<96x32xf32>
    %c0_14 = arith.constant 0 : index
    %c0_15 = arith.constant 0 : index
    %29 = vector.load %arg6[%c0_14, %c0_15] : memref<96x32xf32, #tpu.memory_space<vmem>>, vector<96x32xf32>
    %c0_16 = arith.constant 0 : index
    %c0_17 = arith.constant 0 : index
    %30 = vector.load %arg7[%c0_16, %c0_17] : memref<1x96xf32, #tpu.memory_space<vmem>>, vector<1x96xf32>
    %c0_18 = arith.constant 0 : index
    %c0_19 = arith.constant 0 : index
    %c0_20 = arith.constant 0 : index
    %31 = vector.load %arg8[%c0_18, %c0_19, %c0_20] : memref<2x1x32xf32, #tpu.memory_space<vmem>>, vector<1x1x32xf32>
    %32 = vector.shape_cast %31 : vector<1x1x32xf32> to vector<1x32xf32>
    %c0_21 = arith.constant 0 : index
    %c0_22 = arith.constant 0 : index
    %c0_23 = arith.constant 0 : index
    %33 = vector.load %arg9[%c0_21, %c0_22, %c0_23] : memref<2x1x32xf32, #tpu.memory_space<vmem>>, vector<1x1x32xf32>
    %34 = vector.shape_cast %33 : vector<1x1x32xf32> to vector<1x32xf32>
    %cst_24 = arith.constant dense<0.000000e+00> : vector<96xf32>
    %35 = vector.multi_reduction <add>, %28, %cst_24 [1] : vector<96x32xf32> to vector<96xf32>
    %36 = vector.shape_cast %35 : vector<96xf32> to vector<96x1xf32>
    %cst_25 = arith.constant 3.200000e+01 : f32
    %37 = vector.broadcast %cst_25 : f32 to vector<96x1xf32>
    %38 = arith.divf %36, %37 : vector<96x1xf32>
    %39 = vector.broadcast %38 : vector<96x1xf32> to vector<96x32xf32>
    %40 = arith.subf %28, %39 : vector<96x32xf32>
    %41 = arith.mulf %40, %40 : vector<96x32xf32>
    %cst_26 = arith.constant dense<0.000000e+00> : vector<96xf32>
    %42 = vector.multi_reduction <add>, %41, %cst_26 [1] : vector<96x32xf32> to vector<96xf32>
    %43 = vector.shape_cast %42 : vector<96xf32> to vector<96x1xf32>
    %cst_27 = arith.constant 3.200000e+01 : f32
    %44 = vector.broadcast %cst_27 : f32 to vector<96x1xf32>
    %45 = arith.divf %43, %44 : vector<96x1xf32>
    %46 = vector.broadcast %38 : vector<96x1xf32> to vector<96x32xf32>
    %47 = arith.subf %28, %46 : vector<96x32xf32>
    %cst_28 = arith.constant 9.99999974E-6 : f32
    %48 = vector.broadcast %cst_28 : f32 to vector<96x1xf32>
    %49 = arith.addf %45, %48 : vector<96x1xf32>
    %50 = math.rsqrt %49 : vector<96x1xf32>
    %51 = vector.broadcast %50 : vector<96x1xf32> to vector<96x32xf32>
    %52 = arith.mulf %47, %51 : vector<96x32xf32>
    %53 = vector.broadcast %32 : vector<1x32xf32> to vector<96x32xf32>
    %54 = arith.mulf %52, %53 : vector<96x32xf32>
    %55 = vector.broadcast %34 : vector<1x32xf32> to vector<96x32xf32>
    %56 = arith.addf %54, %55 : vector<96x32xf32>
    %c0_29 = arith.constant 0 : index
    %c0_30 = arith.constant 0 : index
    %c0_31 = arith.constant 0 : index
    %57 = vector.load %arg10[%c0_29, %c0_30, %c0_31] : memref<2x32x32xf32, #tpu.memory_space<vmem>>, vector<1x32x32xf32>
    %58 = vector.shape_cast %57 : vector<1x32x32xf32> to vector<32x32xf32>
    %cst_32 = arith.constant dense<0.000000e+00> : vector<96x32xf32>
    %59 = tpu.matmul %56, %58, %cst_32 {dimension_numbers = #tpu.dot_dimension_numbers<[1], [0], [0], [1], [0, 0, 1, 1], [], []>} : vector<96x32xf32>, vector<32x32xf32>, vector<96x32xf32> -> vector<96x32xf32>
    %c0_33 = arith.constant 0 : index
    %c0_34 = arith.constant 0 : index
    %c0_35 = arith.constant 0 : index
    %60 = vector.load %arg11[%c0_33, %c0_34, %c0_35] : memref<2x1x32xf32, #tpu.memory_space<vmem>>, vector<1x1x32xf32>
    %61 = vector.shape_cast %60 : vector<1x1x32xf32> to vector<1x32xf32>
    %62 = vector.broadcast %61 : vector<1x32xf32> to vector<96x32xf32>
    %63 = arith.addf %59, %62 : vector<96x32xf32>
    %cst_36 = arith.constant 0.353553385 : f32
    %64 = vector.broadcast %cst_36 : f32 to vector<96x32xf32>
    %65 = arith.mulf %63, %64 : vector<96x32xf32>
    %c0_37 = arith.constant 0 : index
    %c0_38 = arith.constant 0 : index
    %c0_39 = arith.constant 0 : index
    %66 = vector.load %arg12[%c0_37, %c0_38, %c0_39] : memref<2x32x32xf32, #tpu.memory_space<vmem>>, vector<1x32x32xf32>
    %67 = vector.shape_cast %66 : vector<1x32x32xf32> to vector<32x32xf32>
    %cst_40 = arith.constant dense<0.000000e+00> : vector<96x32xf32>
    %68 = tpu.matmul %56, %67, %cst_40 {dimension_numbers = #tpu.dot_dimension_numbers<[1], [0], [0], [1], [0, 0, 1, 1], [], []>} : vector<96x32xf32>, vector<32x32xf32>, vector<96x32xf32> -> vector<96x32xf32>
    %c0_41 = arith.constant 0 : index
    %c0_42 = arith.constant 0 : index
    %c0_43 = arith.constant 0 : index
    %69 = vector.load %arg13[%c0_41, %c0_42, %c0_43] : memref<2x1x32xf32, #tpu.memory_space<vmem>>, vector<1x1x32xf32>
    %70 = vector.shape_cast %69 : vector<1x1x32xf32> to vector<1x32xf32>
    %71 = vector.broadcast %70 : vector<1x32xf32> to vector<96x32xf32>
    %72 = arith.addf %68, %71 : vector<96x32xf32>
    %c0_44 = arith.constant 0 : index
    %c0_45 = arith.constant 0 : index
    %c0_46 = arith.constant 0 : index
    %73 = vector.load %arg14[%c0_44, %c0_45, %c0_46] : memref<2x32x32xf32, #tpu.memory_space<vmem>>, vector<1x32x32xf32>
    %74 = vector.shape_cast %73 : vector<1x32x32xf32> to vector<32x32xf32>
    %cst_47 = arith.constant dense<0.000000e+00> : vector<96x32xf32>
    %75 = tpu.matmul %56, %74, %cst_47 {dimension_numbers = #tpu.dot_dimension_numbers<[1], [0], [0], [1], [0, 0, 1, 1], [], []>} : vector<96x32xf32>, vector<32x32xf32>, vector<96x32xf32> -> vector<96x32xf32>
    %c0_48 = arith.constant 0 : index
    %c0_49 = arith.constant 0 : index
    %c0_50 = arith.constant 0 : index
    %76 = vector.load %arg15[%c0_48, %c0_49, %c0_50] : memref<2x1x32xf32, #tpu.memory_space<vmem>>, vector<1x1x32xf32>
    %77 = vector.shape_cast %76 : vector<1x1x32xf32> to vector<1x32xf32>
    %78 = vector.broadcast %77 : vector<1x32xf32> to vector<96x32xf32>
    %79 = arith.addf %75, %78 : vector<96x32xf32>
    %80 = vector.extract_strided_slice %65 {offsets = [0, 0], sizes = [24, 32], strides = [1, 1]} : vector<96x32xf32> to vector<24x32xf32>
    %81 = vector.extract_strided_slice %72 {offsets = [0, 0], sizes = [24, 32], strides = [1, 1]} : vector<96x32xf32> to vector<24x32xf32>
    %82 = vector.extract_strided_slice %79 {offsets = [0, 0], sizes = [24, 32], strides = [1, 1]} : vector<96x32xf32> to vector<24x32xf32>
    %83 = tpu.concatenate %81, %81, %81, %81 in 0 : vector<24x32xf32>, vector<24x32xf32>, vector<24x32xf32>, vector<24x32xf32> -> vector<96x32xf32>
    %84 = arith.mulf %83, %29 : vector<96x32xf32>
    %85 = tpu.concatenate %82, %82, %82, %82 in 0 : vector<24x32xf32>, vector<24x32xf32>, vector<24x32xf32>, vector<24x32xf32> -> vector<96x32xf32>
    %86 = arith.mulf %85, %29 : vector<96x32xf32>
    "tpu.trace_start"() <{level = 10 : i32, message = "qd,kd->qk"}> : () -> ()
    %cst_51 = arith.constant dense<0.000000e+00> : vector<24x96xf32>
    %87 = tpu.matmul %80, %84, %cst_51 {dimension_numbers = #tpu.dot_dimension_numbers<[1], [1], [0], [0], [0, 0, 1, 0], [], []>} : vector<24x32xf32>, vector<96x32xf32>, vector<24x96xf32> -> vector<24x96xf32>
    "tpu.trace_stop"() : () -> ()
    %88 = vector.broadcast %30 : vector<1x96xf32> to vector<24x96xf32>
    %89 = arith.addf %87, %88 : vector<24x96xf32>
    %cst_52 = arith.constant dense<0xFF800000> : vector<24xf32>
    %90 = vector.multi_reduction <maximumf>, %89, %cst_52 [1] : vector<24x96xf32> to vector<24xf32>
    %91 = vector.shape_cast %90 : vector<24xf32> to vector<24x1xf32>
    %92 = vector.broadcast %91 : vector<24x1xf32> to vector<24x96xf32>
    %93 = arith.subf %89, %92 : vector<24x96xf32>
    %94 = math.exp %93 : vector<24x96xf32>
    %cst_53 = arith.constant dense<0.000000e+00> : vector<24x32xf32>
    %95 = tpu.matmul %94, %29, %cst_53 {dimension_numbers = #tpu.dot_dimension_numbers<[1], [0], [0], [1], [0, 0, 1, 1], [], []>} : vector<24x96xf32>, vector<96x32xf32>, vector<24x32xf32> -> vector<24x32xf32>
    %cst_54 = arith.constant dense<0.000000e+00> : vector<24x32xf32>
    %96 = tpu.matmul %94, %86, %cst_54 {dimension_numbers = #tpu.dot_dimension_numbers<[1], [0], [0], [1], [0, 0, 1, 1], [], []>} : vector<24x96xf32>, vector<96x32xf32>, vector<24x32xf32> -> vector<24x32xf32>
    %97 = arith.divf %96, %95 : vector<24x32xf32>
    %98 = vector.extract_strided_slice %65 {offsets = [24, 0], sizes = [24, 32], strides = [1, 1]} : vector<96x32xf32> to vector<24x32xf32>
    %99 = vector.extract_strided_slice %72 {offsets = [24, 0], sizes = [24, 32], strides = [1, 1]} : vector<96x32xf32> to vector<24x32xf32>
    %100 = vector.extract_strided_slice %79 {offsets = [24, 0], sizes = [24, 32], strides = [1, 1]} : vector<96x32xf32> to vector<24x32xf32>
    %101 = tpu.concatenate %99, %99, %99, %99 in 0 : vector<24x32xf32>, vector<24x32xf32>, vector<24x32xf32>, vector<24x32xf32> -> vector<96x32xf32>
    %102 = arith.mulf %101, %29 : vector<96x32xf32>
    %103 = tpu.concatenate %100, %100, %100, %100 in 0 : vector<24x32xf32>, vector<24x32xf32>, vector<24x32xf32>, vector<24x32xf32> -> vector<96x32xf32>
    %104 = arith.mulf %103, %29 : vector<96x32xf32>
    "tpu.trace_start"() <{level = 10 : i32, message = "qd,kd->qk"}> : () -> ()
    %cst_55 = arith.constant dense<0.000000e+00> : vector<24x96xf32>
    %105 = tpu.matmul %98, %102, %cst_55 {dimension_numbers = #tpu.dot_dimension_numbers<[1], [1], [0], [0], [0, 0, 1, 0], [], []>} : vector<24x32xf32>, vector<96x32xf32>, vector<24x96xf32> -> vector<24x96xf32>
    "tpu.trace_stop"() : () -> ()
    %106 = vector.broadcast %30 : vector<1x96xf32> to vector<24x96xf32>
    %107 = arith.addf %105, %106 : vector<24x96xf32>
    %cst_56 = arith.constant dense<0xFF800000> : vector<24xf32>
    %108 = vector.multi_reduction <maximumf>, %107, %cst_56 [1] : vector<24x96xf32> to vector<24xf32>
    %109 = vector.shape_cast %108 : vector<24xf32> to vector<24x1xf32>
    %110 = vector.broadcast %109 : vector<24x1xf32> to vector<24x96xf32>
    %111 = arith.subf %107, %110 : vector<24x96xf32>
    %112 = math.exp %111 : vector<24x96xf32>
    %cst_57 = arith.constant dense<0.000000e+00> : vector<24x32xf32>
    %113 = tpu.matmul %112, %29, %cst_57 {dimension_numbers = #tpu.dot_dimension_numbers<[1], [0], [0], [1], [0, 0, 1, 1], [], []>} : vector<24x96xf32>, vector<96x32xf32>, vector<24x32xf32> -> vector<24x32xf32>
    %cst_58 = arith.constant dense<0.000000e+00> : vector<24x32xf32>
    %114 = tpu.matmul %112, %104, %cst_58 {dimension_numbers = #tpu.dot_dimension_numbers<[1], [0], [0], [1], [0, 0, 1, 1], [], []>} : vector<24x96xf32>, vector<96x32xf32>, vector<24x32xf32> -> vector<24x32xf32>
    %115 = arith.divf %114, %113 : vector<24x32xf32>
    %116 = vector.extract_strided_slice %65 {offsets = [48, 0], sizes = [24, 32], strides = [1, 1]} : vector<96x32xf32> to vector<24x32xf32>
    %117 = vector.extract_strided_slice %72 {offsets = [48, 0], sizes = [24, 32], strides = [1, 1]} : vector<96x32xf32> to vector<24x32xf32>
    %118 = vector.extract_strided_slice %79 {offsets = [48, 0], sizes = [24, 32], strides = [1, 1]} : vector<96x32xf32> to vector<24x32xf32>
    %119 = tpu.concatenate %117, %117, %117, %117 in 0 : vector<24x32xf32>, vector<24x32xf32>, vector<24x32xf32>, vector<24x32xf32> -> vector<96x32xf32>
    %120 = arith.mulf %119, %29 : vector<96x32xf32>
    %121 = tpu.concatenate %118, %118, %118, %118 in 0 : vector<24x32xf32>, vector<24x32xf32>, vector<24x32xf32>, vector<24x32xf32> -> vector<96x32xf32>
    %122 = arith.mulf %121, %29 : vector<96x32xf32>
    "tpu.trace_start"() <{level = 10 : i32, message = "qd,kd->qk"}> : () -> ()
    %cst_59 = arith.constant dense<0.000000e+00> : vector<24x96xf32>
    %123 = tpu.matmul %116, %120, %cst_59 {dimension_numbers = #tpu.dot_dimension_numbers<[1], [1], [0], [0], [0, 0, 1, 0], [], []>} : vector<24x32xf32>, vector<96x32xf32>, vector<24x96xf32> -> vector<24x96xf32>
    "tpu.trace_stop"() : () -> ()
    %124 = vector.broadcast %30 : vector<1x96xf32> to vector<24x96xf32>
    %125 = arith.addf %123, %124 : vector<24x96xf32>
    %cst_60 = arith.constant dense<0xFF800000> : vector<24xf32>
    %126 = vector.multi_reduction <maximumf>, %125, %cst_60 [1] : vector<24x96xf32> to vector<24xf32>
    %127 = vector.shape_cast %126 : vector<24xf32> to vector<24x1xf32>
    %128 = vector.broadcast %127 : vector<24x1xf32> to vector<24x96xf32>
    %129 = arith.subf %125, %128 : vector<24x96xf32>
    %130 = math.exp %129 : vector<24x96xf32>
    %cst_61 = arith.constant dense<0.000000e+00> : vector<24x32xf32>
    %131 = tpu.matmul %130, %29, %cst_61 {dimension_numbers = #tpu.dot_dimension_numbers<[1], [0], [0], [1], [0, 0, 1, 1], [], []>} : vector<24x96xf32>, vector<96x32xf32>, vector<24x32xf32> -> vector<24x32xf32>
    %cst_62 = arith.constant dense<0.000000e+00> : vector<24x32xf32>
    %132 = tpu.matmul %130, %122, %cst_62 {dimension_numbers = #tpu.dot_dimension_numbers<[1], [0], [0], [1], [0, 0, 1, 1], [], []>} : vector<24x96xf32>, vector<96x32xf32>, vector<24x32xf32> -> vector<24x32xf32>
    %133 = arith.divf %132, %131 : vector<24x32xf32>
    %134 = vector.extract_strided_slice %65 {offsets = [72, 0], sizes = [24, 32], strides = [1, 1]} : vector<96x32xf32> to vector<24x32xf32>
    %135 = vector.extract_strided_slice %72 {offsets = [72, 0], sizes = [24, 32], strides = [1, 1]} : vector<96x32xf32> to vector<24x32xf32>
    %136 = vector.extract_strided_slice %79 {offsets = [72, 0], sizes = [24, 32], strides = [1, 1]} : vector<96x32xf32> to vector<24x32xf32>
    %137 = tpu.concatenate %135, %135, %135, %135 in 0 : vector<24x32xf32>, vector<24x32xf32>, vector<24x32xf32>, vector<24x32xf32> -> vector<96x32xf32>
    %138 = arith.mulf %137, %29 : vector<96x32xf32>
    %139 = tpu.concatenate %136, %136, %136, %136 in 0 : vector<24x32xf32>, vector<24x32xf32>, vector<24x32xf32>, vector<24x32xf32> -> vector<96x32xf32>
    %140 = arith.mulf %139, %29 : vector<96x32xf32>
    "tpu.trace_start"() <{level = 10 : i32, message = "qd,kd->qk"}> : () -> ()
    %cst_63 = arith.constant dense<0.000000e+00> : vector<24x96xf32>
    %141 = tpu.matmul %134, %138, %cst_63 {dimension_numbers = #tpu.dot_dimension_numbers<[1], [1], [0], [0], [0, 0, 1, 0], [], []>} : vector<24x32xf32>, vector<96x32xf32>, vector<24x96xf32> -> vector<24x96xf32>
    "tpu.trace_stop"() : () -> ()
    %142 = vector.broadcast %30 : vector<1x96xf32> to vector<24x96xf32>
    %143 = arith.addf %141, %142 : vector<24x96xf32>
    %cst_64 = arith.constant dense<0xFF800000> : vector<24xf32>
    %144 = vector.multi_reduction <maximumf>, %143, %cst_64 [1] : vector<24x96xf32> to vector<24xf32>
    %145 = vector.shape_cast %144 : vector<24xf32> to vector<24x1xf32>
    %146 = vector.broadcast %145 : vector<24x1xf32> to vector<24x96xf32>
    %147 = arith.subf %143, %146 : vector<24x96xf32>
    %148 = math.exp %147 : vector<24x96xf32>
    %cst_65 = arith.constant dense<0.000000e+00> : vector<24x32xf32>
    %149 = tpu.matmul %148, %29, %cst_65 {dimension_numbers = #tpu.dot_dimension_numbers<[1], [0], [0], [1], [0, 0, 1, 1], [], []>} : vector<24x96xf32>, vector<96x32xf32>, vector<24x32xf32> -> vector<24x32xf32>
    %cst_66 = arith.constant dense<0.000000e+00> : vector<24x32xf32>
    %150 = tpu.matmul %148, %140, %cst_66 {dimension_numbers = #tpu.dot_dimension_numbers<[1], [0], [0], [1], [0, 0, 1, 1], [], []>} : vector<24x96xf32>, vector<96x32xf32>, vector<24x32xf32> -> vector<24x32xf32>
    %151 = arith.divf %150, %149 : vector<24x32xf32>
    %152 = tpu.concatenate %97, %115, %133, %151 in 0 : vector<24x32xf32>, vector<24x32xf32>, vector<24x32xf32>, vector<24x32xf32> -> vector<96x32xf32>
    %c0_67 = arith.constant 0 : index
    %c0_68 = arith.constant 0 : index
    %c0_69 = arith.constant 0 : index
    %153 = vector.load %arg16[%c0_67, %c0_68, %c0_69] : memref<2x32x32xf32, #tpu.memory_space<vmem>>, vector<1x32x32xf32>
    %154 = vector.shape_cast %153 : vector<1x32x32xf32> to vector<32x32xf32>
    %cst_70 = arith.constant dense<0.000000e+00> : vector<96x32xf32>
    %155 = tpu.matmul %152, %154, %cst_70 {dimension_numbers = #tpu.dot_dimension_numbers<[1], [0], [0], [1], [0, 0, 1, 1], [], []>} : vector<96x32xf32>, vector<32x32xf32>, vector<96x32xf32> -> vector<96x32xf32>
    %156 = arith.addf %28, %155 : vector<96x32xf32>
    %c0_71 = arith.constant 0 : index
    %c0_72 = arith.constant 0 : index
    %c0_73 = arith.constant 0 : index
    %157 = vector.load %arg17[%c0_71, %c0_72, %c0_73] : memref<2x1x32xf32, #tpu.memory_space<vmem>>, vector<1x1x32xf32>
    %158 = vector.shape_cast %157 : vector<1x1x32xf32> to vector<1x32xf32>
    %159 = vector.broadcast %158 : vector<1x32xf32> to vector<96x32xf32>
    %160 = arith.addf %156, %159 : vector<96x32xf32>
    %c0_74 = arith.constant 0 : index
    %c0_75 = arith.constant 0 : index
    %c0_76 = arith.constant 0 : index
    %161 = vector.load %arg18[%c0_74, %c0_75, %c0_76] : memref<2x1x32xf32, #tpu.memory_space<vmem>>, vector<1x1x32xf32>
    %162 = vector.shape_cast %161 : vector<1x1x32xf32> to vector<1x32xf32>
    %c0_77 = arith.constant 0 : index
    %c0_78 = arith.constant 0 : index
    %c0_79 = arith.constant 0 : index
    %163 = vector.load %arg19[%c0_77, %c0_78, %c0_79] : memref<2x1x32xf32, #tpu.memory_space<vmem>>, vector<1x1x32xf32>
    %164 = vector.shape_cast %163 : vector<1x1x32xf32> to vector<1x32xf32>
    %cst_80 = arith.constant dense<0.000000e+00> : vector<96xf32>
    %165 = vector.multi_reduction <add>, %160, %cst_80 [1] : vector<96x32xf32> to vector<96xf32>
    %166 = vector.shape_cast %165 : vector<96xf32> to vector<96x1xf32>
    %cst_81 = arith.constant 3.200000e+01 : f32
    %167 = vector.broadcast %cst_81 : f32 to vector<96x1xf32>
    %168 = arith.divf %166, %167 : vector<96x1xf32>
    %169 = vector.broadcast %168 : vector<96x1xf32> to vector<96x32xf32>
    %170 = arith.subf %160, %169 : vector<96x32xf32>
    %171 = arith.mulf %170, %170 : vector<96x32xf32>
    %cst_82 = arith.constant dense<0.000000e+00> : vector<96xf32>
    %172 = vector.multi_reduction <add>, %171, %cst_82 [1] : vector<96x32xf32> to vector<96xf32>
    %173 = vector.shape_cast %172 : vector<96xf32> to vector<96x1xf32>
    %cst_83 = arith.constant 3.200000e+01 : f32
    %174 = vector.broadcast %cst_83 : f32 to vector<96x1xf32>
    %175 = arith.divf %173, %174 : vector<96x1xf32>
    %176 = vector.broadcast %168 : vector<96x1xf32> to vector<96x32xf32>
    %177 = arith.subf %160, %176 : vector<96x32xf32>
    %cst_84 = arith.constant 9.99999974E-6 : f32
    %178 = vector.broadcast %cst_84 : f32 to vector<96x1xf32>
    %179 = arith.addf %175, %178 : vector<96x1xf32>
    %180 = math.rsqrt %179 : vector<96x1xf32>
    %181 = vector.broadcast %180 : vector<96x1xf32> to vector<96x32xf32>
    %182 = arith.mulf %177, %181 : vector<96x32xf32>
    %183 = vector.broadcast %162 : vector<1x32xf32> to vector<96x32xf32>
    %184 = arith.mulf %182, %183 : vector<96x32xf32>
    %185 = vector.broadcast %164 : vector<1x32xf32> to vector<96x32xf32>
    %186 = arith.addf %184, %185 : vector<96x32xf32>
    %c0_85 = arith.constant 0 : index
    %c0_86 = arith.constant 0 : index
    %c0_87 = arith.constant 0 : index
    %187 = vector.load %arg20[%c0_85, %c0_86, %c0_87] : memref<2x32x128xf32, #tpu.memory_space<vmem>>, vector<1x32x128xf32>
    %188 = vector.shape_cast %187 : vector<1x32x128xf32> to vector<32x128xf32>
    %cst_88 = arith.constant dense<0.000000e+00> : vector<96x128xf32>
    %189 = tpu.matmul %186, %188, %cst_88 {dimension_numbers = #tpu.dot_dimension_numbers<[1], [0], [0], [1], [0, 0, 1, 1], [], []>} : vector<96x32xf32>, vector<32x128xf32>, vector<96x128xf32> -> vector<96x128xf32>
    %c0_89 = arith.constant 0 : index
    %c0_90 = arith.constant 0 : index
    %c0_91 = arith.constant 0 : index
    %190 = vector.load %arg21[%c0_89, %c0_90, %c0_91] : memref<2x1x128xf32, #tpu.memory_space<vmem>>, vector<1x1x128xf32>
    %191 = vector.shape_cast %190 : vector<1x1x128xf32> to vector<1x128xf32>
    %192 = vector.broadcast %191 : vector<1x128xf32> to vector<96x128xf32>
    %193 = arith.addf %189, %192 : vector<96x128xf32>
    %cst_92 = arith.constant 1.702000e+00 : f32
    %194 = vector.broadcast %cst_92 : f32 to vector<96x128xf32>
    %195 = arith.mulf %194, %193 : vector<96x128xf32>
    %196 = arith.negf %195 : vector<96x128xf32>
    %197 = math.exp %196 : vector<96x128xf32>
    %cst_93 = arith.constant 1.000000e+00 : f32
    %198 = vector.broadcast %cst_93 : f32 to vector<96x128xf32>
    %199 = arith.addf %198, %197 : vector<96x128xf32>
    %200 = arith.divf %198, %199 : vector<96x128xf32>
    %201 = arith.mulf %193, %200 : vector<96x128xf32>
    %c0_94 = arith.constant 0 : index
    %c0_95 = arith.constant 0 : index
    %c0_96 = arith.constant 0 : index
    %202 = vector.load %arg22[%c0_94, %c0_95, %c0_96] : memref<2x128x32xf32, #tpu.memory_space<vmem>>, vector<1x128x32xf32>
    %203 = vector.shape_cast %202 : vector<1x128x32xf32> to vector<128x32xf32>
    %cst_97 = arith.constant dense<0.000000e+00> : vector<96x32xf32>
    %204 = tpu.matmul %201, %203, %cst_97 {dimension_numbers = #tpu.dot_dimension_numbers<[1], [0], [0], [1], [0, 0, 1, 1], [], []>} : vector<96x128xf32>, vector<128x32xf32>, vector<96x32xf32> -> vector<96x32xf32>
    %205 = arith.addf %160, %204 : vector<96x32xf32>
    %c0_98 = arith.constant 0 : index
    %c0_99 = arith.constant 0 : index
    %c0_100 = arith.constant 0 : index
    %206 = vector.load %arg23[%c0_98, %c0_99, %c0_100] : memref<2x1x32xf32, #tpu.memory_space<vmem>>, vector<1x1x32xf32>
    %207 = vector.shape_cast %206 : vector<1x1x32xf32> to vector<1x32xf32>
    %208 = vector.broadcast %207 : vector<1x32xf32> to vector<96x32xf32>
    %209 = arith.addf %205, %208 : vector<96x32xf32>
    %c1 = arith.constant 1 : index
    %c0_101 = arith.constant 0 : index
    %c0_102 = arith.constant 0 : index
    %210 = vector.load %arg8[%c1, %c0_101, %c0_102] : memref<2x1x32xf32, #tpu.memory_space<vmem>>, vector<1x1x32xf32>
    %211 = vector.shape_cast %210 : vector<1x1x32xf32> to vector<1x32xf32>
    %c1_103 = arith.constant 1 : index
    %c0_104 = arith.constant 0 : index
    %c0_105 = arith.constant 0 : index
    %212 = vector.load %arg9[%c1_103, %c0_104, %c0_105] : memref<2x1x32xf32, #tpu.memory_space<vmem>>, vector<1x1x32xf32>
    %213 = vector.shape_cast %212 : vector<1x1x32xf32> to vector<1x32xf32>
    %cst_106 = arith.constant dense<0.000000e+00> : vector<96xf32>
    %214 = vector.multi_reduction <add>, %209, %cst_106 [1] : vector<96x32xf32> to vector<96xf32>
    %215 = vector.shape_cast %214 : vector<96xf32> to vector<96x1xf32>
    %cst_107 = arith.constant 3.200000e+01 : f32
    %216 = vector.broadcast %cst_107 : f32 to vector<96x1xf32>
    %217 = arith.divf %215, %216 : vector<96x1xf32>
    %218 = vector.broadcast %217 : vector<96x1xf32> to vector<96x32xf32>
    %219 = arith.subf %209, %218 : vector<96x32xf32>
    %220 = arith.mulf %219, %219 : vector<96x32xf32>
    %cst_108 = arith.constant dense<0.000000e+00> : vector<96xf32>
    %221 = vector.multi_reduction <add>, %220, %cst_108 [1] : vector<96x32xf32> to vector<96xf32>
    %222 = vector.shape_cast %221 : vector<96xf32> to vector<96x1xf32>
    %cst_109 = arith.constant 3.200000e+01 : f32
    %223 = vector.broadcast %cst_109 : f32 to vector<96x1xf32>
    %224 = arith.divf %222, %223 : vector<96x1xf32>
    %225 = vector.broadcast %217 : vector<96x1xf32> to vector<96x32xf32>
    %226 = arith.subf %209, %225 : vector<96x32xf32>
    %cst_110 = arith.constant 9.99999974E-6 : f32
    %227 = vector.broadcast %cst_110 : f32 to vector<96x1xf32>
    %228 = arith.addf %224, %227 : vector<96x1xf32>
    %229 = math.rsqrt %228 : vector<96x1xf32>
    %230 = vector.broadcast %229 : vector<96x1xf32> to vector<96x32xf32>
    %231 = arith.mulf %226, %230 : vector<96x32xf32>
    %232 = vector.broadcast %211 : vector<1x32xf32> to vector<96x32xf32>
    %233 = arith.mulf %231, %232 : vector<96x32xf32>
    %234 = vector.broadcast %213 : vector<1x32xf32> to vector<96x32xf32>
    %235 = arith.addf %233, %234 : vector<96x32xf32>
    %c1_111 = arith.constant 1 : index
    %c0_112 = arith.constant 0 : index
    %c0_113 = arith.constant 0 : index
    %236 = vector.load %arg10[%c1_111, %c0_112, %c0_113] : memref<2x32x32xf32, #tpu.memory_space<vmem>>, vector<1x32x32xf32>
    %237 = vector.shape_cast %236 : vector<1x32x32xf32> to vector<32x32xf32>
    %cst_114 = arith.constant dense<0.000000e+00> : vector<96x32xf32>
    %238 = tpu.matmul %235, %237, %cst_114 {dimension_numbers = #tpu.dot_dimension_numbers<[1], [0], [0], [1], [0, 0, 1, 1], [], []>} : vector<96x32xf32>, vector<32x32xf32>, vector<96x32xf32> -> vector<96x32xf32>
    %c1_115 = arith.constant 1 : index
    %c0_116 = arith.constant 0 : index
    %c0_117 = arith.constant 0 : index
    %239 = vector.load %arg11[%c1_115, %c0_116, %c0_117] : memref<2x1x32xf32, #tpu.memory_space<vmem>>, vector<1x1x32xf32>
    %240 = vector.shape_cast %239 : vector<1x1x32xf32> to vector<1x32xf32>
    %241 = vector.broadcast %240 : vector<1x32xf32> to vector<96x32xf32>
    %242 = arith.addf %238, %241 : vector<96x32xf32>
    %cst_118 = arith.constant 0.353553385 : f32
    %243 = vector.broadcast %cst_118 : f32 to vector<96x32xf32>
    %244 = arith.mulf %242, %243 : vector<96x32xf32>
    %c1_119 = arith.constant 1 : index
    %c0_120 = arith.constant 0 : index
    %c0_121 = arith.constant 0 : index
    %245 = vector.load %arg12[%c1_119, %c0_120, %c0_121] : memref<2x32x32xf32, #tpu.memory_space<vmem>>, vector<1x32x32xf32>
    %246 = vector.shape_cast %245 : vector<1x32x32xf32> to vector<32x32xf32>
    %cst_122 = arith.constant dense<0.000000e+00> : vector<96x32xf32>
    %247 = tpu.matmul %235, %246, %cst_122 {dimension_numbers = #tpu.dot_dimension_numbers<[1], [0], [0], [1], [0, 0, 1, 1], [], []>} : vector<96x32xf32>, vector<32x32xf32>, vector<96x32xf32> -> vector<96x32xf32>
    %c1_123 = arith.constant 1 : index
    %c0_124 = arith.constant 0 : index
    %c0_125 = arith.constant 0 : index
    %248 = vector.load %arg13[%c1_123, %c0_124, %c0_125] : memref<2x1x32xf32, #tpu.memory_space<vmem>>, vector<1x1x32xf32>
    %249 = vector.shape_cast %248 : vector<1x1x32xf32> to vector<1x32xf32>
    %250 = vector.broadcast %249 : vector<1x32xf32> to vector<96x32xf32>
    %251 = arith.addf %247, %250 : vector<96x32xf32>
    %c1_126 = arith.constant 1 : index
    %c0_127 = arith.constant 0 : index
    %c0_128 = arith.constant 0 : index
    %252 = vector.load %arg14[%c1_126, %c0_127, %c0_128] : memref<2x32x32xf32, #tpu.memory_space<vmem>>, vector<1x32x32xf32>
    %253 = vector.shape_cast %252 : vector<1x32x32xf32> to vector<32x32xf32>
    %cst_129 = arith.constant dense<0.000000e+00> : vector<96x32xf32>
    %254 = tpu.matmul %235, %253, %cst_129 {dimension_numbers = #tpu.dot_dimension_numbers<[1], [0], [0], [1], [0, 0, 1, 1], [], []>} : vector<96x32xf32>, vector<32x32xf32>, vector<96x32xf32> -> vector<96x32xf32>
    %c1_130 = arith.constant 1 : index
    %c0_131 = arith.constant 0 : index
    %c0_132 = arith.constant 0 : index
    %255 = vector.load %arg15[%c1_130, %c0_131, %c0_132] : memref<2x1x32xf32, #tpu.memory_space<vmem>>, vector<1x1x32xf32>
    %256 = vector.shape_cast %255 : vector<1x1x32xf32> to vector<1x32xf32>
    %257 = vector.broadcast %256 : vector<1x32xf32> to vector<96x32xf32>
    %258 = arith.addf %254, %257 : vector<96x32xf32>
    %259 = vector.extract_strided_slice %244 {offsets = [0, 0], sizes = [24, 32], strides = [1, 1]} : vector<96x32xf32> to vector<24x32xf32>
    %260 = vector.extract_strided_slice %251 {offsets = [0, 0], sizes = [24, 32], strides = [1, 1]} : vector<96x32xf32> to vector<24x32xf32>
    %261 = vector.extract_strided_slice %258 {offsets = [0, 0], sizes = [24, 32], strides = [1, 1]} : vector<96x32xf32> to vector<24x32xf32>
    %262 = tpu.concatenate %260, %260, %260, %260 in 0 : vector<24x32xf32>, vector<24x32xf32>, vector<24x32xf32>, vector<24x32xf32> -> vector<96x32xf32>
    %263 = arith.mulf %262, %29 : vector<96x32xf32>
    %264 = tpu.concatenate %261, %261, %261, %261 in 0 : vector<24x32xf32>, vector<24x32xf32>, vector<24x32xf32>, vector<24x32xf32> -> vector<96x32xf32>
    %265 = arith.mulf %264, %29 : vector<96x32xf32>
    "tpu.trace_start"() <{level = 10 : i32, message = "qd,kd->qk"}> : () -> ()
    %cst_133 = arith.constant dense<0.000000e+00> : vector<24x96xf32>
    %266 = tpu.matmul %259, %263, %cst_133 {dimension_numbers = #tpu.dot_dimension_numbers<[1], [1], [0], [0], [0, 0, 1, 0], [], []>} : vector<24x32xf32>, vector<96x32xf32>, vector<24x96xf32> -> vector<24x96xf32>
    "tpu.trace_stop"() : () -> ()
    %267 = vector.broadcast %30 : vector<1x96xf32> to vector<24x96xf32>
    %268 = arith.addf %266, %267 : vector<24x96xf32>
    %cst_134 = arith.constant dense<0xFF800000> : vector<24xf32>
    %269 = vector.multi_reduction <maximumf>, %268, %cst_134 [1] : vector<24x96xf32> to vector<24xf32>
    %270 = vector.shape_cast %269 : vector<24xf32> to vector<24x1xf32>
    %271 = vector.broadcast %270 : vector<24x1xf32> to vector<24x96xf32>
    %272 = arith.subf %268, %271 : vector<24x96xf32>
    %273 = math.exp %272 : vector<24x96xf32>
    %cst_135 = arith.constant dense<0.000000e+00> : vector<24x32xf32>
    %274 = tpu.matmul %273, %29, %cst_135 {dimension_numbers = #tpu.dot_dimension_numbers<[1], [0], [0], [1], [0, 0, 1, 1], [], []>} : vector<24x96xf32>, vector<96x32xf32>, vector<24x32xf32> -> vector<24x32xf32>
    %cst_136 = arith.constant dense<0.000000e+00> : vector<24x32xf32>
    %275 = tpu.matmul %273, %265, %cst_136 {dimension_numbers = #tpu.dot_dimension_numbers<[1], [0], [0], [1], [0, 0, 1, 1], [], []>} : vector<24x96xf32>, vector<96x32xf32>, vector<24x32xf32> -> vector<24x32xf32>
    %276 = arith.divf %275, %274 : vector<24x32xf32>
    %277 = vector.extract_strided_slice %244 {offsets = [24, 0], sizes = [24, 32], strides = [1, 1]} : vector<96x32xf32> to vector<24x32xf32>
    %278 = vector.extract_strided_slice %251 {offsets = [24, 0], sizes = [24, 32], strides = [1, 1]} : vector<96x32xf32> to vector<24x32xf32>
    %279 = vector.extract_strided_slice %258 {offsets = [24, 0], sizes = [24, 32], strides = [1, 1]} : vector<96x32xf32> to vector<24x32xf32>
    %280 = tpu.concatenate %278, %278, %278, %278 in 0 : vector<24x32xf32>, vector<24x32xf32>, vector<24x32xf32>, vector<24x32xf32> -> vector<96x32xf32>
    %281 = arith.mulf %280, %29 : vector<96x32xf32>
    %282 = tpu.concatenate %279, %279, %279, %279 in 0 : vector<24x32xf32>, vector<24x32xf32>, vector<24x32xf32>, vector<24x32xf32> -> vector<96x32xf32>
    %283 = arith.mulf %282, %29 : vector<96x32xf32>
    "tpu.trace_start"() <{level = 10 : i32, message = "qd,kd->qk"}> : () -> ()
    %cst_137 = arith.constant dense<0.000000e+00> : vector<24x96xf32>
    %284 = tpu.matmul %277, %281, %cst_137 {dimension_numbers = #tpu.dot_dimension_numbers<[1], [1], [0], [0], [0, 0, 1, 0], [], []>} : vector<24x32xf32>, vector<96x32xf32>, vector<24x96xf32> -> vector<24x96xf32>
    "tpu.trace_stop"() : () -> ()
    %285 = vector.broadcast %30 : vector<1x96xf32> to vector<24x96xf32>
    %286 = arith.addf %284, %285 : vector<24x96xf32>
    %cst_138 = arith.constant dense<0xFF800000> : vector<24xf32>
    %287 = vector.multi_reduction <maximumf>, %286, %cst_138 [1] : vector<24x96xf32> to vector<24xf32>
    %288 = vector.shape_cast %287 : vector<24xf32> to vector<24x1xf32>
    %289 = vector.broadcast %288 : vector<24x1xf32> to vector<24x96xf32>
    %290 = arith.subf %286, %289 : vector<24x96xf32>
    %291 = math.exp %290 : vector<24x96xf32>
    %cst_139 = arith.constant dense<0.000000e+00> : vector<24x32xf32>
    %292 = tpu.matmul %291, %29, %cst_139 {dimension_numbers = #tpu.dot_dimension_numbers<[1], [0], [0], [1], [0, 0, 1, 1], [], []>} : vector<24x96xf32>, vector<96x32xf32>, vector<24x32xf32> -> vector<24x32xf32>
    %cst_140 = arith.constant dense<0.000000e+00> : vector<24x32xf32>
    %293 = tpu.matmul %291, %283, %cst_140 {dimension_numbers = #tpu.dot_dimension_numbers<[1], [0], [0], [1], [0, 0, 1, 1], [], []>} : vector<24x96xf32>, vector<96x32xf32>, vector<24x32xf32> -> vector<24x32xf32>
    %294 = arith.divf %293, %292 : vector<24x32xf32>
    %295 = vector.extract_strided_slice %244 {offsets = [48, 0], sizes = [24, 32], strides = [1, 1]} : vector<96x32xf32> to vector<24x32xf32>
    %296 = vector.extract_strided_slice %251 {offsets = [48, 0], sizes = [24, 32], strides = [1, 1]} : vector<96x32xf32> to vector<24x32xf32>
    %297 = vector.extract_strided_slice %258 {offsets = [48, 0], sizes = [24, 32], strides = [1, 1]} : vector<96x32xf32> to vector<24x32xf32>
    %298 = tpu.concatenate %296, %296, %296, %296 in 0 : vector<24x32xf32>, vector<24x32xf32>, vector<24x32xf32>, vector<24x32xf32> -> vector<96x32xf32>
    %299 = arith.mulf %298, %29 : vector<96x32xf32>
    %300 = tpu.concatenate %297, %297, %297, %297 in 0 : vector<24x32xf32>, vector<24x32xf32>, vector<24x32xf32>, vector<24x32xf32> -> vector<96x32xf32>
    %301 = arith.mulf %300, %29 : vector<96x32xf32>
    "tpu.trace_start"() <{level = 10 : i32, message = "qd,kd->qk"}> : () -> ()
    %cst_141 = arith.constant dense<0.000000e+00> : vector<24x96xf32>
    %302 = tpu.matmul %295, %299, %cst_141 {dimension_numbers = #tpu.dot_dimension_numbers<[1], [1], [0], [0], [0, 0, 1, 0], [], []>} : vector<24x32xf32>, vector<96x32xf32>, vector<24x96xf32> -> vector<24x96xf32>
    "tpu.trace_stop"() : () -> ()
    %303 = vector.broadcast %30 : vector<1x96xf32> to vector<24x96xf32>
    %304 = arith.addf %302, %303 : vector<24x96xf32>
    %cst_142 = arith.constant dense<0xFF800000> : vector<24xf32>
    %305 = vector.multi_reduction <maximumf>, %304, %cst_142 [1] : vector<24x96xf32> to vector<24xf32>
    %306 = vector.shape_cast %305 : vector<24xf32> to vector<24x1xf32>
    %307 = vector.broadcast %306 : vector<24x1xf32> to vector<24x96xf32>
    %308 = arith.subf %304, %307 : vector<24x96xf32>
    %309 = math.exp %308 : vector<24x96xf32>
    %cst_143 = arith.constant dense<0.000000e+00> : vector<24x32xf32>
    %310 = tpu.matmul %309, %29, %cst_143 {dimension_numbers = #tpu.dot_dimension_numbers<[1], [0], [0], [1], [0, 0, 1, 1], [], []>} : vector<24x96xf32>, vector<96x32xf32>, vector<24x32xf32> -> vector<24x32xf32>
    %cst_144 = arith.constant dense<0.000000e+00> : vector<24x32xf32>
    %311 = tpu.matmul %309, %301, %cst_144 {dimension_numbers = #tpu.dot_dimension_numbers<[1], [0], [0], [1], [0, 0, 1, 1], [], []>} : vector<24x96xf32>, vector<96x32xf32>, vector<24x32xf32> -> vector<24x32xf32>
    %312 = arith.divf %311, %310 : vector<24x32xf32>
    %313 = vector.extract_strided_slice %244 {offsets = [72, 0], sizes = [24, 32], strides = [1, 1]} : vector<96x32xf32> to vector<24x32xf32>
    %314 = vector.extract_strided_slice %251 {offsets = [72, 0], sizes = [24, 32], strides = [1, 1]} : vector<96x32xf32> to vector<24x32xf32>
    %315 = vector.extract_strided_slice %258 {offsets = [72, 0], sizes = [24, 32], strides = [1, 1]} : vector<96x32xf32> to vector<24x32xf32>
    %316 = tpu.concatenate %314, %314, %314, %314 in 0 : vector<24x32xf32>, vector<24x32xf32>, vector<24x32xf32>, vector<24x32xf32> -> vector<96x32xf32>
    %317 = arith.mulf %316, %29 : vector<96x32xf32>
    %318 = tpu.concatenate %315, %315, %315, %315 in 0 : vector<24x32xf32>, vector<24x32xf32>, vector<24x32xf32>, vector<24x32xf32> -> vector<96x32xf32>
    %319 = arith.mulf %318, %29 : vector<96x32xf32>
    "tpu.trace_start"() <{level = 10 : i32, message = "qd,kd->qk"}> : () -> ()
    %cst_145 = arith.constant dense<0.000000e+00> : vector<24x96xf32>
    %320 = tpu.matmul %313, %317, %cst_145 {dimension_numbers = #tpu.dot_dimension_numbers<[1], [1], [0], [0], [0, 0, 1, 0], [], []>} : vector<24x32xf32>, vector<96x32xf32>, vector<24x96xf32> -> vector<24x96xf32>
    "tpu.trace_stop"() : () -> ()
    %321 = vector.broadcast %30 : vector<1x96xf32> to vector<24x96xf32>
    %322 = arith.addf %320, %321 : vector<24x96xf32>
    %cst_146 = arith.constant dense<0xFF800000> : vector<24xf32>
    %323 = vector.multi_reduction <maximumf>, %322, %cst_146 [1] : vector<24x96xf32> to vector<24xf32>
    %324 = vector.shape_cast %323 : vector<24xf32> to vector<24x1xf32>
    %325 = vector.broadcast %324 : vector<24x1xf32> to vector<24x96xf32>
    %326 = arith.subf %322, %325 : vector<24x96xf32>
    %327 = math.exp %326 : vector<24x96xf32>
    %cst_147 = arith.constant dense<0.000000e+00> : vector<24x32xf32>
    %328 = tpu.matmul %327, %29, %cst_147 {dimension_numbers = #tpu.dot_dimension_numbers<[1], [0], [0], [1], [0, 0, 1, 1], [], []>} : vector<24x96xf32>, vector<96x32xf32>, vector<24x32xf32> -> vector<24x32xf32>
    %cst_148 = arith.constant dense<0.000000e+00> : vector<24x32xf32>
    %329 = tpu.matmul %327, %319, %cst_148 {dimension_numbers = #tpu.dot_dimension_numbers<[1], [0], [0], [1], [0, 0, 1, 1], [], []>} : vector<24x96xf32>, vector<96x32xf32>, vector<24x32xf32> -> vector<24x32xf32>
    %330 = arith.divf %329, %328 : vector<24x32xf32>
    %331 = tpu.concatenate %276, %294, %312, %330 in 0 : vector<24x32xf32>, vector<24x32xf32>, vector<24x32xf32>, vector<24x32xf32> -> vector<96x32xf32>
    %c1_149 = arith.constant 1 : index
    %c0_150 = arith.constant 0 : index
    %c0_151 = arith.constant 0 : index
    %332 = vector.load %arg16[%c1_149, %c0_150, %c0_151] : memref<2x32x32xf32, #tpu.memory_space<vmem>>, vector<1x32x32xf32>
    %333 = vector.shape_cast %332 : vector<1x32x32xf32> to vector<32x32xf32>
    %cst_152 = arith.constant dense<0.000000e+00> : vector<96x32xf32>
    %334 = tpu.matmul %331, %333, %cst_152 {dimension_numbers = #tpu.dot_dimension_numbers<[1], [0], [0], [1], [0, 0, 1, 1], [], []>} : vector<96x32xf32>, vector<32x32xf32>, vector<96x32xf32> -> vector<96x32xf32>
    %335 = arith.addf %209, %334 : vector<96x32xf32>
    %c1_153 = arith.constant 1 : index
    %c0_154 = arith.constant 0 : index
    %c0_155 = arith.constant 0 : index
    %336 = vector.load %arg17[%c1_153, %c0_154, %c0_155] : memref<2x1x32xf32, #tpu.memory_space<vmem>>, vector<1x1x32xf32>
    %337 = vector.shape_cast %336 : vector<1x1x32xf32> to vector<1x32xf32>
    %338 = vector.broadcast %337 : vector<1x32xf32> to vector<96x32xf32>
    %339 = arith.addf %335, %338 : vector<96x32xf32>
    %c1_156 = arith.constant 1 : index
    %c0_157 = arith.constant 0 : index
    %c0_158 = arith.constant 0 : index
    %340 = vector.load %arg18[%c1_156, %c0_157, %c0_158] : memref<2x1x32xf32, #tpu.memory_space<vmem>>, vector<1x1x32xf32>
    %341 = vector.shape_cast %340 : vector<1x1x32xf32> to vector<1x32xf32>
    %c1_159 = arith.constant 1 : index
    %c0_160 = arith.constant 0 : index
    %c0_161 = arith.constant 0 : index
    %342 = vector.load %arg19[%c1_159, %c0_160, %c0_161] : memref<2x1x32xf32, #tpu.memory_space<vmem>>, vector<1x1x32xf32>
    %343 = vector.shape_cast %342 : vector<1x1x32xf32> to vector<1x32xf32>
    %cst_162 = arith.constant dense<0.000000e+00> : vector<96xf32>
    %344 = vector.multi_reduction <add>, %339, %cst_162 [1] : vector<96x32xf32> to vector<96xf32>
    %345 = vector.shape_cast %344 : vector<96xf32> to vector<96x1xf32>
    %cst_163 = arith.constant 3.200000e+01 : f32
    %346 = vector.broadcast %cst_163 : f32 to vector<96x1xf32>
    %347 = arith.divf %345, %346 : vector<96x1xf32>
    %348 = vector.broadcast %347 : vector<96x1xf32> to vector<96x32xf32>
    %349 = arith.subf %339, %348 : vector<96x32xf32>
    %350 = arith.mulf %349, %349 : vector<96x32xf32>
    %cst_164 = arith.constant dense<0.000000e+00> : vector<96xf32>
    %351 = vector.multi_reduction <add>, %350, %cst_164 [1] : vector<96x32xf32> to vector<96xf32>
    %352 = vector.shape_cast %351 : vector<96xf32> to vector<96x1xf32>
    %cst_165 = arith.constant 3.200000e+01 : f32
    %353 = vector.broadcast %cst_165 : f32 to vector<96x1xf32>
    %354 = arith.divf %352, %353 : vector<96x1xf32>
    %355 = vector.broadcast %347 : vector<96x1xf32> to vector<96x32xf32>
    %356 = arith.subf %339, %355 : vector<96x32xf32>
    %cst_166 = arith.constant 9.99999974E-6 : f32
    %357 = vector.broadcast %cst_166 : f32 to vector<96x1xf32>
    %358 = arith.addf %354, %357 : vector<96x1xf32>
    %359 = math.rsqrt %358 : vector<96x1xf32>
    %360 = vector.broadcast %359 : vector<96x1xf32> to vector<96x32xf32>
    %361 = arith.mulf %356, %360 : vector<96x32xf32>
    %362 = vector.broadcast %341 : vector<1x32xf32> to vector<96x32xf32>
    %363 = arith.mulf %361, %362 : vector<96x32xf32>
    %364 = vector.broadcast %343 : vector<1x32xf32> to vector<96x32xf32>
    %365 = arith.addf %363, %364 : vector<96x32xf32>
    %c1_167 = arith.constant 1 : index
    %c0_168 = arith.constant 0 : index
    %c0_169 = arith.constant 0 : index
    %366 = vector.load %arg20[%c1_167, %c0_168, %c0_169] : memref<2x32x128xf32, #tpu.memory_space<vmem>>, vector<1x32x128xf32>
    %367 = vector.shape_cast %366 : vector<1x32x128xf32> to vector<32x128xf32>
    %cst_170 = arith.constant dense<0.000000e+00> : vector<96x128xf32>
    %368 = tpu.matmul %365, %367, %cst_170 {dimension_numbers = #tpu.dot_dimension_numbers<[1], [0], [0], [1], [0, 0, 1, 1], [], []>} : vector<96x32xf32>, vector<32x128xf32>, vector<96x128xf32> -> vector<96x128xf32>
    %c1_171 = arith.constant 1 : index
    %c0_172 = arith.constant 0 : index
    %c0_173 = arith.constant 0 : index
    %369 = vector.load %arg21[%c1_171, %c0_172, %c0_173] : memref<2x1x128xf32, #tpu.memory_space<vmem>>, vector<1x1x128xf32>
    %370 = vector.shape_cast %369 : vector<1x1x128xf32> to vector<1x128xf32>
    %371 = vector.broadcast %370 : vector<1x128xf32> to vector<96x128xf32>
    %372 = arith.addf %368, %371 : vector<96x128xf32>
    %cst_174 = arith.constant 1.702000e+00 : f32
    %373 = vector.broadcast %cst_174 : f32 to vector<96x128xf32>
    %374 = arith.mulf %373, %372 : vector<96x128xf32>
    %375 = arith.negf %374 : vector<96x128xf32>
    %376 = math.exp %375 : vector<96x128xf32>
    %cst_175 = arith.constant 1.000000e+00 : f32
    %377 = vector.broadcast %cst_175 : f32 to vector<96x128xf32>
    %378 = arith.addf %377, %376 : vector<96x128xf32>
    %379 = arith.divf %377, %378 : vector<96x128xf32>
    %380 = arith.mulf %372, %379 : vector<96x128xf32>
    %c1_176 = arith.constant 1 : index
    %c0_177 = arith.constant 0 : index
    %c0_178 = arith.constant 0 : index
    %381 = vector.load %arg22[%c1_176, %c0_177, %c0_178] : memref<2x128x32xf32, #tpu.memory_space<vmem>>, vector<1x128x32xf32>
    %382 = vector.shape_cast %381 : vector<1x128x32xf32> to vector<128x32xf32>
    %cst_179 = arith.constant dense<0.000000e+00> : vector<96x32xf32>
    %383 = tpu.matmul %380, %382, %cst_179 {dimension_numbers = #tpu.dot_dimension_numbers<[1], [0], [0], [1], [0, 0, 1, 1], [], []>} : vector<96x128xf32>, vector<128x32xf32>, vector<96x32xf32> -> vector<96x32xf32>
    %384 = arith.addf %339, %383 : vector<96x32xf32>
    %c1_180 = arith.constant 1 : index
    %c0_181 = arith.constant 0 : index
    %c0_182 = arith.constant 0 : index
    %385 = vector.load %arg23[%c1_180, %c0_181, %c0_182] : memref<2x1x32xf32, #tpu.memory_space<vmem>>, vector<1x1x32xf32>
    %386 = vector.shape_cast %385 : vector<1x1x32xf32> to vector<1x32xf32>
    %387 = vector.broadcast %386 : vector<1x32xf32> to vector<96x32xf32>
    %388 = arith.addf %384, %387 : vector<96x32xf32>
    %389 = vector.extract_strided_slice %388 {offsets = [0, 0], sizes = [1, 32], strides = [1, 1]} : vector<96x32xf32> to vector<1x32xf32>
    %390 = vector.extract_strided_slice %388 {offsets = [24, 0], sizes = [1, 32], strides = [1, 1]} : vector<96x32xf32> to vector<1x32xf32>
    %391 = vector.extract_strided_slice %388 {offsets = [48, 0], sizes = [1, 32], strides = [1, 1]} : vector<96x32xf32> to vector<1x32xf32>
    %392 = vector.extract_strided_slice %388 {offsets = [72, 0], sizes = [1, 32], strides = [1, 1]} : vector<96x32xf32> to vector<1x32xf32>
    %393 = tpu.concatenate %389, %390, %391, %392 in 0 : vector<1x32xf32>, vector<1x32xf32>, vector<1x32xf32>, vector<1x32xf32> -> vector<4x32xf32>
    %c0_183 = arith.constant 0 : index
    %c0_184 = arith.constant 0 : index
    %394 = vector.load %arg24[%c0_183, %c0_184] : memref<1x32xf32, #tpu.memory_space<vmem>>, vector<1x32xf32>
    %c0_185 = arith.constant 0 : index
    %c0_186 = arith.constant 0 : index
    %395 = vector.load %arg25[%c0_185, %c0_186] : memref<1x32xf32, #tpu.memory_space<vmem>>, vector<1x32xf32>
    %cst_187 = arith.constant dense<0.000000e+00> : vector<4xf32>
    %396 = vector.multi_reduction <add>, %393, %cst_187 [1] : vector<4x32xf32> to vector<4xf32>
    %397 = vector.shape_cast %396 : vector<4xf32> to vector<4x1xf32>
    %cst_188 = arith.constant 3.200000e+01 : f32
    %398 = vector.broadcast %cst_188 : f32 to vector<4x1xf32>
    %399 = arith.divf %397, %398 : vector<4x1xf32>
    %400 = vector.broadcast %399 : vector<4x1xf32> to vector<4x32xf32>
    %401 = arith.subf %393, %400 : vector<4x32xf32>
    %402 = arith.mulf %401, %401 : vector<4x32xf32>
    %cst_189 = arith.constant dense<0.000000e+00> : vector<4xf32>
    %403 = vector.multi_reduction <add>, %402, %cst_189 [1] : vector<4x32xf32> to vector<4xf32>
    %404 = vector.shape_cast %403 : vector<4xf32> to vector<4x1xf32>
    %cst_190 = arith.constant 3.200000e+01 : f32
    %405 = vector.broadcast %cst_190 : f32 to vector<4x1xf32>
    %406 = arith.divf %404, %405 : vector<4x1xf32>
    %407 = vector.broadcast %399 : vector<4x1xf32> to vector<4x32xf32>
    %408 = arith.subf %393, %407 : vector<4x32xf32>
    %cst_191 = arith.constant 9.99999974E-6 : f32
    %409 = vector.broadcast %cst_191 : f32 to vector<4x1xf32>
    %410 = arith.addf %406, %409 : vector<4x1xf32>
    %411 = math.rsqrt %410 : vector<4x1xf32>
    %412 = vector.broadcast %411 : vector<4x1xf32> to vector<4x32xf32>
    %413 = arith.mulf %408, %412 : vector<4x32xf32>
    %414 = vector.broadcast %394 : vector<1x32xf32> to vector<4x32xf32>
    %415 = arith.mulf %413, %414 : vector<4x32xf32>
    %416 = vector.broadcast %395 : vector<1x32xf32> to vector<4x32xf32>
    %417 = arith.addf %415, %416 : vector<4x32xf32>
    %c0_192 = arith.constant 0 : index
    %c0_193 = arith.constant 0 : index
    %418 = vector.load %arg26[%c0_192, %c0_193] : memref<32x16xf32, #tpu.memory_space<vmem>>, vector<32x16xf32>
    %cst_194 = arith.constant dense<0.000000e+00> : vector<4x16xf32>
    %419 = tpu.matmul %417, %418, %cst_194 {dimension_numbers = #tpu.dot_dimension_numbers<[1], [0], [0], [1], [0, 0, 1, 1], [], []>} : vector<4x32xf32>, vector<32x16xf32>, vector<4x16xf32> -> vector<4x16xf32>
    %c0_195 = arith.constant 0 : index
    %c0_196 = arith.constant 0 : index
    %c0_197 = arith.constant 0 : index
    %420 = vector.load %arg27[%c0_195, %c0_196, %c0_197] : memref<1x4x16xf32, #tpu.memory_space<vmem>>, vector<1x4x16xf32>
    %421 = vector.shape_cast %420 : vector<1x4x16xf32> to vector<4x16xf32>
    %422 = vector.shape_cast %419 : vector<4x16xf32> to vector<1x4x16xf32>
    tpu.vector_store %arg27[%c0_195, %c0_196, %c0_197], %422 {strides = array<i32>} : memref<1x4x16xf32, #tpu.memory_space<vmem>>, vector<1x4x16xf32>,
    return
  }
  func.func @transform_0(%arg0: i32) -> (i32, i32) {
    %c0_i32 = arith.constant 0 : i32
    %c0_i32_0 = arith.constant 0 : i32
    return %arg0, %c0_i32 : i32, i32
  }
  func.func @transform_1(%arg0: i32) -> (i32, i32) {
    %c0_i32 = arith.constant 0 : i32
    %c0_i32_0 = arith.constant 0 : i32
    %c0_i32_1 = arith.constant 0 : i32
    return %c0_i32, %c0_i32_0 : i32, i32
  }
  func.func @transform_2(%arg0: i32) -> (i32, i32) {
    %c0_i32 = arith.constant 0 : i32
    %c0_i32_0 = arith.constant 0 : i32
    %c0_i32_1 = arith.constant 0 : i32
    return %c0_i32, %c0_i32_0 : i32, i32
  }
  func.func @transform_3(%arg0: i32) -> (i32, i32) {
    %c0_i32 = arith.constant 0 : i32
    %c0_i32_0 = arith.constant 0 : i32
    %c0_i32_1 = arith.constant 0 : i32
    return %c0_i32, %c0_i32_0 : i32, i32
  }
  func.func @transform_4(%arg0: i32) -> (i32, i32) {
    %c0_i32 = arith.constant 0 : i32
    %c0_i32_0 = arith.constant 0 : i32
    %c0_i32_1 = arith.constant 0 : i32
    return %c0_i32, %c0_i32_0 : i32, i32
  }
  func.func @transform_5(%arg0: i32) -> (i32, i32) {
    %c0_i32 = arith.constant 0 : i32
    %c0_i32_0 = arith.constant 0 : i32
    %c0_i32_1 = arith.constant 0 : i32
    return %c0_i32, %c0_i32_0 : i32, i32
  }
  func.func @transform_6(%arg0: i32) -> (i32, i32) {
    %c0_i32 = arith.constant 0 : i32
    %c0_i32_0 = arith.constant 0 : i32
    %c0_i32_1 = arith.constant 0 : i32
    return %c0_i32, %c0_i32_0 : i32, i32
  }
  func.func @transform_7(%arg0: i32) -> (i32, i32, i32) {
    %c0_i32 = arith.constant 0 : i32
    %c0_i32_0 = arith.constant 0 : i32
    %c0_i32_1 = arith.constant 0 : i32
    %c0_i32_2 = arith.constant 0 : i32
    return %c0_i32, %c0_i32_0, %c0_i32_1 : i32, i32, i32
  }
  func.func @transform_8(%arg0: i32) -> (i32, i32, i32) {
    %c0_i32 = arith.constant 0 : i32
    %c0_i32_0 = arith.constant 0 : i32
    %c0_i32_1 = arith.constant 0 : i32
    %c0_i32_2 = arith.constant 0 : i32
    return %c0_i32, %c0_i32_0, %c0_i32_1 : i32, i32, i32
  }
  func.func @transform_9(%arg0: i32) -> (i32, i32, i32) {
    %c0_i32 = arith.constant 0 : i32
    %c0_i32_0 = arith.constant 0 : i32
    %c0_i32_1 = arith.constant 0 : i32
    %c0_i32_2 = arith.constant 0 : i32
    return %c0_i32, %c0_i32_0, %c0_i32_1 : i32, i32, i32
  }
  func.func @transform_10(%arg0: i32) -> (i32, i32, i32) {
    %c0_i32 = arith.constant 0 : i32
    %c0_i32_0 = arith.constant 0 : i32
    %c0_i32_1 = arith.constant 0 : i32
    %c0_i32_2 = arith.constant 0 : i32
    return %c0_i32, %c0_i32_0, %c0_i32_1 : i32, i32, i32
  }
  func.func @transform_11(%arg0: i32) -> (i32, i32, i32) {
    %c0_i32 = arith.constant 0 : i32
    %c0_i32_0 = arith.constant 0 : i32
    %c0_i32_1 = arith.constant 0 : i32
    %c0_i32_2 = arith.constant 0 : i32
    return %c0_i32, %c0_i32_0, %c0_i32_1 : i32, i32, i32
  }
  func.func @transform_12(%arg0: i32) -> (i32, i32, i32) {
    %c0_i32 = arith.constant 0 : i32
    %c0_i32_0 = arith.constant 0 : i32
    %c0_i32_1 = arith.constant 0 : i32
    %c0_i32_2 = arith.constant 0 : i32
    return %c0_i32, %c0_i32_0, %c0_i32_1 : i32, i32, i32
  }
  func.func @transform_13(%arg0: i32) -> (i32, i32, i32) {
    %c0_i32 = arith.constant 0 : i32
    %c0_i32_0 = arith.constant 0 : i32
    %c0_i32_1 = arith.constant 0 : i32
    %c0_i32_2 = arith.constant 0 : i32
    return %c0_i32, %c0_i32_0, %c0_i32_1 : i32, i32, i32
  }
  func.func @transform_14(%arg0: i32) -> (i32, i32, i32) {
    %c0_i32 = arith.constant 0 : i32
    %c0_i32_0 = arith.constant 0 : i32
    %c0_i32_1 = arith.constant 0 : i32
    %c0_i32_2 = arith.constant 0 : i32
    return %c0_i32, %c0_i32_0, %c0_i32_1 : i32, i32, i32
  }
  func.func @transform_15(%arg0: i32) -> (i32, i32, i32) {
    %c0_i32 = arith.constant 0 : i32
    %c0_i32_0 = arith.constant 0 : i32
    %c0_i32_1 = arith.constant 0 : i32
    %c0_i32_2 = arith.constant 0 : i32
    return %c0_i32, %c0_i32_0, %c0_i32_1 : i32, i32, i32
  }
  func.func @transform_16(%arg0: i32) -> (i32, i32, i32) {
    %c0_i32 = arith.constant 0 : i32
    %c0_i32_0 = arith.constant 0 : i32
    %c0_i32_1 = arith.constant 0 : i32
    %c0_i32_2 = arith.constant 0 : i32
    return %c0_i32, %c0_i32_0, %c0_i32_1 : i32, i32, i32
  }
  func.func @transform_17(%arg0: i32) -> (i32, i32, i32) {
    %c0_i32 = arith.constant 0 : i32
    %c0_i32_0 = arith.constant 0 : i32
    %c0_i32_1 = arith.constant 0 : i32
    %c0_i32_2 = arith.constant 0 : i32
    return %c0_i32, %c0_i32_0, %c0_i32_1 : i32, i32, i32
  }
  func.func @transform_18(%arg0: i32) -> (i32, i32, i32) {
    %c0_i32 = arith.constant 0 : i32
    %c0_i32_0 = arith.constant 0 : i32
    %c0_i32_1 = arith.constant 0 : i32
    %c0_i32_2 = arith.constant 0 : i32
    return %c0_i32, %c0_i32_0, %c0_i32_1 : i32, i32, i32
  }
  func.func @transform_19(%arg0: i32) -> (i32, i32, i32) {
    %c0_i32 = arith.constant 0 : i32
    %c0_i32_0 = arith.constant 0 : i32
    %c0_i32_1 = arith.constant 0 : i32
    %c0_i32_2 = arith.constant 0 : i32
    return %c0_i32, %c0_i32_0, %c0_i32_1 : i32, i32, i32
  }
  func.func @transform_20(%arg0: i32) -> (i32, i32, i32) {
    %c0_i32 = arith.constant 0 : i32
    %c0_i32_0 = arith.constant 0 : i32
    %c0_i32_1 = arith.constant 0 : i32
    %c0_i32_2 = arith.constant 0 : i32
    return %c0_i32, %c0_i32_0, %c0_i32_1 : i32, i32, i32
  }
  func.func @transform_21(%arg0: i32) -> (i32, i32, i32) {
    %c0_i32 = arith.constant 0 : i32
    %c0_i32_0 = arith.constant 0 : i32
    %c0_i32_1 = arith.constant 0 : i32
    %c0_i32_2 = arith.constant 0 : i32
    return %c0_i32, %c0_i32_0, %c0_i32_1 : i32, i32, i32
  }
  func.func @transform_22(%arg0: i32) -> (i32, i32, i32) {
    %c0_i32 = arith.constant 0 : i32
    %c0_i32_0 = arith.constant 0 : i32
    %c0_i32_1 = arith.constant 0 : i32
    %c0_i32_2 = arith.constant 0 : i32
    return %c0_i32, %c0_i32_0, %c0_i32_1 : i32, i32, i32
  }
  func.func @transform_23(%arg0: i32) -> (i32, i32) {
    %c0_i32 = arith.constant 0 : i32
    %c0_i32_0 = arith.constant 0 : i32
    %c0_i32_1 = arith.constant 0 : i32
    return %c0_i32, %c0_i32_0 : i32, i32
  }
  func.func @transform_24(%arg0: i32) -> (i32, i32) {
    %c0_i32 = arith.constant 0 : i32
    %c0_i32_0 = arith.constant 0 : i32
    %c0_i32_1 = arith.constant 0 : i32
    return %c0_i32, %c0_i32_0 : i32, i32
  }
  func.func @transform_25(%arg0: i32) -> (i32, i32) {
    %c0_i32 = arith.constant 0 : i32
    %c0_i32_0 = arith.constant 0 : i32
    %c0_i32_1 = arith.constant 0 : i32
    return %c0_i32, %c0_i32_0 : i32, i32
  }
  func.func @transform_26(%arg0: i32) -> (i32, i32, i32) {
    %c0_i32 = arith.constant 0 : i32
    %c0_i32_0 = arith.constant 0 : i32
    %c0_i32_1 = arith.constant 0 : i32
    return %arg0, %c0_i32, %c0_i32_0 : i32, i32, i32
  }
}

</mosaic_0001>

<bundles_post_ra>
// kernel: clip_feature_extractor.2
= control target key start
LH: loop header
LB: loop body
LE: loop exit
PB: predicated region body
PF: predicated region fallthrough
CT: control target
= control target key end

     0   :  { %9 = vsyncpa [#allocation3], 0  ;;  %s3390_s0 = inlined_call_operand.hbm [shape: f32[8,48,16], index: 0, kind: input, shape index: {}]   ;;  %s3391_s1 = inlined_call_operand.hbm [shape: f32[16,32], index: 1, kind: input, shape index: {}]   ;;  %s3392_s2 = inlined_call_operand.hbm [shape: f32[3,32,16], index: 2, kind: input, shape index: {}]   ;;  %s3393_s3 = inlined_call_operand.hbm [shape: f32[1,96], index: 3, kind: input, shape index: {}]   ;;  %s3394_s4 = inlined_call_operand.vmem [shape: f32[8,32,96], index: 4, kind: output, shape index: {}]  }
   0x1   :  { %11 = vsyncpa [#allocation3 + $0x1], 0 }
   0x2   :  { %12 = vsyncpa [#allocation5], 0 }
   0x3   :  { %13 = vsyncpa [#allocation8], 0  ;;  %s2851_s15 = smov 0   ;;  %s2853_s16 = smov 0  }
   0x4   :  { %s2855_s17 = smov 0   ;;  %s2857_s18 = smov 0  }
   0x5 LB: > { %s2120_s19 = sadd.s32 4294967295, %s2816_s18   ;;  %p39_p0 = scmp.ne.s32.totalorder %s2808_s16, %s2804_s15  ;;  %s2816_s18 = sphi %s2857_s18, %s3411_s18   ;;  %s2812_s17 = sphi %s2855_s17, %s3410_s17   ;;  %s2808_s16 = sphi %s2853_s16, %s3409_s16   ;;  %s2804_s15 = sphi %s2851_s15, %s3408_s15  }
   0x6   : > { %p2873_p1 = scmp.eq.s32.totalorder %s2120_s19, 0  ;;  %p2122_p2 = scmp.ge.s32.totalorder %s2816_s18, 1 }
   0x7   : > { %p139_p3 = scmp.lt.s32.totalorder %s2816_s18, 3  ;;  %s2818_s23 = smov [#allocation4]  }
   0x8   : > { %s3399_s20 = scalar_select %p2873_p1, 1, 0 }
   0x9   : > { %p2881_p4 = por %p2873_p1, %p39_p0  ;;  %p2885_p5 = pnand %p2122_p2, %p139_p3 }
   0xa   : > { %s151_s24 = sshll.u32 %s2818_s23, 4  ;;  %s2819_s26 = smov [#allocation6]   ;;  %s2889_s24 = int_to_ptr.vmem [resolvable:$true] %s151_s24 }
   0xb   : > { %s3400_s21 = scalar_select %p2881_p4, 1, 0 }
   0xc   : > { %s3401_s22 = scalar_select %p2885_p5, 1, 0 }
   0xd   : > { %p2600_p6 = pneg %p2885_p5  ;;  %s164_s27 = sshll.u32 %s2819_s26, 4  ;;  %s2899_s27 = int_to_ptr.vmem [resolvable:$true] %s164_s27 }
   0xe   : > { %s2820_s28 = smov [#allocation7]   ;;  %s2660_s6 = scalar_lea.hbm %s3391_s1, 256 }
   0xf   : > { %p2895_p7 = pnand %p2600_p6, %p2873_p1  ;;  %s2901_s29 = sshll.u32 %s2820_s28, 4  ;;  %s179_s29 = int_to_ptr.vmem [resolvable:$true] %s2901_s29 }
  0x10   : > { %p2661_p8 = scmp.ne.s32.totalorder %s3391_s1, %s2660_s6  ;;  %p2667_p12 = scmp.lt.u32.totalorder %s2660_s6, %s3391_s1 }
  0x11   : > { %p2911_p9 = pneg %p2895_p7 }
  0x13   : > { %p2663_p10 = pnand %p2911_p9, %p2661_p8 }
  0x15   : > { %p2664_p11 = pneg %p2663_p10 }
  0x17   : > { %p2669_p13 = pnand %p2667_p12, %p2664_p11 }
  0x19   : > { %2672 = shalt.err (!%p2669_p13)
}
  0x1a   : > { %s2673_s12 = scalar_lea.vmem %s2889_s24, 256  ;;  %p2681_p6 = scmp.lt.s32.totalorder %s2889_s24, %s2889_s24 }
  0x1b   : > { %p2674_p0 = scmp.ne.s32.totalorder %s2889_s24, %s2673_s12  ;;  %p2682_p1 = scmp.lt.s32.totalorder %s2673_s12, %s2673_s12 }
  0x1d   : > { %p2676_p2 = pnand %p2674_p0, %p2911_p9  ;;  %p2683_p8 = por %p2682_p1, %p2681_p6 }
  0x1f   : > { %p2677_p3 = pneg %p2676_p2 }
  0x21   : > { %p2684_p10 = pnand %p2683_p8, %p2677_p3 }
  0x23   : > { %2687 = shalt.err (!%p2684_p10)
}
  0x24   : > { %s2821_s13 = smov 128   ;;  %s2822_s14 = smov 8  }
  0x25   : > { %2603 = dma.hbm_to_vmem [thread:$0]  (!%p2895_p7), %s3391_s1, 256, %s2889_s24, [#allocation5], %s2821_s13, %s2821_s13, %s2822_s14  }
  0x26   : > { %s2688_s30 = scalar_lea.hbm %s3392_s2, 1536 }
  0x27   : > { %p2689_p1 = scmp.ne.s32.totalorder %s3392_s2, %s2688_s30  ;;  %p2695_p13 = scmp.lt.u32.totalorder %s2688_s30, %s3392_s2 }
  0x29   : > { %p2691_p11 = pnand %p2689_p1, %p2911_p9 }
  0x2b   : > { %p2692_p12 = pneg %p2691_p11 }
  0x2d   : > { %p2697_p0 = pnand %p2695_p13, %p2692_p12 }
  0x2f   : > { %2700 = shalt.err (!%p2697_p0)
}
  0x30   : > { %s2701_s24 = scalar_lea.vmem %s2899_s27, 1536  ;;  %p2709_p8 = scmp.lt.s32.totalorder %s2899_s27, %s2899_s27 }
  0x31   : > { %p2702_p2 = scmp.ne.s32.totalorder %s2899_s27, %s2701_s24  ;;  %p2710_p10 = scmp.lt.s32.totalorder %s2701_s24, %s2701_s24 }
  0x33   : > { %p2704_p3 = pnand %p2702_p2, %p2911_p9  ;;  %p2711_p1 = por %p2710_p10, %p2709_p8 }
  0x35   : > { %p2705_p6 = pneg %p2704_p3 }
  0x37   : > { %p2712_p11 = pnand %p2711_p1, %p2705_p6 }
  0x39   : > { %2715 = shalt.err (!%p2712_p11)
}
  0x3a   : > { %2606 = dma.hbm_to_vmem [thread:$0]  (!%p2895_p7), %s3392_s2, 1536, %s2899_s27, [#allocation5], %s2821_s13, %s2821_s13, %s2822_s14  }
  0x3b   : > { %s2716_s23 = scalar_lea.hbm %s3393_s3, 16 }
  0x3c   : > { %p2717_p12 = scmp.ne.s32.totalorder %s3393_s3, %s2716_s23  ;;  %p2723_p2 = scmp.lt.u32.totalorder %s2716_s23, %s3393_s3 }
  0x3e   : > { %p2719_p13 = pnand %p2717_p12, %p2911_p9 }
  0x40   : > { %p2720_p0 = pneg %p2719_p13 }
  0x42   : > { %p2725_p3 = pnand %p2723_p2, %p2720_p0 }
  0x44   : > { %2728 = shalt.err (!%p2725_p3)
}
  0x45   : > { %s2729_s6 = scalar_lea.vmem %s179_s29, 16  ;;  %s2736_s27 = scalar_lea.vmem %s179_s29, 32 }
  0x46   : > { %p2730_p6 = scmp.ne.s32.totalorder %s179_s29, %s2729_s6  ;;  %p2737_p1 = scmp.lt.s32.totalorder %s179_s29, %s179_s29 }
  0x47   : > { %p2738_p11 = scmp.lt.s32.totalorder %s2736_s27, %s2729_s6 }
  0x48   : > { %p2732_p8 = pnand %p2730_p6, %p2911_p9 }
  0x49   : > { %p2739_p4 = por %p2738_p11, %p2737_p1 }
  0x4a   : > { %p2733_p10 = pneg %p2732_p8 }
  0x4c   : > { %p2740_p5 = pnand %p2739_p4, %p2733_p10 }
  0x4e   : > { %2743 = shalt.err (!%p2740_p5)
}
  0x4f   : > { %2609 = dma.hbm_to_vmem [thread:$0]  (!%p2895_p7), %s3393_s3, 16, %s179_s29, [#allocation8]  }
  0x50   : > { %s2981_s9 = sadd.s32 1, %s2816_s18   ;;  %s26_s10 = sadd.s32 1, %s2812_s17 }
  0x51   : > { %s23_s24 = ssub.s32 %s2816_s18, %s2981_s9  ;;  %p33_p5 = scmp.ne.s32.totalorder %s2812_s17, %s2808_s16 }
  0x52   : > { %p24_p4 = scmp.eq.s32.totalorder %s23_s24, 0  ;;  %p34_p9 = scmp.eq.s32.totalorder %s2816_s18, 0 }
  0x53   : > { %p2617_p12 = scmp.lt.s32.totalorder %s2816_s18, 2  ;;  %s189_s11 = sand.u32 1, %s2812_s17  }
  0x54   : > { %s2991_s25 = scalar_select %p24_p4, %s2812_s17, %s26_s10  }
  0x55   : > { %p35_p13 = por %p34_p9, %p33_p5  ;;  %s2583_s12 = smul.u32 192, %s189_s11 }
  0x56   : > { %s2584_s15 = smul.u32 3072, %s2816_s18  ;;  %s3006_s6 = scalar_lea.sflag [#allocation3], %s189_s11 }
  0x57   : > { %p2995_p0 = pnand %p2617_p12, %p35_p13  ;;  %s193_s30 = scalar_lea.vmem [#allocation2], %s2583_s12 }
  0x58   : > { %s3002_s28 = scalar_lea.hbm %s3390_s0, %s2584_s15  ;;  %s201_s5 = sshll.u32 %s193_s30, 4  ;;  %s3004_s5 = int_to_ptr.vmem [resolvable:$true] %s201_s5 }
  0x59   : > { %s2744_s27 = scalar_lea.hbm %s3002_s28, 3072  ;;  %p2746_p2 = pneg %p2995_p0 }
  0x5a   : > { %p2745_p7 = scmp.ne.s32.totalorder %s3002_s28, %s2744_s27  ;;  %s2749_s24 = scalar_lea.hbm %s3390_s0, 6144 }
  0x5b   : > { %p2750_p8 = scmp.lt.u32.totalorder %s3002_s28, %s3390_s0  ;;  %p2751_p10 = scmp.lt.u32.totalorder %s2749_s24, %s2744_s27 }
  0x5c   : > { %p2747_p3 = pnand %p2746_p2, %p2745_p7  ;;  %p2753_p11 = scmp.lt.u32.totalorder %s2744_s27, %s3002_s28 }
  0x5d   : > { %p2752_p1 = por %p2751_p10, %p2750_p8 }
  0x5e   : > { %p2748_p6 = pneg %p2747_p3 }
  0x5f   : > { %p2754_p4 = por %p2753_p11, %p2752_p1 }
  0x61   : > { %p2755_p5 = pnand %p2754_p4, %p2748_p6 }
  0x63   : > { %2758 = shalt.err (!%p2755_p5)
}
  0x64   : > { %s2759_s11 = scalar_lea.vmem %s3004_s5, 3072  ;;  %s2823_s12 = smov [#allocation2]  }
  0x65   : > { %p2760_p9 = scmp.ne.s32.totalorder %s3004_s5, %s2759_s11  ;;  %s2764_s29 = sshll.u32 %s2823_s12, 4  ;;  %s2765_s29 = int_to_ptr.vmem [resolvable:$false] %s2764_s29 }
  0x66   : > { %s2766_s26 = scalar_lea.vmem %s2765_s29, 6144  ;;  %p2767_p7 = scmp.lt.s32.totalorder %s3004_s5, %s2765_s29 }
  0x67   : > { %p2762_p12 = pnand %p2760_p9, %p2746_p2  ;;  %p2768_p3 = scmp.lt.s32.totalorder %s2766_s26, %s2759_s11 }
  0x69   : > { %p2763_p13 = pneg %p2762_p12  ;;  %p2769_p8 = por %p2768_p3, %p2767_p7 }
  0x6b   : > { %p2770_p10 = pnand %p2769_p8, %p2763_p13 }
  0x6d   : > { %2773 = shalt.err (!%p2770_p10)
}
  0x6e   : > { %2613 = dma.hbm_to_vmem [thread:$0]  (!%p2995_p0), %s3002_s28, 3072, %s3004_s5, %s3006_s6, %s2821_s13, %s2821_s13, %s2822_s14  }
  0x6f   : > { %p3405_p2 = scmp.ne.s32.totalorder %s3401_s22, 0 }
  0x70   : > { %s215_s30 = sand.u32 (!%p3405_p2), 1, %s2808_s16   ;;  %p3406_p6 = scmp.ne.s32.totalorder (!%p3405_p2), %s3400_s21, 0 }
  0x71   : > { %213 = sbr.rel (%p3405_p2) target bundleno = 1409 (0x581), region = 36  ;;  %s216_s7 = scalar_lea.sflag (!%p3405_p2), [#allocation3], %s215_s30 }
  0x72   : > { %s2585_s27 = smul.u32 (!%p3405_p2), 192, %s215_s30 }
  0x74   : > { %s3040_s8 = scalar_lea.vmem (!%p3405_p2), [#allocation2], %s2585_s27 }
  0x78   : > { %2791 = dma.done.wait (%p3406_p6), %s216_s7, 3072  }
  0x79   : > { %2793 = vsyncadd (%p3406_p6), %s216_s7, 4294964224  ;;  %p3407_p1 = scmp.ne.s32.totalorder %s3399_s20, 0 }
  0x7b   : > { %2795 = dma.done.wait (%p3407_p1), [#allocation5], 1792  }
  0x7c   : > { %2797 = vsyncadd (%p3407_p1), [#allocation5], 4294965504 }
  0x7d   : > { %2799 = dma.done.wait (%p3407_p1), [#allocation8], 16  }
  0x7e   : > { %2801 = vsyncadd (%p3407_p1), [#allocation8], 4294967280  ;;  %vm288_vm0 = vcmask 130048   ;;  %v265_v0 = vld [vmem:[#allocation4] sm:$0xff]  ;;  %v266_v1 = vld [vmem:[#allocation4 + $0x8] sm:$0xff]  ;;  %s2824_s20 = smov 32  }
  0x7f   : > { %v282_v2 = vld [vmem:[%s3040_s8] sm:$0xff]  ;;  %v3055_v3 = vpack.c.bf16 %v266_v1, %v265_v0  ;;  %v283_v4 = vld [vmem:[%s3040_s8 + $0x8] sm:$0xff]  ;;  %v284_v5 = vld [vmem:[%s3040_s8 + $0x10] sm:$0xff]  ;;  %s2825_s21 = smov 64   ;;  %s2134_s22 = sshll.u32 %s2120_s19, 2  ;;  %vm725_vm1 = vcmask 261120  }
  0x80   : > { %2351 = vmatprep.mubr.msk.f32.mxu0 %vm288_vm0, %v282_v2  ;;  %v285_v6 = vld [vmem:[%s3040_s8 + $0x18] sm:$0xff]  ;;  %v286_v7 = vld [vmem:[%s3040_s8 + $0x20] sm:$0xff]  ;;  %v287_v8 = vld [vmem:[%s3040_s8 + $0x28] sm:$0xff]  ;;  %p259_p0 = scmp.lt.s32.totalorder %s2134_s22, 7  ;;  %vm730_vm2 = vcmask 523264   ;;  %vm745_vm3 = vcmask 785408  }
  0x81   : > { %2520 = vmatprep.subr.bf16.mxu0 %v3055_v3  ;;  %v3070_v9 = vld [vmem:[#allocation6] sm:$0xff]  ;;  %v3078_v16 = vld [vmem:[#allocation6 + $0x8] sm:$0xff]  ;;  %v3080_v18 = vld [vmem:[#allocation6 + $0x10] sm:$0xff] }
  0x82   : > { %2522 = vmatpush3.bf16.msra.mxu0 %v3055_v3  ;;  %2364 = vmatprep.mubr.msk.f32.mxu1 %vm288_vm0, %v3070_v9  ;;  %v3074_v10 = vld [vmem:[#allocation6 + $0x40] sm:$0xff]  ;;  %v3086_v21 = vld [vmem:[#allocation6 + $0x18] sm:$0xff]  ;;  %v3095_v24 = vld [vmem:[#allocation6 + $0x28] sm:$0xff]  ;;  %s3413_s22 = smov (!%p259_p0, %s2134_s22), 7 }
  0x83   : > { %v3088_v23 = vld [vmem:[#allocation6 + $0x20] sm:$0xff]  ;;  %v3097_v25 = vld [vmem:[#allocation6 + $0x48] sm:$0xff]  ;;  %v3099_v26 = vld [vmem:[#allocation6 + $0x30] sm:$0xff]  ;;  %s2242_s13 = sshll.u32 %s3413_s22, 5 }
  0x84   : > { %v3101_v27 = vld [vmem:[#allocation6 + $0x50] sm:$0xff]  ;;  %v3109_v28 = vld [vmem:[#allocation6 + $0x38] sm:$0xff]  ;;  %v2156_v30 = vld [vmem:[%s3040_s8 + $0x30] sm:$0xff]  ;;  %s3199_s28 = scalar_lea.vmem %s3394_s4, %s2242_s13 }
  0x85   : > { %2352 = vmatmul.mubr.msk.f32.vlgmr.msra.gmra.mrb[0].mxu0 %vm288_vm0, %v283_v4  ;;  %v3112_v29 = vld [vmem:[#allocation6 + $0x58] sm:$0xff]  ;;  %v2157_v31 = vld [vmem:[%s3040_s8 + $0x38] sm:$0xff]  ;;  %v2158_v32 = vld [vmem:[%s3040_s8 + $0x40] sm:$0xff] }
  0x86   : > { %2354 = vmatprep.mubr.msk.f32.mxu0 %vm288_vm0, %v284_v5  ;;  %v2159_v33 = vld [vmem:[%s3040_s8 + $0x48] sm:$0xff]  ;;  %v2160_v34 = vld [vmem:[%s3040_s8 + $0x50] sm:$0xff]  ;;  %v2161_v35 = vld [vmem:[%s3040_s8 + $0x58] sm:$0xff] }
  0x87   : > { %v2184_v57 = vld [vmem:[%s3040_s8 + $0x60] sm:$0xff]  ;;  %v2185_v58 = vld [vmem:[%s3040_s8 + $0x68] sm:$0xff]  ;;  %v2186_v59 = vld [vmem:[%s3040_s8 + $0x70] sm:$0xff] }
  0x88   : > { %v2187_v60 = vld [vmem:[%s3040_s8 + $0x78] sm:$0xff]  ;;  %v2188_v61 = vld [vmem:[%s3040_s8 + $0x80] sm:$0xff]  ;;  %v2189_v62 = vld [vmem:[%s3040_s8 + $0x88] sm:$0xff] }
  0x89   : > { %2355 = vmatmul.mubr.msk.f32.gmra.mrb[2].mxu0 %vm288_vm0, %v285_v6  ;;  %v3192_v0 = vld [vmem:[#allocation7] ss:$0 sm:$0xff] }
  0x8a   : > { %2357 = vmatprep.mubr.msk.f32.mxu0 %vm288_vm0, %v286_v7 }
  0x8d   : > { %2358 = vmatmul.mubr.msk.f32.gmra.mrb[4].mxu0 %vm288_vm0, %v287_v8 }
  0x8e   : > { %2384 = vmatprep.mubr.msk.f32.mxu0 %vm288_vm0, %v3074_v10 }
 0x158   : > { %v2353_v11 = vpop.f32.mrb[0].mxu0 }
 0x159   : > { %v373_v12 = vpop.f32.mrb[1].mxu0 }
 0x15a   : > { %v2523_v13 = vpack.c.bf16 %v2353_v11, %v373_v12 }
 0x15c   : > { %2524 = vmatprep.subr.bf16.mxu1 %v2523_v13  ;;  %v2356_v14 = vpop.f32.mrb[2].mxu0 }
 0x15d   : > { %2526 = vmatpush3.bf16.msra.mxu1 %v2523_v13  ;;  %v383_v15 = vpop.f32.mrb[3].mxu0 }
 0x15e   : > { %v2527_v17 = vpack.c.bf16 %v2356_v14, %v383_v15 }
 0x160   : > { %v2359_v19 = vpop.f32.mrb[4].mxu0  ;;  %2365 = vmatmul.mubr.msk.f32.vlgmr.msra.gmra.mrb[0].mxu1 %vm288_vm0, %v3078_v16  ;;  %2528 = vmatprep.subr.bf16.mxu1 %v2527_v17 }
 0x161   : > { %v393_v20 = vpop.f32.mrb[5].mxu0  ;;  %2367 = vmatprep.mubr.msk.f32.mxu1 %vm288_vm0, %v3080_v18  ;;  %2530 = vmatpush3.bf16.msra.mxu1 %v2527_v17 }
 0x162   : > { %v2531_v22 = vpack.c.bf16 %v2359_v19, %v393_v20  ;;  %2536 = vmatprep.subr.bf16.mxu1 %v3055_v3 }
 0x164   : > { %2368 = vmatmul.mubr.msk.f32.gmra.mrb[2].mxu1 %vm288_vm0, %v3086_v21  ;;  %2532 = vmatprep.subr.bf16.mxu0 %v2531_v22 }
 0x165   : > { %2534 = vmatpush3.bf16.msra.mxu0 %v2531_v22  ;;  %2374 = vmatprep.mubr.msk.f32.mxu1 %vm288_vm0, %v3088_v23 }
 0x168   : > { %2375 = vmatmul.mubr.msk.f32.vlgmr.msra.gmra.mrb[4].mxu1 %vm288_vm0, %v3095_v24  ;;  %2385 = vmatmul.mubr.msk.f32.vlgmr.msra.gmra.mrb[6].mxu0 %vm288_vm0, %v3097_v25 }
 0x169   : > { %2377 = vmatprep.mubr.msk.f32.mxu1 %vm288_vm0, %v3099_v26  ;;  %2538 = vmatpush3.bf16.msra.mxu1 %v3055_v3 }
 0x16a   : > { %2387 = vmatprep.mubr.msk.f32.mxu0 %vm288_vm0, %v3101_v27 }
 0x16c   : > { %2378 = vmatmul.mubr.msk.f32.gmra.mrb[6].mxu1 %vm288_vm0, %v3109_v28  ;;  %2388 = vmatmul.mubr.msk.f32.gmra.mrb[8].mxu0 %vm288_vm0, %v3112_v29 }
 0x16d   : > { %2394 = vmatprep.mubr.msk.f32.mxu1 %vm288_vm0, %v2156_v30  ;;  %2407 = vmatprep.mubr.msk.f32.mxu0 %vm288_vm0, %v3070_v9 }
 0x170   : > { %2395 = vmatmul.mubr.msk.f32.vlgmr.msra.gmra.mrb[8].mxu1 %vm288_vm0, %v2157_v31 }
 0x171   : > { %2397 = vmatprep.mubr.msk.f32.mxu1 %vm288_vm0, %v2158_v32 }
 0x174   : > { %2398 = vmatmul.mubr.msk.f32.gmra.mrb[10].mxu1 %vm288_vm0, %v2159_v33 }
 0x175   : > { %2400 = vmatprep.mubr.msk.f32.mxu1 %vm288_vm0, %v2160_v34 }
 0x178   : > { %2401 = vmatmul.mubr.msk.f32.gmra.mrb[12].mxu1 %vm288_vm0, %v2161_v35 }
 0x179   : > { %2427 = vmatprep.mubr.msk.f32.mxu1 %vm288_vm0, %v3074_v10 }
 0x233   : > { %v3136_v36 = vpop.f32.mrb[0].mxu1 }
 0x234   : > { %v3138_v37 = vpop.f32.mrb[1].mxu1 }
 0x237   : > { %v3140_v38 = vpop.f32.mrb[2].mxu1 }
 0x238   : > { %v3142_v39 = vpop.f32.mrb[3].mxu1 }
 0x23b   : > { %v2376_v40 = vpop.f32.mrb[4].mxu1  ;;  %v2386_v41 = vpop.f32.mrb[6].mxu0 }
 0x23c   : > { %699 = vrot.lane.b32.xlu0 %v2376_v40, %s2824_s20  ;;  %v577_v42 = vpop.f32.mrb[5].mxu1  ;;  %715 = vrot.lane.b32.xlu1 %v2386_v41, %s2825_s21  ;;  %v674_v43 = vpop.f32.mrb[7].mxu0 }
 0x23f   : > { %v2379_v44 = vpop.f32.mrb[6].mxu1  ;;  %v2389_v45 = vpop.f32.mrb[8].mxu0 }
 0x240   : > { %697 = vrot.lane.b32.xlu0 %v577_v42, %s2824_s20  ;;  %v587_v46 = vpop.f32.mrb[7].mxu1  ;;  %703 = vrot.lane.b32.xlu1 %v2379_v44, %s2824_s20  ;;  %v684_v47 = vpop.f32.mrb[9].mxu0 }
 0x243   : > { %v2396_v48 = vpop.f32.mrb[8].mxu1 }
 0x244   : > { %v841_v49 = vpop.f32.mrb[9].mxu1  ;;  %713 = vrot.lane.b32.xlu0 %v674_v43, %s2825_s21  ;;  %719 = vrot.lane.b32.xlu1 %v2389_v45, %s2825_s21 }
 0x245   : > { %v2539_v50 = vpack.c.bf16 %v2396_v48, %v841_v49 }
 0x247   : > { %2540 = vmatprep.subr.bf16.mxu0 %v2539_v50  ;;  %v2399_v51 = vpop.f32.mrb[10].mxu1 }
 0x248   : > { %2542 = vmatpush3.bf16.msra.mxu0 %v2539_v50  ;;  %701 = vrot.lane.b32.xlu1 %v587_v46, %s2824_s20  ;;  %v851_v52 = vpop.f32.mrb[11].mxu1 }
 0x249   : > { %717 = vrot.lane.b32.xlu0 %v684_v47, %s2825_s21  ;;  %v2543_v53 = vpack.c.bf16 %v2399_v51, %v851_v52 }
 0x24b   : > { %2408 = vmatmul.mubr.msk.f32.vlgmr.msra.gmra.mrb[10].mxu0 %vm288_vm0, %v3078_v16  ;;  %2544 = vmatprep.subr.bf16.mxu0 %v2543_v53  ;;  %v2402_v54 = vpop.f32.mrb[12].mxu1 }
 0x24c   : > { %2410 = vmatprep.mubr.msk.f32.mxu0 %vm288_vm0, %v3080_v18  ;;  %2546 = vmatpush3.bf16.msra.mxu0 %v2543_v53  ;;  %v861_v55 = vpop.f32.mrb[13].mxu1 }
 0x24d   : > { %v2547_v56 = vpack.c.bf16 %v2402_v54, %v861_v55  ;;  %2552 = vmatprep.subr.bf16.mxu0 %v3055_v3  ;;  %v2212_v54 = vld [vmem:[%s3040_s8 + $0x90] sm:$0xff]  ;;  %v2213_v55 = vld [vmem:[%s3040_s8 + $0x98] sm:$0xff] }
 0x24f   : > { %2411 = vmatmul.mubr.msk.f32.gmra.mrb[12].mxu0 %vm288_vm0, %v3086_v21  ;;  %2548 = vmatprep.subr.bf16.mxu1 %v2547_v56 }
 0x250   : > { %2417 = vmatprep.mubr.msk.f32.mxu0 %vm288_vm0, %v3088_v23  ;;  %2550 = vmatpush3.bf16.msra.mxu1 %v2547_v56  ;;  %v2214_v56 = vld [vmem:[%s3040_s8 + $0xa0] sm:$0xff] }
 0x253   : > { %2418 = vmatmul.mubr.msk.f32.vlgmr.msra.gmra.mrb[14].mxu0 %vm288_vm0, %v3095_v24  ;;  %2428 = vmatmul.mubr.msk.f32.vlgmr.msra.gmra.mrb[14].mxu1 %vm288_vm0, %v3097_v25 }
 0x254   : > { %2420 = vmatprep.mubr.msk.f32.mxu0 %vm288_vm0, %v3099_v26  ;;  %2554 = vmatpush3.bf16.msra.mxu0 %v3055_v3 }
 0x255   : > { %2430 = vmatprep.mubr.msk.f32.mxu1 %vm288_vm0, %v3101_v27 }
 0x257   : > { %2421 = vmatmul.mubr.msk.f32.gmra.mrb[16].mxu0 %vm288_vm0, %v3109_v28  ;;  %2431 = vmatmul.mubr.msk.f32.gmra.mrb[16].mxu1 %vm288_vm0, %v3112_v29 }
 0x258   : > { %2437 = vmatprep.mubr.msk.f32.mxu0 %vm288_vm0, %v2184_v57  ;;  %2450 = vmatprep.mubr.msk.f32.mxu1 %vm288_vm0, %v3070_v9  ;;  %v2216_v57 = vld [vmem:[%s3040_s8 + $0xb0] sm:$0xff] }
 0x25b   : > { %2438 = vmatmul.mubr.msk.f32.vlgmr.msra.gmra.mrb[18].mxu0 %vm288_vm0, %v2185_v58  ;;  %v2217_v58 = vld [vmem:[%s3040_s8 + $0xb8] sm:$0xff] }
 0x25c   : > { %2440 = vmatprep.mubr.msk.f32.mxu0 %vm288_vm0, %v2186_v59 }
 0x25f   : > { %2441 = vmatmul.mubr.msk.f32.gmra.mrb[20].mxu0 %vm288_vm0, %v2187_v60 }
 0x260   : > { %2443 = vmatprep.mubr.msk.f32.mxu0 %vm288_vm0, %v2188_v61 }
 0x263   : > { %2444 = vmatmul.mubr.msk.f32.gmra.mrb[22].mxu0 %vm288_vm0, %v2189_v62 }
 0x264   : > { %2470 = vmatprep.mubr.msk.f32.mxu0 %vm288_vm0, %v3074_v10 }
 0x2ae   : > { %v700_v63 = vpop.permute.xlu0 %699  ;;  %v716_v1 = vpop.permute.xlu1 %715 }
 0x2af   : > { %v727_v2 = vsel %vm725_vm1, %v3136_v36, %v700_v63 }
 0x2b0   : > { %v732_v4 = vsel %vm730_vm2, %v727_v2, %v716_v1 }
 0x2b1   : > { %v742_v5 = vsub.f32 %v732_v4, %v3192_v0 }
 0x2b2   : > { %v698_v6 = vpop.permute.xlu0 %697  ;;  %v704_v7 = vpop.permute.xlu1 %703 }
 0x2b3   : > { %747 = vst.msk [vmem:[%s3199_s28 + $0x8] sm:$0xff] %vm745_vm3, %v742_v5  ;;  %v726_v8 = vsel %vm725_vm1, %v3138_v37, %v698_v6  ;;  %v729_v11 = vsel %vm725_vm1, %v3140_v38, %v704_v7 }
 0x2b6   : > { %v714_v12 = vpop.permute.xlu0 %713  ;;  %v720_v13 = vpop.permute.xlu1 %719 }
 0x2b7   : > { %v731_v14 = vsel %vm730_vm2, %v726_v8, %v714_v12  ;;  %v734_v15 = vsel %vm730_vm2, %v729_v11, %v720_v13 }
 0x2b8   : > { %v741_v17 = vsub.f32 %v731_v14, %v3192_v0  ;;  %v744_v19 = vsub.f32 %v734_v15, %v3192_v0 }
 0x2ba   : > { %746 = vst.msk [vmem:[%s3199_s28] sm:$0xff] %vm745_vm3, %v741_v17  ;;  %749 = vst.msk [vmem:[%s3199_s28 + $0x18] sm:$0xff] %vm745_vm3, %v744_v19  ;;  %v702_v20 = vpop.permute.xlu1 %701 }
 0x2bb   : > { %v728_v22 = vsel %vm725_vm1, %v3142_v39, %v702_v20  ;;  %v718_v30 = vpop.permute.xlu0 %717 }
 0x2bc   : > { %v733_v31 = vsel %vm730_vm2, %v728_v22, %v718_v30 }
 0x2bd   : > { %v743_v32 = vsub.f32 %v733_v31, %v3192_v0 }
 0x2bf   : > { %748 = vst.msk [vmem:[%s3199_s28 + $0x10] sm:$0xff] %vm745_vm3, %v743_v32 }
 0x31e   : > { %v3223_v33 = vpop.f32.mrb[10].mxu0 }
 0x31f   : > { %v3225_v34 = vpop.f32.mrb[11].mxu0 }
 0x322   : > { %v3227_v35 = vpop.f32.mrb[12].mxu0 }
 0x323   : > { %v3229_v36 = vpop.f32.mrb[13].mxu0 }
 0x326   : > { %v2419_v37 = vpop.f32.mrb[14].mxu0  ;;  %v2429_v38 = vpop.f32.mrb[14].mxu1 }
 0x327   : > { %1131 = vrot.lane.b32.xlu1 %v2419_v37, %s2824_s20  ;;  %v1021_v39 = vpop.f32.mrb[15].mxu0  ;;  %v1106_v40 = vpop.f32.mrb[15].mxu1 }
 0x328   : > { %1129 = vrot.lane.b32.xlu0 %v1021_v39, %s2824_s20 }
 0x32a   : > { %v2422_v41 = vpop.f32.mrb[16].mxu0  ;;  %v2432_v42 = vpop.f32.mrb[16].mxu1 }
 0x32b   : > { %1147 = vrot.lane.b32.xlu1 %v2429_v38, %s2825_s21  ;;  %v1031_v43 = vpop.f32.mrb[17].mxu0  ;;  %v1116_v44 = vpop.f32.mrb[17].mxu1 }
 0x32c   : > { %1145 = vrot.lane.b32.xlu0 %v1106_v40, %s2825_s21 }
 0x32e   : > { %v2439_v45 = vpop.f32.mrb[18].mxu0 }
 0x32f   : > { %1135 = vrot.lane.b32.xlu1 %v2422_v41, %s2824_s20  ;;  %v1265_v46 = vpop.f32.mrb[19].mxu0 }
 0x330   : > { %v2555_v47 = vpack.c.bf16 %v2439_v45, %v1265_v46  ;;  %1133 = vrot.lane.b32.xlu0 %v1031_v43, %s2824_s20 }
 0x332   : > { %2556 = vmatprep.subr.bf16.mxu1 %v2555_v47  ;;  %v2442_v48 = vpop.f32.mrb[20].mxu0 }
 0x333   : > { %1151 = vrot.lane.b32.xlu1 %v2432_v42, %s2825_s21  ;;  %2558 = vmatpush3.bf16.msra.mxu1 %v2555_v47  ;;  %v1275_v49 = vpop.f32.mrb[21].mxu0 }
 0x334   : > { %1149 = vrot.lane.b32.xlu0 %v1116_v44, %s2825_s21  ;;  %v2559_v50 = vpack.c.bf16 %v2442_v48, %v1275_v49 }
 0x336   : > { %2451 = vmatmul.mubr.msk.f32.vlgmr.msra.gmra.mrb[18].mxu1 %vm288_vm0, %v3078_v16  ;;  %2560 = vmatprep.subr.bf16.mxu1 %v2559_v50  ;;  %v2445_v51 = vpop.f32.mrb[22].mxu0 }
 0x337   : > { %2453 = vmatprep.mubr.msk.f32.mxu1 %vm288_vm0, %v3080_v18  ;;  %2562 = vmatpush3.bf16.msra.mxu1 %v2559_v50  ;;  %v1285_v52 = vpop.f32.mrb[23].mxu0 }
 0x338   : > { %v2563_v53 = vpack.c.bf16 %v2445_v51, %v1285_v52  ;;  %2568 = vmatprep.subr.bf16.mxu1 %v3055_v3 }
 0x33a   : > { %2454 = vmatmul.mubr.msk.f32.gmra.mrb[20].mxu1 %vm288_vm0, %v3086_v21  ;;  %2564 = vmatprep.subr.bf16.mxu0 %v2563_v53 }
 0x33b   : > { %2460 = vmatprep.mubr.msk.f32.mxu1 %vm288_vm0, %v3088_v23  ;;  %2566 = vmatpush3.bf16.msra.mxu0 %v2563_v53 }
 0x33e   : > { %2461 = vmatmul.mubr.msk.f32.vlgmr.msra.gmra.mrb[22].mxu1 %vm288_vm0, %v3095_v24  ;;  %2471 = vmatmul.mubr.msk.f32.vlgmr.msra.gmra.mrb[24].mxu0 %vm288_vm0, %v3097_v25 }
 0x33f   : > { %2463 = vmatprep.mubr.msk.f32.mxu1 %vm288_vm0, %v3099_v26  ;;  %2570 = vmatpush3.bf16.msra.mxu1 %v3055_v3  ;;  %v2215_v3 = vld [vmem:[%s3040_s8 + $0xa8] sm:$0xff] }
 0x340   : > { %2473 = vmatprep.mubr.msk.f32.mxu0 %vm288_vm0, %v3101_v27 }
 0x342   : > { %2464 = vmatmul.mubr.msk.f32.gmra.mrb[24].mxu1 %vm288_vm0, %v3109_v28  ;;  %2474 = vmatmul.mubr.msk.f32.gmra.mrb[26].mxu0 %vm288_vm0, %v3112_v29 }
 0x343   : > { %2480 = vmatprep.mubr.msk.f32.mxu1 %vm288_vm0, %v2212_v54  ;;  %2493 = vmatprep.mubr.msk.f32.mxu0 %vm288_vm0, %v3070_v9 }
 0x346   : > { %2481 = vmatmul.mubr.msk.f32.vlgmr.msra.gmra.mrb[26].mxu1 %vm288_vm0, %v2213_v55 }
 0x347   : > { %2483 = vmatprep.mubr.msk.f32.mxu1 %vm288_vm0, %v2214_v56 }
 0x34a   : > { %2484 = vmatmul.mubr.msk.f32.gmra.mrb[28].mxu1 %vm288_vm0, %v2215_v3 }
 0x34b   : > { %2486 = vmatprep.mubr.msk.f32.mxu1 %vm288_vm0, %v2216_v57 }
 0x34e   : > { %2487 = vmatmul.mubr.msk.f32.gmra.mrb[30].mxu1 %vm288_vm0, %v2217_v58 }
 0x34f   : > { %2513 = vmatprep.mubr.msk.f32.mxu1 %vm288_vm0, %v3074_v10 }
 0x399   : > { %v1132_v9 = vpop.permute.xlu1 %1131 }
 0x39a   : > { %v1130_v59 = vpop.permute.xlu0 %1129  ;;  %v1158_v60 = vsel %vm725_vm1, %v3223_v33, %v1132_v9 }
 0x39b   : > { %v1157_v62 = vsel %vm725_vm1, %v3225_v34, %v1130_v59 }
 0x39d   : > { %v1148_v61 = vpop.permute.xlu1 %1147 }
 0x39e   : > { %v1162_v63 = vsel %vm730_vm2, %v1158_v60, %v1148_v61  ;;  %v1146_v1 = vpop.permute.xlu0 %1145 }
 0x39f   : > { %v1166_v2 = vsub.f32 %v1162_v63, %v3192_v0  ;;  %v1161_v4 = vsel %vm730_vm2, %v1157_v62, %v1146_v1 }
 0x3a0   : > { %v1165_v10 = vsub.f32 %v1161_v4, %v3192_v0 }
 0x3a1   : > { %2181 = vst.msk [vmem:[%s3199_s28 + $0x28] sm:$0xff] %vm745_vm3, %v1166_v2  ;;  %v1136_v5 = vpop.permute.xlu1 %1135 }
 0x3a2   : > { %2180 = vst.msk [vmem:[%s3199_s28 + $0x20] sm:$0xff] %vm745_vm3, %v1165_v10  ;;  %v1134_v6 = vpop.permute.xlu0 %1133  ;;  %v1160_v7 = vsel %vm725_vm1, %v3227_v35, %v1136_v5 }
 0x3a3   : > { %v1159_v11 = vsel %vm725_vm1, %v3229_v36, %v1134_v6 }
 0x3a5   : > { %v1152_v8 = vpop.permute.xlu1 %1151 }
 0x3a6   : > { %v1164_v12 = vsel %vm730_vm2, %v1160_v7, %v1152_v8  ;;  %v1150_v13 = vpop.permute.xlu0 %1149 }
 0x3a7   : > { %v1168_v14 = vsub.f32 %v1164_v12, %v3192_v0  ;;  %v1163_v15 = vsel %vm730_vm2, %v1159_v11, %v1150_v13 }
 0x3a8   : > { %v1167_v17 = vsub.f32 %v1163_v15, %v3192_v0 }
 0x3a9   : > { %2183 = vst.msk [vmem:[%s3199_s28 + $0x38] sm:$0xff] %vm745_vm3, %v1168_v14 }
 0x3aa   : > { %2182 = vst.msk [vmem:[%s3199_s28 + $0x30] sm:$0xff] %vm745_vm3, %v1167_v17 }
 0x409   : > { %v2452_v19 = vpop.f32.mrb[18].mxu1 }
 0x40a   : > { %v1360_v20 = vpop.f32.mrb[19].mxu1 }
 0x40d   : > { %v2455_v22 = vpop.f32.mrb[20].mxu1 }
 0x40e   : > { %v1370_v30 = vpop.f32.mrb[21].mxu1 }
 0x411   : > { %v2462_v31 = vpop.f32.mrb[22].mxu1  ;;  %v2472_v32 = vpop.f32.mrb[24].mxu0 }
 0x412   : > { %1555 = vrot.lane.b32.xlu1 %v2462_v31, %s2824_s20  ;;  %v1445_v33 = vpop.f32.mrb[23].mxu1  ;;  %v1530_v34 = vpop.f32.mrb[25].mxu0 }
 0x413   : > { %1553 = vrot.lane.b32.xlu0 %v1445_v33, %s2824_s20 }
 0x415   : > { %v2465_v35 = vpop.f32.mrb[24].mxu1  ;;  %v2475_v36 = vpop.f32.mrb[26].mxu0 }
 0x416   : > { %v1455_v37 = vpop.f32.mrb[25].mxu1  ;;  %1571 = vrot.lane.b32.xlu1 %v2472_v32, %s2825_s21  ;;  %v1540_v38 = vpop.f32.mrb[27].mxu0 }
 0x417   : > { %1569 = vrot.lane.b32.xlu0 %v1530_v34, %s2825_s21 }
 0x419   : > { %v2482_v39 = vpop.f32.mrb[26].mxu1 }
 0x41a   : > { %v1689_v40 = vpop.f32.mrb[27].mxu1  ;;  %1559 = vrot.lane.b32.xlu1 %v2465_v35, %s2824_s20 }
 0x41b   : > { %v2571_v41 = vpack.c.bf16 %v2482_v39, %v1689_v40  ;;  %1557 = vrot.lane.b32.xlu0 %v1455_v37, %s2824_s20 }
 0x41d   : > { %v2485_v42 = vpop.f32.mrb[28].mxu1  ;;  %2572 = vmatprep.subr.bf16.mxu0 %v2571_v41 }
 0x41e   : > { %v1699_v43 = vpop.f32.mrb[29].mxu1  ;;  %2574 = vmatpush3.bf16.msra.mxu0 %v2571_v41  ;;  %1575 = vrot.lane.b32.xlu1 %v2475_v36, %s2825_s21 }
 0x41f   : > { %v2575_v44 = vpack.c.bf16 %v2485_v42, %v1699_v43  ;;  %1573 = vrot.lane.b32.xlu0 %v1540_v38, %s2825_s21 }
 0x421   : > { %v2488_v45 = vpop.f32.mrb[30].mxu1  ;;  %2494 = vmatmul.mubr.msk.f32.vlgmr.msra.gmra.mrb[28].mxu0 %vm288_vm0, %v3078_v16  ;;  %2576 = vmatprep.subr.bf16.mxu0 %v2575_v44 }
 0x422   : > { %v1709_v46 = vpop.f32.mrb[31].mxu1  ;;  %2578 = vmatpush3.bf16.msra.mxu0 %v2575_v44  ;;  %2496 = vmatprep.mubr.msk.f32.mxu0 %vm288_vm0, %v3080_v18 }
 0x423   : > { %v2579_v47 = vpack.c.bf16 %v2488_v45, %v1709_v46 }
 0x425   : > { %2497 = vmatmul.mubr.msk.f32.gmra.mrb[30].mxu0 %vm288_vm0, %v3086_v21  ;;  %2580 = vmatprep.subr.bf16.mxu1 %v2579_v47 }
 0x426   : > { %2582 = vmatpush3.bf16.msra.mxu1 %v2579_v47  ;;  %2503 = vmatprep.mubr.msk.f32.mxu0 %vm288_vm0, %v3088_v23 }
 0x429   : > { %2504 = vmatmul.mubr.msk.f32.vlgmr.msra.gmra.mrb[32].mxu0 %vm288_vm0, %v3095_v24  ;;  %2514 = vmatmul.mubr.msk.f32.vlgmr.msra.gmra.mrb[32].mxu1 %vm288_vm0, %v3097_v25 }
 0x42a   : > { %2506 = vmatprep.mubr.msk.f32.mxu0 %vm288_vm0, %v3099_v26  ;;  %2516 = vmatprep.mubr.msk.f32.mxu1 %vm288_vm0, %v3101_v27 }
 0x42d   : > { %2507 = vmatmul.mubr.msk.f32.gmra.mrb[34].mxu0 %vm288_vm0, %v3109_v28  ;;  %2517 = vmatmul.mubr.msk.f32.gmra.mrb[34].mxu1 %vm288_vm0, %v3112_v29 }
 0x484   : > { %v1556_v16 = vpop.permute.xlu1 %1555 }
 0x485   : > { %v1554_v18 = vpop.permute.xlu0 %1553  ;;  %v1582_v21 = vsel %vm725_vm1, %v2452_v19, %v1556_v16 }
 0x486   : > { %v1581_v24 = vsel %vm725_vm1, %v1360_v20, %v1554_v18 }
 0x488   : > { %v1572_v23 = vpop.permute.xlu1 %1571 }
 0x489   : > { %v1586_v25 = vsel %vm730_vm2, %v1582_v21, %v1572_v23  ;;  %v1570_v26 = vpop.permute.xlu0 %1569 }
 0x48a   : > { %v1590_v48 = vsub.f32 %v1586_v25, %v3192_v0  ;;  %v1585_v27 = vsel %vm730_vm2, %v1581_v24, %v1570_v26 }
 0x48b   : > { %v1589_v28 = vsub.f32 %v1585_v27, %v3192_v0 }
 0x48c   : > { %2209 = vst.msk [vmem:[%s3199_s28 + $0x48] sm:$0xff] %vm745_vm3, %v1590_v48  ;;  %v1560_v29 = vpop.permute.xlu1 %1559 }
 0x48d   : > { %2208 = vst.msk [vmem:[%s3199_s28 + $0x40] sm:$0xff] %vm745_vm3, %v1589_v28  ;;  %v1558_v49 = vpop.permute.xlu0 %1557  ;;  %v1584_v50 = vsel %vm725_vm1, %v2455_v22, %v1560_v29 }
 0x48e   : > { %v1583_v52 = vsel %vm725_vm1, %v1370_v30, %v1558_v49 }
 0x490   : > { %v1576_v51 = vpop.permute.xlu1 %1575 }
 0x491   : > { %v1588_v53 = vsel %vm730_vm2, %v1584_v50, %v1576_v51  ;;  %v1574_v54 = vpop.permute.xlu0 %1573 }
 0x492   : > { %v1592_v55 = vsub.f32 %v1588_v53, %v3192_v0  ;;  %v1587_v56 = vsel %vm730_vm2, %v1583_v52, %v1574_v54 }
 0x493   : > { %v1591_v3 = vsub.f32 %v1587_v56, %v3192_v0 }
 0x494   : > { %2211 = vst.msk [vmem:[%s3199_s28 + $0x58] sm:$0xff] %vm745_vm3, %v1592_v55 }
 0x495   : > { %2210 = vst.msk [vmem:[%s3199_s28 + $0x50] sm:$0xff] %vm745_vm3, %v1591_v3 }
 0x4f4   : > { %v2495_v57 = vpop.f32.mrb[28].mxu0 }
 0x4f5   : > { %v1784_v58 = vpop.f32.mrb[29].mxu0 }
 0x4f8   : > { %v2498_v9 = vpop.f32.mrb[30].mxu0 }
 0x4f9   : > { %v1794_v59 = vpop.f32.mrb[31].mxu0 }
 0x4fc   : > { %v2505_v60 = vpop.f32.mrb[32].mxu0  ;;  %v2515_v61 = vpop.f32.mrb[32].mxu1 }
 0x4fd   : > { %1979 = vrot.lane.b32.xlu1 %v2505_v60, %s2824_s20  ;;  %v1869_v62 = vpop.f32.mrb[33].mxu0  ;;  %v1954_v63 = vpop.f32.mrb[33].mxu1 }
 0x4fe   : > { %1977 = vrot.lane.b32.xlu0 %v1869_v62, %s2824_s20 }
 0x500   : > { %v2508_v1 = vpop.f32.mrb[34].mxu0  ;;  %v2518_v2 = vpop.f32.mrb[34].mxu1 }
 0x501   : > { %1995 = vrot.lane.b32.xlu1 %v2515_v61, %s2825_s21  ;;  %v1879_v4 = vpop.f32.mrb[35].mxu0  ;;  %v1964_v10 = vpop.f32.mrb[35].mxu1 }
 0x502   : > { %1993 = vrot.lane.b32.xlu0 %v1954_v63, %s2825_s21 }
 0x505   : > { %1983 = vrot.lane.b32.xlu1 %v2508_v1, %s2824_s20 }
 0x506   : > { %1981 = vrot.lane.b32.xlu0 %v1879_v4, %s2824_s20 }
 0x509   : > { %1999 = vrot.lane.b32.xlu1 %v2518_v2, %s2825_s21 }
 0x50a   : > { %1997 = vrot.lane.b32.xlu0 %v1964_v10, %s2825_s21 }
 0x56f   : > { %v1980_v5 = vpop.permute.xlu1 %1979 }
 0x570   : > { %v1978_v6 = vpop.permute.xlu0 %1977  ;;  %v2006_v7 = vsel %vm725_vm1, %v2495_v57, %v1980_v5 }
 0x571   : > { %v2005_v11 = vsel %vm725_vm1, %v1784_v58, %v1978_v6 }
 0x573   : > { %v1996_v8 = vpop.permute.xlu1 %1995 }
 0x574   : > { %v2010_v12 = vsel %vm730_vm2, %v2006_v7, %v1996_v8  ;;  %v1994_v13 = vpop.permute.xlu0 %1993 }
 0x575   : > { %v2014_v14 = vsub.f32 %v2010_v12, %v3192_v0  ;;  %v2009_v15 = vsel %vm730_vm2, %v2005_v11, %v1994_v13 }
 0x576   : > { %v2013_v17 = vsub.f32 %v2009_v15, %v3192_v0 }
 0x577   : > { %2237 = vst.msk [vmem:[%s3199_s28 + $0x68] sm:$0xff] %vm745_vm3, %v2014_v14  ;;  %v1984_v19 = vpop.permute.xlu1 %1983 }
 0x578   : > { %2236 = vst.msk [vmem:[%s3199_s28 + $0x60] sm:$0xff] %vm745_vm3, %v2013_v17  ;;  %v1982_v20 = vpop.permute.xlu0 %1981  ;;  %v2008_v22 = vsel %vm725_vm1, %v2498_v9, %v1984_v19 }
 0x579   : > { %v2007_v31 = vsel %vm725_vm1, %v1794_v59, %v1982_v20 }
 0x57b   : > { %v2000_v30 = vpop.permute.xlu1 %1999 }
 0x57c   : > { %v2012_v32 = vsel %vm730_vm2, %v2008_v22, %v2000_v30  ;;  %v1998_v33 = vpop.permute.xlu0 %1997 }
 0x57d   : > { %v2016_v34 = vsub.f32 %v2012_v32, %v3192_v0  ;;  %v2011_v35 = vsel %vm730_vm2, %v2007_v31, %v1998_v33 }
 0x57e   : > { %v2015_v36 = vsub.f32 %v2011_v35, %v3192_v0 }
 0x57f   : > { %2239 = vst.msk [vmem:[%s3199_s28 + $0x78] sm:$0xff] %vm745_vm3, %v2016_v34 }
 0x580   : > { %2238 = vst.msk [vmem:[%s3199_s28 + $0x70] sm:$0xff] %vm745_vm3, %v2015_v36 }
 0x581 PF: > { %p16_p11 = scmp.ge.s32.totalorder %s2981_s9, 4   ;;  %s3408_s15 = smov %s2808_s16 }
 0x582   : > { %s3409_s16 = smov %s2812_s17  ;;  %s3410_s17 = smov %s2991_s25 }
 0x583   : > { %s3411_s18 = smov %s2981_s9  ;;  %18 = sbr.rel (!%p16_p11) target bundleno = 5 (0x5), region = 96 }
 0x58a   :  { %2046 = vsyncpa [#allocation3], 1 }
 0x58b   :  { %2048 = vsyncpa [#allocation3 + $0x1], 1 }
 0x58c   :  { %2049 = vsyncpa [#allocation5], 1 }
 0x58d   :  { %2050 = vsyncpa [#allocation8], 1 }

// kernel: clip_feature_extractor.3
= control target key start
LH: loop header
LB: loop body
LE: loop exit
PB: predicated region body
PF: predicated region fallthrough
CT: control target
= control target key end

     0   :  { %s14011_s0 = inlined_call_operand.vmem [shape: f32[192,192], index: 0, kind: input, shape index: {}]   ;;  %s14012_s1 = inlined_call_operand.vmem [shape: f32[192,32], index: 1, kind: input, shape index: {}]   ;;  %s14013_s2 = inlined_call_operand.vmem [shape: f32[96,32], index: 2, kind: input, shape index: {}]   ;;  %s14014_s3 = inlined_call_operand.vmem [shape: f32[1,32], index: 3, kind: input, shape index: {}]   ;;  %s14015_s4 = inlined_call_operand.vmem [shape: f32[1,32], index: 4, kind: input, shape index: {}]   ;;  %s14016_s5 = inlined_call_operand.vmem [shape: f32[96,32], index: 5, kind: input, shape index: {}]   ;;  %s14017_s6 = inlined_call_operand.vmem [shape: f32[1,96], index: 6, kind: input, shape index: {}]   ;;  %s14018_s7 = inlined_call_operand.vmem [shape: f32[2,1,32], index: 7, kind: input, shape index: {}]   ;;  %s14019_s8 = inlined_call_operand.vmem [shape: f32[2,1,32], index: 8, kind: input, shape index: {}]   ;;  %s14020_s9 = inlined_call_operand.vmem [shape: f32[2,32,32], index: 9, kind: input, shape index: {}]   ;;  %s14021_s10 = inlined_call_operand.vmem [shape: f32[2,1,32], index: 10, kind: input, shape index: {}]   ;;  %s14022_s11 = inlined_call_operand.vmem [shape: f32[2,32,32], index: 11, kind: input, shape index: {}]   ;;  %s14023_s12 = inlined_call_operand.vmem [shape: f32[2,1,32], index: 12, kind: input, shape index: {}]   ;;  %s14024_s13 = inlined_call_operand.vmem [shape: f32[2,32,32], index: 13, kind: input, shape index: {}]   ;;  %s14025_s14 = inlined_call_operand.vmem [shape: f32[2,1,32], index: 14, kind: input, shape index: {}]   ;;  %s14026_s15 = inlined_call_operand.vmem [shape: f32[2,32,32], index: 15, kind: input, shape index: {}]   ;;  %s14027_s16 = inlined_call_operand.vmem [shape: f32[2,1,32], index: 16, kind: input, shape index: {}]   ;;  %s14028_s17 = inlined_call_operand.vmem [shape: f32[2,1,32], index: 17, kind: input, shape index: {}]   ;;  %s14029_s18 = inlined_call_operand.vmem [shape: f32[2,1,32], index: 18, kind: input, shape index: {}]   ;;  %s14030_s19 = inlined_call_operand.vmem [shape: f32[2,32,128], index: 19, kind: input, shape index: {}]   ;;  %s14031_s20 = inlined_call_operand.vmem [shape: f32[2,1,128], index: 20, kind: input, shape index: {}]   ;;  %s14032_s21 = inlined_call_operand.vmem [shape: f32[2,128,32], index: 21, kind: input, shape index: {}]   ;;  %s14033_s22 = inlined_call_operand.vmem [shape: f32[2,1,32], index: 22, kind: input, shape index: {}]   ;;  %s14034_s23 = inlined_call_operand.vmem [shape: f32[1,32], index: 23, kind: input, shape index: {}]   ;;  %s14035_s24 = inlined_call_operand.vmem [shape: f32[1,32], index: 24, kind: input, shape index: {}]   ;;  %s14036_s25 = inlined_call_operand.vmem [shape: f32[32,16], index: 25, kind: input, shape index: {}]   ;;  %s14037_s26 = inlined_call_operand.hbm [shape: f32[2,4,16], index: 26, kind: output, shape index: {}]  }
   0x1   :  { %14170 = sst [smem:[#allocation79_spill]] %s14011_s0 }
   0x2   :  { %14171 = sst [smem:[#allocation80_spill]] %s14012_s1 }
   0x3   :  { %14172 = sst [smem:[#allocation81_spill]] %s14013_s2 }
   0x4   :  { %14173 = sst [smem:[#allocation82_spill]] %s14014_s3 }
   0x5   :  { %14174 = sst [smem:[#allocation83_spill]] %s14015_s4 }
   0x6   :  { %14175 = sst [smem:[#allocation84_spill]] %s14016_s5 }
   0x7   :  { %14176 = sst [smem:[#allocation85_spill]] %s14017_s6 }
   0x8   :  { %14177 = sst [smem:[#allocation86_spill]] %s14018_s7 }
   0x9   :  { %14178 = sst [smem:[#allocation87_spill]] %s14019_s8 }
   0xa   :  { %14179 = sst [smem:[#allocation88_spill]] %s14020_s9 }
   0xb   :  { %14180 = sst [smem:[#allocation89_spill]] %s14021_s10 }
   0xc   :  { %14181 = sst [smem:[#allocation90_spill]] %s14035_s24 }
   0xd   :  { %14182 = sst [smem:[#allocation91_spill]] %s14037_s26 }
   0xe   :  { %31 = vsyncpa [#allocation3], 0 }
   0xf   :  { %33 = vsyncpa [#allocation3 + $0x1], 0  ;;  %s10524_s27 = smov 0   ;;  %s10526_s3 = smov 0  }
  0x10   :  { %s10528_s7 = smov 0   ;;  %s10530_s28 = smov 0  }
  0x11 LB: > { %14183 = sst [smem:[#allocation5_spill]] %s10371_s27  ;;  %s10545_s8 = sadd.s32 4294967295, %s10383_s28   ;;  %s10383_s28 = sphi %s10530_s28, %s14495_s28   ;;  %s10379_s7 = sphi %s10528_s7, %s14497_s7   ;;  %s10375_s3 = sphi %s10526_s3, %s14499_s3   ;;  %s10371_s27 = sphi %s10524_s27, %s14498_s27  }
  0x12   : > { %14184 = sst [smem:[#allocation6_spill]] %s10379_s7  ;;  %s7118_s4 = sadd.s32 4294967294, %s10383_s28  }
  0x13   : > { %14185 = sst [smem:[#allocation7_spill]] %s10383_s28  ;;  %s10549_s29 = sadd.s32 1, %s10383_s28  }
  0x14   : > { %14186 = sst [smem:[#allocation8_spill]] %s10549_s29  ;;  %s597_s0 = sadd.s32 1, %s10379_s7 }
  0x15   : > { %s594_s9 = ssub.s32 %s10383_s28, %s10549_s29  ;;  %p607_p0 = scmp.ne.s32.totalorder %s10379_s7, %s10375_s3 }
  0x16   : > { %p595_p1 = scmp.eq.s32.totalorder %s594_s9, 0  ;;  %p608_p2 = scmp.eq.s32.totalorder %s10545_s8, 1 }
  0x17   : > { %p613_p3 = scmp.ne.s32.totalorder %s10375_s3, %s10371_s27  ;;  %p614_p4 = scmp.eq.s32.totalorder %s7118_s4, 1 }
  0x18   : > { %s10560_s30 = scalar_select %p595_p1, %s10379_s7, %s597_s0  }
  0x19   : > { %p10562_p5 = por %p608_p2, %p607_p0  ;;  %p10566_p6 = por %p614_p4, %p613_p3 }
  0x1a   : > { %14187 = sst [smem:[#allocation9_spill]] %s10560_s30  ;;  %p7121_p7 = scmp.ge.s32.totalorder %s10383_s28, 1 }
  0x1b   : > { %s14188_s2 = scalar_select %p10562_p5, 1, 0 }
  0x1c   : > { %s14190_s5 = scalar_select %p10566_p6, 1, 0 }
  0x1d   : > { %14189 = sst [smem:[#allocation10_spill]] %s14188_s2  ;;  %p717_p8 = scmp.lt.s32.totalorder %s10383_s28, 3 }
  0x1e   : > { %14191 = sst [smem:[#allocation11_spill]] %s14190_s5 }
  0x1f   : > { %p718_p9 = pnand %p7121_p7, %p717_p8 }
  0x21   : > { %721 = sbr.rel (%p718_p9) target bundleno = 5829 (0x16c5), region = 124 }
  0x28   : > { %s14192_s1 = sld [smem:[#allocation80_spill]]  ;;  %s788_s7 = smul.u32 12, %s10545_s8  ;;  %v14059_v3 = vmov 0.0|0.0   ;;  %vm855_vm0 = vcmask 523264   ;;  %vm1019_vm1 = vcmask 261120   ;;  %vm10386_vm2 = vmmov 0  }
  0x29   : > { %9270 = vmatprep.subr.bf16.mxu0 %v14059_v3  ;;  %s14193_s9 = sld [smem:[#allocation79_spill]]  ;;  %s14194_s28 = sld [smem:[#allocation81_spill]]  ;;  %vm11290_vm3 = vmpackc.low %vm1019_vm1, %vm1019_vm1  ;;  %vm2031_vm4 = vcmask 785408   ;;  %vm6930_vm5 = vcmask 1040384   ;;  %vm6932_vm6 = vcmask 1041408   ;;  %vm6934_vm7 = vcmask 1042432  }
  0x2a   : > { %p789_p10 = scmp.lt.s32.totalorder %s788_s7, 23  ;;  %s14196_s30 = sld [smem:[#allocation82_spill]]  ;;  %vm6938_vm8 = vcmask 257024   ;;  %vm7043_vm9 = vcmask 125952  }
  0x2b   : > { %s14213_s29 = sld [smem:[#allocation89_spill]]  ;;  %s785_s6 = sand.u32 1, %s10375_s3  }
  0x2c   : > { %s14501_s7 = smov (!%p789_p10, %s788_s7), 23  ;;  %s7122_s24 = sshll.u32 %s785_s6, 2 }
  0x2d   : > { %s7525_s0 = sshll.u32 %s14501_s7, 4  ;;  %s14220_s7 = sld [smem:[#allocation84_spill]] }
  0x2e   : > { %v819_v0 = vld [vmem:[%s14192_s1] sm:$0xff]  ;;  %v820_v1 = vld [vmem:[%s14192_s1 + $0x8] sm:$0xff]  ;;  %v821_v2 = vld [vmem:[%s14192_s1 + $0x10] sm:$0xff]  ;;  %s7522_s26 = sshll.u32 %s10545_s8, 6  ;;  %s14491_s2 = sld [smem:[#allocation91_spill]] }
  0x2f   : > { %v9271_v4 = vpack.c.bf16 %v820_v1, %v819_v0  ;;  %v822_v5 = vld [vmem:[%s14192_s1 + $0x18] sm:$0xff]  ;;  %v823_v7 = vld [vmem:[%s14192_s1 + $0x20] sm:$0xff]  ;;  %v824_v8 = vld [vmem:[%s14192_s1 + $0x28] sm:$0xff]  ;;  %s10596_s27 = scalar_lea.vmem %s14193_s9, %s7525_s0  ;;  %s14195_s5 = smov %s14194_s28 }
  0x30   : > { %v9274_v6 = vpack.c.bf16 %v822_v5, %v821_v2  ;;  %v9277_v9 = vpack.c.bf16 %v824_v8, %v823_v7  ;;  %v825_v10 = vld [vmem:[%s14192_s1 + $0x30] sm:$0xff]  ;;  %v826_v11 = vld [vmem:[%s14192_s1 + $0x38] sm:$0xff]  ;;  %v796_v12 = vld [vmem:[%s10596_s27 + $0x8] sm:$0xff]  ;;  %s14197_s0 = sld [smem:[#allocation83_spill]]  ;;  %s14210_s9 = sld [smem:[#allocation88_spill]] }
  0x31   : > { %9272 = vmatpush1.bf16.msra.mxu0 %v9271_v4  ;;  %7125 = vmatprep.mubr.msk.f32.mxu0 %vm855_vm0, %v796_v12  ;;  %v9280_v13 = vpack.c.bf16 %v826_v11, %v825_v10  ;;  %v827_v14 = vld [vmem:[%s14192_s1 + $0x40] sm:$0xff]  ;;  %v828_v15 = vld [vmem:[%s14192_s1 + $0x48] sm:$0xff]  ;;  %v829_v17 = vld [vmem:[%s14192_s1 + $0x50] sm:$0xff]  ;;  %s10388_s8 = smov [#allocation2]  }
  0x32   : > { %9273 = vmatprep.subr.bf16.mxu0 %v14059_v3  ;;  %v9283_v16 = vpack.c.bf16 %v828_v15, %v827_v14  ;;  %v830_v18 = vld [vmem:[%s14192_s1 + $0x58] sm:$0xff]  ;;  %v831_v20 = vld [vmem:[%s14192_s1 + $0x60] sm:$0xff]  ;;  %v832_v21 = vld [vmem:[%s14192_s1 + $0x68] sm:$0xff] }
  0x33   : > { %v9286_v19 = vpack.c.bf16 %v830_v18, %v829_v17  ;;  %v9289_v22 = vpack.c.bf16 %v832_v21, %v831_v20  ;;  %v833_v23 = vld [vmem:[%s14192_s1 + $0x70] sm:$0xff]  ;;  %v834_v24 = vld [vmem:[%s14192_s1 + $0x78] sm:$0xff]  ;;  %v835_v26 = vld [vmem:[%s14192_s1 + $0x80] sm:$0xff]  ;;  %s14221_s4 = smov %s14220_s7 }
  0x34   : > { %v9292_v25 = vpack.c.bf16 %v834_v24, %v833_v23  ;;  %v836_v27 = vld [vmem:[%s14192_s1 + $0x88] sm:$0xff]  ;;  %v837_v29 = vld [vmem:[%s14192_s1 + $0x90] sm:$0xff]  ;;  %v838_v30 = vld [vmem:[%s14192_s1 + $0x98] sm:$0xff] }
  0x35   : > { %9275 = vmatpush1.bf16.msra.mxu0 %v9274_v6  ;;  %v9295_v28 = vpack.c.bf16 %v836_v27, %v835_v26  ;;  %v9298_v31 = vpack.c.bf16 %v838_v30, %v837_v29  ;;  %v839_v32 = vld [vmem:[%s14192_s1 + $0xa0] sm:$0xff]  ;;  %v840_v33 = vld [vmem:[%s14192_s1 + $0xa8] sm:$0xff]  ;;  %v841_v35 = vld [vmem:[%s14192_s1 + $0xb0] sm:$0xff] }
  0x36   : > { %9276 = vmatprep.subr.bf16.mxu0 %v14059_v3  ;;  %v9301_v34 = vpack.c.bf16 %v840_v33, %v839_v32  ;;  %v842_v36 = vld [vmem:[%s14192_s1 + $0xb8] sm:$0xff]  ;;  %v795_v38 = vld [vmem:[%s10596_s27] sm:$0xff]  ;;  %v797_v40 = vld [vmem:[%s10596_s27 + $0x10] sm:$0xff] }
  0x37   : > { %v9304_v37 = vpack.c.bf16 %v842_v36, %v841_v35  ;;  %v798_v39 = vld [vmem:[%s10596_s27 + $0x18] sm:$0xff]  ;;  %v800_v41 = vld [vmem:[%s10596_s27 + $0x28] sm:$0xff]  ;;  %v799_v42 = vld [vmem:[%s10596_s27 + $0x20] sm:$0xff] }
  0x38   : > { %v802_v43 = vld [vmem:[%s10596_s27 + $0x38] sm:$0xff]  ;;  %v801_v44 = vld [vmem:[%s10596_s27 + $0x30] sm:$0xff]  ;;  %v804_v45 = vld [vmem:[%s10596_s27 + $0x48] sm:$0xff] }
  0x39   : > { %9278 = vmatpush1.bf16.msra.mxu0 %v9277_v9  ;;  %v803_v46 = vld [vmem:[%s10596_s27 + $0x40] sm:$0xff]  ;;  %v806_v47 = vld [vmem:[%s10596_s27 + $0x58] sm:$0xff]  ;;  %v805_v48 = vld [vmem:[%s10596_s27 + $0x50] sm:$0xff] }
  0x3a   : > { %9279 = vmatprep.subr.bf16.mxu0 %v14059_v3  ;;  %v808_v49 = vld [vmem:[%s10596_s27 + $0x68] sm:$0xff]  ;;  %v807_v50 = vld [vmem:[%s10596_s27 + $0x60] sm:$0xff]  ;;  %v810_v51 = vld [vmem:[%s10596_s27 + $0x78] sm:$0xff] }
  0x3b   : > { %v809_v52 = vld [vmem:[%s10596_s27 + $0x70] sm:$0xff]  ;;  %v812_v53 = vld [vmem:[%s10596_s27 + $0x88] sm:$0xff]  ;;  %v811_v54 = vld [vmem:[%s10596_s27 + $0x80] sm:$0xff] }
  0x3c   : > { %v814_v55 = vld [vmem:[%s10596_s27 + $0x98] sm:$0xff]  ;;  %v813_v56 = vld [vmem:[%s10596_s27 + $0x90] sm:$0xff]  ;;  %v816_v57 = vld [vmem:[%s10596_s27 + $0xa8] sm:$0xff] }
  0x3d   : > { %9281 = vmatpush1.bf16.msra.mxu0 %v9280_v13  ;;  %v815_v58 = vld [vmem:[%s10596_s27 + $0xa0] sm:$0xff]  ;;  %v818_v59 = vld [vmem:[%s10596_s27 + $0xb8] sm:$0xff]  ;;  %v817_v60 = vld [vmem:[%s10596_s27 + $0xb0] sm:$0xff]  ;;  %s14489_s27 = sld [smem:[#allocation90_spill]] }
  0x3e   : > { %9282 = vmatprep.subr.bf16.mxu0 %v14059_v3  ;;  %v843_v61 = vld [vmem:[%s14194_s28] sm:$0xff]  ;;  %v844_v1 = vld [vmem:[%s14195_s5 + $0x8] sm:$0xff]  ;;  %v845_v7 = vld [vmem:[%s14195_s5 + $0x10] sm:$0xff]  ;;  %s7046_s28 = scalar_lea.sflag [#allocation3], %s785_s6 }
  0x3f   : > { %v846_v12 = vld [vmem:[%s14195_s5 + $0x18] sm:$0xff]  ;;  %v847_v17 = vld [vmem:[%s14195_s5 + $0x20] sm:$0xff]  ;;  %v849_v27 = vld [vmem:[%s14195_s5 + $0x30] sm:$0xff] }
  0x40   : > { %v850_v32 = vld [vmem:[%s14195_s5 + $0x38] sm:$0xff] }
  0x41   : > { %9284 = vmatpush1.bf16.msra.mxu0 %v9283_v16 }
  0x42   : > { %9285 = vmatprep.subr.bf16.mxu0 %v14059_v3 }
  0x45   : > { %9287 = vmatpush1.bf16.msra.mxu0 %v9286_v19 }
  0x46   : > { %9288 = vmatprep.subr.bf16.mxu0 %v14059_v3 }
  0x49   : > { %9290 = vmatpush1.bf16.msra.mxu0 %v9289_v22  ;;  %v848_v22 = vld [vmem:[%s14195_s5 + $0x28] sm:$0xff] }
  0x4a   : > { %9291 = vmatprep.subr.bf16.mxu0 %v14059_v3 }
  0x4d   : > { %9293 = vmatpush1.bf16.msra.mxu0 %v9292_v25 }
  0x4e   : > { %9294 = vmatprep.subr.bf16.mxu0 %v14059_v3 }
  0x51   : > { %9296 = vmatpush1.bf16.msra.mxu0 %v9295_v28 }
  0x52   : > { %9297 = vmatprep.subr.bf16.mxu0 %v14059_v3 }
  0x55   : > { %9299 = vmatpush1.bf16.msra.mxu0 %v9298_v31 }
  0x56   : > { %9300 = vmatprep.subr.bf16.mxu0 %v14059_v3 }
  0x59   : > { %9302 = vmatpush1.bf16.msra.mxu0 %v9301_v34 }
  0x5a   : > { %9303 = vmatprep.subr.bf16.mxu0 %v14059_v3 }
  0x5d   : > { %9305 = vmatpush1.bf16.msra.mxu0 %v9304_v37  ;;  %v851_v37 = vld [vmem:[%s14195_s5 + $0x40] sm:$0xff] }
  0x5e   : > { %9330 = vmatprep.subr.bf16.mxu0 %v14059_v3 }
  0x60   : > { %957 = vmatmul.mubr.f32.vlgmr.msra.gmra.mrb[0].mxu0 %v795_v38 }
  0x61   : > { %7126 = vmatprep.mubr.msk.f32.mxu0 %vm855_vm0, %v798_v39 }
  0x64   : > { %962 = vmatmul.mubr.f32.gmra.mrb[2].mxu0 %v797_v40 }
  0x65   : > { %7127 = vmatprep.mubr.msk.f32.mxu0 %vm855_vm0, %v800_v41 }
  0x68   : > { %967 = vmatmul.mubr.f32.gmra.mrb[4].mxu0 %v799_v42  ;;  %v852_v42 = vld [vmem:[%s14195_s5 + $0x48] sm:$0xff] }
  0x69   : > { %7128 = vmatprep.mubr.msk.f32.mxu0 %vm855_vm0, %v802_v43 }
  0x6c   : > { %972 = vmatmul.mubr.f32.gmra.mrb[6].mxu0 %v801_v44 }
  0x6d   : > { %7129 = vmatprep.mubr.msk.f32.mxu0 %vm855_vm0, %v804_v45 }
  0x70   : > { %977 = vmatmul.mubr.f32.gmra.mrb[8].mxu0 %v803_v46 }
  0x71   : > { %7130 = vmatprep.mubr.msk.f32.mxu0 %vm855_vm0, %v806_v47  ;;  %v853_v47 = vld [vmem:[%s14195_s5 + $0x50] sm:$0xff] }
  0x74   : > { %982 = vmatmul.mubr.f32.gmra.mrb[10].mxu0 %v805_v48 }
  0x75   : > { %7131 = vmatprep.mubr.msk.f32.mxu0 %vm855_vm0, %v808_v49 }
  0x78   : > { %987 = vmatmul.mubr.f32.gmra.mrb[12].mxu0 %v807_v50 }
  0x79   : > { %7132 = vmatprep.mubr.msk.f32.mxu0 %vm855_vm0, %v810_v51 }
  0x7c   : > { %992 = vmatmul.mubr.f32.gmra.mrb[14].mxu0 %v809_v52  ;;  %v854_v52 = vld [vmem:[%s14195_s5 + $0x58] sm:$0xff]  ;;  %s14326_s5 = sld [smem:[#allocation85_spill]] }
  0x7d   : > { %7133 = vmatprep.mubr.msk.f32.mxu0 %vm855_vm0, %v812_v53 }
  0x80   : > { %997 = vmatmul.mubr.f32.gmra.mrb[16].mxu0 %v811_v54 }
  0x81   : > { %7134 = vmatprep.mubr.msk.f32.mxu0 %vm855_vm0, %v814_v55 }
  0x84   : > { %1002 = vmatmul.mubr.f32.gmra.mrb[18].mxu0 %v813_v56 }
  0x85   : > { %7135 = vmatprep.mubr.msk.f32.mxu0 %vm855_vm0, %v816_v57 }
  0x88   : > { %1007 = vmatmul.mubr.f32.gmra.mrb[20].mxu0 %v815_v58 }
  0x89   : > { %7136 = vmatprep.mubr.msk.f32.mxu0 %vm855_vm0, %v818_v59 }
  0x8c   : > { %1012 = vmatmul.mubr.f32.gmra.mrb[22].mxu0 %v817_v60 }
 0x133   : > { %v958_v62 = vpop.f32.mrb[0].mxu0 }
 0x134   : > { %v10702_v63 = vadd.f32 %v958_v62, %v843_v61  ;;  %v960_v0 = vpop.f32.mrb[1].mxu0 }
 0x136   : > { %v1020_v2 = vsel %vm1019_vm1, %v10702_v63, 0.0 }
 0x137   : > { %v963_v4 = vpop.f32.mrb[2].mxu0  ;;  %1021 = vadd.xlane.f32.xlu0 %v1020_v2 }
 0x138   : > { %v10709_v5 = vadd.f32 %v963_v4, %v844_v1  ;;  %v965_v6 = vpop.f32.mrb[3].mxu0 }
 0x13a   : > { %v1023_v8 = vsel %vm1019_vm1, %v10709_v5, 0.0 }
 0x13b   : > { %v968_v9 = vpop.f32.mrb[4].mxu0  ;;  %1024 = vadd.xlane.f32.xlu0 %v1023_v8 }
 0x13c   : > { %v10716_v10 = vadd.f32 %v968_v9, %v845_v7  ;;  %v970_v11 = vpop.f32.mrb[5].mxu0 }
 0x13e   : > { %v1026_v13 = vsel %vm1019_vm1, %v10716_v10, 0.0 }
 0x13f   : > { %v973_v14 = vpop.f32.mrb[6].mxu0  ;;  %1027 = vadd.xlane.f32.xlu1 %v1026_v13 }
 0x140   : > { %v10723_v15 = vadd.f32 %v973_v14, %v846_v12  ;;  %v975_v16 = vpop.f32.mrb[7].mxu0 }
 0x142   : > { %v1029_v18 = vsel %vm1019_vm1, %v10723_v15, 0.0 }
 0x143   : > { %v978_v19 = vpop.f32.mrb[8].mxu0  ;;  %1030 = vadd.xlane.f32.xlu1 %v1029_v18 }
 0x144   : > { %v10730_v20 = vadd.f32 %v978_v19, %v847_v17  ;;  %v980_v21 = vpop.f32.mrb[9].mxu0 }
 0x146   : > { %v1032_v23 = vsel %vm1019_vm1, %v10730_v20, 0.0 }
 0x147   : > { %v983_v24 = vpop.f32.mrb[10].mxu0  ;;  %1033 = vadd.xlane.f32.xlu0 %v1032_v23 }
 0x148   : > { %v10737_v25 = vadd.f32 %v983_v24, %v848_v22  ;;  %v985_v26 = vpop.f32.mrb[11].mxu0 }
 0x14a   : > { %v1035_v28 = vsel %vm1019_vm1, %v10737_v25, 0.0 }
 0x14b   : > { %v988_v29 = vpop.f32.mrb[12].mxu0  ;;  %1036 = vadd.xlane.f32.xlu1 %v1035_v28 }
 0x14c   : > { %v10744_v30 = vadd.f32 %v988_v29, %v849_v27  ;;  %v990_v31 = vpop.f32.mrb[13].mxu0 }
 0x14e   : > { %v1038_v33 = vsel %vm1019_vm1, %v10744_v30, 0.0 }
 0x14f   : > { %v993_v34 = vpop.f32.mrb[14].mxu0  ;;  %1039 = vadd.xlane.f32.xlu0 %v1038_v33 }
 0x150   : > { %v10751_v35 = vadd.f32 %v993_v34, %v850_v32  ;;  %v995_v36 = vpop.f32.mrb[15].mxu0 }
 0x152   : > { %v1041_v38 = vsel %vm1019_vm1, %v10751_v35, 0.0 }
 0x153   : > { %v998_v39 = vpop.f32.mrb[16].mxu0  ;;  %1042 = vadd.xlane.f32.xlu1 %v1041_v38 }
 0x154   : > { %v10758_v40 = vadd.f32 %v998_v39, %v851_v37  ;;  %v1000_v41 = vpop.f32.mrb[17].mxu0 }
 0x156   : > { %v1044_v43 = vsel %vm1019_vm1, %v10758_v40, 0.0 }
 0x157   : > { %v1003_v44 = vpop.f32.mrb[18].mxu0  ;;  %1045 = vadd.xlane.f32.xlu0 %v1044_v43 }
 0x158   : > { %v10765_v45 = vadd.f32 %v1003_v44, %v852_v42  ;;  %v1005_v46 = vpop.f32.mrb[19].mxu0 }
 0x15a   : > { %v1047_v48 = vsel %vm1019_vm1, %v10765_v45, 0.0 }
 0x15b   : > { %v1008_v49 = vpop.f32.mrb[20].mxu0  ;;  %1048 = vadd.xlane.f32.xlu1 %v1047_v48 }
 0x15c   : > { %v10772_v50 = vadd.f32 %v1008_v49, %v853_v47  ;;  %v1010_v51 = vpop.f32.mrb[21].mxu0 }
 0x15e   : > { %v1050_v53 = vsel %vm1019_vm1, %v10772_v50, 0.0 }
 0x15f   : > { %v1013_v54 = vpop.f32.mrb[22].mxu0  ;;  %1051 = vadd.xlane.f32.xlu0 %v1050_v53 }
 0x160   : > { %v10779_v55 = vadd.f32 %v1013_v54, %v854_v52  ;;  %v1015_v56 = vpop.f32.mrb[23].mxu0 }
 0x162   : > { %v1053_v57 = vsel %vm1019_vm1, %v10779_v55, 0.0 }
 0x163   : > { %1054 = vadd.xlane.f32.xlu1 %v1053_v57 }
 0x1c4   : > { %v1022_v58 = vpop.xlane.xlu0 %1021 }
 0x1c5   : > { %v1057_v59 = vmul.f32 0.03125, %v1022_v58 }
 0x1c7   : > { %v10784_v60 = vsub.f32 %v10702_v63, %v1057_v59 }
 0x1c8   : > { %v1025_v61 = vpop.xlane.xlu0 %1024 }
 0x1c9   : > { %v1058_v62 = vmul.f32 0.03125, %v1025_v61  ;;  %v1081_v0 = vmul.f32 %v10784_v60, %v10784_v60 }
 0x1cb   : > { %v10789_v1 = vsub.f32 %v10709_v5, %v1058_v62  ;;  %v1093_v2 = vsel %vm1019_vm1, %v1081_v0, 0.0 }
 0x1cc   : > { %v1028_v4 = vpop.xlane.xlu1 %1027  ;;  %1094 = vadd.xlane.f32.xlu0 %v1093_v2 }
 0x1cd   : > { %v1059_v6 = vmul.f32 0.03125, %v1028_v4  ;;  %v1082_v7 = vmul.f32 %v10789_v1, %v10789_v1 }
 0x1cf   : > { %v10795_v8 = vsub.f32 %v10716_v10, %v1059_v6  ;;  %v1096_v63 = vsel %vm1019_vm1, %v1082_v7, 0.0 }
 0x1d0   : > { %v1031_v9 = vpop.xlane.xlu1 %1030  ;;  %1097 = vadd.xlane.f32.xlu1 %v1096_v63 }
 0x1d1   : > { %v1060_v11 = vmul.f32 0.03125, %v1031_v9  ;;  %v1083_v5 = vmul.f32 %v10795_v8, %v10795_v8  ;;  %v10858_v9 = vld [vmem:[%s14196_s30] ss:$0 sm:$0xff]  ;;  %s14211_s30 = sld [smem:[#allocation86_spill]] }
 0x1d3   : > { %v10801_v12 = vsub.f32 %v10723_v15, %v1060_v11  ;;  %v1099_v13 = vsel %vm1019_vm1, %v1083_v5, 0.0 }
 0x1d4   : > { %1100 = vadd.xlane.f32.xlu0 %v1099_v13  ;;  %v1034_v14 = vpop.xlane.xlu0 %1033 }
 0x1d5   : > { %v1061_v16 = vmul.f32 0.03125, %v1034_v14  ;;  %v1084_v10 = vmul.f32 %v10801_v12, %v10801_v12  ;;  %v10864_v14 = vld [vmem:[%s14197_s0] ss:$0 sm:$0xff]  ;;  %s14212_s0 = sld [smem:[#allocation87_spill]] }
 0x1d7   : > { %v10807_v17 = vsub.f32 %v10730_v20, %v1061_v16  ;;  %v1102_v18 = vsel %vm1019_vm1, %v1084_v10, 0.0 }
 0x1d8   : > { %v1037_v19 = vpop.xlane.xlu1 %1036  ;;  %1103 = vadd.xlane.f32.xlu1 %v1102_v18 }
 0x1d9   : > { %v1062_v21 = vmul.f32 0.03125, %v1037_v19  ;;  %v1085_v15 = vmul.f32 %v10807_v17, %v10807_v17 }
 0x1db   : > { %v10813_v22 = vsub.f32 %v10737_v25, %v1062_v21  ;;  %v1105_v23 = vsel %vm1019_vm1, %v1085_v15, 0.0 }
 0x1dc   : > { %1106 = vadd.xlane.f32.xlu0 %v1105_v23  ;;  %v1040_v24 = vpop.xlane.xlu0 %1039 }
 0x1dd   : > { %v1063_v26 = vmul.f32 0.03125, %v1040_v24  ;;  %v1086_v20 = vmul.f32 %v10813_v22, %v10813_v22 }
 0x1df   : > { %v10819_v27 = vsub.f32 %v10744_v30, %v1063_v26  ;;  %v1108_v28 = vsel %vm1019_vm1, %v1086_v20, 0.0 }
 0x1e0   : > { %v1043_v29 = vpop.xlane.xlu1 %1042  ;;  %1109 = vadd.xlane.f32.xlu1 %v1108_v28 }
 0x1e1   : > { %v1064_v31 = vmul.f32 0.03125, %v1043_v29  ;;  %v1087_v25 = vmul.f32 %v10819_v27, %v10819_v27 }
 0x1e3   : > { %v10825_v32 = vsub.f32 %v10751_v35, %v1064_v31  ;;  %v1111_v33 = vsel %vm1019_vm1, %v1087_v25, 0.0 }
 0x1e4   : > { %1112 = vadd.xlane.f32.xlu0 %v1111_v33  ;;  %v1046_v34 = vpop.xlane.xlu0 %1045 }
 0x1e5   : > { %v1065_v36 = vmul.f32 0.03125, %v1046_v34  ;;  %v1088_v30 = vmul.f32 %v10825_v32, %v10825_v32 }
 0x1e7   : > { %v10831_v37 = vsub.f32 %v10758_v40, %v1065_v36  ;;  %v1114_v38 = vsel %vm1019_vm1, %v1088_v30, 0.0 }
 0x1e8   : > { %v1049_v39 = vpop.xlane.xlu1 %1048  ;;  %1115 = vadd.xlane.f32.xlu1 %v1114_v38 }
 0x1e9   : > { %v1066_v41 = vmul.f32 0.03125, %v1049_v39  ;;  %v1089_v35 = vmul.f32 %v10831_v37, %v10831_v37 }
 0x1eb   : > { %v10837_v42 = vsub.f32 %v10765_v45, %v1066_v41  ;;  %v1117_v43 = vsel %vm1019_vm1, %v1089_v35, 0.0 }
 0x1ec   : > { %1118 = vadd.xlane.f32.xlu0 %v1117_v43  ;;  %v1052_v44 = vpop.xlane.xlu0 %1051 }
 0x1ed   : > { %v1067_v46 = vmul.f32 0.03125, %v1052_v44  ;;  %v1090_v40 = vmul.f32 %v10837_v42, %v10837_v42 }
 0x1ef   : > { %v10843_v47 = vsub.f32 %v10772_v50, %v1067_v46  ;;  %v1120_v48 = vsel %vm1019_vm1, %v1090_v40, 0.0 }
 0x1f0   : > { %v1055_v49 = vpop.xlane.xlu1 %1054  ;;  %1121 = vadd.xlane.f32.xlu1 %v1120_v48 }
 0x1f1   : > { %v1068_v51 = vmul.f32 0.03125, %v1055_v49  ;;  %v1091_v45 = vmul.f32 %v10843_v47, %v10843_v47 }
 0x1f3   : > { %v10849_v52 = vsub.f32 %v10779_v55, %v1068_v51  ;;  %v1123_v53 = vsel %vm1019_vm1, %v1091_v45, 0.0 }
 0x1f4   : > { %1124 = vadd.xlane.f32.xlu0 %v1123_v53 }
 0x1f5   : > { %v1092_v54 = vmul.f32 %v10849_v52, %v10849_v52 }
 0x1f7   : > { %v1126_v50 = vsel %vm1019_vm1, %v1092_v54, 0.0 }
 0x1f8   : > { %1127 = vadd.xlane.f32.xlu1 %v1126_v50 }
 0x259   : > { %v1095_v56 = vpop.xlane.xlu0 %1094 }
 0x25a   : > { %v1129_v57 = vmul.f32 0.03125, %v1095_v56 }
 0x25c   : > { %v1141_v58 = vadd.f32 1e-05, %v1129_v57 }
 0x25d   : > { %v1098_v59 = vpop.xlane.xlu1 %1097 }
 0x25e   : > { %9994 = vrsqrt.f32 %v1141_v58  ;;  %v1130_v61 = vmul.f32 0.03125, %v1098_v59 }
 0x260   : > { %v1142_v62 = vadd.f32 1e-05, %v1130_v61 }
 0x261   : > { %v1101_v0 = vpop.xlane.xlu0 %1100 }
 0x262   : > { %9996 = vrsqrt.f32 %v1142_v62  ;;  %v1131_v55 = vmul.f32 0.03125, %v1101_v0 }
 0x264   : > { %v1143_v2 = vadd.f32 1e-05, %v1131_v55 }
 0x265   : > { %v1104_v4 = vpop.xlane.xlu1 %1103 }
 0x266   : > { %9998 = vrsqrt.f32 %v1143_v2  ;;  %v1132_v6 = vmul.f32 0.03125, %v1104_v4 }
 0x268   : > { %v9995_v7 = vpop.eup %9994  ;;  %v1144_v63 = vadd.f32 1e-05, %v1132_v6 }
 0x269   : > { %v1107_v11 = vpop.xlane.xlu0 %1106  ;;  %v1165_v5 = vmul.f32 %v9995_v7, %v10784_v60 }
 0x26a   : > { %10000 = vrsqrt.f32 %v1144_v63  ;;  %v1133_v13 = vmul.f32 0.03125, %v1107_v11 }
 0x26b   : > { %v1183_v16 = vmul.f32 %v10858_v9, %v1165_v5 }
 0x26c   : > { %v9997_v10 = vpop.eup %9996  ;;  %v1145_v18 = vadd.f32 1e-05, %v1133_v13 }
 0x26d   : > { %v1110_v19 = vpop.xlane.xlu1 %1109  ;;  %v10868_v21 = vadd.f32 %v10864_v14, %v1183_v16  ;;  %v1166_v15 = vmul.f32 %v9997_v10, %v10789_v1 }
 0x26e   : > { %10002 = vrsqrt.f32 %v1145_v18  ;;  %v1134_v23 = vmul.f32 0.03125, %v1110_v19 }
 0x26f   : > { %14198 = vst [vmem:[#allocation12_spill] sm:$0xff] %v10868_v21  ;;  %v1228_v60 = vsel %vm1019_vm1, %v10868_v21, 0.0  ;;  %v1184_v24 = vmul.f32 %v10858_v9, %v1166_v15 }
 0x270   : > { %v9999_v26 = vpop.eup %9998  ;;  %v1146_v20 = vadd.f32 1e-05, %v1134_v23  ;;  %1229 = vadd.xlane.f32.xlu0 %v1228_v60 }
 0x271   : > { %v1113_v28 = vpop.xlane.xlu0 %1112  ;;  %v10875_v29 = vadd.f32 %v10864_v14, %v1184_v24  ;;  %v1167_v31 = vmul.f32 %v9999_v26, %v10795_v8 }
 0x272   : > { %10004 = vrsqrt.f32 %v1146_v20  ;;  %v1135_v25 = vmul.f32 0.03125, %v1113_v28 }
 0x273   : > { %14199 = vst [vmem:[#allocation13_spill] sm:$0xff] %v10875_v29  ;;  %v1231_v1 = vsel %vm1019_vm1, %v10875_v29, 0.0  ;;  %v1185_v33 = vmul.f32 %v10858_v9, %v1167_v31 }
 0x274   : > { %v10001_v34 = vpop.eup %10000  ;;  %v1147_v36 = vadd.f32 1e-05, %v1135_v25  ;;  %1232 = vadd.xlane.f32.xlu1 %v1231_v1 }
 0x275   : > { %v1116_v30 = vpop.xlane.xlu1 %1115  ;;  %v10882_v38 = vadd.f32 %v10864_v14, %v1185_v33  ;;  %v1168_v39 = vmul.f32 %v10001_v34, %v10801_v12 }
 0x276   : > { %10006 = vrsqrt.f32 %v1147_v36  ;;  %v1136_v41 = vmul.f32 0.03125, %v1116_v30 }
 0x277   : > { %14200 = vst [vmem:[#allocation14_spill] sm:$0xff] %v10882_v38  ;;  %v1234_v8 = vsel %vm1019_vm1, %v10882_v38, 0.0  ;;  %v1186_v35 = vmul.f32 %v10858_v9, %v1168_v39 }
 0x278   : > { %v10003_v43 = vpop.eup %10002  ;;  %v1148_v44 = vadd.f32 1e-05, %v1136_v41  ;;  %1235 = vadd.xlane.f32.xlu0 %v1234_v8 }
 0x279   : > { %v1119_v46 = vpop.xlane.xlu0 %1118  ;;  %v10889_v40 = vadd.f32 %v10864_v14, %v1186_v35  ;;  %v1169_v48 = vmul.f32 %v10003_v43, %v10807_v17 }
 0x27a   : > { %10008 = vrsqrt.f32 %v1148_v44  ;;  %v1137_v49 = vmul.f32 0.03125, %v1119_v46 }
 0x27b   : > { %14201 = vst [vmem:[#allocation15_spill] sm:$0xff] %v10889_v40  ;;  %v1237_v12 = vsel %vm1019_vm1, %v10889_v40, 0.0  ;;  %v1187_v51 = vmul.f32 %v10858_v9, %v1169_v48 }
 0x27c   : > { %v10005_v45 = vpop.eup %10004  ;;  %v1149_v53 = vadd.f32 1e-05, %v1137_v49  ;;  %1238 = vadd.xlane.f32.xlu1 %v1237_v12 }
 0x27d   : > { %v1122_v54 = vpop.xlane.xlu1 %1121  ;;  %v10896_v50 = vadd.f32 %v10864_v14, %v1187_v51  ;;  %v1170_v56 = vmul.f32 %v10005_v45, %v10813_v22 }
 0x27e   : > { %10010 = vrsqrt.f32 %v1149_v53  ;;  %v1138_v57 = vmul.f32 0.03125, %v1122_v54 }
 0x27f   : > { %14202 = vst [vmem:[#allocation16_spill] sm:$0xff] %v10896_v50  ;;  %v1240_v17 = vsel %vm1019_vm1, %v10896_v50, 0.0  ;;  %v1188_v58 = vmul.f32 %v10858_v9, %v1170_v56 }
 0x280   : > { %v10007_v59 = vpop.eup %10006  ;;  %v1150_v61 = vadd.f32 1e-05, %v1138_v57  ;;  %1241 = vadd.xlane.f32.xlu0 %v1240_v17 }
 0x281   : > { %v1125_v62 = vpop.xlane.xlu0 %1124  ;;  %v10903_v0 = vadd.f32 %v10864_v14, %v1188_v58  ;;  %v1171_v55 = vmul.f32 %v10007_v59, %v10819_v27 }
 0x282   : > { %10012 = vrsqrt.f32 %v1150_v61  ;;  %v1139_v2 = vmul.f32 0.03125, %v1125_v62 }
 0x283   : > { %14203 = vst [vmem:[#allocation17_spill] sm:$0xff] %v10903_v0  ;;  %v1243_v22 = vsel %vm1019_vm1, %v10903_v0, 0.0  ;;  %v1189_v4 = vmul.f32 %v10858_v9, %v1171_v55 }
 0x284   : > { %v10009_v6 = vpop.eup %10008  ;;  %v1151_v7 = vadd.f32 1e-05, %v1139_v2  ;;  %1244 = vadd.xlane.f32.xlu1 %v1243_v22 }
 0x285   : > { %v1128_v63 = vpop.xlane.xlu1 %1127  ;;  %v10910_v11 = vadd.f32 %v10864_v14, %v1189_v4  ;;  %v1172_v5 = vmul.f32 %v10009_v6, %v10825_v32 }
 0x286   : > { %10014 = vrsqrt.f32 %v1151_v7  ;;  %v1140_v13 = vmul.f32 0.03125, %v1128_v63 }
 0x287   : > { %14204 = vst [vmem:[#allocation18_spill] sm:$0xff] %v10910_v11  ;;  %v1246_v27 = vsel %vm1019_vm1, %v10910_v11, 0.0  ;;  %v1190_v16 = vmul.f32 %v10858_v9, %v1172_v5 }
 0x288   : > { %v10011_v10 = vpop.eup %10010  ;;  %v1152_v18 = vadd.f32 1e-05, %v1140_v13  ;;  %1247 = vadd.xlane.f32.xlu0 %v1246_v27 }
 0x289   : > { %v10917_v19 = vadd.f32 %v10864_v14, %v1190_v16  ;;  %v1173_v15 = vmul.f32 %v10011_v10, %v10831_v37 }
 0x28a   : > { %10016 = vrsqrt.f32 %v1152_v18 }
 0x28b   : > { %14205 = vst [vmem:[#allocation19_spill] sm:$0xff] %v10917_v19  ;;  %v1249_v23 = vsel %vm1019_vm1, %v10917_v19, 0.0  ;;  %v1191_v32 = vmul.f32 %v10858_v9, %v1173_v15 }
 0x28c   : > { %v10013_v60 = vpop.eup %10012  ;;  %1250 = vadd.xlane.f32.xlu1 %v1249_v23 }
 0x28d   : > { %v10924_v24 = vadd.f32 %v10864_v14, %v1191_v32  ;;  %v1174_v26 = vmul.f32 %v10013_v60, %v10837_v42 }
 0x28f   : > { %14206 = vst [vmem:[#allocation20_spill] sm:$0xff] %v10924_v24  ;;  %v1252_v20 = vsel %vm1019_vm1, %v10924_v24, 0.0  ;;  %v1192_v28 = vmul.f32 %v10858_v9, %v1174_v26 }
 0x290   : > { %v10015_v31 = vpop.eup %10014  ;;  %1253 = vadd.xlane.f32.xlu0 %v1252_v20 }
 0x291   : > { %v10931_v37 = vadd.f32 %v10864_v14, %v1192_v28  ;;  %v1175_v25 = vmul.f32 %v10015_v31, %v10843_v47 }
 0x293   : > { %14207 = vst [vmem:[#allocation21_spill] sm:$0xff] %v10931_v37  ;;  %v1255_v1 = vsel %vm1019_vm1, %v10931_v37, 0.0  ;;  %v1193_v33 = vmul.f32 %v10858_v9, %v1175_v25 }
 0x294   : > { %v10017_v34 = vpop.eup %10016  ;;  %1256 = vadd.xlane.f32.xlu1 %v1255_v1  ;;  %v1420_v1 = vld [vmem:[%s14210_s9] sm:$0xff] }
 0x295   : > { %v10938_v42 = vadd.f32 %v10864_v14, %v1193_v33  ;;  %v1176_v36 = vmul.f32 %v10017_v34, %v10849_v52  ;;  %v1421_v33 = vld [vmem:[%s14210_s9 + $0x8] sm:$0xff] }
 0x297   : > { %14208 = vst [vmem:[#allocation22_spill] sm:$0xff] %v10938_v42  ;;  %v1258_v30 = vsel %vm1019_vm1, %v10938_v42, 0.0  ;;  %v1194_v39 = vmul.f32 %v10858_v9, %v1176_v36 }
 0x298   : > { %1259 = vadd.xlane.f32.xlu0 %v1258_v30  ;;  %v9306_v30 = vpack.c.bf16 %v1421_v33, %v1420_v1  ;;  %v11048_v1 = vld [vmem:[%s14212_s0] ss:$0 sm:$0xff] }
 0x299   : > { %v10945_v47 = vadd.f32 %v10864_v14, %v1194_v39 }
 0x29a   : > { %9307 = vmatprep.subr.bf16.mxu1 %v9306_v30 }
 0x29b   : > { %14209 = vst [vmem:[#allocation23_spill] sm:$0xff] %v10945_v47  ;;  %v1261_v41 = vsel %vm1019_vm1, %v10945_v47, 0.0  ;;  %9309 = vmatpush3.bf16.msra.mxu1 %v9306_v30 }
 0x29c   : > { %1262 = vadd.xlane.f32.xlu1 %v1261_v41 }
 0x2fd   : > { %v1230_v8 = vpop.xlane.xlu0 %1229 }
 0x2fe   : > { %v1264_v35 = vmul.f32 0.03125, %v1230_v8 }
 0x300   : > { %v10950_v43 = vsub.f32 %v10868_v21, %v1264_v35  ;;  %v1422_v35 = vld [vmem:[%s14210_s9 + $0x10] sm:$0xff] }
 0x301   : > { %v1233_v44 = vpop.xlane.xlu1 %1232 }
 0x302   : > { %v1265_v52 = vmul.f32 0.03125, %v1233_v44  ;;  %v1288_v46 = vmul.f32 %v10950_v43, %v10950_v43  ;;  %v1423_v44 = vld [vmem:[%s14210_s9 + $0x18] sm:$0xff] }
 0x304   : > { %v10955_v9 = vsub.f32 %v10875_v29, %v1265_v52  ;;  %v1300_v14 = vsel %vm1019_vm1, %v1288_v46, 0.0 }
 0x305   : > { %1301 = vadd.xlane.f32.xlu0 %v1300_v14  ;;  %v1236_v48 = vpop.xlane.xlu0 %1235  ;;  %v9310_v14 = vpack.c.bf16 %v1423_v44, %v1422_v35  ;;  %v1607_v44 = vld [vmem:[%s14022_s11 + $0x18] sm:$0xff] }
 0x306   : > { %v1266_v49 = vmul.f32 0.03125, %v1236_v48  ;;  %v1289_v12 = vmul.f32 %v10955_v9, %v10955_v9 }
 0x307   : > { %9311 = vmatprep.subr.bf16.mxu1 %v9310_v14 }
 0x308   : > { %v10961_v51 = vsub.f32 %v10882_v38, %v1266_v49  ;;  %v1303_v45 = vsel %vm1019_vm1, %v1289_v12, 0.0  ;;  %9313 = vmatpush3.bf16.msra.mxu1 %v9310_v14 }
 0x309   : > { %1304 = vadd.xlane.f32.xlu1 %v1303_v45  ;;  %v1239_v53 = vpop.xlane.xlu1 %1238 }
 0x30a   : > { %v1267_v54 = vmul.f32 0.03125, %v1239_v53  ;;  %v1290_v56 = vmul.f32 %v10961_v51, %v10961_v51 }
 0x30c   : > { %v10967_v57 = vsub.f32 %v10889_v40, %v1267_v54  ;;  %v1306_v17 = vsel %vm1019_vm1, %v1290_v56, 0.0 }
 0x30d   : > { %1307 = vadd.xlane.f32.xlu0 %v1306_v17  ;;  %v1242_v58 = vpop.xlane.xlu0 %1241 }
 0x30e   : > { %v1268_v59 = vmul.f32 0.03125, %v1242_v58  ;;  %v1291_v61 = vmul.f32 %v10967_v57, %v10967_v57 }
 0x310   : > { %v10973_v62 = vsub.f32 %v10896_v50, %v1268_v59  ;;  %v1309_v55 = vsel %vm1019_vm1, %v1291_v61, 0.0  ;;  %v1604_v59 = vld [vmem:[%s14022_s11] sm:$0xff]  ;;  %v1605_v61 = vld [vmem:[%s14022_s11 + $0x8] sm:$0xff] }
 0x311   : > { %1310 = vadd.xlane.f32.xlu1 %v1309_v55  ;;  %v1245_v2 = vpop.xlane.xlu1 %1244  ;;  %v9314_v55 = vpack.c.bf16 %v1605_v61, %v1604_v59 }
 0x312   : > { %v1269_v22 = vmul.f32 0.03125, %v1245_v2  ;;  %v1292_v4 = vmul.f32 %v10973_v62, %v10973_v62 }
 0x313   : > { %9315 = vmatprep.subr.bf16.mxu1 %v9314_v55 }
 0x314   : > { %v10979_v6 = vsub.f32 %v10903_v0, %v1269_v22  ;;  %v1312_v7 = vsel %vm1019_vm1, %v1292_v4, 0.0 }
 0x315   : > { %1313 = vadd.xlane.f32.xlu0 %v1312_v7  ;;  %v1248_v63 = vpop.xlane.xlu0 %1247 }
 0x316   : > { %v1270_v5 = vmul.f32 0.03125, %v1248_v63  ;;  %v1293_v13 = vmul.f32 %v10979_v6, %v10979_v6 }
 0x318   : > { %v10985_v27 = vsub.f32 %v10910_v11, %v1270_v5  ;;  %v1315_v16 = vsel %vm1019_vm1, %v1293_v13, 0.0 }
 0x319   : > { %1316 = vadd.xlane.f32.xlu1 %v1315_v16  ;;  %v1251_v10 = vpop.xlane.xlu1 %1250 }
 0x31a   : > { %v1271_v18 = vmul.f32 0.03125, %v1251_v10  ;;  %v1294_v15 = vmul.f32 %v10985_v27, %v10985_v27 }
 0x31c   : > { %v10991_v23 = vsub.f32 %v10917_v19, %v1271_v18  ;;  %v1318_v32 = vsel %vm1019_vm1, %v1294_v15, 0.0  ;;  %v14225_v19 = vmov 0.0|0.0  }
 0x31d   : > { %1319 = vadd.xlane.f32.xlu0 %v1318_v32  ;;  %v1254_v60 = vpop.xlane.xlu0 %1253 }
 0x31e   : > { %v1272_v26 = vmul.f32 0.03125, %v1254_v60  ;;  %v1295_v20 = vmul.f32 %v10991_v23, %v10991_v23 }
 0x320   : > { %v10997_v28 = vsub.f32 %v10924_v24, %v1272_v26  ;;  %v1321_v31 = vsel %vm1019_vm1, %v1295_v20, 0.0  ;;  %v11042_v26 = vld [vmem:[%s14211_s30] ss:$0 sm:$0xff] }
 0x321   : > { %1322 = vadd.xlane.f32.xlu1 %v1321_v31  ;;  %v1257_v25 = vpop.xlane.xlu1 %1256 }
 0x322   : > { %v1273_v34 = vmul.f32 0.03125, %v1257_v25  ;;  %v1296_v36 = vmul.f32 %v10997_v28, %v10997_v28 }
 0x324   : > { %v11009_v39 = vsub.f32 %v10931_v37, %v1273_v34  ;;  %v1324_v41 = vsel %vm1019_vm1, %v1296_v36, 0.0 }
 0x325   : > { %1325 = vadd.xlane.f32.xlu0 %v1324_v41  ;;  %v1260_v8 = vpop.xlane.xlu0 %1259 }
 0x326   : > { %v1274_v52 = vmul.f32 0.03125, %v1260_v8  ;;  %v1297_v46 = vmul.f32 %v11009_v39, %v11009_v39 }
 0x328   : > { %v11021_v48 = vsub.f32 %v10938_v42, %v1274_v52  ;;  %v1327_v49 = vsel %vm1019_vm1, %v1297_v46, 0.0 }
 0x329   : > { %1328 = vadd.xlane.f32.xlu1 %v1327_v49  ;;  %v1263_v12 = vpop.xlane.xlu1 %1262 }
 0x32a   : > { %v1275_v45 = vmul.f32 0.03125, %v1263_v12  ;;  %v1298_v53 = vmul.f32 %v11021_v48, %v11021_v48 }
 0x32c   : > { %v11027_v54 = vsub.f32 %v10945_v47, %v1275_v45  ;;  %v1330_v56 = vsel %vm1019_vm1, %v1298_v53, 0.0 }
 0x32d   : > { %1331 = vadd.xlane.f32.xlu0 %v1330_v56  ;;  %v1740_v56 = vld [vmem:[%s14024_s13] sm:$0xff] }
 0x32e   : > { %v1299_v17 = vmul.f32 %v11027_v54, %v11027_v54 }
 0x330   : > { %v1333_v58 = vsel %vm1019_vm1, %v1299_v17, 0.0  ;;  %v1741_v17 = vld [vmem:[%s14024_s13 + $0x8] sm:$0xff] }
 0x331   : > { %1334 = vadd.xlane.f32.xlu1 %v1333_v58 }
 0x392   : > { %v1302_v2 = vpop.xlane.xlu0 %1301 }
 0x393   : > { %v1336_v22 = vmul.f32 0.03125, %v1302_v2 }
 0x395   : > { %v1348_v4 = vadd.f32 1e-05, %v1336_v22 }
 0x396   : > { %v1305_v7 = vpop.xlane.xlu1 %1304 }
 0x397   : > { %10018 = vrsqrt.f32 %v1348_v4  ;;  %v1337_v63 = vmul.f32 0.03125, %v1305_v7  ;;  %v11081_v4 = vpack.c.bf16 %v1741_v17, %v1740_v56 }
 0x399   : > { %v1349_v5 = vadd.f32 1e-05, %v1337_v63 }
 0x39a   : > { %v1308_v13 = vpop.xlane.xlu0 %1307 }
 0x39b   : > { %10020 = vrsqrt.f32 %v1349_v5  ;;  %v1338_v16 = vmul.f32 0.03125, %v1308_v13 }
 0x39d   : > { %v1350_v10 = vadd.f32 1e-05, %v1338_v16 }
 0x39e   : > { %v1311_v18 = vpop.xlane.xlu1 %1310 }
 0x39f   : > { %10022 = vrsqrt.f32 %v1350_v10  ;;  %v1339_v15 = vmul.f32 0.03125, %v1311_v18 }
 0x3a1   : > { %v10019_v32 = vpop.eup %10018  ;;  %v1351_v60 = vadd.f32 1e-05, %v1339_v15 }
 0x3a2   : > { %v1314_v20 = vpop.xlane.xlu0 %1313  ;;  %v1372_v31 = vmul.f32 %v10019_v32, %v10950_v43  ;;  %v1606_v43 = vld [vmem:[%s14022_s11 + $0x10] sm:$0xff] }
 0x3a3   : > { %10024 = vrsqrt.f32 %v1351_v60  ;;  %v1340_v25 = vmul.f32 0.03125, %v1314_v20  ;;  %v9318_v45 = vpack.c.bf16 %v1607_v44, %v1606_v43 }
 0x3a4   : > { %v1390_v33 = vmul.f32 %v11042_v26, %v1372_v31 }
 0x3a5   : > { %v10021_v34 = vpop.eup %10020  ;;  %v1352_v36 = vadd.f32 1e-05, %v1340_v25 }
 0x3a6   : > { %v1317_v30 = vpop.xlane.xlu1 %1316  ;;  %v11052_v41 = vadd.f32 %v11048_v1, %v1390_v33  ;;  %v1373_v8 = vmul.f32 %v10021_v34, %v10955_v9 }
 0x3a7   : > { %10026 = vrsqrt.f32 %v1352_v36  ;;  %v1341_v35 = vmul.f32 0.03125, %v1317_v30 }
 0x3a8   : > { %8115 = vmatprep.mubr.msk.f32.mxu1 %vm1019_vm1, %v11052_v41  ;;  %v1391_v52 = vmul.f32 %v11042_v26, %v1373_v8 }
 0x3a9   : > { %v10023_v46 = vpop.eup %10022  ;;  %v1353_v14 = vadd.f32 1e-05, %v1341_v35 }
 0x3aa   : > { %v1320_v49 = vpop.xlane.xlu0 %1319  ;;  %v11065_v9 = vadd.f32 %v11048_v1, %v1391_v52  ;;  %v1374_v12 = vmul.f32 %v10023_v46, %v10961_v51 }
 0x3ab   : > { %10028 = vrsqrt.f32 %v1353_v14  ;;  %v1342_v53 = vmul.f32 0.03125, %v1320_v49 }
 0x3ac   : > { %8116 = vmatmul.mubr.msk.f32.vlgmr.msra.gmra.mrb[0].mxu1 %vm1019_vm1, %v11065_v9  ;;  %v1392_v58 = vmul.f32 %v11042_v26, %v1374_v12 }
 0x3ad   : > { %v10025_v59 = vpop.eup %10024  ;;  %v1354_v61 = vadd.f32 1e-05, %v1342_v53  ;;  %9317 = vmatpush3.bf16.msra.mxu1 %v9314_v55 }
 0x3ae   : > { %v1323_v51 = vpop.xlane.xlu1 %1322  ;;  %v11078_v2 = vadd.f32 %v11048_v1, %v1392_v58  ;;  %v1375_v22 = vmul.f32 %v10025_v59, %v10967_v57  ;;  %9319 = vmatprep.subr.bf16.mxu1 %v9318_v45 }
 0x3af   : > { %10030 = vrsqrt.f32 %v1354_v61  ;;  %v1343_v7 = vmul.f32 0.03125, %v1323_v51 }
 0x3b0   : > { %8118 = vmatprep.mubr.msk.f32.mxu1 %vm1019_vm1, %v11078_v2  ;;  %v1393_v63 = vmul.f32 %v11042_v26, %v1375_v22 }
 0x3b1   : > { %v10027_v5 = vpop.eup %10026  ;;  %v1355_v13 = vadd.f32 1e-05, %v1343_v7  ;;  %9321 = vmatpush3.bf16.msra.mxu1 %v9318_v45 }
 0x3b2   : > { %v1326_v55 = vpop.xlane.xlu0 %1325  ;;  %v11087_v16 = vadd.f32 %v11048_v1, %v1393_v63  ;;  %v1376_v10 = vmul.f32 %v10027_v5, %v10973_v62  ;;  %9323 = vmatprep.subr.bf16.mxu1 %v11081_v4 }
 0x3b3   : > { %10032 = vrsqrt.f32 %v1355_v13  ;;  %v1344_v57 = vmul.f32 0.03125, %v1326_v55 }
 0x3b4   : > { %8119 = vmatmul.mubr.msk.f32.gmra.mrb[2].mxu1 %vm1019_vm1, %v11087_v16  ;;  %v1394_v18 = vmul.f32 %v11042_v26, %v1376_v10  ;;  %v1742_v10 = vld [vmem:[%s14024_s13 + $0x10] sm:$0xff] }
 0x3b5   : > { %v10029_v15 = vpop.eup %10028  ;;  %v1356_v32 = vadd.f32 1e-05, %v1344_v57  ;;  %v11193_v57 = vld [vmem:[%s14213_s29] ss:$0 sm:$0xff] }
 0x3b6   : > { %v1329_v60 = vpop.xlane.xlu1 %1328  ;;  %v11095_v20 = vadd.f32 %v11048_v1, %v1394_v18  ;;  %v1377_v31 = vmul.f32 %v10029_v15, %v10979_v6 }
 0x3b7   : > { %10034 = vrsqrt.f32 %v1356_v32  ;;  %v1345_v25 = vmul.f32 0.03125, %v1329_v60 }
 0x3b8   : > { %8121 = vmatprep.mubr.msk.f32.mxu1 %vm1019_vm1, %v11095_v20  ;;  %v1395_v62 = vmul.f32 %v11042_v26, %v1377_v31 }
 0x3b9   : > { %v10031_v33 = vpop.eup %10030  ;;  %v1357_v34 = vadd.f32 1e-05, %v1345_v25 }
 0x3ba   : > { %v1332_v36 = vpop.xlane.xlu0 %1331  ;;  %v11102_v30 = vadd.f32 %v11048_v1, %v1395_v62  ;;  %v1378_v8 = vmul.f32 %v10031_v33, %v10985_v27 }
 0x3bb   : > { %10036 = vrsqrt.f32 %v1357_v34  ;;  %v1346_v35 = vmul.f32 0.03125, %v1332_v36 }
 0x3bc   : > { %8122 = vmatmul.mubr.msk.f32.gmra.mrb[4].mxu1 %vm1019_vm1, %v11102_v30  ;;  %v1396_v6 = vmul.f32 %v11042_v26, %v1378_v8  ;;  %v11216_v8 = vld [vmem:[%s14023_s12] ss:$0 sm:$0xff] }
 0x3bd   : > { %v10033_v43 = vpop.eup %10032  ;;  %v1358_v44 = vadd.f32 1e-05, %v1346_v35  ;;  %v11221_v35 = vld [vmem:[%s14220_s7 + $0x8] sm:$0xff]  ;;  %s13969_s7 = scalar_lea.hbm %s14491_s2, %s7522_s26 }
 0x3be   : > { %v1335_v52 = vpop.xlane.xlu1 %1334  ;;  %v1414_v46 = vadd.f32 %v11048_v1, %v1396_v6  ;;  %v1379_v14 = vmul.f32 %v10033_v43, %v10991_v23  ;;  %v11226_v6 = vld [vmem:[%s14221_s4 + $0x38] sm:$0xff] }
 0x3bf   : > { %10038 = vrsqrt.f32 %v1358_v44  ;;  %v1347_v49 = vmul.f32 0.03125, %v1335_v52  ;;  %v11232_v52 = vld [vmem:[%s14221_s4] sm:$0xff] }
 0x3c0   : > { %8124 = vmatprep.mubr.msk.f32.mxu1 %vm1019_vm1, %v1414_v46  ;;  %v1397_v27 = vmul.f32 %v11042_v26, %v1379_v14 }
 0x3c1   : > { %v10035_v12 = vpop.eup %10034  ;;  %v1359_v45 = vadd.f32 1e-05, %v1347_v49 }
 0x3c2   : > { %v1415_v53 = vadd.f32 %v11048_v1, %v1397_v27  ;;  %v1380_v56 = vmul.f32 %v10035_v12, %v10997_v28  ;;  %v11243_v27 = vld [vmem:[%s14221_s4 + $0x20] sm:$0xff]  ;;  %v11248_v12 = vld [vmem:[%s14221_s4 + $0x50] sm:$0xff] }
 0x3c3   : > { %10040 = vrsqrt.f32 %v1359_v45 }
 0x3c4   : > { %8125 = vmatmul.mubr.msk.f32.gmra.mrb[6].mxu1 %vm1019_vm1, %v1415_v53  ;;  %v1398_v17 = vmul.f32 %v11042_v26, %v1380_v56  ;;  %v11257_v56 = vld [vmem:[%s14221_s4 + $0x18] sm:$0xff] }
 0x3c5   : > { %v10037_v58 = vpop.eup %10036 }
 0x3c6   : > { %v1416_v23 = vadd.f32 %v11048_v1, %v1398_v17  ;;  %v1381_v59 = vmul.f32 %v10037_v58, %v11009_v39  ;;  %v11262_v17 = vld [vmem:[%s14221_s4 + $0x48] sm:$0xff] }
 0x3c8   : > { %8127 = vmatprep.mubr.msk.f32.mxu1 %vm1019_vm1, %v1416_v23  ;;  %v1399_v61 = vmul.f32 %v11042_v26, %v1381_v59 }
 0x3c9   : > { %v10039_v51 = vpop.eup %10038 }
 0x3ca   : > { %v1417_v22 = vadd.f32 %v11048_v1, %v1399_v61  ;;  %v1382_v7 = vmul.f32 %v10039_v51, %v11021_v48  ;;  %v1743_v48 = vld [vmem:[%s14024_s13 + $0x18] sm:$0xff]  ;;  %v11271_v61 = vld [vmem:[%s14221_s4 + $0x10] sm:$0xff]  ;;  %v11276_v51 = vld [vmem:[%s14221_s4 + $0x28] sm:$0xff] }
 0x3cc   : > { %8128 = vmatmul.mubr.msk.f32.gmra.mrb[8].mxu1 %vm1019_vm1, %v1417_v22  ;;  %v1400_v28 = vmul.f32 %v11042_v26, %v1382_v7  ;;  %v11286_v7 = vld [vmem:[%s14221_s4 + $0x58] sm:$0xff] }
 0x3cd   : > { %v10041_v63 = vpop.eup %10040 }
 0x3ce   : > { %v1418_v5 = vadd.f32 %v11048_v1, %v1400_v28  ;;  %v1383_v13 = vmul.f32 %v10041_v63, %v11027_v54  ;;  %v9326_v54 = vpack.c.bf16 %v1743_v48, %v1742_v10  ;;  %v13379_v63 = vld [vmem:[%s14326_s5] ss:$0 sm:$0xff] }
 0x3d0   : > { %8130 = vmatprep.mubr.msk.f32.mxu1 %vm1019_vm1, %v1418_v5  ;;  %v1401_v39 = vmul.f32 %v11042_v26, %v1383_v13  ;;  %v14057_v26 = vmov 0.0  }
 0x3d1   : > { %8209 = vmatprep.mubr.msk.f32.mxu0 %vm10386_vm2, %v14057_v26 }
 0x3d2   : > { %v1419_v55 = vadd.f32 %v11048_v1, %v1401_v39 }
 0x3d4   : > { %8131 = vmatmul.mubr.msk.f32.gmra.mrb[10].mxu1 %vm1019_vm1, %v1419_v55 }
 0x3d5   : > { %8141 = vmatprep.mubr.msk.f32.mxu1 %vm1019_vm1, %v11052_v41 }
 0x3d8   : > { %8142 = vmatmul.mubr.msk.f32.vlgmr.msra.gmra.mrb[12].mxu1 %vm1019_vm1, %v11065_v9 }
 0x3d9   : > { %8144 = vmatprep.mubr.msk.f32.mxu1 %vm1019_vm1, %v11078_v2  ;;  %9325 = vmatpush3.bf16.msra.mxu1 %v11081_v4 }
 0x3da   : > { %9327 = vmatprep.subr.bf16.mxu1 %v9326_v54 }
 0x3dc   : > { %8145 = vmatmul.mubr.msk.f32.gmra.mrb[14].mxu1 %vm1019_vm1, %v11087_v16 }
 0x3dd   : > { %8147 = vmatprep.mubr.msk.f32.mxu1 %vm1019_vm1, %v11095_v20  ;;  %9329 = vmatpush3.bf16.msra.mxu1 %v9326_v54 }
 0x3de   : > { %9354 = vmatprep.subr.bf16.mxu1 %v14059_v3 }
 0x3e0   : > { %8148 = vmatmul.mubr.msk.f32.gmra.mrb[16].mxu1 %vm1019_vm1, %v11102_v30 }
 0x3e1   : > { %8150 = vmatprep.mubr.msk.f32.mxu1 %vm1019_vm1, %v1414_v46 }
 0x3e4   : > { %8151 = vmatmul.mubr.msk.f32.gmra.mrb[18].mxu1 %vm1019_vm1, %v1415_v53 }
 0x3e5   : > { %8153 = vmatprep.mubr.msk.f32.mxu1 %vm1019_vm1, %v1416_v23 }
 0x3e8   : > { %8154 = vmatmul.mubr.msk.f32.gmra.mrb[20].mxu1 %vm1019_vm1, %v1417_v22 }
 0x3e9   : > { %8156 = vmatprep.mubr.msk.f32.mxu1 %vm1019_vm1, %v1418_v5 }
 0x3ec   : > { %8157 = vmatmul.mubr.msk.f32.gmra.mrb[22].mxu1 %vm1019_vm1, %v1419_v55 }
 0x3ed   : > { %8167 = vmatprep.mubr.msk.f32.mxu1 %vm1019_vm1, %v11052_v41 }
 0x3f0   : > { %8168 = vmatmul.mubr.msk.f32.vlgmr.msra.gmra.mrb[24].mxu1 %vm1019_vm1, %v11065_v9 }
 0x3f1   : > { %8170 = vmatprep.mubr.msk.f32.mxu1 %vm1019_vm1, %v11078_v2 }
 0x3f4   : > { %8171 = vmatmul.mubr.msk.f32.gmra.mrb[26].mxu1 %vm1019_vm1, %v11087_v16 }
 0x3f5   : > { %8173 = vmatprep.mubr.msk.f32.mxu1 %vm1019_vm1, %v11095_v20 }
 0x3f8   : > { %8174 = vmatmul.mubr.msk.f32.gmra.mrb[28].mxu1 %vm1019_vm1, %v11102_v30 }
 0x3f9   : > { %8176 = vmatprep.mubr.msk.f32.mxu1 %vm1019_vm1, %v1414_v46  ;;  %v11237_v46 = vld [vmem:[%s14221_s4 + $0x30] sm:$0xff] }
 0x3fc   : > { %8177 = vmatmul.mubr.msk.f32.gmra.mrb[30].mxu1 %vm1019_vm1, %v1415_v53 }
 0x3fd   : > { %8179 = vmatprep.mubr.msk.f32.mxu1 %vm1019_vm1, %v1416_v23 }
 0x400   : > { %8180 = vmatmul.mubr.msk.f32.gmra.mrb[32].mxu1 %vm1019_vm1, %v1417_v22  ;;  %v11281_v22 = vld [vmem:[%s14221_s4 + $0x40] sm:$0xff] }
 0x401   : > { %8182 = vmatprep.mubr.msk.f32.mxu1 %vm1019_vm1, %v1418_v5 }
 0x404   : > { %8183 = vmatmul.mubr.msk.f32.gmra.mrb[34].mxu1 %vm1019_vm1, %v1419_v55 }
 0x405   : > { %8242 = vmatprep.mubr.msk.f32.mxu1 %vm10386_vm2, %v14057_v26 }
 0x47f   : > { %v11178_v1 = vpop.f32.mrb[0].mxu1 }
 0x480   : > { %v11180_v41 = vpop.f32.mrb[1].mxu1 }
 0x487   : > { %v11182_v9 = vpop.f32.mrb[2].mxu1 }
 0x488   : > { %v11184_v2 = vpop.f32.mrb[3].mxu1 }
 0x48f   : > { %v11186_v4 = vpop.f32.mrb[4].mxu1 }
 0x490   : > { %v11188_v16 = vpop.f32.mrb[5].mxu1 }
 0x497   : > { %v8126_v18 = vpop.f32.mrb[6].mxu1 }
 0x498   : > { %v11196_v15 = vadd.f32 %v8126_v18, %v11193_v57  ;;  %v1563_v32 = vpop.f32.mrb[7].mxu1 }
 0x499   : > { %v11199_v60 = vadd.f32 %v11193_v57, %v1563_v32 }
 0x49a   : > { %14214 = vst [vmem:[#allocation24_spill] sm:$0xff] %v11196_v15 }
 0x49b   : > { %14215 = vst [vmem:[#allocation25_spill] sm:$0xff] %v11199_v60 }
 0x49f   : > { %v8129_v20 = vpop.f32.mrb[8].mxu1 }
 0x4a0   : > { %v11202_v31 = vadd.f32 %v8129_v20, %v11193_v57  ;;  %v1573_v25 = vpop.f32.mrb[9].mxu1 }
 0x4a1   : > { %v11205_v62 = vadd.f32 %v11193_v57, %v1573_v25 }
 0x4a2   : > { %14216 = vst [vmem:[#allocation26_spill] sm:$0xff] %v11202_v31 }
 0x4a3   : > { %14217 = vst [vmem:[#allocation27_spill] sm:$0xff] %v11205_v62 }
 0x4a7   : > { %v8132_v33 = vpop.f32.mrb[10].mxu1 }
 0x4a8   : > { %v11208_v34 = vadd.f32 %v8132_v33, %v11193_v57  ;;  %v1583_v36 = vpop.f32.mrb[11].mxu1 }
 0x4a9   : > { %v11211_v30 = vadd.f32 %v11193_v57, %v1583_v36 }
 0x4aa   : > { %14218 = vst [vmem:[#allocation28_spill] sm:$0xff] %v11208_v34 }
 0x4ab   : > { %14219 = vst [vmem:[#allocation29_spill] sm:$0xff] %v11211_v30  ;;  %v8143_v43 = vpop.f32.mrb[12].mxu1 }
 0x4ac   : > { %v1687_v44 = vadd.f32 %v8143_v43, %v11216_v8  ;;  %v1681_v14 = vpop.f32.mrb[13].mxu1 }
 0x4ad   : > { %v1682_v49 = vadd.f32 %v11216_v8, %v1681_v14 }
 0x4ae   : > { %v1877_v45 = vmul.f32 %v1687_v44, %v11221_v35  ;;  %v11252_v53 = vmul.f32 %v1687_v44, %v11226_v6  ;;  %v11295_v5 = vmul.f32 %v1687_v44, %v11243_v27  ;;  %v11301_v10 = vmul.f32 %v1687_v44, %v11248_v12 }
 0x4af   : > { %v1876_v58 = vmul.f32 %v1682_v49, %v11232_v52  ;;  %v11266_v23 = vmul.f32 %v1682_v49, %v11237_v46  ;;  %v8146_v59 = vpop.f32.mrb[14].mxu1  ;;  %v1879_v48 = vmul.f32 %v1682_v49, %v11257_v56  ;;  %v11305_v54 = vmul.f32 %v1682_v49, %v11262_v17 }
 0x4b0   : > { %v1691_v28 = vpop.f32.mrb[15].mxu1  ;;  %v1697_v18 = vadd.f32 %v8146_v59, %v11216_v8 }
 0x4b1   : > { %v9331_v13 = vpack.c.bf16 %v1877_v45, %v1876_v58  ;;  %v1692_v55 = vadd.f32 %v11216_v8, %v1691_v28 }
 0x4b2   : > { %v11329_v59 = vmul.f32 %v1697_v18, %v11257_v56  ;;  %v11332_v28 = vmul.f32 %v1697_v18, %v11262_v17  ;;  %v11351_v26 = vmul.f32 %v1697_v18, %v11237_v46 }
 0x4b3   : > { %v1878_v32 = vmul.f32 %v1692_v55, %v11271_v61  ;;  %v11310_v20 = vmul.f32 %v1692_v55, %v11276_v51  ;;  %v11313_v25 = vmul.f32 %v1692_v55, %v11281_v22  ;;  %v11316_v33 = vmul.f32 %v1692_v55, %v11286_v7  ;;  %v8149_v36 = vpop.f32.mrb[16].mxu1  ;;  %9333 = vmatpush3.bf16.xpose.msk.msra.mxu0 %vm11290_vm3, %v9331_v13 }
 0x4b4   : > { %v1707_v43 = vadd.f32 %v8149_v36, %v11216_v8  ;;  %v1701_v44 = vpop.f32.mrb[17].mxu1  ;;  %9334 = vmatprep.subr.bf16.mxu0 %v14059_v3 }
 0x4b5   : > { %v9335_v14 = vpack.c.bf16 %v1879_v48, %v1878_v32  ;;  %v9339_v49 = vpack.c.bf16 %v11310_v20, %v11295_v5  ;;  %v11341_v5 = vmul.f32 %v1697_v18, %v11232_v52  ;;  %v1702_v20 = vadd.f32 %v11216_v8, %v1701_v44 }
 0x4b6   : > { %v11335_v13 = vmul.f32 %v1707_v43, %v11271_v61  ;;  %v11338_v55 = vmul.f32 %v1707_v43, %v11281_v22  ;;  %v11344_v48 = vmul.f32 %v1707_v43, %v11276_v51  ;;  %v11347_v32 = vmul.f32 %v1707_v43, %v11286_v7 }
 0x4b7   : > { %v8152_v36 = vpop.f32.mrb[18].mxu1  ;;  %v11359_v42 = vmul.f32 %v1702_v20, %v11221_v35  ;;  %v11362_v43 = vmul.f32 %v1702_v20, %v11243_v27  ;;  %v11365_v44 = vmul.f32 %v1702_v20, %v11226_v6  ;;  %v11368_v18 = vmul.f32 %v1702_v20, %v11248_v12 }
 0x4b8   : > { %v1717_v39 = vadd.f32 %v8152_v36, %v11216_v8  ;;  %v1711_v3 = vpop.f32.mrb[19].mxu1 }
 0x4b9   : > { %v1712_v58 = vadd.f32 %v11216_v8, %v1711_v3 }
 0x4ba   : > { %v11381_v37 = vmul.f32 %v1717_v39, %v11221_v35  ;;  %v11384_v20 = vmul.f32 %v1717_v39, %v11226_v6  ;;  %v11391_v47 = vmul.f32 %v1717_v39, %v11243_v27 }
 0x4bb   : > { %v8155_v24 = vpop.f32.mrb[20].mxu1  ;;  %9337 = vmatpush3.bf16.xpose.msk.msra.mxu0 %vm11290_vm3, %v9335_v14  ;;  %v11394_v14 = vmul.f32 %v1717_v39, %v11248_v12  ;;  %v11397_v50 = vmul.f32 %v1712_v58, %v11232_v52  ;;  %v11400_v0 = vmul.f32 %v1712_v58, %v11237_v46  ;;  %v11403_v3 = vmul.f32 %v1712_v58, %v11257_v56 }
 0x4bc   : > { %14224 = vst [vmem:[#allocation30_spill] sm:$0xff] %v11384_v20  ;;  %v1727_v45 = vadd.f32 %v8155_v24, %v11216_v8  ;;  %v1721_v11 = vpop.f32.mrb[21].mxu1  ;;  %9338 = vmatprep.subr.bf16.mxu0 %v14225_v19  ;;  %14226 = vst [vmem:[#allocation31_spill] sm:$0xff] %v11391_v47  ;;  %v11406_v24 = vmul.f32 %v1712_v58, %v11262_v17 }
 0x4bd   : > { %v1722_v36 = vadd.f32 %v11216_v8, %v1721_v11  ;;  %14227 = vst [vmem:[#allocation32_spill] sm:$0xff] %v11394_v14  ;;  %14228 = vst [vmem:[#allocation33_spill] sm:$0xff] %v11400_v0 }
 0x4be   : > { %14229 = vst [vmem:[#allocation34_spill] sm:$0xff] %v11403_v3  ;;  %14230 = vst [vmem:[#allocation35_spill] sm:$0xff] %v11406_v24  ;;  %v11409_v11 = vmul.f32 %v1727_v45, %v11232_v52  ;;  %v11412_v38 = vmul.f32 %v1727_v45, %v11257_v56  ;;  %v11433_v15 = vmul.f32 %v1727_v45, %v11237_v46 }
 0x4bf   : > { %v8158_v39 = vpop.f32.mrb[22].mxu1  ;;  %v11419_v29 = vmul.f32 %v1722_v36, %v11271_v61  ;;  %v11422_v34 = vmul.f32 %v1722_v36, %v11276_v51  ;;  %v11425_v30 = vmul.f32 %v1722_v36, %v11281_v22  ;;  %v11428_v31 = vmul.f32 %v1722_v36, %v11286_v7  ;;  %v11445_v36 = vld [vmem:[%s14025_s14] ss:$0 sm:$0xff] }
 0x4c0   : > { %14231 = vst [vmem:[#allocation36_spill] sm:$0xff] %v11409_v11  ;;  %14232 = vst [vmem:[#allocation37_spill] sm:$0xff] %v11412_v38  ;;  %v1731_v58 = vpop.f32.mrb[23].mxu1  ;;  %v1737_v62 = vadd.f32 %v8158_v39, %v11216_v8  ;;  %v11436_v21 = vmul.f32 %v1727_v45, %v11262_v17 }
 0x4c1   : > { %14233 = vst [vmem:[#allocation38_spill] sm:$0xff] %v11419_v29  ;;  %14234 = vst [vmem:[#allocation39_spill] sm:$0xff] %v11422_v34  ;;  %v1732_v40 = vadd.f32 %v11216_v8, %v1731_v58 }
 0x4c2   : > { %14235 = vst [vmem:[#allocation40_spill] sm:$0xff] %v11425_v30  ;;  %14236 = vst [vmem:[#allocation41_spill] sm:$0xff] %v11428_v31  ;;  %v11452_v45 = vmul.f32 %v1737_v62, %v11271_v61  ;;  %v11455_v58 = vmul.f32 %v1737_v62, %v11276_v51  ;;  %v11460_v0 = vmul.f32 %v1737_v62, %v11281_v22 }
 0x4c3   : > { %14237 = vst [vmem:[#allocation42_spill] sm:$0xff] %v11433_v15  ;;  %14238 = vst [vmem:[#allocation43_spill] sm:$0xff] %v11436_v21  ;;  %v8169_v60 = vpop.f32.mrb[24].mxu1  ;;  %9341 = vmatpush3.bf16.xpose.msk.msra.mxu0 %vm11290_vm3, %v9339_v49  ;;  %v11463_v20 = vmul.f32 %v1737_v62, %v11286_v7  ;;  %v11466_v8 = vmul.f32 %v1732_v40, %v11221_v35  ;;  %v11469_v39 = vmul.f32 %v1732_v40, %v11243_v27 }
 0x4c4   : > { %14239 = vst [vmem:[#allocation44_spill] sm:$0xff] %v11452_v45  ;;  %14240 = vst [vmem:[#allocation45_spill] sm:$0xff] %v11455_v58  ;;  %v1817_v14 = vpop.f32.mrb[25].mxu1  ;;  %9342 = vmatprep.subr.bf16.mxu0 %v14225_v19  ;;  %v11475_v49 = vmul.f32 %v1732_v40, %v11226_v6  ;;  %v11478_v30 = vmul.f32 %v1732_v40, %v11248_v12  ;;  %v1823_v62 = vadd.f32 %v8169_v60, %v11445_v36 }
 0x4c5   : > { %14241 = vst [vmem:[#allocation46_spill] sm:$0xff] %v11460_v0  ;;  %14242 = vst [vmem:[#allocation47_spill] sm:$0xff] %v11463_v20  ;;  %v1818_v29 = vadd.f32 %v11445_v36, %v1817_v14 }
 0x4c6   : > { %14243 = vst [vmem:[#allocation48_spill] sm:$0xff] %v11466_v8  ;;  %14244 = vst [vmem:[#allocation49_spill] sm:$0xff] %v11469_v39  ;;  %v11493_v45 = vmul.f32 %v1823_v62, %v11221_v35  ;;  %v11499_v47 = vmul.f32 %v1823_v62, %v11226_v6  ;;  %v11507_v40 = vmul.f32 %v1823_v62, %v11243_v27 }
 0x4c7   : > { %14245 = vst [vmem:[#allocation50_spill] sm:$0xff] %v11475_v49  ;;  %14246 = vst [vmem:[#allocation51_spill] sm:$0xff] %v11478_v30  ;;  %v8172_v60 = vpop.f32.mrb[26].mxu1  ;;  %v11496_v24 = vmul.f32 %v1818_v29, %v11232_v52  ;;  %v11502_v34 = vmul.f32 %v1818_v29, %v11237_v46  ;;  %v11510_v30 = vmul.f32 %v1823_v62, %v11248_v12 }
 0x4c8   : > { %14247 = vst [vmem:[#allocation52_spill] sm:$0xff] %v11493_v45  ;;  %v1827_v0 = vpop.f32.mrb[27].mxu1  ;;  %14249 = vst [vmem:[#allocation54_spill] sm:$0xff] %v11499_v47  ;;  %v1833_v14 = vadd.f32 %v8172_v60, %v11445_v36  ;;  %v11513_v20 = vmul.f32 %v1818_v29, %v11257_v56  ;;  %v11518_v15 = vmul.f32 %v1818_v29, %v11262_v17 }
 0x4c9   : > { %14248 = vst [vmem:[#allocation53_spill] sm:$0xff] %v11496_v24  ;;  %14250 = vst [vmem:[#allocation55_spill] sm:$0xff] %v11502_v34  ;;  %v1828_v31 = vadd.f32 %v11445_v36, %v1827_v0  ;;  %v14257_v39 = vpack.c.bf16 %v11252_v53, %v11266_v23  ;;  %v14270_v34 = vpack.c.bf16 %v11305_v54, %v11313_v25 }
 0x4ca   : > { %14251 = vst [vmem:[#allocation56_spill] sm:$0xff] %v11507_v40  ;;  %14252 = vst [vmem:[#allocation57_spill] sm:$0xff] %v11510_v30  ;;  %v11521_v49 = vmul.f32 %v1833_v14, %v11232_v52  ;;  %v11524_v0 = vmul.f32 %v1833_v14, %v11257_v56  ;;  %v11527_v60 = vmul.f32 %v1833_v14, %v11237_v46 }
 0x4cb   : > { %14253 = vst [vmem:[#allocation58_spill] sm:$0xff] %v11518_v15  ;;  %v8175_v62 = vpop.f32.mrb[28].mxu1  ;;  %9345 = vmatpush3.bf16.xpose.msk.msra.mxu0 %vm11290_vm3, %v14257_v39  ;;  %v11535_v21 = vmul.f32 %v1828_v31, %v11271_v61  ;;  %v11538_v29 = vmul.f32 %v1828_v31, %v11276_v51  ;;  %v11541_v24 = vmul.f32 %v1828_v31, %v11281_v22 }
 0x4cc   : > { %14254 = vst [vmem:[#allocation59_spill] sm:$0xff] %v11521_v49  ;;  %14255 = vst [vmem:[#allocation60_spill] sm:$0xff] %v11524_v0  ;;  %v11544_v45 = vmul.f32 %v1828_v31, %v11286_v7  ;;  %v1837_v58 = vpop.f32.mrb[29].mxu1  ;;  %9346 = vmatprep.subr.bf16.mxu0 %v14225_v19  ;;  %v11548_v53 = vmul.f32 %v1833_v14, %v11262_v17  ;;  %v1843_v23 = vadd.f32 %v8175_v62, %v11445_v36 }
 0x4cd   : > { %14256 = vst [vmem:[#allocation61_spill] sm:$0xff] %v11527_v60  ;;  %14258 = vst [vmem:[#allocation62_spill] sm:$0xff] %v11541_v24  ;;  %v1838_v39 = vadd.f32 %v11445_v36, %v1837_v58  ;;  %v1534_v47 = vadd.f32 %v11193_v57, %v11180_v41 }
 0x4ce   : > { %14259 = vst [vmem:[#allocation63_spill] sm:$0xff] %v11544_v45  ;;  %14260 = vst [vmem:[#allocation64_spill] sm:$0xff] %v11548_v53  ;;  %v11563_v3 = vmul.f32 %v1843_v23, %v11271_v61  ;;  %v11566_v58 = vmul.f32 %v1843_v23, %v11276_v51  ;;  %v11569_v62 = vmul.f32 %v1843_v23, %v11281_v22 }
 0x4cf   : > { %v11572_v38 = vmul.f32 %v1843_v23, %v11286_v7  ;;  %v8178_v11 = vpop.f32.mrb[30].mxu1  ;;  %v11575_v31 = vmul.f32 %v1838_v39, %v11221_v35  ;;  %v11578_v8 = vmul.f32 %v1838_v39, %v11243_v27  ;;  %v11581_v14 = vmul.f32 %v1838_v39, %v11226_v6 }
 0x4d0   : > { %14261 = vst [vmem:[#allocation65_spill] sm:$0xff] %v11563_v3  ;;  %14262 = vst [vmem:[#allocation66_spill] sm:$0xff] %v11566_v58  ;;  %v11584_v30 = vmul.f32 %v1838_v39, %v11248_v12  ;;  %v1847_v45 = vpop.f32.mrb[31].mxu1  ;;  %v1853_v24 = vadd.f32 %v8178_v11, %v11445_v36 }
 0x4d1   : > { %14263 = vst [vmem:[#allocation67_spill] sm:$0xff] %v11569_v62  ;;  %14264 = vst [vmem:[#allocation68_spill] sm:$0xff] %v11572_v38  ;;  %v1848_v15 = vadd.f32 %v11445_v36, %v1847_v45 }
 0x4d2   : > { %14265 = vst [vmem:[#allocation69_spill] sm:$0xff] %v11578_v8  ;;  %14266 = vst [vmem:[#allocation70_spill] sm:$0xff] %v11581_v14  ;;  %v11601_v45 = vmul.f32 %v1853_v24, %v11221_v35  ;;  %v11604_v23 = vmul.f32 %v1853_v24, %v11226_v6  ;;  %v11623_v54 = vmul.f32 %v1853_v24, %v11243_v27 }
 0x4d3   : > { %14267 = vst [vmem:[#allocation71_spill] sm:$0xff] %v11584_v30  ;;  %v8181_v3 = vpop.f32.mrb[32].mxu1  ;;  %9349 = vmatpush3.bf16.xpose.msk.msra.mxu0 %vm11290_vm3, %v14270_v34  ;;  %v11612_v40 = vmul.f32 %v1848_v15, %v11232_v52  ;;  %v11615_v39 = vmul.f32 %v1848_v15, %v11237_v46  ;;  %v11626_v34 = vmul.f32 %v1853_v24, %v11248_v12 }
 0x4d4   : > { %14268 = vst [vmem:[#allocation72_spill] sm:$0xff] %v11601_v45  ;;  %14269 = vst [vmem:[#allocation73_spill] sm:$0xff] %v11604_v23  ;;  %v1857_v11 = vpop.f32.mrb[33].mxu1  ;;  %9350 = vmatprep.subr.bf16.mxu0 %v14225_v19  ;;  %v1863_v30 = vadd.f32 %v8181_v3, %v11445_v36  ;;  %v11633_v53 = vmul.f32 %v1848_v15, %v11257_v56  ;;  %v11636_v41 = vmul.f32 %v1848_v15, %v11262_v17 }
 0x4d5   : > { %14271 = vst [vmem:[#allocation74_spill] sm:$0xff] %v11612_v40  ;;  %14272 = vst [vmem:[#allocation75_spill] sm:$0xff] %v11615_v39  ;;  %v1858_v38 = vadd.f32 %v11445_v36, %v1857_v11 }
 0x4d6   : > { %14273 = vst [vmem:[#allocation76_spill] sm:$0xff] %v11626_v34  ;;  %v11639_v3 = vmul.f32 %v1863_v30, %v11232_v52  ;;  %v11642_v11 = vmul.f32 %v1863_v30, %v11257_v56  ;;  %v11657_v23 = vmul.f32 %v1863_v30, %v11237_v46  ;;  %v11660_v40 = vmul.f32 %v1863_v30, %v11262_v17 }
 0x4d7   : > { %v8184_v24 = vpop.f32.mrb[34].mxu1  ;;  %v11645_v60 = vmul.f32 %v1858_v38, %v11271_v61  ;;  %v11648_v25 = vmul.f32 %v1858_v38, %v11276_v51  ;;  %v11651_v62 = vmul.f32 %v1858_v38, %v11281_v22  ;;  %v11654_v39 = vmul.f32 %v1858_v38, %v11286_v7 }
 0x4d8   : > { %v1867_v15 = vpop.f32.mrb[35].mxu1  ;;  %v1873_v45 = vadd.f32 %v8184_v24, %v11445_v36  ;;  %v1544_v34 = vadd.f32 %v11193_v57, %v11184_v2  ;;  %v14281_v2 = vpack.c.bf16 %v11365_v44, %v11351_v26  ;;  %v1549_v26 = vadd.f32 %v11182_v9, %v11193_v57  ;;  %v14291_v44 = vld [vmem:[#allocation30_spill] sm:$0xff] }
 0x4d9   : > { %14274 = vst [vmem:[#allocation77_spill] sm:$0xff] %v11651_v62  ;;  %14275 = vst [vmem:[#allocation78_spill] sm:$0xff] %v11654_v39  ;;  %v1868_v14 = vadd.f32 %v11445_v36, %v1867_v15  ;;  %v14276_v15 = vpack.c.bf16 %v11316_v33, %v11301_v10  ;;  %v1539_v39 = vadd.f32 %v11178_v1, %v11193_v57  ;;  %v1592_v62 = vmul.f32 0.35355338, %v1534_v47 }
 0x4da   : > { %v11673_v49 = vmul.f32 %v1873_v45, %v11271_v61  ;;  %v11676_v30 = vmul.f32 %v1873_v45, %v11276_v51  ;;  %v11679_v36 = vmul.f32 %v1873_v45, %v11281_v22  ;;  %v11682_v24 = vmul.f32 %v1873_v45, %v11286_v7 }
 0x4db   : > { %9353 = vmatpush3.bf16.xpose.msk.msra.mxu0 %vm11290_vm3, %v14276_v15  ;;  %v11690_v0 = vmul.f32 %v1868_v14, %v11221_v35  ;;  %v11693_v38 = vmul.f32 %v1868_v14, %v11243_v27  ;;  %v11696_v58 = vmul.f32 %v1868_v14, %v11226_v6  ;;  %v11699_v8 = vmul.f32 %v1868_v14, %v11248_v12 }
 0x4dc   : > { %9390 = vmatprep.subr.bf16.mxu0 %v14225_v19  ;;  %v14277_v33 = vpack.c.bf16 %v11359_v42, %v11341_v5  ;;  %v14278_v10 = vmov 0.0   ;;  %v1593_v15 = vmul.f32 0.35355338, %v1539_v39  ;;  %v1594_v47 = vmul.f32 0.35355338, %v1544_v34  ;;  %v14294_v39 = vld [vmem:[#allocation35_spill] sm:$0xff] }
 0x4dd   : > { %v9553_v45 = vpack.c.bf16 %v11690_v0, %v11639_v3  ;;  %v9568_v14 = vpack.c.bf16 %v11682_v24, %v11699_v8  ;;  %v14279_v42 = vpack.c.bf16 %v11329_v59, %v11335_v13  ;;  %v14280_v1 = vpack.c.bf16 %v11344_v48, %v11362_v43  ;;  %v14295_v34 = vld [vmem:[#allocation40_spill] sm:$0xff] }
 0x4de   : > { %v14282_v59 = vpack.c.bf16 %v11332_v28, %v11338_v55  ;;  %v14283_v13 = vpack.c.bf16 %v11347_v32, %v11368_v18  ;;  %v1595_v5 = vmul.f32 0.35355338, %v1549_v26  ;;  %v1554_v28 = vadd.f32 %v11193_v57, %v11188_v16  ;;  %v14292_v18 = vld [vmem:[#allocation33_spill] sm:$0xff] }
 0x4df   : > { %v14284_v55 = vpack.c.bf16 %v11381_v37, %v11397_v50  ;;  %v1559_v9 = vadd.f32 %v11186_v4, %v11193_v57  ;;  %v14285_v50 = vld [vmem:[#allocation34_spill] sm:$0xff]  ;;  %v14288_v4 = vld [vmem:[#allocation39_spill] sm:$0xff]  ;;  %v14377_v0 = vpack.c.bf16 %v11676_v30, %v11693_v38  ;;  %v14379_v3 = vpack.c.bf16 %v11660_v40, %v11679_v36 }
 0x4e0   : > { %v1596_v48 = vmul.f32 0.35355338, %v1554_v28  ;;  %v14286_v37 = vld [vmem:[#allocation38_spill] sm:$0xff]  ;;  %v14289_v57 = vld [vmem:[#allocation31_spill] sm:$0xff] }
 0x4e1   : > { %v1597_v16 = vmul.f32 0.35355338, %v1559_v9  ;;  %v14287_v32 = vpack.c.bf16 %v14285_v50, %v14286_v37  ;;  %v14290_v43 = vpack.c.bf16 %v14288_v4, %v14289_v57  ;;  %v14309_v37 = vld [vmem:[#allocation45_spill] sm:$0xff]  ;;  %v14312_v57 = vld [vmem:[#allocation50_spill] sm:$0xff] }
 0x4e2   : > { %8210 = vmatmul.mubr.msk.f32.vlgmr.msra.gmra.mrb[24].mxu0 %vm1019_vm1, %v1592_v62  ;;  %v14293_v62 = vpack.c.bf16 %v14291_v44, %v14292_v18  ;;  %v14315_v18 = vld [vmem:[#allocation43_spill] sm:$0xff] }
 0x4e3   : > { %9393 = vmatpush3.bf16.xpose.msk.msra.mxu0 %vm11290_vm3, %v14277_v33  ;;  %8212 = vmatprep.mubr.msk.f32.mxu0 %vm10386_vm2, %v14278_v10  ;;  %v14296_v33 = vpack.c.bf16 %v14294_v39, %v14295_v34  ;;  %v14318_v34 = vld [vmem:[#allocation47_spill] sm:$0xff] }
 0x4e4   : > { %9394 = vmatprep.subr.bf16.mxu0 %v14225_v19 }
 0x4e6   : > { %8213 = vmatmul.mubr.msk.f32.gmra.mrb[26].mxu0 %vm1019_vm1, %v1593_v15  ;;  %v14297_v15 = vld [vmem:[#allocation41_spill] sm:$0xff] }
 0x4e7   : > { %8215 = vmatprep.mubr.msk.f32.mxu0 %vm10386_vm2, %v14278_v10 }
 0x4ea   : > { %8216 = vmatmul.mubr.msk.f32.gmra.mrb[28].mxu0 %vm1019_vm1, %v1594_v47  ;;  %v14298_v47 = vld [vmem:[#allocation32_spill] sm:$0xff] }
 0x4eb   : > { %9397 = vmatpush3.bf16.xpose.msk.msra.mxu0 %vm11290_vm3, %v14279_v42  ;;  %8308 = vmatprep.mubr.msk.f32.mxu0 %vm10386_vm2, %v14278_v10  ;;  %v14299_v42 = vpack.c.bf16 %v14297_v15, %v14298_v47  ;;  %v14321_v47 = vld [vmem:[#allocation26_spill] sm:$0xff] }
 0x4ec   : > { %9398 = vmatprep.subr.bf16.mxu0 %v14225_v19 }
 0x4f3   : > { %9401 = vmatpush3.bf16.xpose.msk.msra.mxu0 %vm11290_vm3, %v14280_v1  ;;  %v14300_v1 = vld [vmem:[#allocation25_spill] sm:$0xff] }
 0x4f4   : > { %9402 = vmatprep.subr.bf16.mxu0 %v14225_v19 }
 0x4fb   : > { %9405 = vmatpush3.bf16.xpose.msk.msra.mxu0 %vm11290_vm3, %v14281_v2  ;;  %v1598_v2 = vmul.f32 0.35355338, %v14300_v1  ;;  %v14322_v1 = vld [vmem:[#allocation29_spill] sm:$0xff] }
 0x4fc   : > { %9406 = vmatprep.subr.bf16.mxu0 %v14225_v19 }
 0x503   : > { %9409 = vmatpush3.bf16.xpose.msk.msra.mxu0 %vm11290_vm3, %v14282_v59  ;;  %v14301_v59 = vld [vmem:[#allocation48_spill] sm:$0xff] }
 0x504   : > { %9410 = vmatprep.subr.bf16.mxu0 %v14225_v19 }
 0x50b   : > { %9413 = vmatpush3.bf16.xpose.msk.msra.mxu0 %vm11290_vm3, %v14283_v13  ;;  %v14302_v13 = vld [vmem:[#allocation36_spill] sm:$0xff] }
 0x50c   : > { %9450 = vmatprep.subr.bf16.mxu0 %v14225_v19  ;;  %v14303_v26 = vpack.c.bf16 %v14301_v59, %v14302_v13  ;;  %v14323_v59 = vld [vmem:[#allocation28_spill] sm:$0xff] }
 0x50d   : > { %v1603_v13 = vmul.f32 0.35355338, %v14323_v59 }
 0x512   : > { %8309 = vmatmul.mubr.msk.f32.vlgmr.msra.gmra.mrb[30].mxu0 %vm1019_vm1, %v1595_v5  ;;  %v14304_v5 = vld [vmem:[#allocation24_spill] sm:$0xff] }
 0x513   : > { %9453 = vmatpush3.bf16.xpose.msk.msra.mxu0 %vm11290_vm3, %v14284_v55  ;;  %8311 = vmatprep.mubr.msk.f32.mxu0 %vm10386_vm2, %v14278_v10  ;;  %v1599_v28 = vmul.f32 0.35355338, %v14304_v5  ;;  %v14305_v55 = vld [vmem:[#allocation27_spill] sm:$0xff]  ;;  %v11878_v5 = vpack.c.bf16 %v11257_v56, %v11271_v61 }
 0x514   : > { %9454 = vmatprep.subr.bf16.mxu0 %v14225_v19  ;;  %v1600_v9 = vmul.f32 0.35355338, %v14305_v55 }
 0x515   : > { %14325 = vst [vmem:[#allocation38_spill] sm:$0xff] %v11878_v5 }
 0x516   : > { %8312 = vmatmul.mubr.msk.f32.gmra.mrb[32].mxu0 %vm1019_vm1, %v1596_v48  ;;  %v14306_v48 = vld [vmem:[#allocation37_spill] sm:$0xff] }
 0x517   : > { %8314 = vmatprep.mubr.msk.f32.mxu0 %vm10386_vm2, %v14278_v10 }
 0x51a   : > { %8315 = vmatmul.mubr.msk.f32.gmra.mrb[34].mxu0 %vm1019_vm1, %v1597_v16  ;;  %v14307_v16 = vld [vmem:[#allocation44_spill] sm:$0xff] }
 0x51b   : > { %9457 = vmatpush3.bf16.xpose.msk.msra.mxu0 %vm11290_vm3, %v14287_v32  ;;  %8407 = vmatprep.mubr.msk.f32.mxu0 %vm10386_vm2, %v14278_v10  ;;  %v14308_v50 = vpack.c.bf16 %v14306_v48, %v14307_v16  ;;  %v14310_v32 = vld [vmem:[#allocation49_spill] sm:$0xff] }
 0x51c   : > { %9458 = vmatprep.subr.bf16.mxu0 %v14225_v19  ;;  %v14311_v4 = vpack.c.bf16 %v14309_v37, %v14310_v32 }
 0x523   : > { %9461 = vmatpush3.bf16.xpose.msk.msra.mxu0 %vm11290_vm3, %v14290_v43  ;;  %v14313_v43 = vld [vmem:[#allocation42_spill] sm:$0xff] }
 0x524   : > { %9462 = vmatprep.subr.bf16.mxu0 %v14225_v19  ;;  %v14314_v44 = vpack.c.bf16 %v14312_v57, %v14313_v43  ;;  %v11902_v57 = vpack.c.bf16 %v11276_v51, %v11243_v27  ;;  %v11908_v43 = vpack.c.bf16 %v11226_v6, %v11237_v46  ;;  %v11920_v27 = vpack.c.bf16 %v11286_v7, %v11248_v12 }
 0x526   : > { %14327 = vst [vmem:[#allocation39_spill] sm:$0xff] %v11902_v57  ;;  %14328 = vst [vmem:[#allocation31_spill] sm:$0xff] %v11908_v43 }
 0x527   : > { %14330 = vst [vmem:[#allocation33_spill] sm:$0xff] %v11920_v27 }
 0x52b   : > { %9465 = vmatpush3.bf16.xpose.msk.msra.mxu0 %vm11290_vm3, %v14293_v62  ;;  %v14316_v62 = vld [vmem:[#allocation46_spill] sm:$0xff] }
 0x52c   : > { %9466 = vmatprep.subr.bf16.mxu0 %v14225_v19  ;;  %v14317_v39 = vpack.c.bf16 %v14315_v18, %v14316_v62 }
 0x533   : > { %9469 = vmatpush3.bf16.xpose.msk.msra.mxu0 %vm11290_vm3, %v14296_v33  ;;  %v14319_v33 = vld [vmem:[#allocation51_spill] sm:$0xff] }
 0x534   : > { %9470 = vmatprep.subr.bf16.mxu0 %v14225_v19  ;;  %v14320_v15 = vpack.c.bf16 %v14318_v34, %v14319_v33 }
 0x53b   : > { %9473 = vmatpush3.bf16.xpose.msk.msra.mxu0 %vm11290_vm3, %v14299_v42  ;;  %v1601_v42 = vmul.f32 0.35355338, %v14321_v47 }
 0x53c   : > { %9510 = vmatprep.subr.bf16.mxu0 %v14225_v19 }
 0x542   : > { %8408 = vmatmul.mubr.msk.f32.vlgmr.msra.gmra.mrb[36].mxu0 %vm1019_vm1, %v1598_v2  ;;  %v1602_v2 = vmul.f32 0.35355338, %v14322_v1 }
 0x543   : > { %9513 = vmatpush3.bf16.xpose.msk.msra.mxu0 %vm11290_vm3, %v14303_v26  ;;  %8410 = vmatprep.mubr.msk.f32.mxu0 %vm10386_vm2, %v14278_v10  ;;  %v11873_v26 = vpack.c.bf16 %v11221_v35, %v11232_v52 }
 0x544   : > { %9514 = vmatprep.subr.bf16.mxu0 %v14225_v19 }
 0x545   : > { %14324 = vst [vmem:[#allocation34_spill] sm:$0xff] %v11873_v26  ;;  %9356 = vmatpush3.bf16.msra.mxu1 %v11873_v26 }
 0x546   : > { %8411 = vmatmul.mubr.msk.f32.gmra.mrb[38].mxu0 %vm1019_vm1, %v1599_v28  ;;  %9357 = vmatprep.subr.bf16.mxu1 %v14225_v19  ;;  %v11886_v28 = vld [vmem:[%s14326_s5] ss:$0 sm:$0xff] }
 0x547   : > { %8413 = vmatprep.mubr.msk.f32.mxu0 %vm10386_vm2, %v14278_v10 }
 0x549   : > { %9359 = vmatpush3.bf16.msra.mxu1 %v11878_v5 }
 0x54a   : > { %8414 = vmatmul.mubr.msk.f32.gmra.mrb[40].mxu0 %vm1019_vm1, %v1600_v9  ;;  %9360 = vmatprep.subr.bf16.mxu1 %v14225_v19 }
 0x54b   : > { %9517 = vmatpush3.bf16.xpose.msk.msra.mxu0 %vm11290_vm3, %v14308_v50  ;;  %8506 = vmatprep.mubr.msk.f32.mxu0 %vm10386_vm2, %v14278_v10 }
 0x54c   : > { %9518 = vmatprep.subr.bf16.mxu0 %v14225_v19 }
 0x54d   : > { %9362 = vmatpush3.bf16.msra.mxu1 %v11902_v57 }
 0x54e   : > { %9363 = vmatprep.subr.bf16.mxu1 %v14225_v19 }
 0x551   : > { %9365 = vmatpush3.bf16.msra.mxu1 %v11908_v43 }
 0x552   : > { %9366 = vmatprep.subr.bf16.mxu1 %v14225_v19 }
 0x553   : > { %9521 = vmatpush3.bf16.xpose.msk.msra.mxu0 %vm11290_vm3, %v14311_v4 }
 0x554   : > { %9522 = vmatprep.subr.bf16.mxu0 %v14225_v19 }
 0x55b   : > { %9525 = vmatpush3.bf16.xpose.msk.msra.mxu0 %vm11290_vm3, %v14314_v44  ;;  %v11914_v44 = vpack.c.bf16 %v11262_v17, %v11281_v22 }
 0x55c   : > { %9526 = vmatprep.subr.bf16.mxu0 %v14225_v19 }
 0x55d   : > { %14329 = vst [vmem:[#allocation30_spill] sm:$0xff] %v11914_v44  ;;  %9368 = vmatpush3.bf16.msra.mxu1 %v11914_v44 }
 0x55e   : > { %9369 = vmatprep.subr.bf16.mxu1 %v14225_v19 }
 0x561   : > { %9371 = vmatpush3.bf16.msra.mxu1 %v11920_v27 }
 0x562   : > { %9372 = vmatprep.subr.bf16.mxu1 %v14225_v19 }
 0x563   : > { %9529 = vmatpush3.bf16.xpose.msk.msra.mxu0 %vm11290_vm3, %v14317_v39 }
 0x564   : > { %9530 = vmatprep.subr.bf16.mxu0 %v14225_v19 }
 0x56b   : > { %9533 = vmatpush3.bf16.xpose.msk.msra.mxu0 %vm11290_vm3, %v14320_v15 }
 0x572   : > { %8507 = vmatmul.mubr.msk.f32.vlgmr.msra.gmra.mrb[42].mxu0 %vm1019_vm1, %v1601_v42 }
 0x573   : > { %8509 = vmatprep.mubr.msk.f32.mxu0 %vm10386_vm2, %v14278_v10 }
 0x576   : > { %8510 = vmatmul.mubr.msk.f32.gmra.mrb[44].mxu0 %vm1019_vm1, %v1602_v2 }
 0x577   : > { %8512 = vmatprep.mubr.msk.f32.mxu0 %vm10386_vm2, %v14278_v10 }
 0x57a   : > { %8513 = vmatmul.mubr.msk.f32.gmra.mrb[46].mxu0 %vm1019_vm1, %v1603_v13 }
 0x5b5   : > { %v2017_v55 = vpop.f32.mrb[24].mxu0 }
 0x5b6   : > { %v2018_v35 = vadd.f32 %v11886_v28, %v2017_v55  ;;  %v8211_v52 = vpop.f32.mrb[25].mxu0 }
 0x5b8   : > { %v2032_v9 = vsel %vm2031_vm4, %v2018_v35, -inf }
 0x5b9   : > { %2033 = vmax.xlane.f32.xlu0 %v2032_v9  ;;  %v2022_v56 = vpop.f32.mrb[26].mxu0 }
 0x5ba   : > { %v11891_v61 = vadd.f32 %v11886_v28, %v2022_v56  ;;  %v8214_v48 = vpop.f32.mrb[27].mxu0 }
 0x5bc   : > { %v2035_v16 = vsel %vm2031_vm4, %v11891_v61, -inf }
 0x5bd   : > { %2036 = vmax.xlane.f32.xlu1 %v2035_v16  ;;  %v2027_v50 = vpop.f32.mrb[28].mxu0 }
 0x5be   : > { %v11896_v37 = vadd.f32 %v11886_v28, %v2027_v50  ;;  %v8217_v32 = vpop.f32.mrb[29].mxu0 }
 0x5c0   : > { %v2038_v4 = vsel %vm2031_vm4, %v11896_v37, -inf }
 0x5c1   : > { %2039 = vmax.xlane.f32.xlu0 %v2038_v4 }
 0x5e5   : > { %v2360_v6 = vpop.f32.mrb[30].mxu0 }
 0x5e6   : > { %v11925_v46 = vadd.f32 %v11886_v28, %v2360_v6  ;;  %v8310_v51 = vpop.f32.mrb[31].mxu0 }
 0x5e8   : > { %v2374_v17 = vsel %vm2031_vm4, %v11925_v46, -inf }
 0x5e9   : > { %2375 = vmax.xlane.f32.xlu1 %v2374_v17  ;;  %v2365_v22 = vpop.f32.mrb[32].mxu0 }
 0x5ea   : > { %v11930_v18 = vadd.f32 %v11886_v28, %v2365_v22  ;;  %v8313_v62 = vpop.f32.mrb[33].mxu0 }
 0x5ec   : > { %v2377_v12 = vsel %vm2031_vm4, %v11930_v18, -inf }
 0x5ed   : > { %2378 = vmax.xlane.f32.xlu0 %v2377_v12  ;;  %v2370_v7 = vpop.f32.mrb[34].mxu0 }
 0x5ee   : > { %v11935_v39 = vadd.f32 %v11886_v28, %v2370_v7  ;;  %v8316_v34 = vpop.f32.mrb[35].mxu0 }
 0x5f0   : > { %v2380_v33 = vsel %vm2031_vm4, %v11935_v39, -inf }
 0x5f1   : > { %2381 = vmax.xlane.f32.xlu1 %v2380_v33 }
 0x615   : > { %v2702_v15 = vpop.f32.mrb[36].mxu0 }
 0x616   : > { %v11940_v47 = vadd.f32 %v11886_v28, %v2702_v15  ;;  %v8409_v42 = vpop.f32.mrb[37].mxu0 }
 0x618   : > { %v2716_v1 = vsel %vm2031_vm4, %v11940_v47, -inf }
 0x619   : > { %2717 = vmax.xlane.f32.xlu0 %v2716_v1  ;;  %v2707_v2 = vpop.f32.mrb[38].mxu0 }
 0x61a   : > { %v11945_v59 = vadd.f32 %v11886_v28, %v2707_v2  ;;  %v8412_v13 = vpop.f32.mrb[39].mxu0 }
 0x61c   : > { %v2719_v55 = vsel %vm2031_vm4, %v11945_v59, -inf }
 0x61d   : > { %2720 = vmax.xlane.f32.xlu1 %v2719_v55  ;;  %v2712_v52 = vpop.f32.mrb[40].mxu0 }
 0x61e   : > { %v11950_v9 = vadd.f32 %v11886_v28, %v2712_v52  ;;  %v8415_v56 = vpop.f32.mrb[41].mxu0 }
 0x61f   : > { %v14331_v56 = vld [vmem:[#allocation52_spill] sm:$0xff] }
 0x620   : > { %v2722_v48 = vsel %vm2031_vm4, %v11950_v9, -inf }
 0x621   : > { %2723 = vmax.xlane.f32.xlu0 %v2722_v48  ;;  %v14332_v48 = vld [vmem:[#allocation53_spill] sm:$0xff] }
 0x645   : > { %v3044_v16 = vpop.f32.mrb[42].mxu0 }
 0x646   : > { %v11955_v50 = vadd.f32 %v11886_v28, %v3044_v16  ;;  %v2034_v32 = vpop.xlane.xlu0 %2033  ;;  %v8508_v4 = vpop.f32.mrb[43].mxu0  ;;  %v14333_v16 = vpack.c.bf16 %v14331_v56, %v14332_v48  ;;  %v14348_v48 = vld [vmem:[#allocation60_spill] sm:$0xff] }
 0x647   : > { %v2041_v6 = vsub.f32 %v2018_v35, %v2034_v32  ;;  %v14335_v4 = vld [vmem:[#allocation56_spill] sm:$0xff] }
 0x648   : > { %v3058_v51 = vsel %vm2031_vm4, %v11955_v50, -inf }
 0x649   : > { %v2044_v17 = vmul.f32 1.442695, %v2041_v6  ;;  %3059 = vmax.xlane.f32.xlu1 %v3058_v51  ;;  %v3049_v22 = vpop.f32.mrb[44].mxu0  ;;  %v14336_v6 = vpack.c.bf16 %v11538_v29, %v14335_v4  ;;  %v14337_v51 = vld [vmem:[#allocation54_spill] sm:$0xff]  ;;  %v14344_v29 = vld [vmem:[#allocation57_spill] sm:$0xff] }
 0x64a   : > { %v11960_v62 = vadd.f32 %v11886_v28, %v3049_v22  ;;  %v2037_v12 = vpop.xlane.xlu1 %2036  ;;  %v8511_v7 = vpop.f32.mrb[45].mxu0  ;;  %v14341_v22 = vld [vmem:[#allocation62_spill] sm:$0xff] }
 0x64b   : > { %10042 = vpow2.f32 %v2044_v17  ;;  %v2042_v34 = vsub.f32 %v11891_v61, %v2037_v12  ;;  %v14340_v17 = vld [vmem:[#allocation58_spill] sm:$0xff]  ;;  %v14343_v7 = vld [vmem:[#allocation63_spill] sm:$0xff] }
 0x64c   : > { %v3061_v33 = vsel %vm2031_vm4, %v11960_v62, -inf  ;;  %v14342_v12 = vpack.c.bf16 %v14340_v17, %v14341_v22  ;;  %v14358_v17 = vld [vmem:[#allocation67_spill] sm:$0xff] }
 0x64d   : > { %v2046_v15 = vmul.f32 1.442695, %v2042_v34  ;;  %3062 = vmax.xlane.f32.xlu0 %v3061_v33  ;;  %v3054_v35 = vpop.f32.mrb[46].mxu0  ;;  %v14345_v34 = vpack.c.bf16 %v14343_v7, %v14344_v29  ;;  %v14361_v7 = vld [vmem:[#allocation71_spill] sm:$0xff] }
 0x64e   : > { %v11966_v42 = vadd.f32 %v11886_v28, %v3054_v35  ;;  %v2040_v1 = vpop.xlane.xlu0 %2039  ;;  %v8514_v2 = vpop.f32.mrb[47].mxu0 }
 0x64f   : > { %10044 = vpow2.f32 %v2046_v15  ;;  %v2043_v13 = vsub.f32 %v11896_v37, %v2040_v1  ;;  %v14334_v37 = vpack.c.bf16 %v11513_v20, %v11535_v21  ;;  %v14338_v21 = vld [vmem:[#allocation55_spill] sm:$0xff] }
 0x650   : > { %v3064_v55 = vsel %vm2031_vm4, %v11966_v42, -inf  ;;  %v14339_v20 = vpack.c.bf16 %v14337_v51, %v14338_v21  ;;  %v14355_v51 = vld [vmem:[#allocation61_spill] sm:$0xff] }
 0x651   : > { %v2048_v52 = vmul.f32 1.442695, %v2043_v13  ;;  %3065 = vmax.xlane.f32.xlu1 %v3064_v55 }
 0x653   : > { %10046 = vpow2.f32 %v2048_v52 }
 0x655   : > { %v10043_v61 = vpop.eup %10042 }
 0x656   : > { %8243 = vmatmul.mubr.msk.f32.vlgmr.msra.gmra.mrb[36].mxu1 %vm2031_vm4, %v10043_v61 }
 0x657   : > { %9374 = vmatpush3.bf16.msra.mxu1 %v14333_v16  ;;  %8245 = vmatprep.mubr.msk.f32.mxu1 %vm10386_vm2, %v14278_v10  ;;  %v14349_v16 = vld [vmem:[#allocation65_spill] sm:$0xff] }
 0x658   : > { %9375 = vmatprep.subr.bf16.mxu1 %v14225_v19 }
 0x659   : > { %v10045_v28 = vpop.eup %10044 }
 0x65a   : > { %8246 = vmatmul.mubr.msk.f32.gmra.mrb[38].mxu1 %vm2031_vm4, %v10045_v28 }
 0x65b   : > { %9377 = vmatpush3.bf16.msra.mxu1 %v14334_v37  ;;  %8248 = vmatprep.mubr.msk.f32.mxu1 %vm10386_vm2, %v14278_v10 }
 0x65c   : > { %9378 = vmatprep.subr.bf16.mxu1 %v14225_v19 }
 0x65d   : > { %v10047_v32 = vpop.eup %10046 }
 0x65e   : > { %8249 = vmatmul.mubr.msk.f32.gmra.mrb[40].mxu1 %vm2031_vm4, %v10047_v32 }
 0x65f   : > { %9380 = vmatpush3.bf16.msra.mxu1 %v14336_v6  ;;  %8275 = vmatprep.mubr.msk.f32.mxu1 %vm10386_vm2, %v14278_v10  ;;  %v14354_v6 = vld [vmem:[#allocation70_spill] sm:$0xff] }
 0x660   : > { %9381 = vmatprep.subr.bf16.mxu1 %v14225_v19  ;;  %v14356_v21 = vpack.c.bf16 %v14354_v6, %v14355_v51  ;;  %v14373_v6 = vld [vmem:[#allocation78_spill] sm:$0xff]  ;;  %v14374_v51 = vld [vmem:[#allocation76_spill] sm:$0xff] }
 0x663   : > { %9383 = vmatpush3.bf16.msra.mxu1 %v14339_v20  ;;  %v14357_v20 = vld [vmem:[#allocation64_spill] sm:$0xff] }
 0x664   : > { %9384 = vmatprep.subr.bf16.mxu1 %v14225_v19  ;;  %v14359_v22 = vpack.c.bf16 %v14357_v20, %v14358_v17 }
 0x667   : > { %9386 = vmatpush3.bf16.msra.mxu1 %v14342_v12  ;;  %v14360_v12 = vld [vmem:[#allocation68_spill] sm:$0xff] }
 0x668   : > { %9387 = vmatprep.subr.bf16.mxu1 %v14225_v19  ;;  %v14362_v29 = vpack.c.bf16 %v14360_v12, %v14361_v7 }
 0x66b   : > { %9389 = vmatpush3.bf16.msra.mxu1 %v14345_v34 }
 0x66c   : > { %9414 = vmatprep.subr.bf16.mxu1 %v14225_v19 }
 0x66e   : > { %8276 = vmatmul.mubr.msk.f32.vlgmr.msra.gmra.mrb[42].mxu1 %vm2031_vm4, %v10043_v61 }
 0x66f   : > { %9416 = vmatpush3.bf16.msra.mxu1 %v11873_v26  ;;  %8278 = vmatprep.mubr.msk.f32.mxu1 %vm10386_vm2, %v14278_v10 }
 0x670   : > { %9417 = vmatprep.subr.bf16.mxu1 %v14225_v19 }
 0x672   : > { %8279 = vmatmul.mubr.msk.f32.gmra.mrb[44].mxu1 %vm2031_vm4, %v10045_v28  ;;  %v14350_v28 = vpack.c.bf16 %v14348_v48, %v14349_v16  ;;  %v14366_v48 = vpack.c.bf16 %v11633_v53, %v11645_v60  ;;  %v3253_v60 = vld [vmem:[%s14026_s15 + $0x10] sm:$0xff]  ;;  %v3254_v53 = vld [vmem:[%s14026_s15 + $0x18] sm:$0xff] }
 0x673   : > { %9419 = vmatpush3.bf16.msra.mxu1 %v11878_v5  ;;  %8281 = vmatprep.mubr.msk.f32.mxu1 %vm10386_vm2, %v14278_v10 }
 0x674   : > { %9420 = vmatprep.subr.bf16.mxu1 %v14225_v19 }
 0x676   : > { %8282 = vmatmul.mubr.msk.f32.gmra.mrb[46].mxu1 %vm2031_vm4, %v10047_v32  ;;  %v2376_v33 = vpop.xlane.xlu1 %2375  ;;  %v14352_v32 = vld [vmem:[#allocation69_spill] sm:$0xff] }
 0x677   : > { %9422 = vmatpush3.bf16.msra.mxu1 %v11902_v57  ;;  %v2383_v15 = vsub.f32 %v11925_v46, %v2376_v33  ;;  %8341 = vmatprep.mubr.msk.f32.mxu1 %vm10386_vm2, %v14278_v10 }
 0x678   : > { %9423 = vmatprep.subr.bf16.mxu1 %v14225_v19 }
 0x679   : > { %v2386_v35 = vmul.f32 1.442695, %v2383_v15 }
 0x67a   : > { %v2379_v1 = vpop.xlane.xlu0 %2378 }
 0x67b   : > { %10048 = vpow2.f32 %v2386_v35  ;;  %9425 = vmatpush3.bf16.msra.mxu1 %v11908_v43  ;;  %v2384_v2 = vsub.f32 %v11930_v18, %v2379_v1  ;;  %v14346_v18 = vld [vmem:[#allocation59_spill] sm:$0xff] }
 0x67c   : > { %9426 = vmatprep.subr.bf16.mxu1 %v14225_v19  ;;  %v14347_v56 = vpack.c.bf16 %v11575_v31, %v14346_v18  ;;  %v14351_v31 = vld [vmem:[#allocation66_spill] sm:$0xff] }
 0x67d   : > { %v2388_v13 = vmul.f32 1.442695, %v2384_v2  ;;  %v14353_v4 = vpack.c.bf16 %v14351_v31, %v14352_v32  ;;  %v14364_v18 = vld [vmem:[#allocation74_spill] sm:$0xff]  ;;  %v14369_v31 = vld [vmem:[#allocation75_spill] sm:$0xff] }
 0x67e   : > { %v2382_v55 = vpop.xlane.xlu1 %2381 }
 0x67f   : > { %10050 = vpow2.f32 %v2388_v13  ;;  %9428 = vmatpush3.bf16.msra.mxu1 %v11914_v44  ;;  %v2385_v46 = vsub.f32 %v11935_v39, %v2382_v55 }
 0x680   : > { %9429 = vmatprep.subr.bf16.mxu1 %v14225_v19 }
 0x681   : > { %v2390_v52 = vmul.f32 1.442695, %v2385_v46  ;;  %v3251_v46 = vld [vmem:[%s14026_s15] sm:$0xff] }
 0x683   : > { %10052 = vpow2.f32 %v2390_v52  ;;  %9431 = vmatpush3.bf16.msra.mxu1 %v11920_v27 }
 0x684   : > { %9432 = vmatprep.subr.bf16.mxu1 %v14225_v19 }
 0x685   : > { %v10049_v61 = vpop.eup %10048 }
 0x686   : > { %8342 = vmatmul.mubr.msk.f32.vlgmr.msra.gmra.mrb[48].mxu1 %vm2031_vm4, %v10049_v61 }
 0x687   : > { %9434 = vmatpush3.bf16.msra.mxu1 %v14347_v56  ;;  %8344 = vmatprep.mubr.msk.f32.mxu1 %vm10386_vm2, %v14278_v10 }
 0x688   : > { %9435 = vmatprep.subr.bf16.mxu1 %v14225_v19 }
 0x689   : > { %v10051_v39 = vpop.eup %10050 }
 0x68a   : > { %8345 = vmatmul.mubr.msk.f32.gmra.mrb[50].mxu1 %vm2031_vm4, %v10051_v39 }
 0x68b   : > { %9437 = vmatpush3.bf16.msra.mxu1 %v14350_v28  ;;  %8347 = vmatprep.mubr.msk.f32.mxu1 %vm10386_vm2, %v14278_v10  ;;  %v14367_v28 = vpack.c.bf16 %v11648_v25, %v11623_v54  ;;  %v14371_v54 = vld [vmem:[#allocation77_spill] sm:$0xff] }
 0x68c   : > { %9438 = vmatprep.subr.bf16.mxu1 %v14225_v19  ;;  %v14372_v25 = vpack.c.bf16 %v11636_v41, %v14371_v54 }
 0x68d   : > { %v10053_v37 = vpop.eup %10052 }
 0x68e   : > { %8348 = vmatmul.mubr.msk.f32.gmra.mrb[52].mxu1 %vm2031_vm4, %v10053_v37 }
 0x68f   : > { %9440 = vmatpush3.bf16.msra.mxu1 %v14353_v4  ;;  %8374 = vmatprep.mubr.msk.f32.mxu1 %vm10386_vm2, %v14278_v10  ;;  %v9574_v4 = vpack.c.bf16 %v3254_v53, %v3253_v60 }
 0x690   : > { %9441 = vmatprep.subr.bf16.mxu1 %v14225_v19 }
 0x693   : > { %9443 = vmatpush3.bf16.msra.mxu1 %v14356_v21  ;;  %v14375_v21 = vpack.c.bf16 %v14373_v6, %v14374_v51 }
 0x694   : > { %9444 = vmatprep.subr.bf16.mxu1 %v14225_v19 }
 0x697   : > { %9446 = vmatpush3.bf16.msra.mxu1 %v14359_v22 }
 0x698   : > { %9447 = vmatprep.subr.bf16.mxu1 %v14225_v19 }
 0x69b   : > { %9449 = vmatpush3.bf16.msra.mxu1 %v14362_v29 }
 0x69c   : > { %9474 = vmatprep.subr.bf16.mxu1 %v14225_v19 }
 0x69e   : > { %8375 = vmatmul.mubr.msk.f32.vlgmr.msra.gmra.mrb[54].mxu1 %vm2031_vm4, %v10049_v61 }
 0x69f   : > { %9476 = vmatpush3.bf16.msra.mxu1 %v11873_v26  ;;  %8377 = vmatprep.mubr.msk.f32.mxu1 %vm10386_vm2, %v14278_v10 }
 0x6a0   : > { %9477 = vmatprep.subr.bf16.mxu1 %v14225_v19 }
 0x6a2   : > { %8378 = vmatmul.mubr.msk.f32.gmra.mrb[56].mxu1 %vm2031_vm4, %v10051_v39 }
 0x6a3   : > { %9479 = vmatpush3.bf16.msra.mxu1 %v11878_v5  ;;  %8380 = vmatprep.mubr.msk.f32.mxu1 %vm10386_vm2, %v14278_v10 }
 0x6a4   : > { %9480 = vmatprep.subr.bf16.mxu1 %v14225_v19 }
 0x6a6   : > { %8381 = vmatmul.mubr.msk.f32.gmra.mrb[58].mxu1 %vm2031_vm4, %v10053_v37  ;;  %v2718_v34 = vpop.xlane.xlu0 %2717  ;;  %v14368_v37 = vld [vmem:[#allocation73_spill] sm:$0xff] }
 0x6a7   : > { %9482 = vmatpush3.bf16.msra.mxu1 %v11902_v57  ;;  %v2725_v33 = vsub.f32 %v11940_v47, %v2718_v34  ;;  %8440 = vmatprep.mubr.msk.f32.mxu1 %vm10386_vm2, %v14278_v10  ;;  %v14370_v32 = vpack.c.bf16 %v14368_v37, %v14369_v31 }
 0x6a8   : > { %9483 = vmatprep.subr.bf16.mxu1 %v14225_v19 }
 0x6a9   : > { %v2728_v15 = vmul.f32 1.442695, %v2725_v33 }
 0x6aa   : > { %v2721_v35 = vpop.xlane.xlu1 %2720 }
 0x6ab   : > { %10054 = vpow2.f32 %v2728_v15  ;;  %9485 = vmatpush3.bf16.msra.mxu1 %v11908_v43  ;;  %v2726_v1 = vsub.f32 %v11945_v59, %v2721_v35  ;;  %v3252_v59 = vld [vmem:[%s14026_s15 + $0x8] sm:$0xff] }
 0x6ac   : > { %9486 = vmatprep.subr.bf16.mxu1 %v14225_v19  ;;  %v9570_v52 = vpack.c.bf16 %v3252_v59, %v3251_v46 }
 0x6ad   : > { %v2730_v2 = vmul.f32 1.442695, %v2726_v1 }
 0x6ae   : > { %v2724_v13 = vpop.xlane.xlu0 %2723  ;;  %9571 = vmatprep.subr.bf16.mxu0 %v9570_v52 }
 0x6af   : > { %10056 = vpow2.f32 %v2730_v2  ;;  %9488 = vmatpush3.bf16.msra.mxu1 %v11914_v44  ;;  %v2727_v47 = vsub.f32 %v11950_v9, %v2724_v13  ;;  %9573 = vmatpush3.bf16.msra.mxu0 %v9570_v52  ;;  %v14363_v9 = vld [vmem:[#allocation72_spill] sm:$0xff] }
 0x6b0   : > { %9489 = vmatprep.subr.bf16.mxu1 %v14225_v19  ;;  %v14365_v56 = vpack.c.bf16 %v14363_v9, %v14364_v18  ;;  %9575 = vmatprep.subr.bf16.mxu0 %v9574_v4 }
 0x6b1   : > { %v2732_v55 = vmul.f32 1.442695, %v2727_v47 }
 0x6b3   : > { %10058 = vpow2.f32 %v2732_v55  ;;  %9491 = vmatpush3.bf16.msra.mxu1 %v11920_v27  ;;  %9577 = vmatpush3.bf16.msra.mxu0 %v9574_v4 }
 0x6b4   : > { %9492 = vmatprep.subr.bf16.mxu1 %v14225_v19 }
 0x6b5   : > { %v10055_v61 = vpop.eup %10054 }
 0x6b6   : > { %8441 = vmatmul.mubr.msk.f32.vlgmr.msra.gmra.mrb[60].mxu1 %vm2031_vm4, %v10055_v61 }
 0x6b7   : > { %9494 = vmatpush3.bf16.msra.mxu1 %v14365_v56  ;;  %8443 = vmatprep.mubr.msk.f32.mxu1 %vm10386_vm2, %v14278_v10 }
 0x6b8   : > { %9495 = vmatprep.subr.bf16.mxu1 %v14225_v19 }
 0x6b9   : > { %v10057_v39 = vpop.eup %10056 }
 0x6ba   : > { %8444 = vmatmul.mubr.msk.f32.gmra.mrb[62].mxu1 %vm2031_vm4, %v10057_v39 }
 0x6bb   : > { %9497 = vmatpush3.bf16.msra.mxu1 %v14366_v48  ;;  %8446 = vmatprep.mubr.msk.f32.mxu1 %vm10386_vm2, %v14278_v10 }
 0x6bc   : > { %9498 = vmatprep.subr.bf16.mxu1 %v14225_v19 }
 0x6bd   : > { %v10059_v16 = vpop.eup %10058 }
 0x6be   : > { %8447 = vmatmul.mubr.msk.f32.gmra.mrb[64].mxu1 %vm2031_vm4, %v10059_v16 }
 0x6bf   : > { %9500 = vmatpush3.bf16.msra.mxu1 %v14367_v28  ;;  %8473 = vmatprep.mubr.msk.f32.mxu1 %vm10386_vm2, %v14278_v10 }
 0x6c0   : > { %9501 = vmatprep.subr.bf16.mxu1 %v14225_v19 }
 0x6c3   : > { %9503 = vmatpush3.bf16.msra.mxu1 %v14370_v32 }
 0x6c4   : > { %9504 = vmatprep.subr.bf16.mxu1 %v14225_v19 }
 0x6c7   : > { %9506 = vmatpush3.bf16.msra.mxu1 %v14372_v25 }
 0x6c8   : > { %9507 = vmatprep.subr.bf16.mxu1 %v14225_v19 }
 0x6cb   : > { %9509 = vmatpush3.bf16.msra.mxu1 %v14375_v21 }
 0x6cc   : > { %9534 = vmatprep.subr.bf16.mxu1 %v14225_v19 }
 0x6ce   : > { %8474 = vmatmul.mubr.msk.f32.vlgmr.msra.gmra.mrb[66].mxu1 %vm2031_vm4, %v10055_v61 }
 0x6cf   : > { %9536 = vmatpush3.bf16.msra.mxu1 %v11873_v26  ;;  %8476 = vmatprep.mubr.msk.f32.mxu1 %vm10386_vm2, %v14278_v10 }
 0x6d0   : > { %9537 = vmatprep.subr.bf16.mxu1 %v14225_v19 }
 0x6d2   : > { %8477 = vmatmul.mubr.msk.f32.gmra.mrb[68].mxu1 %vm2031_vm4, %v10057_v39 }
 0x6d3   : > { %9539 = vmatpush3.bf16.msra.mxu1 %v11878_v5  ;;  %8479 = vmatprep.mubr.msk.f32.mxu1 %vm10386_vm2, %v14278_v10 }
 0x6d4   : > { %9540 = vmatprep.subr.bf16.mxu1 %v14225_v19 }
 0x6d6   : > { %8480 = vmatmul.mubr.msk.f32.gmra.mrb[70].mxu1 %vm2031_vm4, %v10059_v16  ;;  %v3060_v41 = vpop.xlane.xlu1 %3059 }
 0x6d7   : > { %9542 = vmatpush3.bf16.msra.mxu1 %v11902_v57  ;;  %v3067_v20 = vsub.f32 %v11955_v50, %v3060_v41  ;;  %8539 = vmatprep.mubr.msk.f32.mxu1 %vm10386_vm2, %v14278_v10 }
 0x6d8   : > { %9543 = vmatprep.subr.bf16.mxu1 %v14225_v19 }
 0x6d9   : > { %v3070_v17 = vmul.f32 1.442695, %v3067_v20 }
 0x6da   : > { %v3063_v22 = vpop.xlane.xlu0 %3062 }
 0x6db   : > { %10060 = vpow2.f32 %v3070_v17  ;;  %9545 = vmatpush3.bf16.msra.mxu1 %v11908_v43  ;;  %v3068_v12 = vsub.f32 %v11960_v62, %v3063_v22 }
 0x6dc   : > { %9546 = vmatprep.subr.bf16.mxu1 %v14225_v19 }
 0x6dd   : > { %v3072_v7 = vmul.f32 1.442695, %v3068_v12 }
 0x6de   : > { %v3066_v29 = vpop.xlane.xlu1 %3065 }
 0x6df   : > { %10062 = vpow2.f32 %v3072_v7  ;;  %9548 = vmatpush3.bf16.msra.mxu1 %v11914_v44  ;;  %v3069_v50 = vsub.f32 %v11966_v42, %v3066_v29  ;;  %v14376_v42 = vpack.c.bf16 %v11642_v11, %v11673_v49  ;;  %v14378_v49 = vpack.c.bf16 %v11696_v58, %v11657_v23 }
 0x6e0   : > { %9549 = vmatprep.subr.bf16.mxu1 %v14225_v19 }
 0x6e1   : > { %v3074_v34 = vmul.f32 1.442695, %v3069_v50 }
 0x6e3   : > { %10064 = vpow2.f32 %v3074_v34  ;;  %9551 = vmatpush3.bf16.msra.mxu1 %v11920_v27 }
 0x6e4   : > { %9552 = vmatprep.subr.bf16.mxu1 %v14225_v19 }
 0x6e5   : > { %v10061_v33 = vpop.eup %10060 }
 0x6e6   : > { %8540 = vmatmul.mubr.msk.f32.vlgmr.msra.gmra.mrb[72].mxu1 %vm2031_vm4, %v10061_v33 }
 0x6e7   : > { %9554 = vmatpush3.bf16.msra.mxu1 %v9553_v45  ;;  %8542 = vmatprep.mubr.msk.f32.mxu1 %vm10386_vm2, %v14278_v10 }
 0x6e8   : > { %9555 = vmatprep.subr.bf16.mxu1 %v14225_v19 }
 0x6e9   : > { %v10063_v62 = vpop.eup %10062 }
 0x6ea   : > { %8543 = vmatmul.mubr.msk.f32.gmra.mrb[74].mxu1 %vm2031_vm4, %v10063_v62 }
 0x6eb   : > { %9557 = vmatpush3.bf16.msra.mxu1 %v14376_v42  ;;  %8545 = vmatprep.mubr.msk.f32.mxu1 %vm10386_vm2, %v14278_v10 }
 0x6ec   : > { %9558 = vmatprep.subr.bf16.mxu1 %v14225_v19 }
 0x6ed   : > { %v10065_v15 = vpop.eup %10064 }
 0x6ee   : > { %8546 = vmatmul.mubr.msk.f32.gmra.mrb[76].mxu1 %vm2031_vm4, %v10065_v15 }
 0x6ef   : > { %9560 = vmatpush3.bf16.msra.mxu1 %v14377_v0  ;;  %8572 = vmatprep.mubr.msk.f32.mxu1 %vm10386_vm2, %v14278_v10 }
 0x6f0   : > { %9561 = vmatprep.subr.bf16.mxu1 %v14225_v19 }
 0x6f3   : > { %9563 = vmatpush3.bf16.msra.mxu1 %v14378_v49 }
 0x6f4   : > { %9564 = vmatprep.subr.bf16.mxu1 %v14225_v19 }
 0x6f7   : > { %9566 = vmatpush3.bf16.msra.mxu1 %v14379_v3 }
 0x6f8   : > { %9567 = vmatprep.subr.bf16.mxu1 %v14225_v19 }
 0x6fb   : > { %9569 = vmatpush3.bf16.msra.mxu1 %v9568_v14 }
 0x6fe   : > { %8573 = vmatmul.mubr.msk.f32.vlgmr.msra.gmra.mrb[78].mxu1 %vm2031_vm4, %v10061_v33 }
 0x6ff   : > { %8575 = vmatprep.mubr.msk.f32.mxu1 %vm10386_vm2, %v14278_v10 }
 0x702   : > { %8576 = vmatmul.mubr.msk.f32.gmra.mrb[80].mxu1 %vm2031_vm4, %v10063_v62 }
 0x703   : > { %8578 = vmatprep.mubr.msk.f32.mxu1 %vm10386_vm2, %v14278_v10 }
 0x706   : > { %8579 = vmatmul.mubr.msk.f32.gmra.mrb[82].mxu1 %vm2031_vm4, %v10065_v15 }
 0x729   : > { %v2125_v40 = vpop.f32.mrb[36].mxu1 }
 0x72a   : > { %v8244_v58 = vpop.f32.mrb[37].mxu1  ;;  %10066 = vrcp.f32 %v2125_v40 }
 0x72d   : > { %v2130_v23 = vpop.f32.mrb[38].mxu1 }
 0x72e   : > { %v8247_v11 = vpop.f32.mrb[39].mxu1  ;;  %10068 = vrcp.f32 %v2130_v23 }
 0x731   : > { %v2135_v38 = vpop.f32.mrb[40].mxu1 }
 0x732   : > { %v8250_v30 = vpop.f32.mrb[41].mxu1  ;;  %10070 = vrcp.f32 %v2135_v38 }
 0x734   : > { %v10067_v8 = vpop.eup %10066 }
 0x738   : > { %v10069_v14 = vpop.eup %10068 }
 0x73c   : > { %v10071_v13 = vpop.eup %10070 }
 0x741   : > { %v2205_v36 = vpop.f32.mrb[42].mxu1 }
 0x742   : > { %v2220_v24 = vmul.f32 %v10067_v8, %v2205_v36  ;;  %v8277_v45 = vpop.f32.mrb[43].mxu1 }
 0x744   : > { %8589 = vmatprep.mubr.msk.f32.mxu0 %vm1019_vm1, %v2220_v24 }
 0x745   : > { %v2210_v35 = vpop.f32.mrb[44].mxu1 }
 0x746   : > { %v2222_v1 = vmul.f32 %v10069_v14, %v2210_v35  ;;  %v8280_v2 = vpop.f32.mrb[45].mxu1 }
 0x748   : > { %8590 = vmatmul.mubr.msk.f32.vlgmr.msra.gmra.mrb[48].mxu0 %vm1019_vm1, %v2222_v1 }
 0x749   : > { %v2215_v47 = vpop.f32.mrb[46].mxu1 }
 0x74a   : > { %v2224_v55 = vmul.f32 %v10071_v13, %v2215_v47  ;;  %v8283_v46 = vpop.f32.mrb[47].mxu1 }
 0x74c   : > { %8592 = vmatprep.mubr.msk.f32.mxu0 %vm1019_vm1, %v2224_v55 }
 0x759   : > { %v2467_v59 = vpop.f32.mrb[48].mxu1 }
 0x75a   : > { %v8343_v52 = vpop.f32.mrb[49].mxu1  ;;  %10072 = vrcp.f32 %v2467_v59  ;;  %v12208_v59 = vld [vmem:[%s14027_s16] ss:$0 sm:$0xff] }
 0x75b   : > { %v14380_v52 = vld [vmem:[#allocation13_spill] sm:$0xff] }
 0x75d   : > { %v2472_v61 = vpop.f32.mrb[50].mxu1 }
 0x75e   : > { %v8346_v9 = vpop.f32.mrb[51].mxu1  ;;  %10074 = vrcp.f32 %v2472_v61 }
 0x761   : > { %v2477_v18 = vpop.f32.mrb[52].mxu1 }
 0x762   : > { %v8349_v56 = vpop.f32.mrb[53].mxu1  ;;  %10076 = vrcp.f32 %v2477_v18  ;;  %v14381_v18 = vld [vmem:[#allocation12_spill] sm:$0xff] }
 0x764   : > { %v10073_v39 = vpop.eup %10072 }
 0x768   : > { %v10075_v60 = vpop.eup %10074 }
 0x76c   : > { %v10077_v32 = vpop.eup %10076 }
 0x771   : > { %v2547_v48 = vpop.f32.mrb[54].mxu1 }
 0x772   : > { %v2562_v16 = vmul.f32 %v10073_v39, %v2547_v48  ;;  %v8376_v28 = vpop.f32.mrb[55].mxu1 }
 0x774   : > { %8593 = vmatmul.mubr.msk.f32.gmra.mrb[50].mxu0 %vm1019_vm1, %v2562_v16 }
 0x775   : > { %v2552_v53 = vpop.f32.mrb[56].mxu1 }
 0x776   : > { %v2564_v37 = vmul.f32 %v10075_v60, %v2552_v53  ;;  %v8379_v31 = vpop.f32.mrb[57].mxu1  ;;  %v14382_v53 = vld [vmem:[#allocation15_spill] sm:$0xff] }
 0x778   : > { %8595 = vmatprep.mubr.msk.f32.mxu0 %vm1019_vm1, %v2564_v37 }
 0x779   : > { %v2557_v4 = vpop.f32.mrb[58].mxu1 }
 0x77a   : > { %v2566_v54 = vmul.f32 %v10077_v32, %v2557_v4  ;;  %v8382_v25 = vpop.f32.mrb[59].mxu1  ;;  %v14383_v32 = vld [vmem:[#allocation14_spill] sm:$0xff] }
 0x77c   : > { %8596 = vmatmul.mubr.msk.f32.gmra.mrb[52].mxu0 %vm1019_vm1, %v2566_v54 }
 0x789   : > { %v2809_v6 = vpop.f32.mrb[60].mxu1 }
 0x78a   : > { %v8442_v51 = vpop.f32.mrb[61].mxu1  ;;  %10078 = vrcp.f32 %v2809_v6 }
 0x78d   : > { %v2814_v21 = vpop.f32.mrb[62].mxu1 }
 0x78e   : > { %v8445_v41 = vpop.f32.mrb[63].mxu1  ;;  %10080 = vrcp.f32 %v2814_v21 }
 0x78f   : > { %v14384_v41 = vld [vmem:[#allocation17_spill] sm:$0xff] }
 0x791   : > { %v2819_v20 = vpop.f32.mrb[64].mxu1 }
 0x792   : > { %v8448_v17 = vpop.f32.mrb[65].mxu1  ;;  %10082 = vrcp.f32 %v2819_v20 }
 0x794   : > { %v10079_v22 = vpop.eup %10078 }
 0x798   : > { %v10081_v50 = vpop.eup %10080 }
 0x79c   : > { %v10083_v42 = vpop.eup %10082 }
 0x7a1   : > { %v2889_v12 = vpop.f32.mrb[66].mxu1 }
 0x7a2   : > { %v2904_v7 = vmul.f32 %v10079_v22, %v2889_v12  ;;  %v8475_v29 = vpop.f32.mrb[67].mxu1  ;;  %v14385_v22 = vld [vmem:[#allocation16_spill] sm:$0xff] }
 0x7a4   : > { %8598 = vmatprep.mubr.msk.f32.mxu0 %vm1019_vm1, %v2904_v7 }
 0x7a5   : > { %v2894_v34 = vpop.f32.mrb[68].mxu1 }
 0x7a6   : > { %v2906_v33 = vmul.f32 %v10081_v50, %v2894_v34  ;;  %v8478_v62 = vpop.f32.mrb[69].mxu1 }
 0x7a8   : > { %8599 = vmatmul.mubr.msk.f32.gmra.mrb[54].mxu0 %vm1019_vm1, %v2906_v33 }
 0x7a9   : > { %v2899_v15 = vpop.f32.mrb[70].mxu1 }
 0x7aa   : > { %v2908_v0 = vmul.f32 %v10083_v42, %v2899_v15  ;;  %v8481_v49 = vpop.f32.mrb[71].mxu1 }
 0x7ac   : > { %8601 = vmatprep.mubr.msk.f32.mxu0 %vm1019_vm1, %v2908_v0 }
 0x7b9   : > { %v3151_v3 = vpop.f32.mrb[72].mxu1 }
 0x7ba   : > { %v8541_v40 = vpop.f32.mrb[73].mxu1  ;;  %10084 = vrcp.f32 %v3151_v3 }
 0x7bd   : > { %v3156_v58 = vpop.f32.mrb[74].mxu1 }
 0x7be   : > { %v8544_v23 = vpop.f32.mrb[75].mxu1  ;;  %10086 = vrcp.f32 %v3156_v58 }
 0x7c1   : > { %v3161_v11 = vpop.f32.mrb[76].mxu1 }
 0x7c2   : > { %v8547_v38 = vpop.f32.mrb[77].mxu1  ;;  %10088 = vrcp.f32 %v3161_v11 }
 0x7c4   : > { %v10085_v30 = vpop.eup %10084 }
 0x7c8   : > { %v10087_v45 = vpop.eup %10086 }
 0x7cc   : > { %v10089_v2 = vpop.eup %10088 }
 0x7d1   : > { %v3231_v8 = vpop.f32.mrb[78].mxu1 }
 0x7d2   : > { %v3246_v36 = vmul.f32 %v10085_v30, %v3231_v8  ;;  %v8574_v24 = vpop.f32.mrb[79].mxu1 }
 0x7d4   : > { %8602 = vmatmul.mubr.msk.f32.gmra.mrb[56].mxu0 %vm1019_vm1, %v3246_v36 }
 0x7d5   : > { %v3236_v14 = vpop.f32.mrb[80].mxu1 }
 0x7d6   : > { %v3248_v35 = vmul.f32 %v10087_v45, %v3236_v14  ;;  %v8577_v1 = vpop.f32.mrb[81].mxu1  ;;  %v3641_v45 = vld [vmem:[%s14030_s19] sm:$0xff]  ;;  %v3642_v14 = vld [vmem:[%s14030_s19 + $0x8] sm:$0xff] }
 0x7d7   : > { %v3643_v1 = vld [vmem:[%s14030_s19 + $0x10] sm:$0xff] }
 0x7d8   : > { %8604 = vmatprep.mubr.msk.f32.mxu0 %vm1019_vm1, %v3248_v35  ;;  %v9578_v35 = vpack.c.bf16 %v3642_v14, %v3641_v45 }
 0x7d9   : > { %v3241_v13 = vpop.f32.mrb[82].mxu1 }
 0x7da   : > { %v3250_v47 = vmul.f32 %v10089_v2, %v3241_v13  ;;  %v8580_v55 = vpop.f32.mrb[83].mxu1  ;;  %9579 = vmatprep.subr.bf16.mxu1 %v9578_v35  ;;  %v3644_v2 = vld [vmem:[%s14030_s19 + $0x18] sm:$0xff] }
 0x7db   : > { %9581 = vmatpush3.bf16.msra.mxu1 %v9578_v35  ;;  %v9582_v13 = vpack.c.bf16 %v3644_v2, %v3643_v1 }
 0x7dc   : > { %8605 = vmatmul.mubr.msk.f32.gmra.mrb[58].mxu0 %vm1019_vm1, %v3250_v47 }
 0x7dd   : > { %9583 = vmatprep.subr.bf16.mxu1 %v9582_v13 }
 0x7df   : > { %9585 = vmatpush3.bf16.msra.mxu1 %v9582_v13 }
 0x81b   : > { %v8591_v46 = vpop.f32.mrb[48].mxu0 }
 0x81c   : > { %v3417_v61 = vadd.f32 %v8591_v46, %v14380_v52  ;;  %v3357_v9 = vpop.f32.mrb[49].mxu0 }
 0x81d   : > { %v3416_v56 = vadd.f32 %v3357_v9, %v14381_v18 }
 0x81e   : > { %v12213_v39 = vadd.f32 %v12208_v59, %v3417_v61  ;;  %v14386_v61 = vld [vmem:[#allocation19_spill] sm:$0xff] }
 0x81f   : > { %v12216_v48 = vadd.f32 %v12208_v59, %v3416_v56  ;;  %v14387_v56 = vld [vmem:[#allocation18_spill] sm:$0xff] }
 0x820   : > { %v3452_v16 = vsel %vm1019_vm1, %v12213_v39, 0.0 }
 0x821   : > { %3453 = vadd.xlane.f32.xlu1 %v3452_v16  ;;  %v3449_v28 = vsel %vm1019_vm1, %v12216_v48, 0.0 }
 0x822   : > { %3450 = vadd.xlane.f32.xlu0 %v3449_v28 }
 0x847   : > { %v8594_v60 = vpop.f32.mrb[50].mxu0 }
 0x848   : > { %v3419_v37 = vadd.f32 %v8594_v60, %v14382_v53  ;;  %v3367_v31 = vpop.f32.mrb[51].mxu0 }
 0x849   : > { %v3418_v4 = vadd.f32 %v3367_v31, %v14383_v32  ;;  %v14388_v31 = vld [vmem:[#allocation21_spill] sm:$0xff] }
 0x84a   : > { %v12225_v54 = vadd.f32 %v12208_v59, %v3419_v37 }
 0x84b   : > { %v12228_v25 = vadd.f32 %v12208_v59, %v3418_v4 }
 0x84c   : > { %v3458_v6 = vsel %vm1019_vm1, %v12225_v54, 0.0 }
 0x84d   : > { %3459 = vadd.xlane.f32.xlu1 %v3458_v6  ;;  %v3455_v51 = vsel %vm1019_vm1, %v12228_v25, 0.0 }
 0x84e   : > { %3456 = vadd.xlane.f32.xlu0 %v3455_v51  ;;  %v14389_v51 = vld [vmem:[#allocation20_spill] sm:$0xff] }
 0x84f   : > { %v8597_v21 = vpop.f32.mrb[52].mxu0 }
 0x850   : > { %v3421_v20 = vadd.f32 %v8597_v21, %v14384_v41  ;;  %v3377_v17 = vpop.f32.mrb[53].mxu0 }
 0x851   : > { %v3420_v12 = vadd.f32 %v3377_v17, %v14385_v22 }
 0x852   : > { %v12237_v7 = vadd.f32 %v12208_v59, %v3421_v20 }
 0x853   : > { %v12240_v29 = vadd.f32 %v12208_v59, %v3420_v12 }
 0x854   : > { %v3464_v50 = vsel %vm1019_vm1, %v12237_v7, 0.0 }
 0x855   : > { %3465 = vadd.xlane.f32.xlu1 %v3464_v50  ;;  %v3461_v34 = vsel %vm1019_vm1, %v12240_v29, 0.0 }
 0x856   : > { %3462 = vadd.xlane.f32.xlu0 %v3461_v34 }
 0x87b   : > { %v8600_v33 = vpop.f32.mrb[54].mxu0 }
 0x87c   : > { %v3387_v62 = vpop.f32.mrb[55].mxu0  ;;  %v3423_v9 = vadd.f32 %v8600_v33, %v14386_v61  ;;  %v12333_v61 = vld [vmem:[%s14028_s17] ss:$0 sm:$0xff] }
 0x87d   : > { %v3422_v16 = vadd.f32 %v3387_v62, %v14387_v56 }
 0x87e   : > { %v12283_v37 = vadd.f32 %v12208_v59, %v3423_v9 }
 0x87f   : > { %v12288_v6 = vadd.f32 %v12208_v59, %v3422_v16 }
 0x880   : > { %v3470_v33 = vsel %vm1019_vm1, %v12283_v37, 0.0 }
 0x8a7   : > { %v8603_v42 = vpop.f32.mrb[56].mxu0 }
 0x8a8   : > { %v3397_v15 = vpop.f32.mrb[57].mxu0  ;;  %v3425_v32 = vadd.f32 %v8603_v42, %v14388_v31 }
 0x8a9   : > { %v3424_v21 = vadd.f32 %v3397_v15, %v14389_v51  ;;  %v3467_v15 = vsel %vm1019_vm1, %v12288_v6, 0.0 }
 0x8aa   : > { %v12293_v50 = vadd.f32 %v12208_v59, %v3425_v32 }
 0x8ab   : > { %v12301_v62 = vadd.f32 %v12208_v59, %v3424_v21 }
 0x8ae   : > { %v3454_v0 = vpop.xlane.xlu1 %3453 }
 0x8af   : > { %v3486_v49 = vmul.f32 0.03125, %v3454_v0  ;;  %v3451_v3 = vpop.xlane.xlu0 %3450  ;;  %v8606_v40 = vpop.f32.mrb[58].mxu0  ;;  %v14390_v0 = vld [vmem:[#allocation23_spill] sm:$0xff] }
 0x8b0   : > { %v3485_v58 = vmul.f32 0.03125, %v3451_v3  ;;  %v3407_v23 = vpop.f32.mrb[59].mxu0  ;;  %v3476_v3 = vsel %vm1019_vm1, %v12293_v50, 0.0 }
 0x8b1   : > { %v12247_v11 = vsub.f32 %v12213_v39, %v3486_v49  ;;  %v3427_v49 = vadd.f32 %v8606_v40, %v14390_v0 }
 0x8b2   : > { %v12250_v38 = vsub.f32 %v12216_v48, %v3485_v58 }
 0x8b3   : > { %v3510_v30 = vmul.f32 %v12247_v11, %v12247_v11  ;;  %v12319_v45 = vadd.f32 %v12208_v59, %v3427_v49 }
 0x8b4   : > { %v3509_v8 = vmul.f32 %v12250_v38, %v12250_v38 }
 0x8b5   : > { %v3524_v36 = vsel %vm1019_vm1, %v3510_v30, 0.0  ;;  %v14391_v30 = vld [vmem:[#allocation22_spill] sm:$0xff] }
 0x8b6   : > { %3525 = vadd.xlane.f32.xlu1 %v3524_v36  ;;  %v3521_v24 = vsel %vm1019_vm1, %v3509_v8, 0.0  ;;  %v3426_v8 = vadd.f32 %v3407_v23, %v14391_v30  ;;  %v3473_v36 = vsel %vm1019_vm1, %v12301_v62, 0.0  ;;  %v3482_v23 = vsel %vm1019_vm1, %v12319_v45, 0.0 }
 0x8b7   : > { %3522 = vadd.xlane.f32.xlu0 %v3521_v24 }
 0x8b8   : > { %v12323_v14 = vadd.f32 %v12208_v59, %v3426_v8 }
 0x8ba   : > { %v3479_v1 = vsel %vm1019_vm1, %v12323_v14, 0.0 }
 0x8da   : > { %v3460_v47 = vpop.xlane.xlu1 %3459 }
 0x8db   : > { %v3488_v55 = vmul.f32 0.03125, %v3460_v47  ;;  %v3457_v46 = vpop.xlane.xlu0 %3456 }
 0x8dc   : > { %v3487_v52 = vmul.f32 0.03125, %v3457_v46 }
 0x8dd   : > { %v12272_v18 = vsub.f32 %v12225_v54, %v3488_v55 }
 0x8de   : > { %v12276_v28 = vsub.f32 %v12228_v25, %v3487_v52 }
 0x8df   : > { %v3512_v60 = vmul.f32 %v12272_v18, %v12272_v18 }
 0x8e0   : > { %v3511_v53 = vmul.f32 %v12276_v28, %v12276_v28 }
 0x8e1   : > { %v3530_v4 = vsel %vm1019_vm1, %v3512_v60, 0.0  ;;  %v12340_v60 = vld [vmem:[%s14029_s18] ss:$0 sm:$0xff] }
 0x8e2   : > { %3531 = vadd.xlane.f32.xlu1 %v3530_v4  ;;  %v3466_v41 = vpop.xlane.xlu1 %3465  ;;  %v3527_v20 = vsel %vm1019_vm1, %v3511_v53, 0.0 }
 0x8e3   : > { %v3490_v17 = vmul.f32 0.03125, %v3466_v41  ;;  %3528 = vadd.xlane.f32.xlu0 %v3527_v20  ;;  %v3463_v22 = vpop.xlane.xlu0 %3462 }
 0x8e4   : > { %v3489_v12 = vmul.f32 0.03125, %v3463_v22 }
 0x8e5   : > { %v12296_v34 = vsub.f32 %v12237_v7, %v3490_v17 }
 0x8e6   : > { %v12304_v42 = vsub.f32 %v12240_v29, %v3489_v12  ;;  %3471 = vadd.xlane.f32.xlu1 %v3470_v33 }
 0x8e7   : > { %3468 = vadd.xlane.f32.xlu0 %v3467_v15  ;;  %v3514_v58 = vmul.f32 %v12296_v34, %v12296_v34 }
 0x8e8   : > { %v3513_v24 = vmul.f32 %v12304_v42, %v12304_v42 }
 0x8e9   : > { %v3536_v40 = vsel %vm1019_vm1, %v3514_v58, 0.0 }
 0x8ea   : > { %3477 = vadd.xlane.f32.xlu1 %v3476_v3  ;;  %v3533_v35 = vsel %vm1019_vm1, %v3513_v24, 0.0 }
 0x8eb   : > { %3474 = vadd.xlane.f32.xlu0 %v3473_v36 }
 0x8ee   : > { %3537 = vadd.xlane.f32.xlu1 %v3536_v40 }
 0x8ef   : > { %3534 = vadd.xlane.f32.xlu0 %v3533_v35 }
 0x8f2   : > { %3483 = vadd.xlane.f32.xlu1 %v3482_v23 }
 0x8f3   : > { %3480 = vadd.xlane.f32.xlu0 %v3479_v1 }
 0x943   : > { %v3526_v2 = vpop.xlane.xlu1 %3525 }
 0x944   : > { %v3558_v13 = vmul.f32 0.03125, %v3526_v2  ;;  %v3523_v47 = vpop.xlane.xlu0 %3522 }
 0x945   : > { %v3557_v55 = vmul.f32 0.03125, %v3523_v47 }
 0x946   : > { %v3570_v46 = vadd.f32 1e-05, %v3558_v13 }
 0x947   : > { %v3569_v52 = vadd.f32 1e-05, %v3557_v55 }
 0x948   : > { %10090 = vrsqrt.f32 %v3570_v46 }
 0x949   : > { %10092 = vrsqrt.f32 %v3569_v52 }
 0x952   : > { %v10091_v59 = vpop.eup %10090 }
 0x953   : > { %v10093_v9 = vpop.eup %10092  ;;  %v3594_v56 = vmul.f32 %v10091_v59, %v12247_v11 }
 0x954   : > { %v3593_v16 = vmul.f32 %v10093_v9, %v12250_v38 }
 0x955   : > { %v3612_v53 = vmul.f32 %v12333_v61, %v3594_v56 }
 0x956   : > { %v3611_v31 = vmul.f32 %v12333_v61, %v3593_v16 }
 0x957   : > { %v3630_v4 = vadd.f32 %v12340_v60, %v3612_v53 }
 0x958   : > { %v3629_v32 = vadd.f32 %v12340_v60, %v3611_v31 }
 0x95a   : > { %8615 = vmatprep.mubr.msk.f32.mxu1 %vm1019_vm1, %v3629_v32 }
 0x95b   : > { %8616 = vmatmul.mubr.msk.f32.vlgmr.msra.gmra.mrb[84].mxu1 %vm1019_vm1, %v3630_v4 }
 0x96f   : > { %v3532_v11 = vpop.xlane.xlu1 %3531 }
 0x970   : > { %v3560_v51 = vmul.f32 0.03125, %v3532_v11  ;;  %v3529_v38 = vpop.xlane.xlu0 %3528 }
 0x971   : > { %v3559_v21 = vmul.f32 0.03125, %v3529_v38 }
 0x972   : > { %v3572_v41 = vadd.f32 1e-05, %v3560_v51 }
 0x973   : > { %v3571_v20 = vadd.f32 1e-05, %v3559_v21  ;;  %v3472_v17 = vpop.xlane.xlu1 %3471 }
 0x974   : > { %10094 = vrsqrt.f32 %v3572_v41  ;;  %v3492_v22 = vmul.f32 0.03125, %v3472_v17  ;;  %v3469_v12 = vpop.xlane.xlu0 %3468 }
 0x975   : > { %10096 = vrsqrt.f32 %v3571_v20  ;;  %v3491_v33 = vmul.f32 0.03125, %v3469_v12 }
 0x976   : > { %v12349_v15 = vsub.f32 %v12283_v37, %v3492_v22 }
 0x977   : > { %v12352_v0 = vsub.f32 %v12288_v6, %v3491_v33  ;;  %v3478_v49 = vpop.xlane.xlu1 %3477 }
 0x978   : > { %v3494_v3 = vmul.f32 0.03125, %v3478_v49  ;;  %v3475_v58 = vpop.xlane.xlu0 %3474  ;;  %v3516_v30 = vmul.f32 %v12349_v15, %v12349_v15 }
 0x979   : > { %v3493_v8 = vmul.f32 0.03125, %v3475_v58  ;;  %v3515_v36 = vmul.f32 %v12352_v0, %v12352_v0 }
 0x97a   : > { %v12359_v24 = vsub.f32 %v12293_v50, %v3494_v3  ;;  %v3542_v40 = vsel %vm1019_vm1, %v3516_v30, 0.0 }
 0x97b   : > { %v12363_v35 = vsub.f32 %v12301_v62, %v3493_v8  ;;  %v3538_v23 = vpop.xlane.xlu1 %3537  ;;  %3543 = vadd.xlane.f32.xlu1 %v3542_v40  ;;  %v3539_v1 = vsel %vm1019_vm1, %v3515_v36, 0.0 }
 0x97c   : > { %v3562_v2 = vmul.f32 0.03125, %v3538_v23  ;;  %v3535_v13 = vpop.xlane.xlu0 %3534  ;;  %3540 = vadd.xlane.f32.xlu0 %v3539_v1  ;;  %v3518_v47 = vmul.f32 %v12359_v24, %v12359_v24 }
 0x97d   : > { %v3561_v55 = vmul.f32 0.03125, %v3535_v13  ;;  %v3517_v46 = vmul.f32 %v12363_v35, %v12363_v35  ;;  %v3911_v13 = vld [vmem:[%s14032_s21 + $0x10] sm:$0xff] }
 0x97e   : > { %v10095_v52 = vpop.eup %10094  ;;  %v3574_v59 = vadd.f32 1e-05, %v3562_v2  ;;  %v3548_v9 = vsel %vm1019_vm1, %v3518_v47, 0.0  ;;  %v3909_v2 = vld [vmem:[%s14032_s21] sm:$0xff]  ;;  %v3912_v47 = vld [vmem:[%s14032_s21 + $0x18] sm:$0xff] }
 0x97f   : > { %v10097_v56 = vpop.eup %10096  ;;  %v3573_v16 = vadd.f32 1e-05, %v3561_v55  ;;  %3549 = vadd.xlane.f32.xlu1 %v3548_v9  ;;  %v3484_v53 = vpop.xlane.xlu1 %3483  ;;  %v3545_v31 = vsel %vm1019_vm1, %v3517_v46, 0.0  ;;  %v3596_v32 = vmul.f32 %v10095_v52, %v12272_v18  ;;  %v9590_v55 = vpack.c.bf16 %v3912_v47, %v3911_v13  ;;  %v3913_v46 = vld [vmem:[%s14032_s21 + $0x20] sm:$0xff]  ;;  %v3914_v52 = vld [vmem:[%s14032_s21 + $0x28] sm:$0xff]  ;;  %v3915_v9 = vld [vmem:[%s14032_s21 + $0x30] sm:$0xff] }
 0x980   : > { %10098 = vrsqrt.f32 %v3574_v59  ;;  %v3496_v4 = vmul.f32 0.03125, %v3484_v53  ;;  %3546 = vadd.xlane.f32.xlu0 %v3545_v31  ;;  %v3481_v11 = vpop.xlane.xlu0 %3480  ;;  %v3595_v51 = vmul.f32 %v10097_v56, %v12276_v28  ;;  %v9594_v59 = vpack.c.bf16 %v3914_v52, %v3913_v46  ;;  %v3916_v56 = vld [vmem:[%s14032_s21 + $0x38] sm:$0xff]  ;;  %v3917_v53 = vld [vmem:[%s14032_s21 + $0x40] sm:$0xff]  ;;  %v3918_v31 = vld [vmem:[%s14032_s21 + $0x48] sm:$0xff] }
 0x981   : > { %10100 = vrsqrt.f32 %v3573_v16  ;;  %v3495_v38 = vmul.f32 0.03125, %v3481_v11  ;;  %v3614_v21 = vmul.f32 %v12333_v61, %v3596_v32  ;;  %v9598_v16 = vpack.c.bf16 %v3916_v56, %v3915_v9  ;;  %v3920_v11 = vld [vmem:[%s14032_s21 + $0x58] sm:$0xff] }
 0x982   : > { %v12376_v41 = vsub.f32 %v12319_v45, %v3496_v4  ;;  %v3613_v20 = vmul.f32 %v12333_v61, %v3595_v51  ;;  %v9602_v32 = vpack.c.bf16 %v3918_v31, %v3917_v53  ;;  %v3919_v4 = vld [vmem:[%s14032_s21 + $0x50] sm:$0xff] }
 0x983   : > { %v12380_v17 = vsub.f32 %v12323_v14, %v3495_v38  ;;  %v3632_v12 = vadd.f32 %v12340_v60, %v3614_v21  ;;  %v9606_v51 = vpack.c.bf16 %v3920_v11, %v3919_v4  ;;  %v3921_v38 = vld [vmem:[%s14032_s21 + $0x60] sm:$0xff]  ;;  %v3922_v21 = vld [vmem:[%s14032_s21 + $0x68] sm:$0xff] }
 0x984   : > { %v3631_v18 = vadd.f32 %v12340_v60, %v3613_v20  ;;  %v3520_v22 = vmul.f32 %v12376_v41, %v12376_v41  ;;  %v9610_v20 = vpack.c.bf16 %v3922_v21, %v3921_v38 }
 0x985   : > { %v3519_v28 = vmul.f32 %v12380_v17, %v12380_v17 }
 0x986   : > { %8618 = vmatprep.mubr.msk.f32.mxu1 %vm1019_vm1, %v3631_v18  ;;  %v3554_v33 = vsel %vm1019_vm1, %v3520_v22, 0.0  ;;  %v3923_v18 = vld [vmem:[%s14032_s21 + $0x70] sm:$0xff]  ;;  %v3924_v22 = vld [vmem:[%s14032_s21 + $0x78] sm:$0xff] }
 0x987   : > { %8619 = vmatmul.mubr.msk.f32.gmra.mrb[86].mxu1 %vm1019_vm1, %v3632_v12  ;;  %3555 = vadd.xlane.f32.xlu1 %v3554_v33  ;;  %v3551_v49 = vsel %vm1019_vm1, %v3519_v28, 0.0  ;;  %v9614_v12 = vpack.c.bf16 %v3924_v22, %v3923_v18 }
 0x988   : > { %3552 = vadd.xlane.f32.xlu0 %v3551_v49 }
 0x98a   : > { %v10099_v3 = vpop.eup %10098 }
 0x98b   : > { %v10101_v58 = vpop.eup %10100  ;;  %v3598_v30 = vmul.f32 %v10099_v3, %v12296_v34  ;;  %v3910_v34 = vld [vmem:[%s14032_s21 + $0x8] sm:$0xff] }
 0x98c   : > { %v3597_v8 = vmul.f32 %v10101_v58, %v12304_v42  ;;  %v9586_v42 = vpack.c.bf16 %v3910_v34, %v3909_v2 }
 0x98d   : > { %v3616_v36 = vmul.f32 %v12333_v61, %v3598_v30 }
 0x98e   : > { %v3615_v40 = vmul.f32 %v12333_v61, %v3597_v8  ;;  %9587 = vmatprep.subr.bf16.mxu0 %v9586_v42  ;;  %9936 = vmatprep.subr.bf16.mxu1 %v9586_v42 }
 0x98f   : > { %v3634_v1 = vadd.f32 %v12340_v60, %v3616_v36  ;;  %9589 = vmatpush3.bf16.msra.mxu0 %v9586_v42  ;;  %9944 = vmatpush3.bf16.msra.mxu1 %v9586_v42 }
 0x990   : > { %v3633_v23 = vadd.f32 %v12340_v60, %v3615_v40  ;;  %9591 = vmatprep.subr.bf16.mxu0 %v9590_v55  ;;  %9937 = vmatprep.subr.bf16.mxu1 %v9590_v55 }
 0x992   : > { %8621 = vmatprep.mubr.msk.f32.mxu1 %vm1019_vm1, %v3633_v23 }
 0x993   : > { %8622 = vmatmul.mubr.msk.f32.gmra.mrb[88].mxu1 %vm1019_vm1, %v3634_v1  ;;  %9593 = vmatpush3.bf16.msra.mxu0 %v9590_v55 }
 0x994   : > { %9945 = vmatpush3.bf16.msra.mxu1 %v9590_v55  ;;  %9595 = vmatprep.subr.bf16.mxu0 %v9594_v59 }
 0x995   : > { %9938 = vmatprep.subr.bf16.mxu1 %v9594_v59 }
 0x997   : > { %9597 = vmatpush3.bf16.msra.mxu0 %v9594_v59 }
 0x998   : > { %9946 = vmatpush3.bf16.msra.mxu1 %v9594_v59  ;;  %9599 = vmatprep.subr.bf16.mxu0 %v9598_v16 }
 0x999   : > { %9939 = vmatprep.subr.bf16.mxu1 %v9598_v16 }
 0x99b   : > { %9601 = vmatpush3.bf16.msra.mxu0 %v9598_v16 }
 0x99c   : > { %9947 = vmatpush3.bf16.msra.mxu1 %v9598_v16  ;;  %9603 = vmatprep.subr.bf16.mxu0 %v9602_v32 }
 0x99d   : > { %9940 = vmatprep.subr.bf16.mxu1 %v9602_v32 }
 0x99f   : > { %9605 = vmatpush3.bf16.msra.mxu0 %v9602_v32 }
 0x9a0   : > { %9948 = vmatpush3.bf16.msra.mxu1 %v9602_v32  ;;  %9607 = vmatprep.subr.bf16.mxu0 %v9606_v51 }
 0x9a1   : > { %9941 = vmatprep.subr.bf16.mxu1 %v9606_v51 }
 0x9a3   : > { %9609 = vmatpush3.bf16.msra.mxu0 %v9606_v51 }
 0x9a4   : > { %9949 = vmatpush3.bf16.msra.mxu1 %v9606_v51  ;;  %9611 = vmatprep.subr.bf16.mxu0 %v9610_v20 }
 0x9a5   : > { %9942 = vmatprep.subr.bf16.mxu1 %v9610_v20 }
 0x9a7   : > { %9613 = vmatpush3.bf16.msra.mxu0 %v9610_v20 }
 0x9a8   : > { %9950 = vmatpush3.bf16.msra.mxu1 %v9610_v20  ;;  %9615 = vmatprep.subr.bf16.mxu0 %v9614_v12 }
 0x9a9   : > { %9943 = vmatprep.subr.bf16.mxu1 %v9614_v12 }
 0x9ab   : > { %9617 = vmatpush3.bf16.msra.mxu0 %v9614_v12 }
 0x9ac   : > { %9951 = vmatpush3.bf16.msra.mxu1 %v9614_v12 }
 0xa08   : > { %v3544_v28 = vpop.xlane.xlu1 %3543 }
 0xa09   : > { %v3564_v33 = vmul.f32 0.03125, %v3544_v28  ;;  %v3541_v49 = vpop.xlane.xlu0 %3540 }
 0xa0a   : > { %v3563_v3 = vmul.f32 0.03125, %v3541_v49 }
 0xa0b   : > { %v3576_v58 = vadd.f32 1e-05, %v3564_v33 }
 0xa0c   : > { %v3575_v30 = vadd.f32 1e-05, %v3563_v3  ;;  %v3550_v8 = vpop.xlane.xlu1 %3549  ;;  %v12475_v3 = vld [vmem:[%s14031_s20] ss:$0 sm:$0xff] }
 0xa0d   : > { %10102 = vrsqrt.f32 %v3576_v58  ;;  %v3566_v36 = vmul.f32 0.03125, %v3550_v8  ;;  %v3547_v40 = vpop.xlane.xlu0 %3546 }
 0xa0e   : > { %10104 = vrsqrt.f32 %v3575_v30  ;;  %v3565_v23 = vmul.f32 0.03125, %v3547_v40 }
 0xa0f   : > { %v3578_v1 = vadd.f32 1e-05, %v3566_v36 }
 0xa10   : > { %v3577_v2 = vadd.f32 1e-05, %v3565_v23 }
 0xa11   : > { %10106 = vrsqrt.f32 %v3578_v1 }
 0xa12   : > { %10108 = vrsqrt.f32 %v3577_v2 }
 0xa14   : > { %v3556_v34 = vpop.xlane.xlu1 %3555 }
 0xa15   : > { %v3568_v42 = vmul.f32 0.03125, %v3556_v34  ;;  %v3553_v13 = vpop.xlane.xlu0 %3552 }
 0xa16   : > { %v3567_v47 = vmul.f32 0.03125, %v3553_v13 }
 0xa17   : > { %v10103_v55 = vpop.eup %10102  ;;  %v3580_v46 = vadd.f32 1e-05, %v3568_v42 }
 0xa18   : > { %v10105_v52 = vpop.eup %10104  ;;  %v3579_v59 = vadd.f32 1e-05, %v3567_v47  ;;  %v3600_v9 = vmul.f32 %v10103_v55, %v12349_v15 }
 0xa19   : > { %10110 = vrsqrt.f32 %v3580_v46  ;;  %v3599_v56 = vmul.f32 %v10105_v52, %v12352_v0 }
 0xa1a   : > { %10112 = vrsqrt.f32 %v3579_v59  ;;  %v3618_v16 = vmul.f32 %v12333_v61, %v3600_v9 }
 0xa1b   : > { %v10107_v53 = vpop.eup %10106  ;;  %v3617_v31 = vmul.f32 %v12333_v61, %v3599_v56 }
 0xa1c   : > { %v10109_v32 = vpop.eup %10108  ;;  %v3602_v4 = vmul.f32 %v10107_v53, %v12359_v24  ;;  %v3636_v38 = vadd.f32 %v12340_v60, %v3618_v16 }
 0xa1d   : > { %v3635_v11 = vadd.f32 %v12340_v60, %v3617_v31  ;;  %v3601_v51 = vmul.f32 %v10109_v32, %v12363_v35 }
 0xa1e   : > { %v3620_v15 = vmul.f32 %v12333_v61, %v3602_v4 }
 0xa1f   : > { %8624 = vmatprep.mubr.msk.f32.mxu1 %vm1019_vm1, %v3635_v11  ;;  %v3619_v0 = vmul.f32 %v12333_v61, %v3601_v51 }
 0xa20   : > { %8625 = vmatmul.mubr.msk.f32.gmra.mrb[90].mxu1 %vm1019_vm1, %v3636_v38  ;;  %v3638_v20 = vadd.f32 %v12340_v60, %v3620_v15 }
 0xa21   : > { %v3637_v21 = vadd.f32 %v12340_v60, %v3619_v0 }
 0xa23   : > { %v10111_v18 = vpop.eup %10110  ;;  %8627 = vmatprep.mubr.msk.f32.mxu1 %vm1019_vm1, %v3637_v21 }
 0xa24   : > { %v10113_v24 = vpop.eup %10112  ;;  %8628 = vmatmul.mubr.msk.f32.gmra.mrb[92].mxu1 %vm1019_vm1, %v3638_v20  ;;  %v3604_v35 = vmul.f32 %v10111_v18, %v12376_v41 }
 0xa25   : > { %v3603_v22 = vmul.f32 %v10113_v24, %v12380_v17 }
 0xa26   : > { %v3622_v12 = vmul.f32 %v12333_v61, %v3604_v35 }
 0xa27   : > { %v3621_v28 = vmul.f32 %v12333_v61, %v3603_v22 }
 0xa28   : > { %v3640_v49 = vadd.f32 %v12340_v60, %v3622_v12 }
 0xa29   : > { %v3639_v33 = vadd.f32 %v12340_v60, %v3621_v28 }
 0xa2b   : > { %8630 = vmatprep.mubr.msk.f32.mxu1 %vm1019_vm1, %v3639_v33 }
 0xa2c   : > { %8631 = vmatmul.mubr.msk.f32.gmra.mrb[94].mxu1 %vm1019_vm1, %v3640_v49 }
 0xa2e   : > { %v8617_v41 = vpop.f32.mrb[84].mxu1 }
 0xa2f   : > { %v3760_v17 = vadd.f32 %v8617_v41, %v12475_v3  ;;  %v3754_v58 = vpop.f32.mrb[85].mxu1 }
 0xa30   : > { %v3755_v30 = vadd.f32 %v12475_v3, %v3754_v58 }
 0xa31   : > { %v7294_v61 = vmul.f32 -1.702, %v3760_v17 }
 0xa32   : > { %v7293_v8 = vmul.f32 -1.702, %v3755_v30 }
 0xa33   : > { %v3839_v36 = vmul.f32 1.442695, %v7294_v61 }
 0xa34   : > { %v3837_v40 = vmul.f32 1.442695, %v7293_v8 }
 0xa35   : > { %10114 = vpow2.f32 %v3839_v36 }
 0xa36   : > { %10116 = vpow2.f32 %v3837_v40 }
 0xa3f   : > { %v10115_v60 = vpop.eup %10114 }
 0xa40   : > { %v10117_v23 = vpop.eup %10116  ;;  %v3862_v1 = vadd.f32 1.0, %v10115_v60 }
 0xa41   : > { %v3861_v2 = vadd.f32 1.0, %v10117_v23 }
 0xa42   : > { %10118 = vrcp.f32 %v3862_v1 }
 0xa43   : > { %10120 = vrcp.f32 %v3861_v2 }
 0xa4c   : > { %v10119_v34 = vpop.eup %10118 }
 0xa4d   : > { %v10121_v42 = vpop.eup %10120  ;;  %v3898_v47 = vmul.f32 %v10119_v34, %v3760_v17 }
 0xa4e   : > { %v3897_v13 = vmul.f32 %v10121_v42, %v3755_v30 }
 0xa50   : > { %8665 = vmatprep.mubr.f32.mxu0 %v3897_v13 }
 0xa51   : > { %8666 = vmatmul.mubr.f32.vlgmr.msra.gmra.mrb[60].mxu0 %v3898_v47 }
 0xa5a   : > { %v8620_v55 = vpop.f32.mrb[86].mxu1 }
 0xa5b   : > { %v3770_v46 = vadd.f32 %v8620_v55, %v12475_v3  ;;  %v3764_v52 = vpop.f32.mrb[87].mxu1 }
 0xa5c   : > { %v3765_v59 = vadd.f32 %v12475_v3, %v3764_v52 }
 0xa5d   : > { %v7296_v9 = vmul.f32 -1.702, %v3770_v46 }
 0xa5e   : > { %v7295_v56 = vmul.f32 -1.702, %v3765_v59 }
 0xa5f   : > { %v3843_v16 = vmul.f32 1.442695, %v7296_v9 }
 0xa60   : > { %v3841_v53 = vmul.f32 1.442695, %v7295_v56 }
 0xa61   : > { %10122 = vpow2.f32 %v3843_v16 }
 0xa62   : > { %10124 = vpow2.f32 %v3841_v53 }
 0xa66   : > { %v8623_v31 = vpop.f32.mrb[88].mxu1 }
 0xa67   : > { %v3780_v32 = vadd.f32 %v8623_v31, %v12475_v3  ;;  %v3774_v4 = vpop.f32.mrb[89].mxu1 }
 0xa68   : > { %v3775_v11 = vadd.f32 %v12475_v3, %v3774_v4 }
 0xa69   : > { %v7298_v51 = vmul.f32 -1.702, %v3780_v32 }
 0xa6a   : > { %v7297_v38 = vmul.f32 -1.702, %v3775_v11 }
 0xa6b   : > { %v10123_v15 = vpop.eup %10122  ;;  %v3847_v0 = vmul.f32 1.442695, %v7298_v51 }
 0xa6c   : > { %v10125_v21 = vpop.eup %10124  ;;  %v3864_v20 = vadd.f32 1.0, %v10123_v15  ;;  %v3845_v18 = vmul.f32 1.442695, %v7297_v38 }
 0xa6d   : > { %v3863_v24 = vadd.f32 1.0, %v10125_v21  ;;  %10126 = vpow2.f32 %v3847_v0 }
 0xa6e   : > { %10128 = vrcp.f32 %v3864_v20 }
 0xa6f   : > { %10130 = vrcp.f32 %v3863_v24 }
 0xa70   : > { %10132 = vpow2.f32 %v3845_v18 }
 0xa77   : > { %v10127_v35 = vpop.eup %10126 }
 0xa78   : > { %v10129_v22 = vpop.eup %10128  ;;  %v3866_v12 = vadd.f32 1.0, %v10127_v35 }
 0xa79   : > { %v10131_v28 = vpop.eup %10130  ;;  %v3900_v41 = vmul.f32 %v10129_v22, %v3770_v46 }
 0xa7a   : > { %v10133_v33 = vpop.eup %10132  ;;  %v3899_v49 = vmul.f32 %v10131_v28, %v3765_v59  ;;  %10134 = vrcp.f32 %v3866_v12 }
 0xa7b   : > { %v3865_v17 = vadd.f32 1.0, %v10133_v33 }
 0xa7c   : > { %8668 = vmatprep.mubr.f32.mxu0 %v3899_v49 }
 0xa7d   : > { %10136 = vrcp.f32 %v3865_v17  ;;  %8669 = vmatmul.mubr.f32.gmra.mrb[62].mxu0 %v3900_v41 }
 0xa84   : > { %v10135_v58 = vpop.eup %10134 }
 0xa85   : > { %v3902_v8 = vmul.f32 %v10135_v58, %v3780_v32 }
 0xa87   : > { %v10137_v30 = vpop.eup %10136 }
 0xa88   : > { %v3901_v61 = vmul.f32 %v10137_v30, %v3775_v11 }
 0xa8a   : > { %8671 = vmatprep.mubr.f32.mxu0 %v3901_v61 }
 0xa8b   : > { %8672 = vmatmul.mubr.f32.gmra.mrb[64].mxu0 %v3902_v8 }
 0xaf3   : > { %v8626_v36 = vpop.f32.mrb[90].mxu1 }
 0xaf4   : > { %v3790_v40 = vadd.f32 %v8626_v36, %v12475_v3  ;;  %v3784_v60 = vpop.f32.mrb[91].mxu1 }
 0xaf5   : > { %v3785_v23 = vadd.f32 %v12475_v3, %v3784_v60 }
 0xaf6   : > { %v7300_v1 = vmul.f32 -1.702, %v3790_v40 }
 0xaf7   : > { %v7299_v2 = vmul.f32 -1.702, %v3785_v23  ;;  %v8629_v34 = vpop.f32.mrb[92].mxu1 }
 0xaf8   : > { %v3851_v42 = vmul.f32 1.442695, %v7300_v1  ;;  %v3800_v13 = vadd.f32 %v8629_v34, %v12475_v3  ;;  %v3794_v47 = vpop.f32.mrb[93].mxu1 }
 0xaf9   : > { %v3849_v55 = vmul.f32 1.442695, %v7299_v2  ;;  %v3795_v46 = vadd.f32 %v12475_v3, %v3794_v47 }
 0xafa   : > { %10138 = vpow2.f32 %v3851_v42  ;;  %v7302_v52 = vmul.f32 -1.702, %v3800_v13 }
 0xafb   : > { %10140 = vpow2.f32 %v3849_v55  ;;  %v7301_v59 = vmul.f32 -1.702, %v3795_v46 }
 0xafc   : > { %v3855_v9 = vmul.f32 1.442695, %v7302_v52 }
 0xafd   : > { %v3853_v56 = vmul.f32 1.442695, %v7301_v59 }
 0xafe   : > { %10142 = vpow2.f32 %v3855_v9 }
 0xaff   : > { %10144 = vpow2.f32 %v3853_v56  ;;  %v8632_v16 = vpop.f32.mrb[94].mxu1 }
 0xb00   : > { %v3810_v53 = vadd.f32 %v8632_v16, %v12475_v3  ;;  %v3804_v31 = vpop.f32.mrb[95].mxu1 }
 0xb01   : > { %v3805_v32 = vadd.f32 %v12475_v3, %v3804_v31 }
 0xb02   : > { %v7304_v4 = vmul.f32 -1.702, %v3810_v53 }
 0xb03   : > { %v7303_v11 = vmul.f32 -1.702, %v3805_v32 }
 0xb04   : > { %v10139_v51 = vpop.eup %10138  ;;  %v3859_v38 = vmul.f32 1.442695, %v7304_v4 }
 0xb05   : > { %v10141_v15 = vpop.eup %10140  ;;  %v3868_v0 = vadd.f32 1.0, %v10139_v51  ;;  %v3857_v21 = vmul.f32 1.442695, %v7303_v11 }
 0xb06   : > { %v3867_v20 = vadd.f32 1.0, %v10141_v15  ;;  %10146 = vpow2.f32 %v3859_v38 }
 0xb07   : > { %10148 = vrcp.f32 %v3868_v0 }
 0xb08   : > { %v10143_v18 = vpop.eup %10142  ;;  %10150 = vrcp.f32 %v3867_v20 }
 0xb09   : > { %v10145_v24 = vpop.eup %10144  ;;  %v3870_v35 = vadd.f32 1.0, %v10143_v18  ;;  %10152 = vpow2.f32 %v3857_v21 }
 0xb0a   : > { %v3869_v22 = vadd.f32 1.0, %v10145_v24 }
 0xb0b   : > { %10154 = vrcp.f32 %v3870_v35 }
 0xb0c   : > { %10156 = vrcp.f32 %v3869_v22 }
 0xb10   : > { %v10147_v12 = vpop.eup %10146 }
 0xb11   : > { %v10149_v3 = vpop.eup %10148  ;;  %v3872_v28 = vadd.f32 1.0, %v10147_v12 }
 0xb12   : > { %v10151_v33 = vpop.eup %10150  ;;  %v3904_v17 = vmul.f32 %v10149_v3, %v3790_v40  ;;  %v12492_v40 = vld [vmem:[%s14033_s22] ss:$0 sm:$0xff] }
 0xb13   : > { %v10153_v49 = vpop.eup %10152  ;;  %v3903_v41 = vmul.f32 %v10151_v33, %v3785_v23  ;;  %10158 = vrcp.f32 %v3872_v28  ;;  %v7310_v28 = vld [vmem:[%s14210_s9 + $0x20] sm:$0xff]  ;;  %v7311_v33 = vld [vmem:[%s14210_s9 + $0x28] sm:$0xff] }
 0xb14   : > { %v3871_v58 = vadd.f32 1.0, %v10153_v49  ;;  %v7328_v49 = vld [vmem:[%s14022_s11 + $0x20] sm:$0xff] }
 0xb15   : > { %v10155_v30 = vpop.eup %10154  ;;  %8674 = vmatprep.mubr.f32.mxu0 %v3903_v41  ;;  %v9618_v41 = vpack.c.bf16 %v7311_v33, %v7310_v28 }
 0xb16   : > { %v10157_v61 = vpop.eup %10156  ;;  %10160 = vrcp.f32 %v3871_v58  ;;  %8675 = vmatmul.mubr.f32.gmra.mrb[66].mxu0 %v3904_v17  ;;  %v3906_v36 = vmul.f32 %v10155_v30, %v3800_v13  ;;  %v7329_v17 = vld [vmem:[%s14022_s11 + $0x28] sm:$0xff]  ;;  %v7312_v30 = vld [vmem:[%s14210_s9 + $0x30] sm:$0xff] }
 0xb17   : > { %v3905_v8 = vmul.f32 %v10157_v61, %v3795_v46  ;;  %v9626_v58 = vpack.c.bf16 %v7329_v17, %v7328_v49  ;;  %9619 = vmatprep.subr.bf16.mxu1 %v9618_v41  ;;  %v7313_v61 = vld [vmem:[%s14210_s9 + $0x38] sm:$0xff] }
 0xb19   : > { %8677 = vmatprep.mubr.f32.mxu1 %v3905_v8  ;;  %9627 = vmatprep.subr.bf16.mxu0 %v9626_v58  ;;  %v7330_v8 = vld [vmem:[%s14022_s11 + $0x30] sm:$0xff] }
 0xb1a   : > { %8678 = vmatmul.mubr.f32.vlgmr.msra.gmra.mrb[96].mxu1 %v3906_v36  ;;  %9629 = vmatpush3.bf16.msra.mxu0 %v9626_v58  ;;  %v9622_v36 = vpack.c.bf16 %v7313_v61, %v7312_v30 }
 0xb1b   : > { %9621 = vmatpush3.bf16.msra.mxu1 %v9618_v41 }
 0xb1c   : > { %9623 = vmatprep.subr.bf16.mxu1 %v9622_v36 }
 0xb1d   : > { %v10159_v60 = vpop.eup %10158 }
 0xb1e   : > { %v3908_v34 = vmul.f32 %v10159_v60, %v3810_v53  ;;  %v7331_v60 = vld [vmem:[%s14022_s11 + $0x38] sm:$0xff] }
 0xb1f   : > { %9625 = vmatpush3.bf16.msra.mxu1 %v9622_v36 }
 0xb20   : > { %v10161_v1 = vpop.eup %10160 }
 0xb21   : > { %v3907_v2 = vmul.f32 %v10161_v1, %v3805_v32  ;;  %v9630_v1 = vpack.c.bf16 %v7331_v60, %v7330_v8 }
 0xb23   : > { %8680 = vmatprep.mubr.f32.mxu1 %v3907_v2  ;;  %9631 = vmatprep.subr.bf16.mxu0 %v9630_v1 }
 0xb24   : > { %8681 = vmatmul.mubr.f32.gmra.mrb[98].mxu1 %v3908_v34  ;;  %v8667_v42 = vpop.f32.mrb[60].mxu0  ;;  %9633 = vmatpush3.bf16.msra.mxu0 %v9630_v1 }
 0xb25   : > { %v4051_v23 = vadd.f32 %v8667_v42, %v12213_v39  ;;  %v3991_v47 = vpop.f32.mrb[61].mxu0  ;;  %9642 = vmatprep.subr.bf16.mxu0 %v14225_v19 }
 0xb26   : > { %v4050_v55 = vadd.f32 %v3991_v47, %v12216_v48 }
 0xb27   : > { %v12497_v13 = vadd.f32 %v12492_v40, %v4051_v23 }
 0xb28   : > { %v12500_v46 = vadd.f32 %v12492_v40, %v4050_v55 }
 0xb29   : > { %14392 = vst [vmem:[#allocation35_spill] sm:$0xff] %v12497_v13  ;;  %v4088_v52 = vsel %vm1019_vm1, %v12497_v13, 0.0 }
 0xb2a   : > { %14393 = vst [vmem:[#allocation40_spill] sm:$0xff] %v12500_v46  ;;  %4089 = vadd.xlane.f32.xlu1 %v4088_v52  ;;  %v4085_v59 = vsel %vm1019_vm1, %v12500_v46, 0.0 }
 0xb2b   : > { %4086 = vadd.xlane.f32.xlu0 %v4085_v59 }
 0xb50   : > { %v8670_v9 = vpop.f32.mrb[62].mxu0 }
 0xb51   : > { %v4053_v39 = vadd.f32 %v8670_v9, %v12225_v54  ;;  %v4001_v56 = vpop.f32.mrb[63].mxu0 }
 0xb52   : > { %v4052_v48 = vadd.f32 %v4001_v56, %v12228_v25 }
 0xb53   : > { %v12509_v16 = vadd.f32 %v12492_v40, %v4053_v39 }
 0xb54   : > { %v12512_v53 = vadd.f32 %v12492_v40, %v4052_v48 }
 0xb55   : > { %14394 = vst [vmem:[#allocation41_spill] sm:$0xff] %v12509_v16  ;;  %v4094_v31 = vsel %vm1019_vm1, %v12509_v16, 0.0 }
 0xb56   : > { %14395 = vst [vmem:[#allocation32_spill] sm:$0xff] %v12512_v53  ;;  %4095 = vadd.xlane.f32.xlu1 %v4094_v31  ;;  %v4091_v32 = vsel %vm1019_vm1, %v12512_v53, 0.0 }
 0xb57   : > { %4092 = vadd.xlane.f32.xlu0 %v4091_v32 }
 0xb5e   : > { %v8673_v4 = vpop.f32.mrb[64].mxu0 }
 0xb5f   : > { %v4055_v54 = vadd.f32 %v8673_v4, %v12237_v7  ;;  %v4011_v11 = vpop.f32.mrb[65].mxu0 }
 0xb60   : > { %v4054_v25 = vadd.f32 %v4011_v11, %v12240_v29 }
 0xb61   : > { %v12521_v51 = vadd.f32 %v12492_v40, %v4055_v54 }
 0xb62   : > { %v12524_v38 = vadd.f32 %v12492_v40, %v4054_v25 }
 0xb63   : > { %14396 = vst [vmem:[#allocation25_spill] sm:$0xff] %v12521_v51  ;;  %v4100_v15 = vsel %vm1019_vm1, %v12521_v51, 0.0 }
 0xb64   : > { %14397 = vst [vmem:[#allocation48_spill] sm:$0xff] %v12524_v38  ;;  %4101 = vadd.xlane.f32.xlu1 %v4100_v15  ;;  %v4097_v0 = vsel %vm1019_vm1, %v12524_v38, 0.0 }
 0xb65   : > { %4098 = vadd.xlane.f32.xlu0 %v4097_v0 }
 0xbb7   : > { %v4090_v21 = vpop.xlane.xlu1 %4089 }
 0xbb8   : > { %v4122_v20 = vmul.f32 0.03125, %v4090_v21  ;;  %v4087_v7 = vpop.xlane.xlu0 %4086 }
 0xbb9   : > { %v4121_v18 = vmul.f32 0.03125, %v4087_v7 }
 0xbba   : > { %v12531_v29 = vsub.f32 %v12497_v13, %v4122_v20 }
 0xbbb   : > { %v12534_v24 = vsub.f32 %v12500_v46, %v4121_v18 }
 0xbbc   : > { %v4146_v35 = vmul.f32 %v12531_v29, %v12531_v29 }
 0xbbd   : > { %v4145_v22 = vmul.f32 %v12534_v24, %v12534_v24 }
 0xbbe   : > { %v4160_v12 = vsel %vm1019_vm1, %v4146_v35, 0.0 }
 0xbbf   : > { %4161 = vadd.xlane.f32.xlu1 %v4160_v12  ;;  %v4157_v3 = vsel %vm1019_vm1, %v4145_v22, 0.0 }
 0xbc0   : > { %4158 = vadd.xlane.f32.xlu0 %v4157_v3 }
 0xbe3   : > { %v4096_v2 = vpop.xlane.xlu1 %4095 }
 0xbe4   : > { %v4124_v34 = vmul.f32 0.03125, %v4096_v2  ;;  %v4093_v42 = vpop.xlane.xlu0 %4092 }
 0xbe5   : > { %v4123_v23 = vmul.f32 0.03125, %v4093_v42 }
 0xbe6   : > { %v12567_v47 = vsub.f32 %v12509_v16, %v4124_v34 }
 0xbe7   : > { %v12571_v55 = vsub.f32 %v12512_v53, %v4123_v23 }
 0xbe8   : > { %v4148_v52 = vmul.f32 %v12567_v47, %v12567_v47 }
 0xbe9   : > { %v8676_v59 = vpop.f32.mrb[66].mxu0  ;;  %v4147_v9 = vmul.f32 %v12571_v55, %v12571_v55 }
 0xbea   : > { %v4057_v39 = vadd.f32 %v8676_v59, %v12283_v37  ;;  %v4021_v56 = vpop.f32.mrb[67].mxu0  ;;  %v4166_v48 = vsel %vm1019_vm1, %v4148_v52, 0.0 }
 0xbeb   : > { %v4056_v31 = vadd.f32 %v4021_v56, %v12288_v6  ;;  %4167 = vadd.xlane.f32.xlu1 %v4166_v48  ;;  %v4163_v32 = vsel %vm1019_vm1, %v4147_v9, 0.0  ;;  %v12637_v56 = vld [vmem:[%s14212_s0 + $0x1] ss:$0 sm:$0xff]  ;;  %s787_s0 = scalar_lea.vmem [#allocation2], %s7122_s24 }
 0xbec   : > { %v12582_v4 = vadd.f32 %v12492_v40, %v4057_v39  ;;  %4164 = vadd.xlane.f32.xlu0 %v4163_v32 }
 0xbed   : > { %v12585_v54 = vadd.f32 %v12492_v40, %v4056_v31  ;;  %v8679_v11 = vpop.f32.mrb[96].mxu1 }
 0xbee   : > { %14398 = vst [vmem:[#allocation36_spill] sm:$0xff] %v12582_v4  ;;  %v4059_v25 = vadd.f32 %v8679_v11, %v12293_v50  ;;  %v4031_v15 = vpop.f32.mrb[97].mxu1  ;;  %v4106_v37 = vsel %vm1019_vm1, %v12582_v4, 0.0 }
 0xbef   : > { %14399 = vst [vmem:[#allocation24_spill] sm:$0xff] %v12585_v54  ;;  %v4058_v0 = vadd.f32 %v4031_v15, %v12301_v62  ;;  %4107 = vadd.xlane.f32.xlu1 %v4106_v37  ;;  %v4103_v6 = vsel %vm1019_vm1, %v12585_v54, 0.0 }
 0xbf0   : > { %v12594_v21 = vadd.f32 %v12492_v40, %v4059_v25  ;;  %4104 = vadd.xlane.f32.xlu0 %v4103_v6 }
 0xbf1   : > { %v12597_v20 = vadd.f32 %v12492_v40, %v4058_v0  ;;  %v4102_v7 = vpop.xlane.xlu1 %4101 }
 0xbf2   : > { %14400 = vst [vmem:[#allocation27_spill] sm:$0xff] %v12594_v21  ;;  %v4126_v18 = vmul.f32 0.03125, %v4102_v7  ;;  %v4099_v50 = vpop.xlane.xlu0 %4098  ;;  %v4112_v35 = vsel %vm1019_vm1, %v12594_v21, 0.0 }
 0xbf3   : > { %14401 = vst [vmem:[#allocation37_spill] sm:$0xff] %v12597_v20  ;;  %v4125_v22 = vmul.f32 0.03125, %v4099_v50  ;;  %4113 = vadd.xlane.f32.xlu1 %v4112_v35  ;;  %v4109_v62 = vsel %vm1019_vm1, %v12597_v20, 0.0 }
 0xbf4   : > { %v12604_v12 = vsub.f32 %v12521_v51, %v4126_v18  ;;  %4110 = vadd.xlane.f32.xlu0 %v4109_v62 }
 0xbf5   : > { %v12607_v3 = vsub.f32 %v12524_v38, %v4125_v22 }
 0xbf6   : > { %v4150_v28 = vmul.f32 %v12604_v12, %v12604_v12 }
 0xbf7   : > { %v8682_v33 = vpop.f32.mrb[98].mxu1  ;;  %v4149_v49 = vmul.f32 %v12607_v3, %v12607_v3 }
 0xbf8   : > { %v4061_v41 = vadd.f32 %v8682_v33, %v12319_v45  ;;  %v4041_v17 = vpop.f32.mrb[99].mxu1  ;;  %v4172_v58 = vsel %vm1019_vm1, %v4150_v28, 0.0 }
 0xbf9   : > { %v4060_v30 = vadd.f32 %v4041_v17, %v12323_v14  ;;  %4173 = vadd.xlane.f32.xlu1 %v4172_v58  ;;  %v4169_v61 = vsel %vm1019_vm1, %v4149_v49, 0.0 }
 0xbfa   : > { %v12618_v8 = vadd.f32 %v12492_v40, %v4061_v41  ;;  %4170 = vadd.xlane.f32.xlu0 %v4169_v61 }
 0xbfb   : > { %v12621_v36 = vadd.f32 %v12492_v40, %v4060_v30  ;;  %v12630_v40 = vld [vmem:[%s14211_s30 + $0x1] ss:$0 sm:$0xff] }
 0xbfc   : > { %14402 = vst [vmem:[#allocation44_spill] sm:$0xff] %v12618_v8  ;;  %v4118_v60 = vsel %vm1019_vm1, %v12618_v8, 0.0 }
 0xbfd   : > { %14403 = vst [vmem:[#allocation45_spill] sm:$0xff] %v12621_v36  ;;  %4119 = vadd.xlane.f32.xlu1 %v4118_v60  ;;  %v4115_v45 = vsel %vm1019_vm1, %v12621_v36, 0.0 }
 0xbfe   : > { %4116 = vadd.xlane.f32.xlu0 %v4115_v45 }
 0xc4c   : > { %v4162_v1 = vpop.xlane.xlu1 %4161 }
 0xc4d   : > { %v4194_v14 = vmul.f32 0.03125, %v4162_v1  ;;  %v4159_v2 = vpop.xlane.xlu0 %4158 }
 0xc4e   : > { %v4193_v34 = vmul.f32 0.03125, %v4159_v2 }
 0xc4f   : > { %v4206_v42 = vadd.f32 1e-05, %v4194_v14 }
 0xc50   : > { %v4205_v23 = vadd.f32 1e-05, %v4193_v34 }
 0xc51   : > { %10162 = vrsqrt.f32 %v4206_v42 }
 0xc52   : > { %10164 = vrsqrt.f32 %v4205_v23 }
 0xc5b   : > { %v10163_v52 = vpop.eup %10162 }
 0xc5c   : > { %v10165_v59 = vpop.eup %10164  ;;  %v4230_v9 = vmul.f32 %v10163_v52, %v12531_v29 }
 0xc5d   : > { %v4229_v39 = vmul.f32 %v10165_v59, %v12534_v24 }
 0xc5e   : > { %v4248_v48 = vmul.f32 %v12630_v40, %v4230_v9 }
 0xc5f   : > { %v4247_v31 = vmul.f32 %v12630_v40, %v4229_v39 }
 0xc60   : > { %v12645_v11 = vadd.f32 %v12637_v56, %v4248_v48 }
 0xc61   : > { %v12642_v32 = vadd.f32 %v12637_v56, %v4247_v31 }
 0xc63   : > { %8691 = vmatprep.mubr.msk.f32.mxu1 %vm1019_vm1, %v12642_v32  ;;  %8717 = vmatprep.mubr.msk.f32.mxu0 %vm1019_vm1, %v12642_v32 }
 0xc64   : > { %8692 = vmatmul.mubr.msk.f32.vlgmr.msra.gmra.mrb[100].mxu1 %vm1019_vm1, %v12645_v11  ;;  %8718 = vmatmul.mubr.msk.f32.vlgmr.msra.gmra.mrb[68].mxu0 %vm1019_vm1, %v12645_v11 }
 0xc78   : > { %v4168_v29 = vpop.xlane.xlu1 %4167 }
 0xc79   : > { %v4196_v24 = vmul.f32 0.03125, %v4168_v29  ;;  %v4165_v25 = vpop.xlane.xlu0 %4164 }
 0xc7a   : > { %v4195_v15 = vmul.f32 0.03125, %v4165_v25 }
 0xc7b   : > { %v4208_v37 = vadd.f32 1e-05, %v4196_v24 }
 0xc7c   : > { %v4207_v0 = vadd.f32 1e-05, %v4195_v15  ;;  %v4108_v6 = vpop.xlane.xlu1 %4107 }
 0xc7d   : > { %10166 = vrsqrt.f32 %v4208_v37  ;;  %v4128_v7 = vmul.f32 0.03125, %v4108_v6  ;;  %v4105_v18 = vpop.xlane.xlu0 %4104 }
 0xc7e   : > { %10168 = vrsqrt.f32 %v4207_v0  ;;  %v4127_v50 = vmul.f32 0.03125, %v4105_v18 }
 0xc7f   : > { %v12656_v35 = vsub.f32 %v12582_v4, %v4128_v7 }
 0xc80   : > { %v12659_v22 = vsub.f32 %v12585_v54, %v4127_v50  ;;  %v4114_v62 = vpop.xlane.xlu1 %4113 }
 0xc81   : > { %v4130_v28 = vmul.f32 0.03125, %v4114_v62  ;;  %v4111_v33 = vpop.xlane.xlu0 %4110  ;;  %v4152_v49 = vmul.f32 %v12656_v35, %v12656_v35 }
 0xc82   : > { %v4129_v41 = vmul.f32 0.03125, %v4111_v33  ;;  %v4151_v17 = vmul.f32 %v12659_v22, %v12659_v22 }
 0xc83   : > { %v12666_v58 = vsub.f32 %v12594_v21, %v4130_v28  ;;  %v4178_v30 = vsel %vm1019_vm1, %v4152_v49, 0.0 }
 0xc84   : > { %v12670_v61 = vsub.f32 %v12597_v20, %v4129_v41  ;;  %4179 = vadd.xlane.f32.xlu1 %v4178_v30  ;;  %v4175_v60 = vsel %vm1019_vm1, %v4151_v17, 0.0 }
 0xc85   : > { %4176 = vadd.xlane.f32.xlu0 %v4175_v60  ;;  %v4154_v45 = vmul.f32 %v12666_v58, %v12666_v58 }
 0xc86   : > { %v4174_v1 = vpop.xlane.xlu1 %4173  ;;  %v4153_v14 = vmul.f32 %v12670_v61, %v12670_v61 }
 0xc87   : > { %v10167_v2 = vpop.eup %10166  ;;  %v4198_v34 = vmul.f32 0.03125, %v4174_v1  ;;  %v4171_v42 = vpop.xlane.xlu0 %4170  ;;  %v4184_v23 = vsel %vm1019_vm1, %v4154_v45, 0.0 }
 0xc88   : > { %v10169_v52 = vpop.eup %10168  ;;  %v4197_v59 = vmul.f32 0.03125, %v4171_v42  ;;  %4185 = vadd.xlane.f32.xlu1 %v4184_v23  ;;  %v4181_v9 = vsel %vm1019_vm1, %v4153_v14, 0.0  ;;  %v4232_v39 = vmul.f32 %v10167_v2, %v12567_v47  ;;  %v7349_v42 = vld [vmem:[%s14024_s13 + $0x38] sm:$0xff] }
 0xc89   : > { %v4210_v48 = vadd.f32 1e-05, %v4198_v34  ;;  %4182 = vadd.xlane.f32.xlu0 %v4181_v9  ;;  %v4231_v31 = vmul.f32 %v10169_v52, %v12571_v55  ;;  %v7348_v34 = vld [vmem:[%s14024_s13 + $0x30] sm:$0xff] }
 0xc8a   : > { %v4209_v29 = vadd.f32 1e-05, %v4197_v59  ;;  %v4120_v24 = vpop.xlane.xlu1 %4119  ;;  %v4250_v25 = vmul.f32 %v12630_v40, %v4232_v39  ;;  %v9638_v23 = vpack.c.bf16 %v7349_v42, %v7348_v34 }
 0xc8b   : > { %10170 = vrsqrt.f32 %v4210_v48  ;;  %v4132_v15 = vmul.f32 0.03125, %v4120_v24  ;;  %v4117_v37 = vpop.xlane.xlu0 %4116  ;;  %v4249_v0 = vmul.f32 %v12630_v40, %v4231_v31 }
 0xc8c   : > { %10172 = vrsqrt.f32 %v4209_v29  ;;  %v4131_v6 = vmul.f32 0.03125, %v4117_v37  ;;  %v12693_v55 = vadd.f32 %v12637_v56, %v4250_v25 }
 0xc8d   : > { %v12684_v7 = vsub.f32 %v12618_v8, %v4132_v15  ;;  %v12687_v47 = vadd.f32 %v12637_v56, %v4249_v0 }
 0xc8e   : > { %v12690_v18 = vsub.f32 %v12621_v36, %v4131_v6 }
 0xc8f   : > { %8694 = vmatprep.mubr.msk.f32.mxu1 %vm1019_vm1, %v12687_v47  ;;  %8720 = vmatprep.mubr.msk.f32.mxu0 %vm1019_vm1, %v12687_v47  ;;  %v4156_v50 = vmul.f32 %v12684_v7, %v12684_v7 }
 0xc90   : > { %8695 = vmatmul.mubr.msk.f32.gmra.mrb[102].mxu1 %vm1019_vm1, %v12693_v55  ;;  %8721 = vmatmul.mubr.msk.f32.gmra.mrb[70].mxu0 %vm1019_vm1, %v12693_v55  ;;  %v4155_v62 = vmul.f32 %v12690_v18, %v12690_v18 }
 0xc91   : > { %v4190_v28 = vsel %vm1019_vm1, %v4156_v50, 0.0 }
 0xc92   : > { %4191 = vadd.xlane.f32.xlu1 %v4190_v28  ;;  %v4187_v33 = vsel %vm1019_vm1, %v4155_v62, 0.0 }
 0xc93   : > { %4188 = vadd.xlane.f32.xlu0 %v4187_v33 }
 0xc95   : > { %v10171_v49 = vpop.eup %10170 }
 0xc96   : > { %v10173_v41 = vpop.eup %10172  ;;  %v4234_v17 = vmul.f32 %v10171_v49, %v12604_v12  ;;  %v7346_v12 = vld [vmem:[%s14024_s13 + $0x20] sm:$0xff] }
 0xc97   : > { %v4233_v30 = vmul.f32 %v10173_v41, %v12607_v3  ;;  %v7347_v3 = vld [vmem:[%s14024_s13 + $0x28] sm:$0xff] }
 0xc98   : > { %v4252_v60 = vmul.f32 %v12630_v40, %v4234_v17  ;;  %v9634_v2 = vpack.c.bf16 %v7347_v3, %v7346_v12 }
 0xc99   : > { %v4251_v45 = vmul.f32 %v12630_v40, %v4233_v30 }
 0xc9a   : > { %v12717_v14 = vadd.f32 %v12637_v56, %v4252_v60  ;;  %9635 = vmatprep.subr.bf16.mxu1 %v9634_v2 }
 0xc9b   : > { %v12714_v1 = vadd.f32 %v12637_v56, %v4251_v45  ;;  %9637 = vmatpush3.bf16.msra.mxu1 %v9634_v2 }
 0xc9c   : > { %9639 = vmatprep.subr.bf16.mxu1 %v9638_v23 }
 0xc9d   : > { %8697 = vmatprep.mubr.msk.f32.mxu1 %vm1019_vm1, %v12714_v1  ;;  %8723 = vmatprep.mubr.msk.f32.mxu0 %vm1019_vm1, %v12714_v1 }
 0xc9e   : > { %8698 = vmatmul.mubr.msk.f32.gmra.mrb[104].mxu1 %vm1019_vm1, %v12717_v14  ;;  %8724 = vmatmul.mubr.msk.f32.gmra.mrb[72].mxu0 %vm1019_vm1, %v12717_v14 }
 0xc9f   : > { %9641 = vmatpush3.bf16.msra.mxu1 %v9638_v23 }
 0xca0   : > { %9666 = vmatprep.subr.bf16.mxu1 %v14225_v19 }
 0xd11   : > { %v4180_v52 = vpop.xlane.xlu1 %4179 }
 0xd12   : > { %v4200_v59 = vmul.f32 0.03125, %v4180_v52  ;;  %v4177_v9 = vpop.xlane.xlu0 %4176 }
 0xd13   : > { %v4199_v39 = vmul.f32 0.03125, %v4177_v9 }
 0xd14   : > { %v4212_v48 = vadd.f32 1e-05, %v4200_v59 }
 0xd15   : > { %v4211_v31 = vadd.f32 1e-05, %v4199_v39  ;;  %v4186_v29 = vpop.xlane.xlu1 %4185 }
 0xd16   : > { %10174 = vrsqrt.f32 %v4212_v48  ;;  %v4202_v24 = vmul.f32 0.03125, %v4186_v29  ;;  %v4183_v25 = vpop.xlane.xlu0 %4182 }
 0xd17   : > { %10176 = vrsqrt.f32 %v4211_v31  ;;  %v4201_v15 = vmul.f32 0.03125, %v4183_v25 }
 0xd18   : > { %v4214_v37 = vadd.f32 1e-05, %v4202_v24 }
 0xd19   : > { %v4213_v0 = vadd.f32 1e-05, %v4201_v15  ;;  %v12769_v15 = vld [vmem:[%s14023_s12 + $0x1] ss:$0 sm:$0xff] }
 0xd1a   : > { %10178 = vrsqrt.f32 %v4214_v37 }
 0xd1b   : > { %10180 = vrsqrt.f32 %v4213_v0 }
 0xd1f   : > { %v4192_v6 = vpop.xlane.xlu1 %4191 }
 0xd20   : > { %v10175_v50 = vpop.eup %10174  ;;  %v4204_v62 = vmul.f32 0.03125, %v4192_v6  ;;  %v4189_v28 = vpop.xlane.xlu0 %4188  ;;  %v12788_v6 = vld [vmem:[%s14221_s4 + $0x8] sm:$0xff] }
 0xd21   : > { %v10177_v33 = vpop.eup %10176  ;;  %v4203_v49 = vmul.f32 0.03125, %v4189_v28  ;;  %v4236_v41 = vmul.f32 %v10175_v50, %v12656_v35  ;;  %v12802_v28 = vld [vmem:[%s14221_s4] sm:$0xff] }
 0xd22   : > { %v4216_v17 = vadd.f32 1e-05, %v4204_v62  ;;  %v4235_v30 = vmul.f32 %v10177_v33, %v12659_v22 }
 0xd23   : > { %v4215_v60 = vadd.f32 1e-05, %v4203_v49  ;;  %v4254_v45 = vmul.f32 %v12630_v40, %v4236_v41  ;;  %v12810_v49 = vld [vmem:[%s14221_s4 + $0x30] sm:$0xff] }
 0xd24   : > { %v10179_v12 = vpop.eup %10178  ;;  %10182 = vrsqrt.f32 %v4216_v17  ;;  %v4253_v3 = vmul.f32 %v12630_v40, %v4235_v30 }
 0xd25   : > { %v10181_v2 = vpop.eup %10180  ;;  %10184 = vrsqrt.f32 %v4215_v60  ;;  %v4238_v34 = vmul.f32 %v10179_v12, %v12666_v58  ;;  %v4272_v35 = vadd.f32 %v12637_v56, %v4254_v45  ;;  %v12856_v60 = vld [vmem:[%s14221_s4 + $0x20] sm:$0xff]  ;;  %v12862_v12 = vld [vmem:[%s14221_s4 + $0x18] sm:$0xff] }
 0xd26   : > { %v4271_v42 = vadd.f32 %v12637_v56, %v4253_v3  ;;  %v4237_v23 = vmul.f32 %v10181_v2, %v12670_v61  ;;  %v12868_v2 = vld [vmem:[%s14221_s4 + $0x10] sm:$0xff] }
 0xd27   : > { %v4256_v52 = vmul.f32 %v12630_v40, %v4238_v34 }
 0xd28   : > { %8700 = vmatprep.mubr.msk.f32.mxu1 %vm1019_vm1, %v4271_v42  ;;  %8726 = vmatprep.mubr.msk.f32.mxu0 %vm1019_vm1, %v4271_v42  ;;  %v4255_v22 = vmul.f32 %v12630_v40, %v4237_v23 }
 0xd29   : > { %8701 = vmatmul.mubr.msk.f32.gmra.mrb[106].mxu1 %vm1019_vm1, %v4272_v35  ;;  %8727 = vmatmul.mubr.msk.f32.gmra.mrb[74].mxu0 %vm1019_vm1, %v4272_v35  ;;  %v4274_v59 = vadd.f32 %v12637_v56, %v4256_v52 }
 0xd2a   : > { %v4273_v58 = vadd.f32 %v12637_v56, %v4255_v22  ;;  %v12886_v22 = vld [vmem:[%s14221_s4 + $0x48] sm:$0xff] }
 0xd2c   : > { %8703 = vmatprep.mubr.msk.f32.mxu1 %vm1019_vm1, %v4273_v58  ;;  %8729 = vmatprep.mubr.msk.f32.mxu0 %vm1019_vm1, %v4273_v58 }
 0xd2d   : > { %8704 = vmatmul.mubr.msk.f32.gmra.mrb[108].mxu1 %vm1019_vm1, %v4274_v59  ;;  %8730 = vmatmul.mubr.msk.f32.gmra.mrb[76].mxu0 %vm1019_vm1, %v4274_v59 }
 0xd2e   : > { %v10183_v61 = vpop.eup %10182 }
 0xd2f   : > { %v10185_v9 = vpop.eup %10184  ;;  %v4240_v39 = vmul.f32 %v10183_v61, %v12684_v7 }
 0xd30   : > { %v4239_v48 = vmul.f32 %v10185_v9, %v12690_v18  ;;  %v12898_v9 = vld [vmem:[%s14221_s4 + $0x58] sm:$0xff] }
 0xd31   : > { %v4258_v31 = vmul.f32 %v12630_v40, %v4240_v39 }
 0xd32   : > { %v4257_v29 = vmul.f32 %v12630_v40, %v4239_v48 }
 0xd33   : > { %v4276_v25 = vadd.f32 %v12637_v56, %v4258_v31 }
 0xd34   : > { %v4275_v24 = vadd.f32 %v12637_v56, %v4257_v29 }
 0xd36   : > { %8706 = vmatprep.mubr.msk.f32.mxu1 %vm1019_vm1, %v4275_v24  ;;  %8732 = vmatprep.mubr.msk.f32.mxu0 %vm1019_vm1, %v4275_v24 }
 0xd37   : > { %8707 = vmatmul.mubr.msk.f32.gmra.mrb[110].mxu1 %vm1019_vm1, %v4276_v25  ;;  %8733 = vmatmul.mubr.msk.f32.gmra.mrb[78].mxu0 %vm1019_vm1, %v4276_v25  ;;  %v12775_v7 = vpop.f32.mrb[100].mxu1  ;;  %v8719_v40 = vpop.f32.mrb[68].mxu0 }
 0xd38   : > { %8743 = vmatprep.mubr.msk.f32.mxu1 %vm1019_vm1, %v12642_v32  ;;  %v4548_v56 = vadd.f32 %v8719_v40, %v12769_v15  ;;  %v12780_v18 = vpop.f32.mrb[101].mxu1  ;;  %v4542_v37 = vpop.f32.mrb[69].mxu0  ;;  %8785 = vmatprep.mubr.msk.f32.mxu0 %vm10386_vm2, %v14278_v10  ;;  %v12794_v32 = vld [vmem:[%s14221_s4 + $0x38] sm:$0xff] }
 0xd39   : > { %v4543_v0 = vadd.f32 %v12769_v15, %v4542_v37 }
 0xd3a   : > { %v4740_v50 = vmul.f32 %v12788_v6, %v4548_v56  ;;  %v12797_v62 = vmul.f32 %v12794_v32, %v4548_v56  ;;  %v4743_v45 = vmul.f32 %v12856_v60, %v4548_v56 }
 0xd3b   : > { %v4739_v33 = vmul.f32 %v12802_v28, %v4543_v0  ;;  %8744 = vmatmul.mubr.msk.f32.vlgmr.msra.gmra.mrb[112].mxu1 %vm1019_vm1, %v12645_v11  ;;  %v12813_v41 = vmul.f32 %v12810_v49, %v4543_v0  ;;  %v4742_v3 = vmul.f32 %v12862_v12, %v4543_v0 }
 0xd3c   : > { %8746 = vmatprep.mubr.msk.f32.mxu1 %vm1019_vm1, %v12687_v47  ;;  %9668 = vmatpush3.bf16.msra.mxu1 %v11873_v26 }
 0xd3d   : > { %v9643_v17 = vpack.c.bf16 %v4740_v50, %v4739_v33  ;;  %9669 = vmatprep.subr.bf16.mxu1 %v14225_v19  ;;  %v14404_v8 = vpack.c.bf16 %v12797_v62, %v12813_v41 }
 0xd3f   : > { %8747 = vmatmul.mubr.msk.f32.gmra.mrb[114].mxu1 %vm1019_vm1, %v12693_v55  ;;  %9645 = vmatpush3.bf16.xpose.msk.msra.mxu0 %vm11290_vm3, %v9643_v17 }
 0xd40   : > { %8749 = vmatprep.mubr.msk.f32.mxu1 %vm1019_vm1, %v12714_v1  ;;  %9646 = vmatprep.subr.bf16.mxu0 %v14225_v19 }
 0xd41   : > { %9671 = vmatpush3.bf16.msra.mxu1 %v11878_v5 }
 0xd42   : > { %9672 = vmatprep.subr.bf16.mxu1 %v14225_v19 }
 0xd43   : > { %8750 = vmatmul.mubr.msk.f32.gmra.mrb[116].mxu1 %vm1019_vm1, %v12717_v14 }
 0xd44   : > { %8752 = vmatprep.mubr.msk.f32.mxu1 %vm1019_vm1, %v4271_v42  ;;  %v12874_v42 = vld [vmem:[%s14221_s4 + $0x28] sm:$0xff] }
 0xd45   : > { %9674 = vmatpush3.bf16.msra.mxu1 %v11902_v57 }
 0xd46   : > { %9675 = vmatprep.subr.bf16.mxu1 %v14225_v19 }
 0xd47   : > { %8753 = vmatmul.mubr.msk.f32.gmra.mrb[118].mxu1 %vm1019_vm1, %v4272_v35  ;;  %v12880_v35 = vld [vmem:[%s14221_s4 + $0x50] sm:$0xff] }
 0xd48   : > { %8755 = vmatprep.mubr.msk.f32.mxu1 %vm1019_vm1, %v4273_v58  ;;  %v4749_v52 = vmul.f32 %v12880_v35, %v4548_v56  ;;  %v4748_v58 = vmul.f32 %v12886_v22, %v4543_v0 }
 0xd49   : > { %9677 = vmatpush3.bf16.msra.mxu1 %v11908_v43 }
 0xd4a   : > { %9678 = vmatprep.subr.bf16.mxu1 %v14225_v19 }
 0xd4b   : > { %8756 = vmatmul.mubr.msk.f32.gmra.mrb[120].mxu1 %vm1019_vm1, %v4274_v59  ;;  %v12892_v59 = vld [vmem:[%s14221_s4 + $0x40] sm:$0xff]  ;;  %s7059_s4 = sshll.u32 %s787_s0, 4  ;;  %s13971_s4 = int_to_ptr.vmem [resolvable:$true] %s7059_s4 }
 0xd4c   : > { %8758 = vmatprep.mubr.msk.f32.mxu1 %vm1019_vm1, %v4275_v24  ;;  %s10321_s10 = scalar_lea.vmem %s13971_s4, 64 }
 0xd4d   : > { %9680 = vmatpush3.bf16.msra.mxu1 %v11914_v44  ;;  %p10322_p11 = scmp.ne.s32.totalorder %s13971_s4, %s10321_s10 }
 0xd4e   : > { %9681 = vmatprep.subr.bf16.mxu1 %v14225_v19 }
 0xd4f   : > { %8759 = vmatmul.mubr.msk.f32.gmra.mrb[122].mxu1 %vm1019_vm1, %v4276_v25  ;;  %p10323_p12 = pnand %p10322_p11, %p10562_p5 }
 0xd50   : > { %8818 = vmatprep.mubr.msk.f32.mxu1 %vm10386_vm2, %v14278_v10 }
 0xd51   : > { %9683 = vmatpush3.bf16.msra.mxu1 %v11920_v27  ;;  %p10324_p13 = pneg %p10323_p12 }
 0xd52   : > { %9684 = vmatprep.subr.bf16.mxu1 %v14225_v19 }
 0xd63   : > { %v12848_v11 = vpop.f32.mrb[102].mxu1  ;;  %v8722_v47 = vpop.f32.mrb[70].mxu0 }
 0xd64   : > { %v12850_v55 = vpop.f32.mrb[103].mxu1  ;;  %v4552_v1 = vpop.f32.mrb[71].mxu0  ;;  %v4558_v25 = vadd.f32 %v8722_v47, %v12769_v15 }
 0xd65   : > { %v4553_v14 = vadd.f32 %v12769_v15, %v4552_v1 }
 0xd66   : > { %v5081_v33 = vmul.f32 %v12802_v28, %v4558_v25  ;;  %v5084_v17 = vmul.f32 %v12862_v12, %v4558_v25 }
 0xd67   : > { %v4741_v34 = vmul.f32 %v12868_v2, %v4553_v14  ;;  %v4744_v23 = vmul.f32 %v12874_v42, %v4553_v14  ;;  %v4747_v61 = vmul.f32 %v12892_v59, %v4553_v14  ;;  %v4750_v39 = vmul.f32 %v12898_v9, %v4553_v14 }
 0xd68   : > { %v5090_v14 = vmul.f32 %v12886_v22, %v4558_v25 }
 0xd69   : > { %v9647_v48 = vpack.c.bf16 %v4742_v3, %v4741_v34  ;;  %v9651_v31 = vpack.c.bf16 %v4744_v23, %v4743_v45  ;;  %v9659_v29 = vpack.c.bf16 %v4748_v58, %v4747_v61  ;;  %v9663_v24 = vpack.c.bf16 %v4750_v39, %v4749_v52 }
 0xd6a   : > { %v5087_v34 = vmul.f32 %v12810_v49, %v4558_v25  ;;  %v12934_v25 = vld [vmem:[%s14213_s29 + $0x1] ss:$0 sm:$0xff] }
 0xd6b   : > { %9649 = vmatpush3.bf16.xpose.msk.msra.mxu0 %vm11290_vm3, %v9647_v48  ;;  %v4393_v62 = vadd.f32 %v12934_v25, %v12780_v18  ;;  %v4408_v18 = vadd.f32 %v12848_v11, %v12934_v25 }
 0xd6c   : > { %9650 = vmatprep.subr.bf16.mxu0 %v14225_v19 }
 0xd6d   : > { %v4451_v41 = vmul.f32 0.35355338, %v4393_v62 }
 0xd71   : > { %v8699_v40 = vpop.f32.mrb[104].mxu1  ;;  %v8725_v56 = vpop.f32.mrb[72].mxu0 }
 0xd72   : > { %v4568_v37 = vadd.f32 %v8725_v56, %v12769_v15  ;;  %v4412_v0 = vpop.f32.mrb[105].mxu1  ;;  %v4562_v50 = vpop.f32.mrb[73].mxu0 }
 0xd73   : > { %v4563_v1 = vadd.f32 %v12769_v15, %v4562_v50  ;;  %9653 = vmatpush3.bf16.xpose.msk.msra.mxu0 %vm11290_vm3, %v9651_v31 }
 0xd74   : > { %v5083_v45 = vmul.f32 %v12868_v2, %v4568_v37  ;;  %v5086_v47 = vmul.f32 %v12874_v42, %v4568_v37  ;;  %v5089_v3 = vmul.f32 %v12892_v59, %v4568_v37  ;;  %9654 = vmatprep.subr.bf16.mxu0 %v14225_v19  ;;  %v5092_v23 = vmul.f32 %v12898_v9, %v4568_v37 }
 0xd75   : > { %v5082_v52 = vmul.f32 %v12788_v6, %v4563_v1  ;;  %v5085_v58 = vmul.f32 %v12856_v60, %v4563_v1  ;;  %v5088_v48 = vmul.f32 %v12794_v32, %v4563_v1  ;;  %v5091_v31 = vmul.f32 %v12880_v35, %v4563_v1 }
 0xd76   : > { %v9707_v61 = vpack.c.bf16 %v5084_v17, %v5083_v45  ;;  %v9719_v39 = vpack.c.bf16 %v5090_v14, %v5089_v3  ;;  %v4413_v37 = vadd.f32 %v12934_v25, %v4412_v0 }
 0xd77   : > { %v9703_v56 = vpack.c.bf16 %v5082_v52, %v5081_v33  ;;  %v9711_v50 = vpack.c.bf16 %v5086_v47, %v5085_v58  ;;  %v9715_v30 = vpack.c.bf16 %v5088_v48, %v5087_v34  ;;  %v9723_v36 = vpack.c.bf16 %v5092_v23, %v5091_v31 }
 0xd78   : > { %v4455_v33 = vmul.f32 0.35355338, %v4413_v37 }
 0xd7b   : > { %9657 = vmatpush3.bf16.xpose.msk.msra.mxu0 %vm11290_vm3, %v14404_v8  ;;  %v4398_v8 = vadd.f32 %v12775_v7, %v12934_v25 }
 0xd7c   : > { %9658 = vmatprep.subr.bf16.mxu0 %v14225_v19 }
 0xd83   : > { %9661 = vmatpush3.bf16.xpose.msk.msra.mxu0 %vm11290_vm3, %v9659_v29  ;;  %v4452_v29 = vmul.f32 0.35355338, %v4398_v8 }
 0xd84   : > { %9662 = vmatprep.subr.bf16.mxu0 %v14225_v19 }
 0xd8b   : > { %9665 = vmatpush3.bf16.xpose.msk.msra.mxu0 %vm11290_vm3, %v9663_v24  ;;  %v4403_v24 = vadd.f32 %v12934_v25, %v12850_v55  ;;  %v4454_v55 = vmul.f32 0.35355338, %v4408_v18 }
 0xd8c   : > { %9702 = vmatprep.subr.bf16.mxu0 %v14225_v19 }
 0xd8d   : > { %v4453_v7 = vmul.f32 0.35355338, %v4403_v24 }
 0xd92   : > { %8786 = vmatmul.mubr.msk.f32.vlgmr.msra.gmra.mrb[80].mxu0 %vm1019_vm1, %v4451_v41 }
 0xd93   : > { %9705 = vmatpush3.bf16.xpose.msk.msra.mxu0 %vm11290_vm3, %v9703_v56  ;;  %8788 = vmatprep.mubr.msk.f32.mxu0 %vm10386_vm2, %v14278_v10 }
 0xd94   : > { %9706 = vmatprep.subr.bf16.mxu0 %v14225_v19 }
 0xd96   : > { %8789 = vmatmul.mubr.msk.f32.gmra.mrb[82].mxu0 %vm1019_vm1, %v4452_v29 }
 0xd97   : > { %8791 = vmatprep.mubr.msk.f32.mxu0 %vm10386_vm2, %v14278_v10 }
 0xd9a   : > { %8792 = vmatmul.mubr.msk.f32.gmra.mrb[84].mxu0 %vm1019_vm1, %v4453_v7 }
 0xd9b   : > { %9709 = vmatpush3.bf16.xpose.msk.msra.mxu0 %vm11290_vm3, %v9707_v61  ;;  %8884 = vmatprep.mubr.msk.f32.mxu0 %vm10386_vm2, %v14278_v10 }
 0xd9c   : > { %9710 = vmatprep.subr.bf16.mxu0 %v14225_v19 }
 0xda3   : > { %9713 = vmatpush3.bf16.xpose.msk.msra.mxu0 %vm11290_vm3, %v9711_v50 }
 0xda4   : > { %9714 = vmatprep.subr.bf16.mxu0 %v14225_v19 }
 0xdab   : > { %9717 = vmatpush3.bf16.xpose.msk.msra.mxu0 %vm11290_vm3, %v9715_v30  ;;  %v4418_v30 = vadd.f32 %v8699_v40, %v12934_v25 }
 0xdac   : > { %9718 = vmatprep.subr.bf16.mxu0 %v14225_v19 }
 0xdb3   : > { %9721 = vmatpush3.bf16.xpose.msk.msra.mxu0 %vm11290_vm3, %v9719_v39 }
 0xdb4   : > { %9722 = vmatprep.subr.bf16.mxu0 %v14225_v19 }
 0xdbb   : > { %9725 = vmatpush3.bf16.xpose.msk.msra.mxu0 %vm11290_vm3, %v9723_v36  ;;  %v4456_v36 = vmul.f32 0.35355338, %v4418_v30 }
 0xdbc   : > { %9762 = vmatprep.subr.bf16.mxu0 %v14225_v19 }
 0xdc2   : > { %8885 = vmatmul.mubr.msk.f32.vlgmr.msra.gmra.mrb[86].mxu0 %vm1019_vm1, %v4454_v55 }
 0xdc3   : > { %8887 = vmatprep.mubr.msk.f32.mxu0 %vm10386_vm2, %v14278_v10 }
 0xdc6   : > { %8888 = vmatmul.mubr.msk.f32.gmra.mrb[88].mxu0 %vm1019_vm1, %v4455_v33 }
 0xdc7   : > { %8890 = vmatprep.mubr.msk.f32.mxu0 %vm10386_vm2, %v14278_v10 }
 0xdca   : > { %8891 = vmatmul.mubr.msk.f32.gmra.mrb[90].mxu0 %vm1019_vm1, %v4456_v36 }
 0xdcb   : > { %8983 = vmatprep.mubr.msk.f32.mxu0 %vm10386_vm2, %v14278_v10 }
 0xdfc   : > { %v12985_v11 = vpop.f32.mrb[106].mxu1  ;;  %v8728_v0 = vpop.f32.mrb[74].mxu0 }
 0xdfd   : > { %v4578_v17 = vadd.f32 %v8728_v0, %v12769_v15  ;;  %v12988_v1 = vpop.f32.mrb[107].mxu1  ;;  %v4572_v40 = vpop.f32.mrb[75].mxu0 }
 0xdfe   : > { %v4573_v14 = vadd.f32 %v12769_v15, %v4572_v40 }
 0xdff   : > { %v5424_v45 = vmul.f32 %v12788_v6, %v4578_v17  ;;  %v12993_v47 = vmul.f32 %v12794_v32, %v4578_v17  ;;  %v5427_v56 = vmul.f32 %v12856_v60, %v4578_v17  ;;  %v13008_v50 = vmul.f32 %v12880_v35, %v4578_v17 }
 0xe00   : > { %v5423_v3 = vmul.f32 %v12802_v28, %v4573_v14  ;;  %v12996_v34 = vpop.f32.mrb[108].mxu1  ;;  %v8731_v23 = vpop.f32.mrb[76].mxu0  ;;  %v12999_v52 = vmul.f32 %v12810_v49, %v4573_v14  ;;  %v5426_v62 = vmul.f32 %v12862_v12, %v4573_v14  ;;  %v13015_v41 = vmul.f32 %v12886_v22, %v4573_v14 }
 0xe01   : > { %v13001_v58 = vpop.f32.mrb[109].mxu1  ;;  %v4582_v61 = vpop.f32.mrb[77].mxu0  ;;  %v4588_v33 = vadd.f32 %v8731_v23, %v12769_v15 }
 0xe02   : > { %v9763_v39 = vpack.c.bf16 %v5424_v45, %v5423_v3  ;;  %v4583_v48 = vadd.f32 %v12769_v15, %v4582_v61 }
 0xe03   : > { %v13036_v45 = vmul.f32 %v12802_v28, %v4588_v33  ;;  %v13039_v3 = vmul.f32 %v12862_v12, %v4588_v33  ;;  %v13045_v23 = vmul.f32 %v12886_v22, %v4588_v33 }
 0xe04   : > { %v5425_v8 = vmul.f32 %v12868_v2, %v4583_v48  ;;  %9765 = vmatpush3.bf16.xpose.msk.msra.mxu0 %vm11290_vm3, %v9763_v39  ;;  %v5428_v29 = vmul.f32 %v12874_v42, %v4583_v48  ;;  %v13019_v24 = vmul.f32 %v12892_v59, %v4583_v48  ;;  %v13022_v7 = vmul.f32 %v12898_v9, %v4583_v48 }
 0xe05   : > { %9766 = vmatprep.subr.bf16.mxu0 %v14225_v19 }
 0xe06   : > { %v9767_v18 = vpack.c.bf16 %v5426_v62, %v5425_v8  ;;  %v9771_v55 = vpack.c.bf16 %v5428_v29, %v5427_v56  ;;  %v13059_v62 = vld [vmem:[%s14025_s14 + $0x1] ss:$0 sm:$0xff] }
 0xe0a   : > { %v13030_v36 = vpop.f32.mrb[110].mxu1  ;;  %v8734_v0 = vpop.f32.mrb[78].mxu0 }
 0xe0b   : > { %v4598_v17 = vadd.f32 %v8734_v0, %v12769_v15  ;;  %v13033_v40 = vpop.f32.mrb[111].mxu1  ;;  %v4592_v14 = vpop.f32.mrb[79].mxu0 }
 0xe0c   : > { %v4593_v61 = vadd.f32 %v12769_v15, %v4592_v14  ;;  %9769 = vmatpush3.bf16.xpose.msk.msra.mxu0 %vm11290_vm3, %v9767_v18  ;;  %v13063_v15 = vmul.f32 %v12810_v49, %v4588_v33 }
 0xe0d   : > { %v13048_v39 = vmul.f32 %v12868_v2, %v4598_v17  ;;  %v13051_v48 = vmul.f32 %v12874_v42, %v4598_v17  ;;  %v13054_v56 = vmul.f32 %v12892_v59, %v4598_v17  ;;  %9770 = vmatprep.subr.bf16.mxu0 %v14225_v19  ;;  %v13066_v8 = vmul.f32 %v12898_v9, %v4598_v17 }
 0xe0e   : > { %v13069_v29 = vmul.f32 %v12788_v6, %v4593_v61  ;;  %v13072_v18 = vmul.f32 %v12856_v60, %v4593_v61  ;;  %v8745_v0 = vpop.f32.mrb[112].mxu1  ;;  %v13079_v37 = vmul.f32 %v12794_v32, %v4593_v61  ;;  %v13082_v33 = vmul.f32 %v12880_v35, %v4593_v61 }
 0xe0f   : > { %v4680_v17 = vpop.f32.mrb[113].mxu1  ;;  %v4686_v21 = vadd.f32 %v8745_v0, %v13059_v62 }
 0xe10   : > { %v4681_v14 = vadd.f32 %v13059_v62, %v4680_v17 }
 0xe11   : > { %v13095_v61 = vmul.f32 %v12788_v6, %v4686_v21  ;;  %v13098_v4 = vmul.f32 %v12794_v32, %v4686_v21  ;;  %v13111_v54 = vmul.f32 %v12856_v60, %v4686_v21  ;;  %v13114_v51 = vmul.f32 %v12880_v35, %v4686_v21 }
 0xe12   : > { %v8748_v31 = vpop.f32.mrb[114].mxu1  ;;  %v13101_v38 = vmul.f32 %v12802_v28, %v4681_v14  ;;  %v13104_v0 = vmul.f32 %v12810_v49, %v4681_v14 }
 0xe13   : > { %14405 = vst [vmem:[#allocation49_spill] sm:$0xff] %v13098_v4  ;;  %v4690_v17 = vpop.f32.mrb[115].mxu1  ;;  %v4696_v20 = vadd.f32 %v8748_v31, %v13059_v62  ;;  %14408 = vst [vmem:[#allocation43_spill] sm:$0xff] %v13111_v54  ;;  %v13122_v31 = vmul.f32 %v12862_v12, %v4681_v14 }
 0xe14   : > { %14406 = vst [vmem:[#allocation50_spill] sm:$0xff] %v13101_v38  ;;  %14407 = vst [vmem:[#allocation42_spill] sm:$0xff] %v13104_v0  ;;  %v4691_v30 = vadd.f32 %v13059_v62, %v4690_v17  ;;  %9773 = vmatpush3.bf16.xpose.msk.msra.mxu0 %vm11290_vm3, %v9771_v55  ;;  %v13125_v17 = vmul.f32 %v12886_v22, %v4681_v14 }
 0xe15   : > { %14409 = vst [vmem:[#allocation46_spill] sm:$0xff] %v13114_v51  ;;  %9774 = vmatprep.subr.bf16.mxu0 %v14225_v19  ;;  %v13128_v55 = vmul.f32 %v12802_v28, %v4696_v20  ;;  %v13131_v21 = vmul.f32 %v12862_v12, %v4696_v20  ;;  %v13146_v44 = vmul.f32 %v12810_v49, %v4696_v20 }
 0xe16   : > { %14410 = vst [vmem:[#allocation47_spill] sm:$0xff] %v13125_v17  ;;  %v8751_v46 = vpop.f32.mrb[116].mxu1  ;;  %v13134_v13 = vmul.f32 %v12868_v2, %v4691_v30  ;;  %v13137_v53 = vmul.f32 %v12874_v42, %v4691_v30  ;;  %v13140_v16 = vmul.f32 %v12892_v59, %v4691_v30  ;;  %v13143_v27 = vmul.f32 %v12898_v9, %v4691_v30 }
 0xe17   : > { %v4700_v14 = vpop.f32.mrb[117].mxu1  ;;  %14414 = vst [vmem:[#allocation28_spill] sm:$0xff] %v13146_v44  ;;  %v13149_v43 = vmul.f32 %v12886_v22, %v4696_v20  ;;  %v4706_v57 = vadd.f32 %v8751_v46, %v13059_v62 }
 0xe18   : > { %14411 = vst [vmem:[#allocation51_spill] sm:$0xff] %v13137_v53  ;;  %14412 = vst [vmem:[#allocation26_spill] sm:$0xff] %v13140_v16  ;;  %v4701_v5 = vadd.f32 %v13059_v62, %v4700_v14 }
 0xe19   : > { %14413 = vst [vmem:[#allocation29_spill] sm:$0xff] %v13143_v27  ;;  %14415 = vst [vmem:[#allocation52_spill] sm:$0xff] %v13149_v43  ;;  %v13162_v38 = vmul.f32 %v12868_v2, %v4706_v57  ;;  %v13165_v20 = vmul.f32 %v12874_v42, %v4706_v57  ;;  %v13168_v46 = vmul.f32 %v12892_v59, %v4706_v57 }
 0xe1a   : > { %v13171_v14 = vmul.f32 %v12898_v9, %v4706_v57  ;;  %v8754_v26 = vpop.f32.mrb[118].mxu1  ;;  %v13174_v0 = vmul.f32 %v12788_v6, %v4701_v5  ;;  %v13177_v30 = vmul.f32 %v12856_v60, %v4701_v5  ;;  %v13180_v4 = vmul.f32 %v12794_v32, %v4701_v5 }
 0xe1b   : > { %14416 = vst [vmem:[#allocation53_spill] sm:$0xff] %v13168_v46  ;;  %v13183_v51 = vmul.f32 %v12880_v35, %v4701_v5  ;;  %v4710_v27 = vpop.f32.mrb[119].mxu1  ;;  %v4716_v16 = vadd.f32 %v8754_v26, %v13059_v62  ;;  %v14421_v57 = vpack.c.bf16 %v12993_v47, %v12999_v52 }
 0xe1c   : > { %14417 = vst [vmem:[#allocation56_spill] sm:$0xff] %v13171_v14  ;;  %14418 = vst [vmem:[#allocation54_spill] sm:$0xff] %v13177_v30  ;;  %v4711_v17 = vadd.f32 %v13059_v62, %v4710_v27 }
 0xe1d   : > { %14419 = vst [vmem:[#allocation55_spill] sm:$0xff] %v13180_v4  ;;  %14420 = vst [vmem:[#allocation58_spill] sm:$0xff] %v13183_v51  ;;  %9777 = vmatpush3.bf16.xpose.msk.msra.mxu0 %vm11290_vm3, %v14421_v57  ;;  %v13206_v52 = vmul.f32 %v12788_v6, %v4716_v16  ;;  %v13209_v57 = vmul.f32 %v12794_v32, %v4716_v16  ;;  %v13220_v47 = vmul.f32 %v12856_v60, %v4716_v16 }
 0xe1e   : > { %9778 = vmatprep.subr.bf16.mxu0 %v14225_v19  ;;  %v8757_v53 = vpop.f32.mrb[120].mxu1  ;;  %v13212_v54 = vmul.f32 %v12802_v28, %v4711_v17  ;;  %v13215_v5 = vmul.f32 %v12810_v49, %v4711_v17  ;;  %v13223_v51 = vmul.f32 %v12880_v35, %v4716_v16  ;;  %v13230_v44 = vmul.f32 %v12862_v12, %v4711_v17 }
 0xe1f   : > { %14422 = vst [vmem:[#allocation62_spill] sm:$0xff] %v13206_v52  ;;  %14423 = vst [vmem:[#allocation63_spill] sm:$0xff] %v13209_v57  ;;  %v4720_v26 = vpop.f32.mrb[121].mxu1  ;;  %v4726_v46 = vadd.f32 %v8757_v53, %v13059_v62  ;;  %v13233_v4 = vmul.f32 %v12886_v22, %v4711_v17  ;;  %v14426_v52 = vpack.c.bf16 %v13015_v41, %v13019_v24 }
 0xe20   : > { %14424 = vst [vmem:[#allocation57_spill] sm:$0xff] %v13212_v54  ;;  %14425 = vst [vmem:[#allocation59_spill] sm:$0xff] %v13215_v5  ;;  %v4721_v27 = vadd.f32 %v13059_v62, %v4720_v26 }
 0xe21   : > { %v13236_v53 = vmul.f32 %v12802_v28, %v4726_v46  ;;  %v13239_v26 = vmul.f32 %v12862_v12, %v4726_v46  ;;  %v13254_v28 = vmul.f32 %v12810_v49, %v4726_v46  ;;  %v13257_v12 = vmul.f32 %v12886_v22, %v4726_v46 }
 0xe22   : > { %v8760_v16 = vpop.f32.mrb[122].mxu1  ;;  %v13242_v30 = vmul.f32 %v12868_v2, %v4721_v27  ;;  %v13245_v14 = vmul.f32 %v12874_v42, %v4721_v27  ;;  %v13248_v43 = vmul.f32 %v12892_v59, %v4721_v27  ;;  %v13251_v5 = vmul.f32 %v12898_v9, %v4721_v27 }
 0xe23   : > { %v4730_v17 = vpop.f32.mrb[123].mxu1  ;;  %v4736_v57 = vadd.f32 %v8760_v16, %v13059_v62 }
 0xe24   : > { %v4731_v54 = vadd.f32 %v13059_v62, %v4730_v17  ;;  %v9808_v27 = vpack.c.bf16 %v13230_v44, %v13242_v30  ;;  %v9811_v49 = vpack.c.bf16 %v13245_v14, %v13220_v47  ;;  %v9817_v22 = vpack.c.bf16 %v13233_v4, %v13248_v43 }
 0xe25   : > { %9781 = vmatpush3.bf16.xpose.msk.msra.mxu0 %vm11290_vm3, %v14426_v52  ;;  %v13276_v46 = vmul.f32 %v12868_v2, %v4736_v57  ;;  %v13279_v41 = vmul.f32 %v12874_v42, %v4736_v57  ;;  %v13282_v24 = vmul.f32 %v12892_v59, %v4736_v57  ;;  %v13285_v52 = vmul.f32 %v12898_v9, %v4736_v57 }
 0xe26   : > { %9782 = vmatprep.subr.bf16.mxu0 %v14225_v19  ;;  %v13288_v16 = vmul.f32 %v12788_v6, %v4731_v54  ;;  %v13291_v17 = vmul.f32 %v12856_v60, %v4731_v54  ;;  %v13294_v62 = vmul.f32 %v12794_v32, %v4731_v54  ;;  %v13297_v2 = vmul.f32 %v12880_v35, %v4731_v54 }
 0xe27   : > { %v9868_v42 = vpack.c.bf16 %v13239_v26, %v13276_v46  ;;  %v14427_v54 = vpack.c.bf16 %v13022_v7, %v13008_v50  ;;  %v4423_v35 = vadd.f32 %v12934_v25, %v12988_v1  ;;  %v4428_v57 = vadd.f32 %v12985_v11, %v12934_v25  ;;  %v14472_v44 = vld [vmem:[#allocation59_spill] sm:$0xff] }
 0xe28   : > { %v9865_v9 = vpack.c.bf16 %v13288_v16, %v13236_v53  ;;  %v9871_v6 = vpack.c.bf16 %v13279_v41, %v13291_v17  ;;  %v9874_v60 = vpack.c.bf16 %v13294_v62, %v13254_v28  ;;  %v14428_v32 = vpack.c.bf16 %v13069_v29, %v13036_v45 }
 0xe29   : > { %v4457_v59 = vmul.f32 0.35355338, %v4423_v35  ;;  %v4458_v50 = vmul.f32 0.35355338, %v4428_v57  ;;  %v4433_v1 = vadd.f32 %v12934_v25, %v13001_v58  ;;  %v14429_v7 = vpack.c.bf16 %v13039_v3, %v13048_v39 }
 0xe2a   : > { %v14430_v58 = vpack.c.bf16 %v13051_v48, %v13072_v18  ;;  %v14431_v45 = vpack.c.bf16 %v13079_v37, %v13063_v15  ;;  %v14432_v3 = vpack.c.bf16 %v13045_v23, %v13054_v56  ;;  %v14433_v39 = vpack.c.bf16 %v13066_v8, %v13082_v33 }
 0xe2b   : > { %v4459_v11 = vmul.f32 0.35355338, %v4433_v1  ;;  %v4438_v37 = vadd.f32 %v12996_v34, %v12934_v25  ;;  %v4443_v15 = vadd.f32 %v12934_v25, %v13033_v40  ;;  %v4448_v23 = vadd.f32 %v13030_v36, %v12934_v25 }
 0xe2c   : > { %v14474_v14 = vpack.c.bf16 %v13251_v5, %v13223_v51  ;;  %v14475_v46 = vpack.c.bf16 %v13257_v12, %v13282_v24  ;;  %v14476_v41 = vpack.c.bf16 %v13285_v52, %v13297_v2 }
 0xe2d   : > { %9785 = vmatpush3.bf16.xpose.msk.msra.mxu0 %vm11290_vm3, %v14427_v54  ;;  %v4460_v48 = vmul.f32 0.35355338, %v4438_v37  ;;  %v4461_v56 = vmul.f32 0.35355338, %v4443_v15  ;;  %v4462_v18 = vmul.f32 0.35355338, %v4448_v23 }
 0xe2e   : > { %9822 = vmatprep.subr.bf16.mxu0 %v14225_v19 }
 0xe34   : > { %8984 = vmatmul.mubr.msk.f32.vlgmr.msra.gmra.mrb[92].mxu0 %vm1019_vm1, %v4457_v59 }
 0xe35   : > { %9825 = vmatpush3.bf16.xpose.msk.msra.mxu0 %vm11290_vm3, %v14428_v32  ;;  %8986 = vmatprep.mubr.msk.f32.mxu0 %vm10386_vm2, %v14278_v10 }
 0xe36   : > { %9826 = vmatprep.subr.bf16.mxu0 %v14225_v19 }
 0xe38   : > { %8987 = vmatmul.mubr.msk.f32.gmra.mrb[94].mxu0 %vm1019_vm1, %v4458_v50 }
 0xe39   : > { %8989 = vmatprep.mubr.msk.f32.mxu0 %vm10386_vm2, %v14278_v10 }
 0xe3c   : > { %8990 = vmatmul.mubr.msk.f32.gmra.mrb[96].mxu0 %vm1019_vm1, %v4459_v11 }
 0xe3d   : > { %9829 = vmatpush3.bf16.xpose.msk.msra.mxu0 %vm11290_vm3, %v14429_v7  ;;  %9082 = vmatprep.mubr.msk.f32.mxu0 %vm10386_vm2, %v14278_v10 }
 0xe3e   : > { %9830 = vmatprep.subr.bf16.mxu0 %v14225_v19 }
 0xe45   : > { %9833 = vmatpush3.bf16.xpose.msk.msra.mxu0 %vm11290_vm3, %v14430_v58 }
 0xe46   : > { %9834 = vmatprep.subr.bf16.mxu0 %v14225_v19 }
 0xe4d   : > { %9837 = vmatpush3.bf16.xpose.msk.msra.mxu0 %vm11290_vm3, %v14431_v45 }
 0xe4e   : > { %9838 = vmatprep.subr.bf16.mxu0 %v14225_v19 }
 0xe55   : > { %9841 = vmatpush3.bf16.xpose.msk.msra.mxu0 %vm11290_vm3, %v14432_v3 }
 0xe56   : > { %9842 = vmatprep.subr.bf16.mxu0 %v14225_v19 }
 0xe5d   : > { %9845 = vmatpush3.bf16.xpose.msk.msra.mxu0 %vm11290_vm3, %v14433_v39 }
 0xe64   : > { %9083 = vmatmul.mubr.msk.f32.vlgmr.msra.gmra.mrb[98].mxu0 %vm1019_vm1, %v4460_v48 }
 0xe65   : > { %9085 = vmatprep.mubr.msk.f32.mxu0 %vm10386_vm2, %v14278_v10  ;;  %v4874_v8 = vpop.f32.mrb[80].mxu0 }
 0xe66   : > { %v4875_v34 = vadd.f32 %v13379_v63, %v4874_v8  ;;  %v8787_v29 = vpop.f32.mrb[81].mxu0 }
 0xe68   : > { %9086 = vmatmul.mubr.msk.f32.gmra.mrb[100].mxu0 %vm1019_vm1, %v4461_v56  ;;  %v4888_v40 = vsel %vm2031_vm4, %v4875_v34, -inf }
 0xe69   : > { %9088 = vmatprep.mubr.msk.f32.mxu0 %vm10386_vm2, %v14278_v10  ;;  %4889 = vmax.xlane.f32.xlu0 %v4888_v40  ;;  %v4879_v25 = vpop.f32.mrb[82].mxu0 }
 0xe6a   : > { %v4880_v36 = vadd.f32 %v13379_v63, %v4879_v25  ;;  %v8790_v33 = vpop.f32.mrb[83].mxu0 }
 0xe6c   : > { %9089 = vmatmul.mubr.msk.f32.gmra.mrb[102].mxu0 %vm1019_vm1, %v4462_v18  ;;  %v4891_v59 = vsel %vm2031_vm4, %v4880_v36, -inf }
 0xe6d   : > { %4892 = vmax.xlane.f32.xlu1 %v4891_v59  ;;  %v4884_v32 = vpop.f32.mrb[84].mxu0 }
 0xe6e   : > { %v4885_v54 = vadd.f32 %v13379_v63, %v4884_v32  ;;  %v8793_v35 = vpop.f32.mrb[85].mxu0 }
 0xe70   : > { %v4894_v57 = vsel %vm2031_vm4, %v4885_v54, -inf }
 0xe71   : > { %4895 = vmax.xlane.f32.xlu0 %v4894_v57 }
 0xe95   : > { %v5216_v50 = vpop.f32.mrb[86].mxu0 }
 0xe96   : > { %v13392_v1 = vadd.f32 %v13379_v63, %v5216_v50  ;;  %v8886_v11 = vpop.f32.mrb[87].mxu0  ;;  %v14434_v50 = vld [vmem:[#allocation50_spill] sm:$0xff] }
 0xe97   : > { %v14435_v11 = vpack.c.bf16 %v13095_v61, %v14434_v50  ;;  %v14436_v61 = vpack.c.bf16 %v13122_v31, %v13134_v13  ;;  %v14438_v13 = vld [vmem:[#allocation43_spill] sm:$0xff]  ;;  %v14446_v50 = vld [vmem:[#allocation29_spill] sm:$0xff] }
 0xe98   : > { %v5230_v7 = vsel %vm2031_vm4, %v13392_v1, -inf }
 0xe99   : > { %5231 = vmax.xlane.f32.xlu1 %v5230_v7  ;;  %v5221_v58 = vpop.f32.mrb[88].mxu0 }
 0xe9a   : > { %v13397_v45 = vadd.f32 %v13379_v63, %v5221_v58  ;;  %v8889_v3 = vpop.f32.mrb[89].mxu0 }
 0xe9c   : > { %v5233_v39 = vsel %vm2031_vm4, %v13397_v45, -inf }
 0xe9d   : > { %5234 = vmax.xlane.f32.xlu0 %v5233_v39  ;;  %v5226_v37 = vpop.f32.mrb[90].mxu0 }
 0xe9e   : > { %v13402_v48 = vadd.f32 %v13379_v63, %v5226_v37  ;;  %v8892_v15 = vpop.f32.mrb[91].mxu0 }
 0xea0   : > { %v5236_v23 = vsel %vm2031_vm4, %v13402_v48, -inf }
 0xea1   : > { %5237 = vmax.xlane.f32.xlu1 %v5236_v23 }
 0xef6   : > { %v4890_v56 = vpop.xlane.xlu0 %4889 }
 0xef7   : > { %v4897_v8 = vsub.f32 %v4875_v34, %v4890_v56  ;;  %v14437_v56 = vld [vmem:[#allocation51_spill] sm:$0xff] }
 0xef8   : > { %v14439_v31 = vpack.c.bf16 %v14437_v56, %v14438_v13  ;;  %v14452_v56 = vld [vmem:[#allocation31_spill] sm:$0xff] }
 0xef9   : > { %v4900_v29 = vmul.f32 1.442695, %v4897_v8 }
 0xefa   : > { %v4893_v40 = vpop.xlane.xlu1 %4892 }
 0xefb   : > { %10186 = vpow2.f32 %v4900_v29  ;;  %v4898_v18 = vsub.f32 %v4880_v36, %v4893_v40 }
 0xefd   : > { %v4902_v25 = vmul.f32 1.442695, %v4898_v18  ;;  %v14440_v18 = vld [vmem:[#allocation49_spill] sm:$0xff] }
 0xefe   : > { %v4896_v33 = vpop.xlane.xlu0 %4895 }
 0xeff   : > { %10188 = vpow2.f32 %v4902_v25  ;;  %v4899_v59 = vsub.f32 %v4885_v54, %v4896_v33  ;;  %v14441_v25 = vld [vmem:[#allocation42_spill] sm:$0xff] }
 0xf00   : > { %v14442_v33 = vpack.c.bf16 %v14440_v18, %v14441_v25  ;;  %v14455_v25 = vpack.c.bf16 %v13174_v0, %v13128_v55  ;;  %v14456_v0 = vpack.c.bf16 %v13131_v21, %v13162_v38  ;;  %v14457_v38 = vld [vmem:[#allocation54_spill] sm:$0xff] }
 0xf01   : > { %v4904_v32 = vmul.f32 1.442695, %v4899_v59  ;;  %v14443_v59 = vld [vmem:[#allocation47_spill] sm:$0xff]  ;;  %v14458_v21 = vpack.c.bf16 %v13165_v20, %v14457_v38  ;;  %v14462_v20 = vld [vmem:[#allocation52_spill] sm:$0xff] }
 0xf03   : > { %10190 = vpow2.f32 %v4904_v32  ;;  %v14444_v32 = vld [vmem:[#allocation26_spill] sm:$0xff] }
 0xf05   : > { %v10187_v35 = vpop.eup %10186 }
 0xf06   : > { %8819 = vmatmul.mubr.msk.f32.vlgmr.msra.gmra.mrb[124].mxu1 %vm2031_vm4, %v10187_v35 }
 0xf07   : > { %v5558_v57 = vpop.f32.mrb[92].mxu0  ;;  %9686 = vmatpush3.bf16.msra.mxu1 %v14435_v11  ;;  %8821 = vmatprep.mubr.msk.f32.mxu1 %vm10386_vm2, %v14278_v10  ;;  %v14447_v11 = vld [vmem:[#allocation46_spill] sm:$0xff] }
 0xf08   : > { %v13411_v34 = vadd.f32 %v13379_v63, %v5558_v57  ;;  %v8985_v7 = vpop.f32.mrb[93].mxu0  ;;  %9687 = vmatprep.subr.bf16.mxu1 %v14225_v19  ;;  %v14445_v57 = vpack.c.bf16 %v14443_v59, %v14444_v32 }
 0xf09   : > { %v10189_v36 = vpop.eup %10188  ;;  %v14448_v7 = vpack.c.bf16 %v14446_v50, %v14447_v11 }
 0xf0a   : > { %v5572_v54 = vsel %vm2031_vm4, %v13411_v34, -inf  ;;  %8822 = vmatmul.mubr.msk.f32.gmra.mrb[126].mxu1 %vm2031_vm4, %v10189_v36 }
 0xf0b   : > { %5573 = vmax.xlane.f32.xlu0 %v5572_v54  ;;  %v5563_v58 = vpop.f32.mrb[94].mxu0  ;;  %9689 = vmatpush3.bf16.msra.mxu1 %v14436_v61  ;;  %v14449_v54 = vld [vmem:[#allocation34_spill] sm:$0xff] }
 0xf0c   : > { %v13423_v3 = vadd.f32 %v13379_v63, %v5563_v58  ;;  %v8988_v39 = vpop.f32.mrb[95].mxu0  ;;  %8824 = vmatprep.mubr.msk.f32.mxu1 %vm10386_vm2, %v14278_v10  ;;  %9690 = vmatprep.subr.bf16.mxu1 %v14225_v19  ;;  %v14450_v58 = vld [vmem:[#allocation38_spill] sm:$0xff] }
 0xf0d   : > { %v10191_v37 = vpop.eup %10190  ;;  %v14451_v39 = vld [vmem:[#allocation39_spill] sm:$0xff] }
 0xf0e   : > { %v5575_v15 = vsel %vm2031_vm4, %v13423_v3, -inf  ;;  %8825 = vmatmul.mubr.msk.f32.gmra.mrb[128].mxu1 %vm2031_vm4, %v10191_v37 }
 0xf0f   : > { %5576 = vmax.xlane.f32.xlu1 %v5575_v15  ;;  %v5568_v23 = vpop.f32.mrb[96].mxu0  ;;  %9692 = vmatpush3.bf16.msra.mxu1 %v14439_v31  ;;  %v14453_v31 = vld [vmem:[#allocation30_spill] sm:$0xff] }
 0xf10   : > { %v13435_v8 = vadd.f32 %v13379_v63, %v5568_v23  ;;  %v8991_v29 = vpop.f32.mrb[97].mxu0  ;;  %8851 = vmatprep.mubr.msk.f32.mxu1 %vm10386_vm2, %v14278_v10  ;;  %9693 = vmatprep.subr.bf16.mxu1 %v14225_v19 }
 0xf12   : > { %v5578_v40 = vsel %vm2031_vm4, %v13435_v8, -inf }
 0xf13   : > { %5579 = vmax.xlane.f32.xlu0 %v5578_v40  ;;  %9695 = vmatpush3.bf16.msra.mxu1 %v14442_v33  ;;  %v14454_v40 = vld [vmem:[#allocation33_spill] sm:$0xff] }
 0xf14   : > { %9696 = vmatprep.subr.bf16.mxu1 %v14225_v19 }
 0xf17   : > { %9698 = vmatpush3.bf16.msra.mxu1 %v14445_v57 }
 0xf18   : > { %9699 = vmatprep.subr.bf16.mxu1 %v14225_v19 }
 0xf1b   : > { %9701 = vmatpush3.bf16.msra.mxu1 %v14448_v7 }
 0xf1c   : > { %9726 = vmatprep.subr.bf16.mxu1 %v14225_v19 }
 0xf1e   : > { %8852 = vmatmul.mubr.msk.f32.vlgmr.msra.gmra.mrb[130].mxu1 %vm2031_vm4, %v10187_v35 }
 0xf1f   : > { %9728 = vmatpush3.bf16.msra.mxu1 %v14449_v54  ;;  %8854 = vmatprep.mubr.msk.f32.mxu1 %vm10386_vm2, %v14278_v10 }
 0xf20   : > { %9729 = vmatprep.subr.bf16.mxu1 %v14225_v19 }
 0xf22   : > { %8855 = vmatmul.mubr.msk.f32.gmra.mrb[132].mxu1 %vm2031_vm4, %v10189_v36 }
 0xf23   : > { %9731 = vmatpush3.bf16.msra.mxu1 %v14450_v58  ;;  %8857 = vmatprep.mubr.msk.f32.mxu1 %vm10386_vm2, %v14278_v10 }
 0xf24   : > { %9732 = vmatprep.subr.bf16.mxu1 %v14225_v19 }
 0xf26   : > { %8858 = vmatmul.mubr.msk.f32.gmra.mrb[134].mxu1 %vm2031_vm4, %v10191_v37  ;;  %v5232_v61 = vpop.xlane.xlu1 %5231 }
 0xf27   : > { %v5239_v35 = vsub.f32 %v13392_v1, %v5232_v61  ;;  %9734 = vmatpush3.bf16.msra.mxu1 %v14451_v39  ;;  %8917 = vmatprep.mubr.msk.f32.mxu1 %vm10386_vm2, %v14278_v10 }
 0xf28   : > { %9735 = vmatprep.subr.bf16.mxu1 %v14225_v19 }
 0xf29   : > { %v5242_v36 = vmul.f32 1.442695, %v5239_v35 }
 0xf2a   : > { %v5235_v15 = vpop.xlane.xlu0 %5234 }
 0xf2b   : > { %10192 = vpow2.f32 %v5242_v36  ;;  %v5240_v23 = vsub.f32 %v13397_v45, %v5235_v15  ;;  %9737 = vmatpush3.bf16.msra.mxu1 %v14452_v56 }
 0xf2c   : > { %9738 = vmatprep.subr.bf16.mxu1 %v14225_v19 }
 0xf2d   : > { %v5244_v37 = vmul.f32 1.442695, %v5240_v23  ;;  %v14459_v23 = vld [vmem:[#allocation55_spill] sm:$0xff] }
 0xf2e   : > { %v5238_v13 = vpop.xlane.xlu1 %5237 }
 0xf2f   : > { %10194 = vpow2.f32 %v5244_v37  ;;  %v5241_v1 = vsub.f32 %v13402_v48, %v5238_v13  ;;  %9740 = vmatpush3.bf16.msra.mxu1 %v14453_v31  ;;  %v14460_v37 = vld [vmem:[#allocation28_spill] sm:$0xff] }
 0xf30   : > { %9741 = vmatprep.subr.bf16.mxu1 %v14225_v19  ;;  %v14461_v13 = vpack.c.bf16 %v14459_v23, %v14460_v37 }
 0xf31   : > { %v5246_v29 = vmul.f32 1.442695, %v5241_v1  ;;  %v14463_v1 = vld [vmem:[#allocation53_spill] sm:$0xff] }
 0xf33   : > { %10196 = vpow2.f32 %v5246_v29  ;;  %9743 = vmatpush3.bf16.msra.mxu1 %v14454_v40  ;;  %v14465_v29 = vld [vmem:[#allocation56_spill] sm:$0xff] }
 0xf34   : > { %9744 = vmatprep.subr.bf16.mxu1 %v14225_v19 }
 0xf35   : > { %v10193_v45 = vpop.eup %10192 }
 0xf36   : > { %8918 = vmatmul.mubr.msk.f32.vlgmr.msra.gmra.mrb[136].mxu1 %vm2031_vm4, %v10193_v45 }
 0xf37   : > { %v5900_v18 = vpop.f32.mrb[98].mxu0  ;;  %9746 = vmatpush3.bf16.msra.mxu1 %v14455_v25  ;;  %8920 = vmatprep.mubr.msk.f32.mxu1 %vm10386_vm2, %v14278_v10 }
 0xf38   : > { %v13483_v48 = vadd.f32 %v13379_v63, %v5900_v18  ;;  %v9084_v33 = vpop.f32.mrb[99].mxu0  ;;  %9747 = vmatprep.subr.bf16.mxu1 %v14225_v19  ;;  %v14466_v18 = vld [vmem:[#allocation58_spill] sm:$0xff] }
 0xf39   : > { %v10195_v59 = vpop.eup %10194  ;;  %v14467_v25 = vpack.c.bf16 %v14465_v29, %v14466_v18  ;;  %v7449_v33 = vld [vmem:[%s14026_s15 + $0x28] sm:$0xff] }
 0xf3a   : > { %v5914_v32 = vsel %vm2031_vm4, %v13483_v48, -inf  ;;  %8921 = vmatmul.mubr.msk.f32.gmra.mrb[138].mxu1 %vm2031_vm4, %v10195_v59 }
 0xf3b   : > { %5915 = vmax.xlane.f32.xlu1 %v5914_v32  ;;  %v5905_v57 = vpop.f32.mrb[100].mxu0  ;;  %9749 = vmatpush3.bf16.msra.mxu1 %v14456_v0  ;;  %v7450_v32 = vld [vmem:[%s14026_s15 + $0x30] sm:$0xff] }
 0xf3c   : > { %v13495_v55 = vadd.f32 %v13379_v63, %v5905_v57  ;;  %v9087_v50 = vpop.f32.mrb[101].mxu0  ;;  %8923 = vmatprep.mubr.msk.f32.mxu1 %vm10386_vm2, %v14278_v10  ;;  %9750 = vmatprep.subr.bf16.mxu1 %v14225_v19  ;;  %v7451_v57 = vld [vmem:[%s14026_s15 + $0x38] sm:$0xff] }
 0xf3d   : > { %v10197_v11 = vpop.eup %10196  ;;  %v9886_v0 = vpack.c.bf16 %v7451_v57, %v7450_v32 }
 0xf3e   : > { %v5917_v7 = vsel %vm2031_vm4, %v13495_v55, -inf  ;;  %8924 = vmatmul.mubr.msk.f32.gmra.mrb[140].mxu1 %vm2031_vm4, %v10197_v11 }
 0xf3f   : > { %5918 = vmax.xlane.f32.xlu0 %v5917_v7  ;;  %v5910_v61 = vpop.f32.mrb[102].mxu0  ;;  %9752 = vmatpush3.bf16.msra.mxu1 %v14458_v21 }
 0xf40   : > { %v13507_v35 = vadd.f32 %v13379_v63, %v5910_v61  ;;  %v9090_v36 = vpop.f32.mrb[103].mxu0  ;;  %8950 = vmatprep.mubr.msk.f32.mxu1 %vm10386_vm2, %v14278_v10  ;;  %9753 = vmatprep.subr.bf16.mxu1 %v14225_v19  ;;  %v14464_v63 = vpack.c.bf16 %v14462_v20, %v14463_v1  ;;  %v14469_v20 = vld [vmem:[#allocation57_spill] sm:$0xff] }
 0xf42   : > { %v5920_v15 = vsel %vm2031_vm4, %v13507_v35, -inf }
 0xf43   : > { %5921 = vmax.xlane.f32.xlu1 %v5920_v15  ;;  %9755 = vmatpush3.bf16.msra.mxu1 %v14461_v13  ;;  %v14468_v13 = vld [vmem:[#allocation62_spill] sm:$0xff] }
 0xf44   : > { %9756 = vmatprep.subr.bf16.mxu1 %v14225_v19  ;;  %v14470_v1 = vpack.c.bf16 %v14468_v13, %v14469_v20 }
 0xf47   : > { %9758 = vmatpush3.bf16.msra.mxu1 %v14464_v63 }
 0xf48   : > { %9759 = vmatprep.subr.bf16.mxu1 %v14225_v19 }
 0xf4b   : > { %9761 = vmatpush3.bf16.msra.mxu1 %v14467_v25 }
 0xf4c   : > { %9786 = vmatprep.subr.bf16.mxu1 %v14225_v19 }
 0xf4e   : > { %8951 = vmatmul.mubr.msk.f32.vlgmr.msra.gmra.mrb[142].mxu1 %vm2031_vm4, %v10193_v45  ;;  %v7448_v45 = vld [vmem:[%s14026_s15 + $0x20] sm:$0xff] }
 0xf4f   : > { %8953 = vmatprep.mubr.msk.f32.mxu1 %vm10386_vm2, %v14278_v10  ;;  %9788 = vmatpush3.bf16.msra.mxu1 %v14449_v54 }
 0xf50   : > { %9789 = vmatprep.subr.bf16.mxu1 %v14225_v19 }
 0xf52   : > { %8954 = vmatmul.mubr.msk.f32.gmra.mrb[144].mxu1 %vm2031_vm4, %v10195_v59  ;;  %v9882_v59 = vpack.c.bf16 %v7449_v33, %v7448_v45 }
 0xf53   : > { %8956 = vmatprep.mubr.msk.f32.mxu1 %vm10386_vm2, %v14278_v10  ;;  %9791 = vmatpush3.bf16.msra.mxu1 %v14450_v58 }
 0xf54   : > { %9792 = vmatprep.subr.bf16.mxu1 %v14225_v19  ;;  %9883 = vmatprep.subr.bf16.mxu0 %v9882_v59 }
 0xf55   : > { %9885 = vmatpush3.bf16.msra.mxu0 %v9882_v59 }
 0xf56   : > { %8957 = vmatmul.mubr.msk.f32.gmra.mrb[146].mxu1 %vm2031_vm4, %v10197_v11  ;;  %9887 = vmatprep.subr.bf16.mxu0 %v9886_v0 }
 0xf57   : > { %9794 = vmatpush3.bf16.msra.mxu1 %v14451_v39  ;;  %9016 = vmatprep.mubr.msk.f32.mxu1 %vm10386_vm2, %v14278_v10 }
 0xf58   : > { %9795 = vmatprep.subr.bf16.mxu1 %v14225_v19 }
 0xf59   : > { %9889 = vmatpush3.bf16.msra.mxu0 %v9886_v0 }
 0xf5b   : > { %9797 = vmatpush3.bf16.msra.mxu1 %v14452_v56 }
 0xf5c   : > { %9798 = vmatprep.subr.bf16.mxu1 %v14225_v19 }
 0xf5f   : > { %9800 = vmatpush3.bf16.msra.mxu1 %v14453_v31 }
 0xf60   : > { %9801 = vmatprep.subr.bf16.mxu1 %v14225_v19 }
 0xf63   : > { %9803 = vmatpush3.bf16.msra.mxu1 %v14454_v40 }
 0xf64   : > { %9804 = vmatprep.subr.bf16.mxu1 %v14225_v19 }
 0xf98   : > { %v5574_v50 = vpop.xlane.xlu0 %5573 }
 0xf99   : > { %v5581_v11 = vsub.f32 %v13411_v34, %v5574_v50 }
 0xf9b   : > { %v5584_v7 = vmul.f32 1.442695, %v5581_v11 }
 0xf9c   : > { %v5577_v61 = vpop.xlane.xlu1 %5576 }
 0xf9d   : > { %10198 = vpow2.f32 %v5584_v7  ;;  %v5582_v38 = vsub.f32 %v13423_v3, %v5577_v61 }
 0xf9f   : > { %v5586_v21 = vmul.f32 1.442695, %v5582_v38 }
 0xfa0   : > { %v5580_v36 = vpop.xlane.xlu0 %5579 }
 0xfa1   : > { %10200 = vpow2.f32 %v5586_v21  ;;  %v5583_v15 = vsub.f32 %v13435_v8, %v5580_v36  ;;  %v14471_v8 = vld [vmem:[#allocation63_spill] sm:$0xff] }
 0xfa2   : > { %v14473_v30 = vpack.c.bf16 %v14471_v8, %v14472_v44 }
 0xfa3   : > { %v5588_v23 = vmul.f32 1.442695, %v5583_v15 }
 0xfa5   : > { %10202 = vpow2.f32 %v5588_v23 }
 0xfa7   : > { %v10199_v37 = vpop.eup %10198 }
 0xfa8   : > { %9017 = vmatmul.mubr.msk.f32.vlgmr.msra.gmra.mrb[148].mxu1 %vm2031_vm4, %v10199_v37 }
 0xfa9   : > { %9806 = vmatpush3.bf16.msra.mxu1 %v14470_v1  ;;  %9019 = vmatprep.mubr.msk.f32.mxu1 %vm10386_vm2, %v14278_v10 }
 0xfaa   : > { %9807 = vmatprep.subr.bf16.mxu1 %v14225_v19 }
 0xfab   : > { %v10201_v34 = vpop.eup %10200 }
 0xfac   : > { %9020 = vmatmul.mubr.msk.f32.gmra.mrb[150].mxu1 %vm2031_vm4, %v10201_v34 }
 0xfad   : > { %9809 = vmatpush3.bf16.msra.mxu1 %v9808_v27  ;;  %9022 = vmatprep.mubr.msk.f32.mxu1 %vm10386_vm2, %v14278_v10 }
 0xfae   : > { %9810 = vmatprep.subr.bf16.mxu1 %v14225_v19 }
 0xfaf   : > { %v10203_v3 = vpop.eup %10202 }
 0xfb0   : > { %9023 = vmatmul.mubr.msk.f32.gmra.mrb[152].mxu1 %vm2031_vm4, %v10203_v3 }
 0xfb1   : > { %9812 = vmatpush3.bf16.msra.mxu1 %v9811_v49  ;;  %9049 = vmatprep.mubr.msk.f32.mxu1 %vm10386_vm2, %v14278_v10 }
 0xfb2   : > { %9813 = vmatprep.subr.bf16.mxu1 %v14225_v19 }
 0xfb5   : > { %9815 = vmatpush3.bf16.msra.mxu1 %v14473_v30 }
 0xfb6   : > { %9816 = vmatprep.subr.bf16.mxu1 %v14225_v19 }
 0xfb9   : > { %9818 = vmatpush3.bf16.msra.mxu1 %v9817_v22 }
 0xfba   : > { %9819 = vmatprep.subr.bf16.mxu1 %v14225_v19 }
 0xfbd   : > { %9821 = vmatpush3.bf16.msra.mxu1 %v14474_v14 }
 0xfbe   : > { %9846 = vmatprep.subr.bf16.mxu1 %v14225_v19 }
 0xfc0   : > { %9050 = vmatmul.mubr.msk.f32.vlgmr.msra.gmra.mrb[154].mxu1 %vm2031_vm4, %v10199_v37 }
 0xfc1   : > { %9848 = vmatpush3.bf16.msra.mxu1 %v14449_v54  ;;  %9052 = vmatprep.mubr.msk.f32.mxu1 %vm10386_vm2, %v14278_v10 }
 0xfc2   : > { %9849 = vmatprep.subr.bf16.mxu1 %v14225_v19 }
 0xfc4   : > { %9053 = vmatmul.mubr.msk.f32.gmra.mrb[156].mxu1 %vm2031_vm4, %v10201_v34 }
 0xfc5   : > { %9851 = vmatpush3.bf16.msra.mxu1 %v14450_v58  ;;  %9055 = vmatprep.mubr.msk.f32.mxu1 %vm10386_vm2, %v14278_v10 }
 0xfc6   : > { %9852 = vmatprep.subr.bf16.mxu1 %v14225_v19 }
 0xfc8   : > { %9056 = vmatmul.mubr.msk.f32.gmra.mrb[158].mxu1 %vm2031_vm4, %v10203_v3  ;;  %v5916_v43 = vpop.xlane.xlu1 %5915 }
 0xfc9   : > { %v5923_v51 = vsub.f32 %v13483_v48, %v5916_v43  ;;  %9854 = vmatpush3.bf16.msra.mxu1 %v14451_v39  ;;  %9115 = vmatprep.mubr.msk.f32.mxu1 %vm10386_vm2, %v14278_v10 }
 0xfca   : > { %9855 = vmatprep.subr.bf16.mxu1 %v14225_v19 }
 0xfcb   : > { %v5926_v4 = vmul.f32 1.442695, %v5923_v51 }
 0xfcc   : > { %v5919_v5 = vpop.xlane.xlu0 %5918 }
 0xfcd   : > { %10204 = vpow2.f32 %v5926_v4  ;;  %9857 = vmatpush3.bf16.msra.mxu1 %v14452_v56  ;;  %v5924_v47 = vsub.f32 %v13495_v55, %v5919_v5 }
 0xfce   : > { %9858 = vmatprep.subr.bf16.mxu1 %v14225_v19 }
 0xfcf   : > { %v5928_v27 = vmul.f32 1.442695, %v5924_v47 }
 0xfd0   : > { %v5922_v49 = vpop.xlane.xlu1 %5921 }
 0xfd1   : > { %10206 = vpow2.f32 %v5928_v27  ;;  %9860 = vmatpush3.bf16.msra.mxu1 %v14453_v31  ;;  %v5925_v22 = vsub.f32 %v13507_v35, %v5922_v49 }
 0xfd2   : > { %9861 = vmatprep.subr.bf16.mxu1 %v14225_v19 }
 0xfd3   : > { %v5930_v54 = vmul.f32 1.442695, %v5925_v22 }
 0xfd5   : > { %10208 = vpow2.f32 %v5930_v54  ;;  %9863 = vmatpush3.bf16.msra.mxu1 %v14454_v40 }
 0xfd6   : > { %9864 = vmatprep.subr.bf16.mxu1 %v14225_v19 }
 0xfd7   : > { %v10205_v58 = vpop.eup %10204 }
 0xfd8   : > { %9116 = vmatmul.mubr.msk.f32.vlgmr.msra.gmra.mrb[160].mxu1 %vm2031_vm4, %v10205_v58 }
 0xfd9   : > { %9866 = vmatpush3.bf16.msra.mxu1 %v9865_v9  ;;  %9118 = vmatprep.mubr.msk.f32.mxu1 %vm10386_vm2, %v14278_v10  ;;  %v4981_v39 = vpop.f32.mrb[124].mxu1 }
 0xfda   : > { %9867 = vmatprep.subr.bf16.mxu1 %v14225_v19  ;;  %v8820_v31 = vpop.f32.mrb[125].mxu1  ;;  %10210 = vrcp.f32 %v4981_v39 }
 0xfdb   : > { %v10207_v56 = vpop.eup %10206 }
 0xfdc   : > { %9119 = vmatmul.mubr.msk.f32.gmra.mrb[162].mxu1 %vm2031_vm4, %v10207_v56 }
 0xfdd   : > { %9869 = vmatpush3.bf16.msra.mxu1 %v9868_v42  ;;  %9121 = vmatprep.mubr.msk.f32.mxu1 %vm10386_vm2, %v14278_v10  ;;  %v4986_v40 = vpop.f32.mrb[126].mxu1 }
 0xfde   : > { %9870 = vmatprep.subr.bf16.mxu1 %v14225_v19  ;;  %v8823_v16 = vpop.f32.mrb[127].mxu1  ;;  %10212 = vrcp.f32 %v4986_v40 }
 0xfdf   : > { %v10209_v53 = vpop.eup %10208 }
 0xfe0   : > { %9122 = vmatmul.mubr.msk.f32.gmra.mrb[164].mxu1 %vm2031_vm4, %v10209_v53 }
 0xfe1   : > { %9872 = vmatpush3.bf16.msra.mxu1 %v9871_v6  ;;  %9148 = vmatprep.mubr.msk.f32.mxu1 %vm10386_vm2, %v14278_v10  ;;  %v4991_v9 = vpop.f32.mrb[128].mxu1 }
 0xfe2   : > { %9873 = vmatprep.subr.bf16.mxu1 %v14225_v19  ;;  %v8826_v26 = vpop.f32.mrb[129].mxu1  ;;  %10214 = vrcp.f32 %v4991_v9 }
 0xfe4   : > { %v10211_v28 = vpop.eup %10210 }
 0xfe5   : > { %9875 = vmatpush3.bf16.msra.mxu1 %v9874_v60 }
 0xfe6   : > { %9876 = vmatprep.subr.bf16.mxu1 %v14225_v19 }
 0xfe8   : > { %v10213_v12 = vpop.eup %10212 }
 0xfe9   : > { %9878 = vmatpush3.bf16.msra.mxu1 %v14475_v46 }
 0xfea   : > { %9879 = vmatprep.subr.bf16.mxu1 %v14225_v19 }
 0xfec   : > { %v10215_v6 = vpop.eup %10214 }
 0xfed   : > { %9881 = vmatpush3.bf16.msra.mxu1 %v14476_v41 }
 0xff0   : > { %9149 = vmatmul.mubr.msk.f32.vlgmr.msra.gmra.mrb[166].mxu1 %vm2031_vm4, %v10205_v58 }
 0xff1   : > { %9151 = vmatprep.mubr.msk.f32.mxu1 %vm10386_vm2, %v14278_v10  ;;  %v5061_v62 = vpop.f32.mrb[130].mxu1 }
 0xff2   : > { %v5076_v17 = vmul.f32 %v10211_v28, %v5061_v62  ;;  %v8853_v42 = vpop.f32.mrb[131].mxu1 }
 0xff4   : > { %9152 = vmatmul.mubr.msk.f32.gmra.mrb[168].mxu1 %vm2031_vm4, %v10207_v56  ;;  %9165 = vmatprep.mubr.msk.f32.mxu0 %vm1019_vm1, %v5076_v17 }
 0xff5   : > { %9154 = vmatprep.mubr.msk.f32.mxu1 %vm10386_vm2, %v14278_v10  ;;  %v5066_v24 = vpop.f32.mrb[132].mxu1 }
 0xff6   : > { %v5078_v52 = vmul.f32 %v10213_v12, %v5066_v24  ;;  %v8856_v2 = vpop.f32.mrb[133].mxu1  ;;  %v13672_v24 = vld [vmem:[%s14027_s16 + $0x1] ss:$0 sm:$0xff] }
 0xff8   : > { %9155 = vmatmul.mubr.msk.f32.gmra.mrb[170].mxu1 %vm2031_vm4, %v10209_v53  ;;  %9166 = vmatmul.mubr.msk.f32.vlgmr.msra.gmra.mrb[104].mxu0 %vm1019_vm1, %v5078_v52  ;;  %v14477_v52 = vld [vmem:[#allocation35_spill] sm:$0xff] }
 0xff9   : > { %v5071_v60 = vpop.f32.mrb[134].mxu1 }
 0xffa   : > { %v5080_v48 = vmul.f32 %v10215_v6, %v5071_v60  ;;  %v8859_v55 = vpop.f32.mrb[135].mxu1  ;;  %v14478_v60 = vld [vmem:[#allocation40_spill] sm:$0xff] }
 0xffc   : > { %9168 = vmatprep.mubr.msk.f32.mxu0 %vm1019_vm1, %v5080_v48 }
0x1009   : > { %v5323_v35 = vpop.f32.mrb[136].mxu1 }
0x100a   : > { %v8919_v63 = vpop.f32.mrb[137].mxu1  ;;  %10216 = vrcp.f32 %v5323_v35 }
0x100d   : > { %v5328_v29 = vpop.f32.mrb[138].mxu1 }
0x100e   : > { %v8922_v18 = vpop.f32.mrb[139].mxu1  ;;  %10218 = vrcp.f32 %v5328_v29 }
0x1011   : > { %v5333_v25 = vpop.f32.mrb[140].mxu1 }
0x1012   : > { %v8925_v45 = vpop.f32.mrb[141].mxu1  ;;  %10220 = vrcp.f32 %v5333_v25  ;;  %v14479_v25 = vld [vmem:[#allocation41_spill] sm:$0xff] }
0x1014   : > { %v10217_v33 = vpop.eup %10216 }
0x1018   : > { %v10219_v0 = vpop.eup %10218 }
0x101c   : > { %v10221_v61 = vpop.eup %10220 }
0x1021   : > { %v5403_v59 = vpop.f32.mrb[142].mxu1 }
0x1022   : > { %v5418_v32 = vmul.f32 %v10217_v33, %v5403_v59  ;;  %v8952_v57 = vpop.f32.mrb[143].mxu1  ;;  %v14480_v59 = vld [vmem:[#allocation32_spill] sm:$0xff] }
0x1024   : > { %9169 = vmatmul.mubr.msk.f32.gmra.mrb[106].mxu0 %vm1019_vm1, %v5418_v32 }
0x1025   : > { %v5408_v50 = vpop.f32.mrb[144].mxu1 }
0x1026   : > { %v5420_v11 = vmul.f32 %v10219_v0, %v5408_v50  ;;  %v8955_v7 = vpop.f32.mrb[145].mxu1 }
0x1028   : > { %9171 = vmatprep.mubr.msk.f32.mxu0 %vm1019_vm1, %v5420_v11 }
0x1029   : > { %v5413_v38 = vpop.f32.mrb[146].mxu1 }
0x102a   : > { %v5422_v21 = vmul.f32 %v10221_v61, %v5413_v38  ;;  %v8958_v36 = vpop.f32.mrb[147].mxu1  ;;  %v14481_v61 = vld [vmem:[#allocation25_spill] sm:$0xff] }
0x102b   : > { %v14482_v36 = vld [vmem:[#allocation48_spill] sm:$0xff] }
0x102c   : > { %9172 = vmatmul.mubr.msk.f32.gmra.mrb[108].mxu0 %vm1019_vm1, %v5422_v21 }
0x107b   : > { %v5665_v15 = vpop.f32.mrb[148].mxu1 }
0x107c   : > { %v9018_v23 = vpop.f32.mrb[149].mxu1  ;;  %10222 = vrcp.f32 %v5665_v15 }
0x107f   : > { %v5670_v37 = vpop.f32.mrb[150].mxu1 }
0x1080   : > { %v9021_v13 = vpop.f32.mrb[151].mxu1  ;;  %10224 = vrcp.f32 %v5670_v37 }
0x1083   : > { %v5675_v20 = vpop.f32.mrb[152].mxu1 }
0x1084   : > { %v9024_v1 = vpop.f32.mrb[153].mxu1  ;;  %10226 = vrcp.f32 %v5675_v20 }
0x1086   : > { %v10223_v34 = vpop.eup %10222 }
0x108a   : > { %v10225_v30 = vpop.eup %10224 }
0x108e   : > { %v10227_v4 = vpop.eup %10226 }
0x1093   : > { %v5745_v3 = vpop.f32.mrb[154].mxu1 }
0x1094   : > { %v5760_v8 = vmul.f32 %v10223_v34, %v5745_v3  ;;  %v9051_v44 = vpop.f32.mrb[155].mxu1  ;;  %v14483_v34 = vld [vmem:[#allocation36_spill] sm:$0xff] }
0x1095   : > { %v14484_v44 = vld [vmem:[#allocation24_spill] sm:$0xff] }
0x1096   : > { %9174 = vmatprep.mubr.msk.f32.mxu0 %vm1019_vm1, %v5760_v8 }
0x1097   : > { %v5750_v14 = vpop.f32.mrb[156].mxu1 }
0x1098   : > { %v5762_v43 = vmul.f32 %v10225_v30, %v5750_v14  ;;  %v9054_v51 = vpop.f32.mrb[157].mxu1 }
0x109a   : > { %9175 = vmatmul.mubr.msk.f32.gmra.mrb[110].mxu0 %vm1019_vm1, %v5762_v43 }
0x109b   : > { %v5755_v5 = vpop.f32.mrb[158].mxu1 }
0x109c   : > { %v5764_v47 = vmul.f32 %v10227_v4, %v5755_v5  ;;  %v9057_v27 = vpop.f32.mrb[159].mxu1 }
0x109e   : > { %9177 = vmatprep.mubr.msk.f32.mxu0 %vm1019_vm1, %v5764_v47 }
0x10ab   : > { %v6007_v49 = vpop.f32.mrb[160].mxu1 }
0x10ac   : > { %v9117_v22 = vpop.f32.mrb[161].mxu1  ;;  %10228 = vrcp.f32 %v6007_v49 }
0x10af   : > { %v6012_v54 = vpop.f32.mrb[162].mxu1 }
0x10b0   : > { %v9120_v58 = vpop.f32.mrb[163].mxu1  ;;  %10230 = vrcp.f32 %v6012_v54 }
0x10b3   : > { %v6017_v39 = vpop.f32.mrb[164].mxu1 }
0x10b4   : > { %v9123_v56 = vpop.f32.mrb[165].mxu1  ;;  %10232 = vrcp.f32 %v6017_v39 }
0x10b6   : > { %v10229_v31 = vpop.eup %10228 }
0x10ba   : > { %v10231_v9 = vpop.eup %10230 }
0x10be   : > { %v10233_v28 = vpop.eup %10232 }
0x10c3   : > { %v6087_v40 = vpop.f32.mrb[166].mxu1 }
0x10c4   : > { %v6102_v53 = vmul.f32 %v10229_v31, %v6087_v40  ;;  %v9150_v16 = vpop.f32.mrb[167].mxu1  ;;  %v14485_v31 = vld [vmem:[#allocation27_spill] sm:$0xff] }
0x10c6   : > { %9178 = vmatmul.mubr.msk.f32.gmra.mrb[112].mxu0 %vm1019_vm1, %v6102_v53 }
0x10c7   : > { %v6092_v26 = vpop.f32.mrb[168].mxu1 }
0x10c8   : > { %v6104_v46 = vmul.f32 %v10231_v9, %v6092_v26  ;;  %v9153_v41 = vpop.f32.mrb[169].mxu1 }
0x10ca   : > { %9180 = vmatprep.mubr.msk.f32.mxu0 %vm1019_vm1, %v6104_v46  ;;  %v14486_v46 = vld [vmem:[#allocation37_spill] sm:$0xff] }
0x10cb   : > { %v6097_v62 = vpop.f32.mrb[170].mxu1  ;;  %v9167_v12 = vpop.f32.mrb[104].mxu0 }
0x10cc   : > { %v6106_v17 = vmul.f32 %v10233_v28, %v6097_v62  ;;  %v9156_v42 = vpop.f32.mrb[171].mxu1  ;;  %v6274_v2 = vadd.f32 %v9167_v12, %v14477_v52  ;;  %v6214_v6 = vpop.f32.mrb[105].mxu0 }
0x10cd   : > { %v6273_v48 = vadd.f32 %v6214_v6, %v14478_v60 }
0x10ce   : > { %9181 = vmatmul.mubr.msk.f32.gmra.mrb[114].mxu0 %vm1019_vm1, %v6106_v17  ;;  %v6294_v55 = vadd.f32 %v13672_v24, %v6274_v2 }
0x10cf   : > { %v13679_v35 = vadd.f32 %v13672_v24, %v6273_v48 }
0x10d0   : > { %v6312_v63 = vsel %vm1019_vm1, %v6294_v55, 0.0 }
0x10d1   : > { %6313 = vadd.xlane.f32.xlu1 %v6312_v63  ;;  %v6309_v29 = vsel %vm1019_vm1, %v13679_v35, 0.0 }
0x10d2   : > { %6310 = vadd.xlane.f32.xlu0 %v6309_v29 }
0x10f7   : > { %v9170_v18 = vpop.f32.mrb[106].mxu0 }
0x10f8   : > { %v6276_v45 = vadd.f32 %v9170_v18, %v14479_v25  ;;  %v6224_v33 = vpop.f32.mrb[107].mxu0 }
0x10f9   : > { %v6275_v32 = vadd.f32 %v6224_v33, %v14480_v59 }
0x10fa   : > { %v13687_v57 = vadd.f32 %v13672_v24, %v6276_v45 }
0x10fb   : > { %v6295_v0 = vadd.f32 %v13672_v24, %v6275_v32 }
0x10fc   : > { %v6318_v50 = vsel %vm1019_vm1, %v13687_v57, 0.0 }
0x10fd   : > { %6319 = vadd.xlane.f32.xlu1 %v6318_v50  ;;  %v6315_v11 = vsel %vm1019_vm1, %v6295_v0, 0.0 }
0x10fe   : > { %6316 = vadd.xlane.f32.xlu0 %v6315_v11 }
0x10ff   : > { %v9173_v7 = vpop.f32.mrb[108].mxu0 }
0x1100   : > { %v6278_v38 = vadd.f32 %v9173_v7, %v14481_v61  ;;  %v6234_v21 = vpop.f32.mrb[109].mxu0 }
0x1101   : > { %v6277_v15 = vadd.f32 %v6234_v21, %v14482_v36  ;;  %v7470_v21 = vld [vmem:[%s14030_s19 + $0x20] sm:$0xff]  ;;  %v7471_v36 = vld [vmem:[%s14030_s19 + $0x28] sm:$0xff] }
0x1102   : > { %v6298_v23 = vadd.f32 %v13672_v24, %v6278_v38 }
0x1103   : > { %v6297_v37 = vadd.f32 %v13672_v24, %v6277_v15  ;;  %v9890_v15 = vpack.c.bf16 %v7471_v36, %v7470_v21  ;;  %v13803_v36 = vld [vmem:[%s14028_s17 + $0x1] ss:$0 sm:$0xff] }
0x1104   : > { %v6324_v13 = vsel %vm1019_vm1, %v6298_v23, 0.0 }
0x1105   : > { %6325 = vadd.xlane.f32.xlu1 %v6324_v13  ;;  %v6321_v20 = vsel %vm1019_vm1, %v6297_v37, 0.0  ;;  %9891 = vmatprep.subr.bf16.mxu1 %v9890_v15 }
0x1106   : > { %6322 = vadd.xlane.f32.xlu0 %v6321_v20  ;;  %9893 = vmatpush3.bf16.msra.mxu1 %v9890_v15 }
0x115e   : > { %v6314_v5 = vpop.xlane.xlu1 %6313 }
0x115f   : > { %v6311_v47 = vpop.xlane.xlu0 %6310  ;;  %v6346_v27 = vmul.f32 0.03125, %v6314_v5 }
0x1160   : > { %v6345_v49 = vmul.f32 0.03125, %v6311_v47 }
0x1161   : > { %v13711_v39 = vsub.f32 %v6294_v55, %v6346_v27 }
0x1162   : > { %v13715_v16 = vsub.f32 %v13679_v35, %v6345_v49 }
0x1163   : > { %v6370_v2 = vmul.f32 %v13711_v39, %v13711_v39 }
0x1164   : > { %v6369_v55 = vmul.f32 %v13715_v16, %v13715_v16 }
0x1165   : > { %v6384_v25 = vsel %vm1019_vm1, %v6370_v2, 0.0 }
0x1166   : > { %v6381_v59 = vsel %vm1019_vm1, %v6369_v55, 0.0 }
0x116d   : > { %v9176_v1 = vpop.f32.mrb[110].mxu0 }
0x116e   : > { %v6280_v3 = vadd.f32 %v9176_v1, %v14483_v34  ;;  %v6244_v8 = vpop.f32.mrb[111].mxu0 }
0x116f   : > { %v6279_v30 = vadd.f32 %v6244_v8, %v14484_v44 }
0x1170   : > { %v13702_v14 = vadd.f32 %v13672_v24, %v6280_v3 }
0x1171   : > { %v13705_v43 = vadd.f32 %v13672_v24, %v6279_v30 }
0x1172   : > { %v6330_v51 = vsel %vm1019_vm1, %v13702_v14, 0.0 }
0x1173   : > { %6331 = vadd.xlane.f32.xlu1 %v6330_v51  ;;  %v6327_v4 = vsel %vm1019_vm1, %v13705_v43, 0.0 }
0x1174   : > { %6328 = vadd.xlane.f32.xlu0 %v6327_v4 }
0x118a   : > { %v6320_v22 = vpop.xlane.xlu1 %6319 }
0x118b   : > { %v6317_v54 = vpop.xlane.xlu0 %6316  ;;  %v6348_v56 = vmul.f32 0.03125, %v6320_v22  ;;  %v14487_v22 = vld [vmem:[#allocation44_spill] sm:$0xff] }
0x118c   : > { %v6347_v9 = vmul.f32 0.03125, %v6317_v54 }
0x118d   : > { %v13723_v42 = vsub.f32 %v13687_v57, %v6348_v56  ;;  %v14488_v56 = vld [vmem:[#allocation45_spill] sm:$0xff] }
0x118e   : > { %v13729_v6 = vsub.f32 %v6295_v0, %v6347_v9 }
0x118f   : > { %v6372_v45 = vmul.f32 %v13723_v42, %v13723_v42 }
0x1190   : > { %v6371_v32 = vmul.f32 %v13729_v6, %v13729_v6 }
0x1191   : > { %v6390_v0 = vsel %vm1019_vm1, %v6372_v45, 0.0 }
0x1192   : > { %v6326_v26 = vpop.xlane.xlu1 %6325  ;;  %v6387_v11 = vsel %vm1019_vm1, %v6371_v32, 0.0 }
0x1193   : > { %v6323_v28 = vpop.xlane.xlu0 %6322  ;;  %v6350_v12 = vmul.f32 0.03125, %v6326_v26 }
0x1194   : > { %v6349_v60 = vmul.f32 0.03125, %v6323_v28 }
0x1195   : > { %v13734_v29 = vsub.f32 %v6298_v23, %v6350_v12  ;;  %v7472_v23 = vld [vmem:[%s14030_s19 + $0x30] sm:$0xff] }
0x1196   : > { %v13739_v33 = vsub.f32 %v6297_v37, %v6349_v60  ;;  %v7473_v37 = vld [vmem:[%s14030_s19 + $0x38] sm:$0xff] }
0x1197   : > { %v6374_v50 = vmul.f32 %v13734_v29, %v13734_v29  ;;  %v9894_v13 = vpack.c.bf16 %v7473_v37, %v7472_v23 }
0x1198   : > { %v6373_v7 = vmul.f32 %v13739_v33, %v13739_v33 }
0x1199   : > { %v9179_v58 = vpop.f32.mrb[112].mxu0  ;;  %v6396_v61 = vsel %vm1019_vm1, %v6374_v50, 0.0  ;;  %9895 = vmatprep.subr.bf16.mxu1 %v9894_v13 }
0x119a   : > { %v6282_v40 = vadd.f32 %v9179_v58, %v14485_v31  ;;  %v6254_v53 = vpop.f32.mrb[113].mxu0  ;;  %v6393_v38 = vsel %vm1019_vm1, %v6373_v7, 0.0  ;;  %9897 = vmatpush3.bf16.msra.mxu1 %v9894_v13  ;;  %v13810_v13 = vld [vmem:[%s14029_s18 + $0x1] ss:$0 sm:$0xff] }
0x119b   : > { %v6281_v41 = vadd.f32 %v6254_v53, %v14486_v46  ;;  %9930 = vmatprep.subr.bf16.mxu1 %v14225_v19 }
0x119c   : > { %v13719_v62 = vadd.f32 %v13672_v24, %v6282_v40 }
0x119d   : > { %v6301_v17 = vadd.f32 %v13672_v24, %v6281_v41 }
0x119e   : > { %v6336_v52 = vsel %vm1019_vm1, %v13719_v62, 0.0 }
0x119f   : > { %6337 = vadd.xlane.f32.xlu1 %v6336_v52  ;;  %v6333_v48 = vsel %vm1019_vm1, %v6301_v17, 0.0 }
0x11a0   : > { %6334 = vadd.xlane.f32.xlu0 %v6333_v48 }
0x11a1   : > { %v9182_v63 = vpop.f32.mrb[114].mxu0 }
0x11a2   : > { %v6264_v18 = vpop.f32.mrb[115].mxu0  ;;  %v6284_v54 = vadd.f32 %v9182_v63, %v14487_v22 }
0x11a3   : > { %6385 = vadd.xlane.f32.xlu1 %v6384_v25  ;;  %v6283_v31 = vadd.f32 %v6264_v18, %v14488_v56 }
0x11a4   : > { %6382 = vadd.xlane.f32.xlu0 %v6381_v59  ;;  %v13789_v12 = vadd.f32 %v13672_v24, %v6284_v54 }
0x11a5   : > { %v13793_v60 = vadd.f32 %v13672_v24, %v6283_v31 }
0x11a6   : > { %v6342_v59 = vsel %vm1019_vm1, %v13789_v12, 0.0 }
0x11a7   : > { %6391 = vadd.xlane.f32.xlu1 %v6390_v0  ;;  %v6339_v24 = vsel %vm1019_vm1, %v13793_v60, 0.0 }
0x11a8   : > { %6388 = vadd.xlane.f32.xlu0 %v6387_v11 }
0x11ab   : > { %6397 = vadd.xlane.f32.xlu1 %v6396_v61 }
0x11ac   : > { %6394 = vadd.xlane.f32.xlu0 %v6393_v38 }
0x1200   : > { %v6332_v20 = vpop.xlane.xlu1 %6331 }
0x1201   : > { %v6352_v1 = vmul.f32 0.03125, %v6332_v20  ;;  %v6329_v34 = vpop.xlane.xlu0 %6328 }
0x1202   : > { %v6351_v3 = vmul.f32 0.03125, %v6329_v34 }
0x1203   : > { %v13766_v8 = vsub.f32 %v13702_v14, %v6352_v1 }
0x1204   : > { %v13769_v44 = vsub.f32 %v13705_v43, %v6351_v3 }
0x1205   : > { %v6376_v30 = vmul.f32 %v13766_v8, %v13766_v8 }
0x1206   : > { %v6375_v51 = vmul.f32 %v13769_v44, %v13769_v44 }
0x1207   : > { %v6402_v4 = vsel %vm1019_vm1, %v6376_v30, 0.0 }
0x1208   : > { %6403 = vadd.xlane.f32.xlu1 %v6402_v4  ;;  %v6399_v5 = vsel %vm1019_vm1, %v6375_v51, 0.0 }
0x1209   : > { %6400 = vadd.xlane.f32.xlu0 %v6399_v5 }
0x122c   : > { %v6338_v47 = vpop.xlane.xlu1 %6337 }
0x122d   : > { %v6354_v27 = vmul.f32 0.03125, %v6338_v47  ;;  %v6335_v49 = vpop.xlane.xlu0 %6334 }
0x122e   : > { %v6353_v14 = vmul.f32 0.03125, %v6335_v49 }
0x122f   : > { %v13779_v58 = vsub.f32 %v13719_v62, %v6354_v27 }
0x1230   : > { %v13782_v40 = vsub.f32 %v6301_v17, %v6353_v14  ;;  %v6386_v53 = vpop.xlane.xlu1 %6385 }
0x1231   : > { %v6418_v9 = vmul.f32 0.03125, %v6386_v53  ;;  %v6383_v26 = vpop.xlane.xlu0 %6382  ;;  %v6378_v46 = vmul.f32 %v13779_v58, %v13779_v58 }
0x1232   : > { %v6417_v41 = vmul.f32 0.03125, %v6383_v26  ;;  %v6377_v28 = vmul.f32 %v13782_v40, %v13782_v40 }
0x1233   : > { %v6430_v52 = vadd.f32 1e-05, %v6418_v9  ;;  %v6408_v2 = vsel %vm1019_vm1, %v6378_v46, 0.0 }
0x1234   : > { %v6429_v17 = vadd.f32 1e-05, %v6417_v41  ;;  %6409 = vadd.xlane.f32.xlu1 %v6408_v2  ;;  %v6392_v48 = vpop.xlane.xlu1 %6391  ;;  %v6405_v55 = vsel %vm1019_vm1, %v6377_v28, 0.0  ;;  %v7500_v41 = vld [vmem:[%s14032_s21 + $0x80] sm:$0xff]  ;;  %v7501_v28 = vld [vmem:[%s14032_s21 + $0x88] sm:$0xff]  ;;  %v7502_v2 = vld [vmem:[%s14032_s21 + $0x90] sm:$0xff] }
0x1235   : > { %10234 = vrsqrt.f32 %v6430_v52  ;;  %v6420_v63 = vmul.f32 0.03125, %v6392_v48  ;;  %6406 = vadd.xlane.f32.xlu0 %v6405_v55  ;;  %v6389_v18 = vpop.xlane.xlu0 %6388  ;;  %v9898_v52 = vpack.c.bf16 %v7501_v28, %v7500_v41 }
0x1236   : > { %10236 = vrsqrt.f32 %v6429_v17  ;;  %v6419_v25 = vmul.f32 0.03125, %v6389_v18  ;;  %v7503_v17 = vld [vmem:[%s14032_s21 + $0x98] sm:$0xff] }
0x1237   : > { %v6432_v45 = vadd.f32 1e-05, %v6420_v63  ;;  %9899 = vmatprep.subr.bf16.mxu0 %v9898_v52  ;;  %v9902_v48 = vpack.c.bf16 %v7503_v17, %v7502_v2 }
0x1238   : > { %v6431_v32 = vadd.f32 1e-05, %v6419_v25  ;;  %v6398_v0 = vpop.xlane.xlu1 %6397  ;;  %6343 = vadd.xlane.f32.xlu1 %v6342_v59  ;;  %9901 = vmatpush3.bf16.msra.mxu0 %v9898_v52  ;;  %v7504_v25 = vld [vmem:[%s14032_s21 + $0xa0] sm:$0xff] }
0x1239   : > { %10238 = vrsqrt.f32 %v6432_v45  ;;  %v6422_v50 = vmul.f32 0.03125, %v6398_v0  ;;  %v6395_v11 = vpop.xlane.xlu0 %6394  ;;  %6340 = vadd.xlane.f32.xlu0 %v6339_v24  ;;  %9903 = vmatprep.subr.bf16.mxu0 %v9902_v48  ;;  %v7505_v45 = vld [vmem:[%s14032_s21 + $0xa8] sm:$0xff]  ;;  %v13913_v52 = vld [vmem:[%s14031_s20 + $0x1] ss:$0 sm:$0xff] }
0x123a   : > { %10240 = vrsqrt.f32 %v6431_v32  ;;  %v6421_v7 = vmul.f32 0.03125, %v6395_v11  ;;  %v9906_v32 = vpack.c.bf16 %v7505_v45, %v7504_v25 }
0x123b   : > { %v6434_v61 = vadd.f32 1e-05, %v6422_v50  ;;  %v7507_v50 = vld [vmem:[%s14032_s21 + $0xb8] sm:$0xff] }
0x123c   : > { %v6433_v38 = vadd.f32 1e-05, %v6421_v7  ;;  %9905 = vmatpush3.bf16.msra.mxu0 %v9902_v48 }
0x123d   : > { %10242 = vrsqrt.f32 %v6434_v61  ;;  %9907 = vmatprep.subr.bf16.mxu0 %v9906_v32  ;;  %v7508_v61 = vld [vmem:[%s14032_s21 + $0xc0] sm:$0xff] }
0x123e   : > { %10244 = vrsqrt.f32 %v6433_v38  ;;  %v7509_v38 = vld [vmem:[%s14032_s21 + $0xc8] sm:$0xff] }
0x123f   : > { %v10235_v21 = vpop.eup %10234 }
0x1240   : > { %v10237_v15 = vpop.eup %10236  ;;  %v6454_v23 = vmul.f32 %v10235_v21, %v13711_v39  ;;  %9909 = vmatpush3.bf16.msra.mxu0 %v9906_v32  ;;  %v9914_v21 = vpack.c.bf16 %v7509_v38, %v7508_v61 }
0x1241   : > { %v6453_v37 = vmul.f32 %v10237_v15, %v13715_v16  ;;  %v7510_v15 = vld [vmem:[%s14032_s21 + $0xd0] sm:$0xff] }
0x1242   : > { %v6472_v20 = vmul.f32 %v13803_v36, %v6454_v23  ;;  %v7511_v23 = vld [vmem:[%s14032_s21 + $0xd8] sm:$0xff] }
0x1243   : > { %v10239_v1 = vpop.eup %10238  ;;  %v6471_v34 = vmul.f32 %v13803_v36, %v6453_v37  ;;  %v9918_v37 = vpack.c.bf16 %v7511_v23, %v7510_v15 }
0x1244   : > { %v10241_v3 = vpop.eup %10240  ;;  %v6456_v30 = vmul.f32 %v10239_v1, %v13723_v42  ;;  %v6490_v39 = vadd.f32 %v13810_v13, %v6472_v20  ;;  %v7512_v20 = vld [vmem:[%s14032_s21 + $0xe0] sm:$0xff]  ;;  %v7513_v1 = vld [vmem:[%s14032_s21 + $0xe8] sm:$0xff] }
0x1245   : > { %v6489_v51 = vadd.f32 %v13810_v13, %v6471_v34  ;;  %v6455_v4 = vmul.f32 %v10241_v3, %v13729_v6  ;;  %v9922_v34 = vpack.c.bf16 %v7513_v1, %v7512_v20  ;;  %v7514_v3 = vld [vmem:[%s14032_s21 + $0xf0] sm:$0xff] }
0x1246   : > { %v6474_v16 = vmul.f32 %v13803_v36, %v6456_v30  ;;  %v7515_v30 = vld [vmem:[%s14032_s21 + $0xf8] sm:$0xff] }
0x1247   : > { %v10243_v5 = vpop.eup %10242  ;;  %9191 = vmatprep.mubr.msk.f32.mxu1 %vm1019_vm1, %v6489_v51  ;;  %v6473_v47 = vmul.f32 %v13803_v36, %v6455_v4  ;;  %v9926_v51 = vpack.c.bf16 %v7515_v30, %v7514_v3 }
0x1248   : > { %v10245_v27 = vpop.eup %10244  ;;  %9192 = vmatmul.mubr.msk.f32.vlgmr.msra.gmra.mrb[172].mxu1 %vm1019_vm1, %v6490_v39  ;;  %v6458_v49 = vmul.f32 %v10243_v5, %v13734_v29  ;;  %v6492_v6 = vadd.f32 %v13810_v13, %v6474_v16 }
0x1249   : > { %v6491_v42 = vadd.f32 %v13810_v13, %v6473_v47  ;;  %v6457_v14 = vmul.f32 %v10245_v27, %v13739_v33 }
0x124a   : > { %v6476_v22 = vmul.f32 %v13803_v36, %v6458_v49 }
0x124b   : > { %9194 = vmatprep.mubr.msk.f32.mxu1 %vm1019_vm1, %v6491_v42  ;;  %v6475_v54 = vmul.f32 %v13803_v36, %v6457_v14 }
0x124c   : > { %9195 = vmatmul.mubr.msk.f32.gmra.mrb[174].mxu1 %vm1019_vm1, %v6492_v6  ;;  %v6494_v31 = vadd.f32 %v13810_v13, %v6476_v22 }
0x124d   : > { %v6493_v56 = vadd.f32 %v13810_v13, %v6475_v54 }
0x124f   : > { %9197 = vmatprep.mubr.msk.f32.mxu1 %vm1019_vm1, %v6493_v56 }
0x1250   : > { %9198 = vmatmul.mubr.msk.f32.gmra.mrb[176].mxu1 %vm1019_vm1, %v6494_v31 }
0x1295   : > { %v6404_v29 = vpop.xlane.xlu1 %6403 }
0x1296   : > { %v6424_v33 = vmul.f32 0.03125, %v6404_v29  ;;  %v6401_v53 = vpop.xlane.xlu0 %6400 }
0x1297   : > { %v6423_v9 = vmul.f32 0.03125, %v6401_v53 }
0x1298   : > { %v6436_v26 = vadd.f32 1e-05, %v6424_v33 }
0x1299   : > { %v6435_v46 = vadd.f32 1e-05, %v6423_v9 }
0x129a   : > { %10246 = vrsqrt.f32 %v6436_v26 }
0x129b   : > { %10248 = vrsqrt.f32 %v6435_v46 }
0x12a4   : > { %v10247_v55 = vpop.eup %10246 }
0x12a5   : > { %v10249_v63 = vpop.eup %10248  ;;  %v6460_v18 = vmul.f32 %v10247_v55, %v13766_v8  ;;  %v7506_v8 = vld [vmem:[%s14032_s21 + $0xb0] sm:$0xff] }
0x12a6   : > { %v6459_v59 = vmul.f32 %v10249_v63, %v13769_v44  ;;  %v9910_v7 = vpack.c.bf16 %v7507_v50, %v7506_v8 }
0x12a7   : > { %v6478_v0 = vmul.f32 %v13803_v36, %v6460_v18 }
0x12a8   : > { %v6477_v24 = vmul.f32 %v13803_v36, %v6459_v59  ;;  %9911 = vmatprep.subr.bf16.mxu0 %v9910_v7 }
0x12a9   : > { %v6496_v44 = vadd.f32 %v13810_v13, %v6478_v0  ;;  %9913 = vmatpush3.bf16.msra.mxu0 %v9910_v7 }
0x12aa   : > { %v6495_v11 = vadd.f32 %v13810_v13, %v6477_v24  ;;  %9915 = vmatprep.subr.bf16.mxu0 %v9914_v21 }
0x12ac   : > { %9200 = vmatprep.mubr.msk.f32.mxu1 %vm1019_vm1, %v6495_v11 }
0x12ad   : > { %9201 = vmatmul.mubr.msk.f32.gmra.mrb[178].mxu1 %vm1019_vm1, %v6496_v44  ;;  %9917 = vmatpush3.bf16.msra.mxu0 %v9914_v21 }
0x12ae   : > { %9919 = vmatprep.subr.bf16.mxu0 %v9918_v37 }
0x12b1   : > { %9921 = vmatpush3.bf16.msra.mxu0 %v9918_v37 }
0x12b2   : > { %9923 = vmatprep.subr.bf16.mxu0 %v9922_v34 }
0x12b5   : > { %9925 = vmatpush3.bf16.msra.mxu0 %v9922_v34 }
0x12b6   : > { %9927 = vmatprep.subr.bf16.mxu0 %v9926_v51 }
0x12b9   : > { %9929 = vmatpush3.bf16.msra.mxu0 %v9926_v51 }
0x12c1   : > { %v6410_v4 = vpop.xlane.xlu1 %6409 }
0x12c2   : > { %v6426_v39 = vmul.f32 0.03125, %v6410_v4  ;;  %v6407_v16 = vpop.xlane.xlu0 %6406 }
0x12c3   : > { %v6425_v5 = vmul.f32 0.03125, %v6407_v16 }
0x12c4   : > { %v6438_v47 = vadd.f32 1e-05, %v6426_v39 }
0x12c5   : > { %v6437_v27 = vadd.f32 1e-05, %v6425_v5  ;;  %v6344_v49 = vpop.xlane.xlu1 %6343 }
0x12c6   : > { %10250 = vrsqrt.f32 %v6438_v47  ;;  %v6356_v42 = vmul.f32 0.03125, %v6344_v49  ;;  %v6341_v14 = vpop.xlane.xlu0 %6340 }
0x12c7   : > { %10252 = vrsqrt.f32 %v6437_v27  ;;  %v6355_v6 = vmul.f32 0.03125, %v6341_v14 }
0x12c8   : > { %v13891_v22 = vsub.f32 %v13789_v12, %v6356_v42 }
0x12c9   : > { %v13894_v54 = vsub.f32 %v13793_v60, %v6355_v6 }
0x12ca   : > { %v6380_v56 = vmul.f32 %v13891_v22, %v13891_v22 }
0x12cb   : > { %v6379_v31 = vmul.f32 %v13894_v54, %v13894_v54 }
0x12cc   : > { %v6414_v29 = vsel %vm1019_vm1, %v6380_v56, 0.0 }
0x12cd   : > { %6415 = vadd.xlane.f32.xlu1 %v6414_v29  ;;  %v6411_v33 = vsel %vm1019_vm1, %v6379_v31, 0.0 }
0x12ce   : > { %6412 = vadd.xlane.f32.xlu0 %v6411_v33 }
0x12d0   : > { %v10251_v53 = vpop.eup %10250 }
0x12d1   : > { %v10253_v9 = vpop.eup %10252  ;;  %v6462_v12 = vmul.f32 %v10251_v53, %v13779_v58 }
0x12d2   : > { %v6461_v26 = vmul.f32 %v10253_v9, %v13782_v40 }
0x12d3   : > { %v6480_v60 = vmul.f32 %v13803_v36, %v6462_v12 }
0x12d4   : > { %v6479_v46 = vmul.f32 %v13803_v36, %v6461_v26 }
0x12d5   : > { %v6498_v28 = vadd.f32 %v13810_v13, %v6480_v60 }
0x12d6   : > { %v6497_v41 = vadd.f32 %v13810_v13, %v6479_v46 }
0x12d8   : > { %9203 = vmatprep.mubr.msk.f32.mxu1 %vm1019_vm1, %v6497_v41 }
0x12d9   : > { %9204 = vmatmul.mubr.msk.f32.gmra.mrb[180].mxu1 %vm1019_vm1, %v6498_v28 }
0x131b   : > { %v9193_v58 = vpop.f32.mrb[172].mxu1 }
0x131c   : > { %v6622_v40 = vadd.f32 %v9193_v58, %v13913_v52  ;;  %v6616_v2 = vpop.f32.mrb[173].mxu1 }
0x131d   : > { %v6617_v17 = vadd.f32 %v13913_v52, %v6616_v2 }
0x131e   : > { %v7489_v48 = vmul.f32 -1.702, %v6622_v40 }
0x131f   : > { %v7488_v55 = vmul.f32 -1.702, %v6617_v17  ;;  %v9196_v63 = vpop.f32.mrb[174].mxu1 }
0x1320   : > { %v6701_v18 = vmul.f32 1.442695, %v7489_v48  ;;  %v6632_v25 = vadd.f32 %v9196_v63, %v13913_v52  ;;  %v6626_v45 = vpop.f32.mrb[175].mxu1 }
0x1321   : > { %v6699_v59 = vmul.f32 1.442695, %v7488_v55  ;;  %v6627_v32 = vadd.f32 %v13913_v52, %v6626_v45 }
0x1322   : > { %10254 = vpow2.f32 %v6701_v18  ;;  %v7491_v0 = vmul.f32 -1.702, %v6632_v25 }
0x1323   : > { %10256 = vpow2.f32 %v6699_v59  ;;  %v7490_v24 = vmul.f32 -1.702, %v6627_v32  ;;  %v9199_v8 = vpop.f32.mrb[176].mxu1 }
0x1324   : > { %v6705_v50 = vmul.f32 1.442695, %v7491_v0  ;;  %v6642_v11 = vadd.f32 %v9199_v8, %v13913_v52  ;;  %v6636_v7 = vpop.f32.mrb[177].mxu1 }
0x1325   : > { %v6703_v44 = vmul.f32 1.442695, %v7490_v24  ;;  %v6637_v61 = vadd.f32 %v13913_v52, %v6636_v7 }
0x1326   : > { %10258 = vpow2.f32 %v6705_v50  ;;  %v7493_v38 = vmul.f32 -1.702, %v6642_v11 }
0x1327   : > { %10260 = vpow2.f32 %v6703_v44  ;;  %v7492_v21 = vmul.f32 -1.702, %v6637_v61 }
0x1328   : > { %v6709_v15 = vmul.f32 1.442695, %v7493_v38 }
0x1329   : > { %v6707_v23 = vmul.f32 1.442695, %v7492_v21 }
0x132a   : > { %10262 = vpow2.f32 %v6709_v15 }
0x132b   : > { %10264 = vpow2.f32 %v6707_v23 }
0x132c   : > { %v10255_v37 = vpop.eup %10254 }
0x132d   : > { %v10257_v20 = vpop.eup %10256  ;;  %v6724_v1 = vadd.f32 1.0, %v10255_v37 }
0x132e   : > { %v6723_v34 = vadd.f32 1.0, %v10257_v20 }
0x132f   : > { %10266 = vrcp.f32 %v6724_v1 }
0x1330   : > { %v10259_v3 = vpop.eup %10258  ;;  %10268 = vrcp.f32 %v6723_v34 }
0x1331   : > { %v10261_v30 = vpop.eup %10260  ;;  %v6726_v51 = vadd.f32 1.0, %v10259_v3 }
0x1332   : > { %v6725_v4 = vadd.f32 1.0, %v10261_v30 }
0x1333   : > { %10270 = vrcp.f32 %v6726_v51 }
0x1334   : > { %v10263_v39 = vpop.eup %10262  ;;  %10272 = vrcp.f32 %v6725_v4 }
0x1335   : > { %v10265_v16 = vpop.eup %10264  ;;  %v6728_v5 = vadd.f32 1.0, %v10263_v39 }
0x1336   : > { %v6727_v47 = vadd.f32 1.0, %v10265_v16 }
0x1337   : > { %10274 = vrcp.f32 %v6728_v5 }
0x1338   : > { %10276 = vrcp.f32 %v6727_v47 }
0x1339   : > { %v10267_v27 = vpop.eup %10266 }
0x133a   : > { %v10269_v49 = vpop.eup %10268  ;;  %v6760_v14 = vmul.f32 %v10267_v27, %v6622_v40 }
0x133b   : > { %v6759_v42 = vmul.f32 %v10269_v49, %v6617_v17 }
0x133d   : > { %v10271_v6 = vpop.eup %10270  ;;  %9241 = vmatprep.mubr.f32.mxu0 %v6759_v42 }
0x133e   : > { %v10273_v56 = vpop.eup %10272  ;;  %9242 = vmatmul.mubr.f32.vlgmr.msra.gmra.mrb[116].mxu0 %v6760_v14  ;;  %v6762_v29 = vmul.f32 %v10271_v6, %v6632_v25 }
0x133f   : > { %v6761_v31 = vmul.f32 %v10273_v56, %v6627_v32 }
0x1341   : > { %v10275_v33 = vpop.eup %10274  ;;  %9244 = vmatprep.mubr.f32.mxu0 %v6761_v31  ;;  %v7517_v31 = vld [vmem:[%s14033_s22 + $0x1] ss:$0 sm:$0xff] }
0x1342   : > { %v10277_v53 = vpop.eup %10276  ;;  %9245 = vmatmul.mubr.f32.gmra.mrb[118].mxu0 %v6762_v29  ;;  %v6764_v12 = vmul.f32 %v10275_v33, %v6642_v11 }
0x1343   : > { %v6763_v9 = vmul.f32 %v10277_v53, %v6637_v61 }
0x1345   : > { %9247 = vmatprep.mubr.f32.mxu0 %v6763_v9 }
0x1346   : > { %9248 = vmatmul.mubr.f32.gmra.mrb[120].mxu0 %v6764_v12 }
0x135a   : > { %v6416_v26 = vpop.xlane.xlu1 %6415 }
0x135b   : > { %v6428_v60 = vmul.f32 0.03125, %v6416_v26  ;;  %v6413_v46 = vpop.xlane.xlu0 %6412 }
0x135c   : > { %v6427_v41 = vmul.f32 0.03125, %v6413_v46 }
0x135d   : > { %v6440_v28 = vadd.f32 1e-05, %v6428_v60 }
0x135e   : > { %v6439_v58 = vadd.f32 1e-05, %v6427_v41 }
0x135f   : > { %10278 = vrsqrt.f32 %v6440_v28 }
0x1360   : > { %10280 = vrsqrt.f32 %v6439_v58 }
0x1369   : > { %v10279_v40 = vpop.eup %10278 }
0x136a   : > { %v10281_v2 = vpop.eup %10280  ;;  %v6464_v17 = vmul.f32 %v10279_v40, %v13891_v22 }
0x136b   : > { %v6463_v48 = vmul.f32 %v10281_v2, %v13894_v54 }
0x136c   : > { %v6482_v55 = vmul.f32 %v13803_v36, %v6464_v17 }
0x136d   : > { %v6481_v63 = vmul.f32 %v13803_v36, %v6463_v48 }
0x136e   : > { %v6500_v25 = vadd.f32 %v13810_v13, %v6482_v55 }
0x136f   : > { %v6499_v18 = vadd.f32 %v13810_v13, %v6481_v63 }
0x1371   : > { %9206 = vmatprep.mubr.msk.f32.mxu1 %vm1019_vm1, %v6499_v18 }
0x1372   : > { %9207 = vmatmul.mubr.msk.f32.gmra.mrb[182].mxu1 %vm1019_vm1, %v6500_v25 }
0x1373   : > { %9267 = vmatprep.mubr.msk.f32.mxu1 %vm10386_vm2, %v14278_v10 }
0x1380   : > { %v9202_v45 = vpop.f32.mrb[178].mxu1 }
0x1381   : > { %v6652_v22 = vadd.f32 %v9202_v45, %v13913_v52  ;;  %v6646_v59 = vpop.f32.mrb[179].mxu1 }
0x1382   : > { %v6647_v54 = vadd.f32 %v13913_v52, %v6646_v59 }
0x1383   : > { %v7495_v32 = vmul.f32 -1.702, %v6652_v22 }
0x1384   : > { %v7494_v0 = vmul.f32 -1.702, %v6647_v54 }
0x1385   : > { %v6713_v36 = vmul.f32 1.442695, %v7495_v32 }
0x1386   : > { %v6711_v24 = vmul.f32 1.442695, %v7494_v0 }
0x1387   : > { %10282 = vpow2.f32 %v6713_v36 }
0x1388   : > { %10284 = vpow2.f32 %v6711_v24 }
0x1391   : > { %v10283_v13 = vpop.eup %10282 }
0x1392   : > { %v10285_v8 = vpop.eup %10284  ;;  %v6730_v50 = vadd.f32 1.0, %v10283_v13 }
0x1393   : > { %v6729_v11 = vadd.f32 1.0, %v10285_v8 }
0x1394   : > { %10286 = vrcp.f32 %v6730_v50 }
0x1395   : > { %10288 = vrcp.f32 %v6729_v11 }
0x139e   : > { %v10287_v7 = vpop.eup %10286 }
0x139f   : > { %v10289_v10 = vpop.eup %10288  ;;  %v6766_v61 = vmul.f32 %v10287_v7, %v6652_v22 }
0x13a0   : > { %v6765_v44 = vmul.f32 %v10289_v10, %v6647_v54  ;;  %v6966_v10 = vld [vmem:[%s14036_s25] sm:$0xff] }
0x13a2   : > { %9250 = vmatprep.mubr.f32.mxu0 %v6765_v44 }
0x13a3   : > { %9251 = vmatmul.mubr.f32.gmra.mrb[122].mxu0 %v6766_v61 }
0x13ac   : > { %v9205_v38 = vpop.f32.mrb[180].mxu1 }
0x13ad   : > { %v6662_v21 = vadd.f32 %v9205_v38, %v13913_v52  ;;  %v6656_v15 = vpop.f32.mrb[181].mxu1 }
0x13ae   : > { %v6657_v23 = vadd.f32 %v13913_v52, %v6656_v15 }
0x13af   : > { %v7497_v37 = vmul.f32 -1.702, %v6662_v21 }
0x13b0   : > { %v7496_v20 = vmul.f32 -1.702, %v6657_v23 }
0x13b1   : > { %v6717_v1 = vmul.f32 1.442695, %v7497_v37 }
0x13b2   : > { %v6715_v34 = vmul.f32 1.442695, %v7496_v20  ;;  %v6968_v20 = vld [vmem:[%s14036_s25 + $0x10] sm:$0xff] }
0x13b3   : > { %10290 = vpow2.f32 %v6717_v1  ;;  %v6969_v1 = vld [vmem:[%s14036_s25 + $0x18] sm:$0xff] }
0x13b4   : > { %10292 = vpow2.f32 %v6715_v34  ;;  %v9934_v34 = vpack.c.bf16 %v6969_v1, %v6968_v20 }
0x13bd   : > { %v10291_v3 = vpop.eup %10290 }
0x13be   : > { %v10293_v30 = vpop.eup %10292  ;;  %v6732_v51 = vadd.f32 1.0, %v10291_v3 }
0x13bf   : > { %v6731_v4 = vadd.f32 1.0, %v10293_v30 }
0x13c0   : > { %10294 = vrcp.f32 %v6732_v51 }
0x13c1   : > { %10296 = vrcp.f32 %v6731_v4  ;;  %v7518_v4 = vld [vmem:[%s14034_s23] ss:$0 sm:$0xff] }
0x13ca   : > { %v10295_v39 = vpop.eup %10294 }
0x13cb   : > { %v10297_v16 = vpop.eup %10296  ;;  %v6768_v47 = vmul.f32 %v10295_v39, %v6662_v21 }
0x13cc   : > { %v6767_v5 = vmul.f32 %v10297_v16, %v6657_v23  ;;  %v7519_v16 = vld [vmem:[%s14489_s27] ss:$0 sm:$0xff]  ;;  %s10325_s27 = sshll.u32 %s10388_s8, 4  ;;  %s10326_s27 = int_to_ptr.vmem [resolvable:$false] %s10325_s27 }
0x13cd   : > { %s10327_s9 = scalar_lea.vmem %s10326_s27, 128  ;;  %p10328_p0 = scmp.lt.s32.totalorder %s13971_s4, %s10326_s27 }
0x13ce   : > { %9253 = vmatprep.mubr.f32.mxu0 %v6767_v5  ;;  %p10329_p1 = scmp.lt.s32.totalorder %s10327_s9, %s10321_s10 }
0x13cf   : > { %9254 = vmatmul.mubr.f32.gmra.mrb[124].mxu0 %v6768_v47 }
0x13d0   : > { %p10330_p2 = por %p10329_p1, %p10328_p0 }
0x13d2   : > { %p10331_p3 = pnand %p10330_p2, %p10324_p13 }
0x1411   : > { %v9243_v27 = vpop.f32.mrb[116].mxu0 }
0x1412   : > { %v6854_v49 = vpop.f32.mrb[117].mxu0 }
0x1413   : > { %v6905_v14 = vadd.f32 %v6854_v49, %v13679_v35 }
0x1415   : > { %v9246_v42 = vpop.f32.mrb[118].mxu0  ;;  %v6917_v53 = vadd.f32 %v7517_v31, %v6905_v14 }
0x1416   : > { %v6906_v6 = vadd.f32 %v9246_v42, %v13687_v57  ;;  %v6863_v56 = vpop.f32.mrb[119].mxu0 }
0x1418   : > { %v6918_v29 = vadd.f32 %v7517_v31, %v6906_v6 }
0x1419   : > { %v9249_v33 = vpop.f32.mrb[120].mxu0 }
0x141a   : > { %v6922_v9 = vrot.slane %v6918_v29, 7  ;;  %v6872_v12 = vpop.f32.mrb[121].mxu0 }
0x141c   : > { %v6931_v26 = vsel %vm6930_vm5, %v6917_v53, %v6922_v9 }
0x1445   : > { %v9208_v60 = vpop.f32.mrb[182].mxu1 }
0x1446   : > { %v6672_v46 = vadd.f32 %v9208_v60, %v13913_v52  ;;  %v6666_v41 = vpop.f32.mrb[183].mxu1 }
0x1447   : > { %v6667_v35 = vadd.f32 %v13913_v52, %v6666_v41 }
0x1448   : > { %v7499_v28 = vmul.f32 -1.702, %v6672_v46 }
0x1449   : > { %v7498_v57 = vmul.f32 -1.702, %v6667_v35 }
0x144a   : > { %v6721_v58 = vmul.f32 1.442695, %v7499_v28 }
0x144b   : > { %v6719_v40 = vmul.f32 1.442695, %v7498_v57 }
0x144c   : > { %10298 = vpow2.f32 %v6721_v58 }
0x144d   : > { %10300 = vpow2.f32 %v6719_v40 }
0x1456   : > { %v10299_v2 = vpop.eup %10298 }
0x1457   : > { %v10301_v17 = vpop.eup %10300  ;;  %v6734_v48 = vadd.f32 1.0, %v10299_v2 }
0x1458   : > { %v6733_v55 = vadd.f32 1.0, %v10301_v17 }
0x1459   : > { %10302 = vrcp.f32 %v6734_v48 }
0x145a   : > { %10304 = vrcp.f32 %v6733_v55 }
0x1463   : > { %v10303_v63 = vpop.eup %10302 }
0x1464   : > { %v10305_v18 = vpop.eup %10304  ;;  %v6770_v45 = vmul.f32 %v10303_v63, %v6672_v46 }
0x1465   : > { %v6769_v25 = vmul.f32 %v10305_v18, %v6667_v35 }
0x1467   : > { %9256 = vmatprep.mubr.f32.mxu0 %v6769_v25 }
0x1468   : > { %9257 = vmatmul.mubr.f32.gmra.mrb[126].mxu0 %v6770_v45 }
0x1476   : > { %v9252_v22 = vpop.f32.mrb[122].mxu0 }
0x1477   : > { %v6880_v52 = vpop.f32.mrb[123].mxu0 }
0x1478   : > { %v6907_v59 = vadd.f32 %v6880_v52, %v13705_v43  ;;  %v6967_v43 = vld [vmem:[%s14036_s25 + $0x8] sm:$0xff] }
0x1479   : > { %v9931_v44 = vpack.c.bf16 %v6967_v43, %v6966_v10 }
0x147a   : > { %v6919_v54 = vadd.f32 %v7517_v31, %v6907_v59 }
0x147b   : > { %9932 = vmatpush3.bf16.msra.mxu1 %v9931_v44 }
0x147c   : > { %v6925_v32 = vrot.slane %v6919_v54, 6  ;;  %9933 = vmatprep.subr.bf16.mxu1 %v14225_v19 }
0x147e   : > { %v6933_v0 = vsel %vm6932_vm6, %v6931_v26, %v6925_v32 }
0x147f   : > { %9935 = vmatpush3.bf16.msra.mxu1 %v9934_v34 }
0x14a2   : > { %v9255_v36 = vpop.f32.mrb[124].mxu0 }
0x14a3   : > { %v6908_v24 = vadd.f32 %v9255_v36, %v13719_v62  ;;  %v6889_v13 = vpop.f32.mrb[125].mxu0 }
0x14a5   : > { %v6920_v8 = vadd.f32 %v7517_v31, %v6908_v24 }
0x14a7   : > { %v6928_v50 = vrot.slane %v6920_v8, 5 }
0x14a9   : > { %v6935_v11 = vsel %vm6934_vm7, %v6933_v0, %v6928_v50 }
0x14aa   : > { %v6939_v7 = vsel %vm6938_vm8, %v6935_v11, 0.0 }
0x14ab   : > { %6940 = vadd.xlane.f32.xlu0 %v6939_v7 }
0x1538   : > { %v6941_v62 = vpop.xlane.xlu0 %6940 }
0x1539   : > { %v6942_v61 = vmul.f32 0.03125, %v6941_v62 }
0x153b   : > { %v6943_v38 = vsub.f32 %v6935_v11, %v6942_v61  ;;  %v9258_v21 = vpop.f32.mrb[126].mxu0 }
0x153c   : > { %v6898_v15 = vpop.f32.mrb[127].mxu0 }
0x153d   : > { %v6944_v23 = vmul.f32 %v6943_v38, %v6943_v38 }
0x153f   : > { %v6945_v37 = vsel %vm6938_vm8, %v6944_v23, 0.0 }
0x1540   : > { %6946 = vadd.xlane.f32.xlu1 %v6945_v37 }
0x15cd   : > { %v6947_v19 = vpop.xlane.xlu1 %6946 }
0x15ce   : > { %v6948_v3 = vmul.f32 0.03125, %v6947_v19 }
0x15d0   : > { %v6949_v30 = vadd.f32 1e-05, %v6948_v3 }
0x15d2   : > { %10306 = vrsqrt.f32 %v6949_v30 }
0x15dc   : > { %v10307_v51 = vpop.eup %10306 }
0x15dd   : > { %v6951_v39 = vmul.f32 %v10307_v51, %v6943_v38 }
0x15df   : > { %v6958_v5 = vmul.f32 %v7518_v4, %v6951_v39 }
0x15e1   : > { %v6965_v47 = vadd.f32 %v7519_v16, %v6958_v5 }
0x15e3   : > { %9268 = vmatmul.mubr.msk.f32.vlgmr.msra.gmra.mrb[184].mxu1 %vm1019_vm1, %v6965_v47 }
0x16b6   : > { %v7039_v27 = vpop.f32.mrb[184].mxu1 }
0x16b7   : > { %7044 = vst.msk [vmem:[%s787_s0] sm:$0xf] %vm7043_vm9, %v7039_v27  ;;  %v9269_v49 = vpop.f32.mrb[185].mxu1 }
0x16b8   : > { %10334 = shalt.err (!%p10331_p3)
}
0x16b9   : > { %s10335_s0 = scalar_lea.hbm %s13969_s7, 64  ;;  %s10339_s24 = scalar_lea.hbm %s14491_s2, 128 }
0x16ba   : > { %p10336_p4 = scmp.ne.s32.totalorder %s13969_s7, %s10335_s0  ;;  %p10340_p9 = scmp.lt.u32.totalorder %s13969_s7, %s14491_s2 }
0x16bb   : > { %p10341_p10 = scmp.lt.u32.totalorder %s10339_s24, %s10335_s0  ;;  %p10343_p12 = scmp.lt.u32.totalorder %s10335_s0, %s13969_s7 }
0x16bc   : > { %p10337_p7 = pnand %p10336_p4, %p10562_p5 }
0x16bd   : > { %p10342_p11 = por %p10341_p10, %p10340_p9 }
0x16be   : > { %p10338_p8 = pneg %p10337_p7 }
0x16bf   : > { %p10344_p13 = por %p10343_p12, %p10342_p11 }
0x16c1   : > { %p10345_p0 = pnand %p10344_p13, %p10338_p8 }
0x16c3   : > { %10348 = shalt.err (!%p10345_p0)
}
0x16c4   : > { %9952 = dma.vmem_to_hbm [thread:$0]  (%p10562_p5), %s13971_s4, 64, %s13969_s7, %s7046_s28  }
0x16c5 PF: > { %s14492_s10 = sld [smem:[#allocation7_spill]]  ;;  %s14493_s27 = sld [smem:[#allocation5_spill]] }
0x16cb   : > { %p9958_p1 = scmp.ge.s32.totalorder %s14492_s10, 2  ;;  %s7071_s5 = sand.u32 1, %s14493_s27  }
0x16cc   : > { %s7072_s6 = scalar_lea.sflag [#allocation3], %s7071_s5 }
0x16cd   : > { %p9955_p2 = pnand %p9958_p1, %p10566_p6 }
0x16cf   : > { %10366 = dma.done.wait (!%p9955_p2), %s7072_s6, 64  }
0x16d0   : > { %10368 = vsyncadd (!%p9955_p2), %s7072_s6, 4294967232  ;;  %s14495_s28 = sld [smem:[#allocation8_spill]]  ;;  %s14496_s0 = sld [smem:[#allocation6_spill]] }
0x16d1   : > { %s14497_s7 = sld [smem:[#allocation9_spill]]  ;;  %s14498_s27 = smov %s10375_s3 }
0x16d6   : > { %p36_p3 = scmp.ge.s32.totalorder %s14495_s28, 4   ;;  %s14499_s3 = smov %s14496_s0 }
0x16d8   :  { %38 = sbr.rel (!%p36_p3) target bundleno = 17 (0x11), region = 175 }
0x16df   :  { %7077 = vsyncpa [#allocation3], 1 }
0x16e0   :  { %7079 = vsyncpa [#allocation3 + $0x1], 1 }

</bundles_post_ra>
